<compile_context>
chip_gen: v7x
topology: tpu7x:2x2x1
jax: 0.10.0
libtpu: 0.0.40
codegen_flags: <defaults>
</compile_context>

<pallas_src>
import math
from functools import partial

import jax
import jax.numpy as jnp
from jax.experimental import pallas as pl
from jax.experimental.pallas import tpu as pltpu

LANE = 128           # lane width: output channels padded to a multiple of this
ROW_TILE = 256       # max row tile for the fused MLP-chain kernel
CENTER_TILE = 128    # max centers per tile in the fused PointConv + max kernel
VMEM_LIMIT = 32 * 1024 * 1024   # explicit scoped-VMEM budget (safe on v5e/v6e/v7x)


def _round_up(v, m):
    return (v + m - 1) // m * m


# ----------------------------------------------------------------------------
# Pallas kernels
# ----------------------------------------------------------------------------
def _mlp_chain_kernel(*refs, n_layers, relu_flags):
    """Fused chain of Linear(+ReLU) layers; weights stay resident, intermediates in VMEM."""
    x_ref = refs[0]
    w_refs = [refs[1 + 2 * i] for i in range(n_layers)]
    b_refs = [refs[2 + 2 * i] for i in range(n_layers)]
    o_ref = refs[1 + 2 * n_layers]
    scratch = refs[2 + 2 * n_layers:]

    h = x_ref[...]                                   # bf16 tile
    for li in range(n_layers):
        z = jnp.dot(h, w_refs[li][...], preferred_element_type=jnp.float32)
        z = z + b_refs[li][...]
        if relu_flags[li]:
            z = jnp.maximum(z, 0.0)
        if li < n_layers - 1:
            scratch[li][...] = z.astype(jnp.bfloat16)
            h = scratch[li][...]
        else:
            o_ref[...] = z.astype(o_ref.dtype)


def mlp_chain(x, layers, relu_flags=None, out_dtype=jnp.bfloat16):
    """Apply a prepared [(W_bf16, b_f32), ...] chain as a single pallas_call.

    Returns (n_pad, cout_pad_last); padded columns are exactly zero, padded rows are
    garbage that callers slice off once per chain.
    """
    n_layers = len(layers)
    if relu_flags is None:
        relu_flags = (True,) * n_layers
    cin0 = layers[0][0].shape[0]
    couts = [w.shape[1] for (w, _) in layers]

    n = x.shape[0]
    tm = min(ROW_TILE, _round_up(n, 8))
    n_pad = _round_up(n, tm)
    pad_rows, pad_cols = n_pad - n, cin0 - x.shape[1]
    if pad_rows or pad_cols:
        x = jnp.pad(x, ((0, pad_rows), (0, pad_cols)))
    x = x.astype(jnp.bfloat16)

    in_specs = [pl.BlockSpec((tm, cin0), lambda i: (i, 0))]
    operands = [x]
    for (w, b) in layers:
        in_specs.append(pl.BlockSpec(w.shape, lambda i: (0, 0)))   # resident weights
        in_specs.append(pl.BlockSpec((1, b.shape[1]), lambda i: (0, 0)))
        operands += [w, b]

    out = pl.pallas_call(
        partial(_mlp_chain_kernel, n_layers=n_layers, relu_flags=tuple(relu_flags)),
        out_shape=jax.ShapeDtypeStruct((n_pad, couts[-1]), out_dtype),
        grid=(n_pad // tm,),
        in_specs=in_specs,
        out_specs=pl.BlockSpec((tm, couts[-1]), lambda i: (i, 0)),
        scratch_shapes=[pltpu.VMEM((tm, c), jnp.bfloat16) for c in couts[:-1]],
        compiler_params=pltpu.CompilerParams(
            dimension_semantics=("parallel",),
            vmem_limit_bytes=VMEM_LIMIT),
    )(*operands)
    return out


def _pointconv_last_kernel(msg_ref, w_ref, b_ref, o_ref, acc_ref, *, relu):
    """Fused last-SA-layer + max aggregation with a chunked K reduction.

    msg_ref: (1, kc*tmc, cin) -- kc neighbor slabs of tmc centers stacked along rows.
    One full-height MXU matmul per grid step, then a VALU max over the kc slabs,
    then max into the per-center-tile f32 accumulator.
    """
    tmc = o_ref.shape[0]
    kc = msg_ref.shape[1] // tmc

    h = jnp.dot(msg_ref[0], w_ref[...], preferred_element_type=jnp.float32)
    h = h + b_ref[...]
    if relu:
        h = jnp.maximum(h, 0.0)

    hmax = h[:tmc]
    for j in range(1, kc):
        hmax = jnp.maximum(hmax, h[j * tmc:(j + 1) * tmc])

    kk = pl.program_id(1)

    @pl.when(kk == 0)
    def _():
        acc_ref[...] = jnp.full(acc_ref.shape, -jnp.inf, acc_ref.dtype)

    acc_ref[...] = jnp.maximum(acc_ref[...], hmax)

    @pl.when(kk == pl.num_programs(1) - 1)
    def _():
        o_ref[...] = acc_ref[...].astype(o_ref.dtype)


def pointconv_last(h3d, w, b, *, kc, tmc, relu=True, out_dtype=jnp.bfloat16):
    """h3d: (m_tiles, K_pad*tmc, cin) grouped messages -> (m_tiles*tmc, cout_pad)."""
    m_tiles, rows, cin = h3d.shape
    K_pad = rows // tmc
    cout_pad = w.shape[1]
    out = pl.pallas_call(
        partial(_pointconv_last_kernel, relu=relu),
        out_shape=jax.ShapeDtypeStruct((m_tiles * tmc, cout_pad), out_dtype),
        grid=(m_tiles, K_pad // kc),
        in_specs=[
            pl.BlockSpec((1, kc * tmc, cin), lambda i, k: (i, k, 0)),
            pl.BlockSpec(w.shape, lambda i, k: (0, 0)),
            pl.BlockSpec((1, cout_pad), lambda i, k: (0, 0)),
        ],
        out_specs=pl.BlockSpec((tmc, cout_pad), lambda i, k: (i, 0)),
        scratch_shapes=[pltpu.VMEM((tmc, cout_pad), jnp.float32)],
        compiler_params=pltpu.CompilerParams(
            dimension_semantics=("parallel", "arbitrary"),
            vmem_limit_bytes=VMEM_LIMIT),
    )(h3d, w, b)
    return out


def _linear_rowmax_kernel(x_ref, w_ref, b_ref, o_ref, acc_ref, *, relu, n_valid):
    """Last global-SA layer fused with the global max pool (masked rows -> -inf)."""
    i = pl.program_id(0)
    tm = x_ref.shape[0]
    h = jnp.dot(x_ref[...], w_ref[...], preferred_element_type=jnp.float32)
    h = h + b_ref[...]
    if relu:
        h = jnp.maximum(h, 0.0)
    row = jax.lax.broadcasted_iota(jnp.int32, h.shape, 0) + i * tm
    h = jnp.where(row < n_valid, h, -jnp.inf)

    @pl.when(i == 0)
    def _():
        acc_ref[...] = jnp.full(acc_ref.shape, -jnp.inf, acc_ref.dtype)

    acc_ref[...] = jnp.maximum(acc_ref[...], jnp.max(h, axis=0, keepdims=True))

    @pl.when(i == pl.num_programs(0) - 1)
    def _():
        o_ref[...] = acc_ref[...].astype(o_ref.dtype)


def linear_rowmax(x, w, b, *, n_valid, relu=True, out_dtype=jnp.bfloat16):
    n, cin = x.shape
    cout_pad = w.shape[1]
    tm = min(ROW_TILE, _round_up(n, 8))
    n_pad = _round_up(n, tm)
    if n_pad != n:
        x = jnp.pad(x, ((0, n_pad - n), (0, 0)))
    x = x.astype(jnp.bfloat16)
    out = pl.pallas_call(
        partial(_linear_rowmax_kernel, relu=relu, n_valid=n_valid),
        out_shape=jax.ShapeDtypeStruct((1, cout_pad), out_dtype),
        grid=(n_pad // tm,),
        in_specs=[
            pl.BlockSpec((tm, cin), lambda i: (i, 0)),
            pl.BlockSpec(w.shape, lambda i: (0, 0)),
            pl.BlockSpec((1, cout_pad), lambda i: (0, 0)),
        ],
        out_specs=pl.BlockSpec((1, cout_pad), lambda i: (0, 0)),
        scratch_shapes=[pltpu.VMEM((1, cout_pad), jnp.float32)],
        compiler_params=pltpu.CompilerParams(
            dimension_semantics=("arbitrary",),
            vmem_limit_bytes=VMEM_LIMIT),
    )(x, w, b)
    return out


# ----------------------------------------------------------------------------
# Parameter init (deterministic synthetic weights) + one-time pad/cast at init
# ----------------------------------------------------------------------------
def init_mlp(key, channels, bn_eps=1e-5):
    layers = []
    # eval-mode BN (running_mean=0, running_var=1, gamma=1, beta=0):
    #   y = relu(z) * scale + shift, scale = 1/sqrt(1+eps) > 0, shift = 0.
    # scale > 0 => relu(z)*scale == relu(z*scale): fold scale into (W, b); drop shift.
    scale = 1.0 / math.sqrt(1.0 + bn_eps)
    for i in range(1, len(channels)):
        cin, cout = channels[i - 1], channels[i]
        key, k1 = jax.random.split(key)
        w = jax.random.normal(k1, (cin, cout), jnp.float32) * (1.0 / math.sqrt(cin))
        b = jnp.zeros((cout,), jnp.float32)
        layers.append((w * scale, b * scale))
    return key, layers


def init_linear(key, cin, cout):
    key, k1, k2 = jax.random.split(key, 3)
    w = jax.random.normal(k1, (cin, cout), jnp.float32) * (1.0 / math.sqrt(cin))
    b = jax.random.normal(k2, (cout,), jnp.float32) * 0.01
    return key, (w, b)


def init_raw_params(key):
    raw = {}
    pos_dim, feat_dim = 3, 4
    sa1, sa2, sa3, sa4 = 64, 128, 256, 256
    key, raw["sa1"] = init_mlp(key, [pos_dim + feat_dim, sa1, sa1, sa2])
    key, raw["sa2"] = init_mlp(key, [pos_dim + sa2, sa2, sa2, sa3])
    key, raw["sa3"] = init_mlp(key, [pos_dim + sa3, sa3, sa3, sa4])
    key, raw["sa4"] = init_mlp(key, [pos_dim + sa4, sa4, 512, 1024])
    key, raw["fp3"] = init_mlp(key, [1024 + sa4, sa4, sa4])
    key, raw["fp2"] = init_mlp(key, [sa4 + sa3, sa4, sa3])
    key, raw["fp1"] = init_mlp(key, [sa3 + sa2, sa3, sa2])
    key, raw["fp0"] = init_mlp(key, [sa2 + feat_dim, sa2, 64])
    key, raw["lin1"] = init_linear(key, 64, 64)
    key, raw["lin2"] = init_linear(key, 64, 64)
    key, raw["lin3"] = init_linear(key, 64, 1)
    return raw


def prepare_chain(layers, cin0):
    """One-time lane-dense pad (cout -> x128) + zero-row pad (cin) + bf16 cast."""
    prep = []
    cin = cin0
    for (w, b) in layers:
        cout = w.shape[1]
        cout_pad = _round_up(cout, LANE)
        wp = jnp.zeros((cin, cout_pad), jnp.float32).at[: w.shape[0], :cout].set(w)
        bp = jnp.zeros((1, cout_pad), jnp.float32).at[:, :cout].set(b[None, :])
        prep.append((wp.astype(jnp.bfloat16), bp))
        cin = cout_pad
    return prep


def prepare_params(raw):
    pos_dim, feat_dim = 3, 4

    def sa(name, cin0):
        chain = prepare_chain(raw[name][:-1], cin0)
        mid_pad = chain[-1][0].shape[1]
        last = prepare_chain(raw[name][-1:], mid_pad)[0]
        return {"chain": chain, "last": last}

    return {
        "sa1": sa("sa1", feat_dim + pos_dim),
        "sa2": sa("sa2", 128 + pos_dim),
        "sa3": sa("sa3", 256 + pos_dim),
        "sa4": sa("sa4", 256 + pos_dim),
        "fp3": prepare_chain(raw["fp3"], 1024 + 256),
        "fp2": prepare_chain(raw["fp2"], 256 + 256),
        "fp1": prepare_chain(raw["fp1"], 256 + 128),
        "fp0": prepare_chain(raw["fp0"], 128 + feat_dim),
        # head: lin1 (+ReLU) and lin2 fused in one chain; input is the 128-padded fp0 out
        "head": prepare_chain([raw["lin1"], raw["lin2"]], 128),
        "lin3": raw["lin3"],
    }


# ----------------------------------------------------------------------------
# Plain-JAX glue: irregular index selection (single graph in the batch)
# ----------------------------------------------------------------------------
def fps(pos, m):
    """Farthest point sampling (deterministic start at point 0)."""
    N = pos.shape[0]
    idx0 = jnp.zeros((m,), jnp.int32)
    dist0 = jnp.full((N,), jnp.inf, jnp.float32)
    if m == 1:
        return idx0

    def body(i, state):
        idx, dist = state
        last = idx[i - 1]
        d = jnp.sum((pos - pos[last]) ** 2, axis=-1)
        dist = jnp.minimum(dist, d)
        nxt = jnp.argmax(dist).astype(jnp.int32)
        return idx.at[i].set(nxt), dist

    idx, _ = jax.lax.fori_loop(1, m, body, (idx0, dist0))
    return idx


def radius_neighbors(pos_all, centers, r, K):
    """Up to K neighbors within radius r for each center (nearest-first)."""
    d2 = jnp.sum((centers[:, None, :] - pos_all[None, :, :]) ** 2, axis=-1)  # (M, N)
    d2m = jnp.where(d2 <= r * r, d2, jnp.inf)
    vals, idx = jax.lax.top_k(-d2m, K)
    valid = vals > -jnp.inf
    return idx, valid


def knn_interpolate(x_src, pos_src, pos_tgt, k):
    """Inverse-squared-distance weighted kNN interpolation (PyG semantics)."""
    k = min(k, pos_src.shape[0])
    d2 = jnp.sum((pos_tgt[:, None, :] - pos_src[None, :, :]) ** 2, axis=-1)
    neg, idx = jax.lax.top_k(-d2, k)
    w = 1.0 / jnp.maximum(-neg, 1e-16)
    feats = x_src[idx]
    return jnp.sum(feats * w[:, :, None], axis=1) / jnp.sum(w, axis=1, keepdims=True)


# ----------------------------------------------------------------------------
# Modules
# ----------------------------------------------------------------------------
def sa_module(x, pos, ratio, r, prep):
    N = pos.shape[0]
    m = int(math.ceil(ratio * N))
    idx = fps(pos, m)
    K = min(64, N)
    nbr_idx, valid = radius_neighbors(pos, pos[idx], r, K)     # (m, K)
    # Out-of-radius slots gather the center's own index; the center is always its own
    # nearest in-radius neighbor, so the duplicate is max-neutral -> no validity mask.
    nbr_idx = jnp.where(valid, nbr_idx, idx[:, None])

    # Static tile geometry: split centers so the parallel axis has >=2 steps when
    # possible (v7x dual TC), and pick kc so each matmul is ~256 rows tall.
    m8 = _round_up(m, 8)
    tmc = min(CENTER_TILE, _round_up((m8 + 1) // 2, 8)) if m8 >= 16 else m8
    m_pad = _round_up(m, tmc)
    kc = max(1, min(K, max(1, 256 // tmc)))
    K_pad = _round_up(K, kc)

    # Pad m and K once BEFORE building messages (edge pads are max-neutral duplicates;
    # padded center rows are sliced off at the end).
    if m_pad != m or K_pad != K:
        nbr_idx = jnp.pad(nbr_idx, ((0, m_pad - m), (0, K_pad - K)), mode="edge")
    idx_pad = jnp.pad(idx, (0, m_pad - m), mode="edge") if m_pad != m else idx

    # Group indices as (m_tiles, K_pad, tmc) so the fused kernel sees contiguous
    # (kc*tmc, cin) row blocks without any in-kernel reshape.
    m_tiles = m_pad // tmc
    nbr_g = nbr_idx.reshape(m_tiles, tmc, K_pad).transpose(0, 2, 1)   # (m_tiles, K_pad, tmc)
    ctr_g = idx_pad.reshape(m_tiles, tmc)

    x_j = x[nbr_g].astype(jnp.float32)                          # (m_tiles, K_pad, tmc, C)
    rel = pos[nbr_g] - pos[ctr_g][:, None, :, :]                # (m_tiles, K_pad, tmc, 3)
    msg = jnp.concatenate([x_j, rel], axis=-1)
    cin0 = msg.shape[-1]

    # All but the last MLP layer: one fused chain over the flattened messages.
    n_rows = m_tiles * K_pad * tmc
    h = mlp_chain(msg.reshape(n_rows, cin0), prep["chain"])
    if h.shape[0] != n_rows:
        h = h[:n_rows]
    h3 = h.reshape(m_tiles, K_pad * tmc, h.shape[1])

    # Last layer fused with the max aggregation (chunked K reduction).
    w_last, b_last = prep["last"]
    out = pointconv_last(h3, w_last, b_last, kc=kc, tmc=tmc)    # (m_pad, cout_pad)
    return out[:m], pos[idx]                                    # SA couts are already x128


def global_sa_module(x, pos, prep):
    N = pos.shape[0]
    xin = jnp.concatenate([x.astype(jnp.float32), pos.astype(jnp.float32)], axis=-1)
    h = mlp_chain(xin, prep["chain"])                           # (N_pad, 512)
    w_last, b_last = prep["last"]
    pooled = linear_rowmax(h, w_last, b_last, n_valid=N)        # fused 1024-layer + max pool
    return pooled, jnp.zeros((1, 3), jnp.float32)


def fp_module(x, pos, x_skip, pos_skip, k, prep_chain):
    """FPModule: knn_interpolate -> concat skip -> shared MLP (one fused chain kernel)."""
    xi = knn_interpolate(x.astype(jnp.float32), pos, pos_skip, k)
    if x_skip is not None:
        xi = jnp.concatenate([xi, x_skip.astype(jnp.float32)], axis=-1)
    h = mlp_chain(xi, prep_chain)
    return h[: pos_skip.shape[0]], pos_skip                     # keep lane-dense columns


# ----------------------------------------------------------------------------
# Full forward
# ----------------------------------------------------------------------------
@jax.jit
def pointnet_forward(prep, x_feat, xgb_score, pos):
    cut_point = 0.00394
    mask = xgb_score > cut_point
    # TODO(synk): dynamic boolean masking (x[mask]) needs data-dependent shapes; the
    # synthetic inputs are constructed so every point passes the cut (mask all-True).
    x0 = jnp.concatenate([x_feat, xgb_score[:, None]], axis=1)   # (N, 4)
    pos0 = pos
    N = pos0.shape[0]

    x1, pos1 = sa_module(x0, pos0, 0.5, 7.0, prep["sa1"])
    x2, pos2 = sa_module(x1, pos1, 0.4, 16.0, prep["sa2"])
    x3, pos3 = sa_module(x2, pos2, 0.4, 30.0, prep["sa3"])
    x4, pos4 = global_sa_module(x3, pos3, prep["sa4"])

    f3, p3 = fp_module(x4, pos4, x3, pos3, 1, prep["fp3"])
    f2, p2 = fp_module(f3, p3, x2, pos2, 3, prep["fp2"])
    f1, p1 = fp_module(f2, p2, x1, pos1, 3, prep["fp1"])
    f0, _ = fp_module(f1, p1, x0, pos0, 3, prep["fp0"])

    # Head: lin1(+ReLU) and lin2 fused in one chain; dropout(p=0.5) = identity in eval.
    h = mlp_chain(f0, prep["head"], relu_flags=(True, False))    # (N_pad, 128), cols 64.. zero
    # cout=1 head stays in plain XLA (a 1-lane-wide Pallas output is 1/128 lane util).
    w3, b3 = prep["lin3"]
    logits = jnp.dot(h[:N, :64].astype(jnp.float32), w3) + b3    # (N, 1)

    out = jnp.where(mask, logits[:, 0], 0.0)   # out = zeros; out[mask] = x.squeeze()
    return jax.nn.sigmoid(out)                 # sigmoid applied after the scatter


# ----------------------------------------------------------------------------
if __name__ == "__main__":
    key = jax.random.PRNGKey(0)
    N = 64
    key, kx, kp, ks = jax.random.split(key, 4)
    x_feat = jax.random.normal(kx, (N, 3), jnp.float32)                      # data.x
    pos = jax.random.normal(kp, (N, 3), jnp.float32)                         # data.pos
    xgb = jax.random.uniform(ks, (N,), jnp.float32, minval=0.1, maxval=1.0)  # all > cut
    # data.batch: single graph (all zeros) — implicit in the single-graph implementation.

    raw = init_raw_params(jax.random.PRNGKey(42))
    prep = prepare_params(raw)     # one-time pad/cast of all params, outside the jit

    out = pointnet_forward(prep, x_feat, xgb, pos)
    out = jax.block_until_ready(out)

    assert out.shape == (N,)
    assert bool(jnp.all(jnp.isfinite(out)))
    assert bool(jnp.all((out >= 0.0) & (out <= 1.0)))
    print("KERNEL_OK")
</pallas_src>

<mosaic_0001>
module attributes {stable_mosaic.version = 11 : i64} {
  func.func @_mlp_chain_kernel(%arg0: i32, %arg1: memref<256x7xbf16, #tpu.memory_space<vmem>>, %arg2: memref<7x128xbf16, #tpu.memory_space<vmem>>, %arg3: memref<1x128xf32, #tpu.memory_space<vmem>>, %arg4: memref<128x128xbf16, #tpu.memory_space<vmem>>, %arg5: memref<1x128xf32, #tpu.memory_space<vmem>>, %arg6: memref<256x128xbf16, #tpu.memory_space<vmem>>, %arg7: memref<256x128xbf16, #tpu.memory_space<vmem>>) attributes {dimension_semantics = [#tpu.dimension_semantics<parallel>], iteration_bounds = array<i64: 8>, scalar_prefetch = 0 : i64, scratch_operands = 1 : i64, tpu.core_type = #tpu.core_type<tc>, window_params = [{transform_indices = @transform_0, window_bounds = array<i64: 256, 7>}, {pipeline_mode = #tpu.pipeline_mode<synchronous>, transform_indices = @transform_1, window_bounds = array<i64: 7, 128>}, {pipeline_mode = #tpu.pipeline_mode<synchronous>, transform_indices = @transform_2, window_bounds = array<i64: 1, 128>}, {pipeline_mode = #tpu.pipeline_mode<synchronous>, transform_indices = @transform_3, window_bounds = array<i64: 128, 128>}, {pipeline_mode = #tpu.pipeline_mode<synchronous>, transform_indices = @transform_4, window_bounds = array<i64: 1, 128>}, {transform_indices = @transform_5, window_bounds = array<i64: 256, 128>}]} {
    %c0 = arith.constant 0 : index
    %c0_0 = arith.constant 0 : index
    %0 = vector.load %arg1[%c0, %c0_0] : memref<256x7xbf16, #tpu.memory_space<vmem>>, vector<256x7xbf16>
    %c0_1 = arith.constant 0 : index
    %c0_2 = arith.constant 0 : index
    %1 = vector.load %arg2[%c0_1, %c0_2] : memref<7x128xbf16, #tpu.memory_space<vmem>>, vector<7x128xbf16>
    %cst = arith.constant dense<0.000000e+00> : vector<256x128xf32>
    %2 = tpu.matmul %0, %1, %cst {dimension_numbers = #tpu.dot_dimension_numbers<[1], [0], [0], [1], [0, 0, 1, 1], [], []>} : vector<256x7xbf16>, vector<7x128xbf16>, vector<256x128xf32> -> vector<256x128xf32>
    %c0_3 = arith.constant 0 : index
    %c0_4 = arith.constant 0 : index
    %3 = vector.load %arg3[%c0_3, %c0_4] : memref<1x128xf32, #tpu.memory_space<vmem>>, vector<1x128xf32>
    %4 = vector.broadcast %3 : vector<1x128xf32> to vector<256x128xf32>
    %5 = arith.addf %2, %4 : vector<256x128xf32>
    %cst_5 = arith.constant 0.000000e+00 : f32
    %6 = vector.broadcast %cst_5 : f32 to vector<256x128xf32>
    %7 = arith.maximumf %5, %6 : vector<256x128xf32>
    %8 = arith.truncf %7 : vector<256x128xf32> to vector<256x128xbf16>
    %c0_6 = arith.constant 0 : index
    %c0_7 = arith.constant 0 : index
    %9 = vector.load %arg7[%c0_6, %c0_7] : memref<256x128xbf16, #tpu.memory_space<vmem>>, vector<256x128xbf16>
    tpu.vector_store %arg7[%c0_6, %c0_7], %8 {strides = array<i32>} : memref<256x128xbf16, #tpu.memory_space<vmem>>, vector<256x128xbf16>,
    %c0_8 = arith.constant 0 : index
    %c0_9 = arith.constant 0 : index
    %10 = vector.load %arg7[%c0_8, %c0_9] : memref<256x128xbf16, #tpu.memory_space<vmem>>, vector<256x128xbf16>
    %c0_10 = arith.constant 0 : index
    %c0_11 = arith.constant 0 : index
    %11 = vector.load %arg4[%c0_10, %c0_11] : memref<128x128xbf16, #tpu.memory_space<vmem>>, vector<128x128xbf16>
    %cst_12 = arith.constant dense<0.000000e+00> : vector<256x128xf32>
    %12 = tpu.matmul %10, %11, %cst_12 {dimension_numbers = #tpu.dot_dimension_numbers<[1], [0], [0], [1], [0, 0, 1, 1], [], []>} : vector<256x128xbf16>, vector<128x128xbf16>, vector<256x128xf32> -> vector<256x128xf32>
    %c0_13 = arith.constant 0 : index
    %c0_14 = arith.constant 0 : index
    %13 = vector.load %arg5[%c0_13, %c0_14] : memref<1x128xf32, #tpu.memory_space<vmem>>, vector<1x128xf32>
    %14 = vector.broadcast %13 : vector<1x128xf32> to vector<256x128xf32>
    %15 = arith.addf %12, %14 : vector<256x128xf32>
    %cst_15 = arith.constant 0.000000e+00 : f32
    %16 = vector.broadcast %cst_15 : f32 to vector<256x128xf32>
    %17 = arith.maximumf %15, %16 : vector<256x128xf32>
    %18 = arith.truncf %17 : vector<256x128xf32> to vector<256x128xbf16>
    %c0_16 = arith.constant 0 : index
    %c0_17 = arith.constant 0 : index
    %19 = vector.load %arg6[%c0_16, %c0_17] : memref<256x128xbf16, #tpu.memory_space<vmem>>, vector<256x128xbf16>
    tpu.vector_store %arg6[%c0_16, %c0_17], %18 {strides = array<i32>} : memref<256x128xbf16, #tpu.memory_space<vmem>>, vector<256x128xbf16>,
    return
  }
  func.func @transform_0(%arg0: i32) -> (i32, i32) {
    %c0_i32 = arith.constant 0 : i32
    %c0_i32_0 = arith.constant 0 : i32
    return %arg0, %c0_i32 : i32, i32
  }
  func.func @transform_1(%arg0: i32) -> (i32, i32) {
    %c0_i32 = arith.constant 0 : i32
    %c0_i32_0 = arith.constant 0 : i32
    %c0_i32_1 = arith.constant 0 : i32
    return %c0_i32, %c0_i32_0 : i32, i32
  }
  func.func @transform_2(%arg0: i32) -> (i32, i32) {
    %c0_i32 = arith.constant 0 : i32
    %c0_i32_0 = arith.constant 0 : i32
    %c0_i32_1 = arith.constant 0 : i32
    return %c0_i32, %c0_i32_0 : i32, i32
  }
  func.func @transform_3(%arg0: i32) -> (i32, i32) {
    %c0_i32 = arith.constant 0 : i32
    %c0_i32_0 = arith.constant 0 : i32
    %c0_i32_1 = arith.constant 0 : i32
    return %c0_i32, %c0_i32_0 : i32, i32
  }
  func.func @transform_4(%arg0: i32) -> (i32, i32) {
    %c0_i32 = arith.constant 0 : i32
    %c0_i32_0 = arith.constant 0 : i32
    %c0_i32_1 = arith.constant 0 : i32
    return %c0_i32, %c0_i32_0 : i32, i32
  }
  func.func @transform_5(%arg0: i32) -> (i32, i32) {
    %c0_i32 = arith.constant 0 : i32
    %c0_i32_0 = arith.constant 0 : i32
    return %arg0, %c0_i32 : i32, i32
  }
}

module attributes {stable_mosaic.version = 11 : i64} {
  func.func @_pointconv_last_kernel(%arg0: i32, %arg1: i32, %arg2: memref<1x256x128xbf16, #tpu.memory_space<vmem>>, %arg3: memref<128x128xbf16, #tpu.memory_space<vmem>>, %arg4: memref<1x128xf32, #tpu.memory_space<vmem>>, %arg5: memref<16x128xbf16, #tpu.memory_space<vmem>>, %arg6: memref<16x128xf32, #tpu.memory_space<vmem>>) attributes {dimension_semantics = [#tpu.dimension_semantics<parallel>, #tpu.dimension_semantics<arbitrary>], iteration_bounds = array<i64: 2, 4>, scalar_prefetch = 0 : i64, scratch_operands = 1 : i64, tpu.core_type = #tpu.core_type<tc>, window_params = [{transform_indices = @transform_0, window_bounds = array<i64: 1, 256, 128>}, {pipeline_mode = #tpu.pipeline_mode<synchronous>, transform_indices = @transform_1, window_bounds = array<i64: 128, 128>}, {pipeline_mode = #tpu.pipeline_mode<synchronous>, transform_indices = @transform_2, window_bounds = array<i64: 1, 128>}, {transform_indices = @transform_3, window_bounds = array<i64: 16, 128>}]} {
    %c0 = arith.constant 0 : index
    %c0_0 = arith.constant 0 : index
    %c0_1 = arith.constant 0 : index
    %0 = vector.load %arg2[%c0, %c0_0, %c0_1] : memref<1x256x128xbf16, #tpu.memory_space<vmem>>, vector<1x256x128xbf16>
    %1 = vector.shape_cast %0 : vector<1x256x128xbf16> to vector<256x128xbf16>
    %c0_2 = arith.constant 0 : index
    %c0_3 = arith.constant 0 : index
    %2 = vector.load %arg3[%c0_2, %c0_3] : memref<128x128xbf16, #tpu.memory_space<vmem>>, vector<128x128xbf16>
    %cst = arith.constant dense<0.000000e+00> : vector<256x128xf32>
    %3 = tpu.matmul %1, %2, %cst {dimension_numbers = #tpu.dot_dimension_numbers<[1], [0], [0], [1], [0, 0, 1, 1], [], []>} : vector<256x128xbf16>, vector<128x128xbf16>, vector<256x128xf32> -> vector<256x128xf32>
    %c0_4 = arith.constant 0 : index
    %c0_5 = arith.constant 0 : index
    %4 = vector.load %arg4[%c0_4, %c0_5] : memref<1x128xf32, #tpu.memory_space<vmem>>, vector<1x128xf32>
    %5 = vector.broadcast %4 : vector<1x128xf32> to vector<256x128xf32>
    %6 = arith.addf %3, %5 : vector<256x128xf32>
    %cst_6 = arith.constant 0.000000e+00 : f32
    %7 = vector.broadcast %cst_6 : f32 to vector<256x128xf32>
    %8 = arith.maximumf %6, %7 : vector<256x128xf32>
    %9 = vector.extract_strided_slice %8 {offsets = [0, 0], sizes = [16, 128], strides = [1, 1]} : vector<256x128xf32> to vector<16x128xf32>
    %10 = vector.extract_strided_slice %8 {offsets = [16, 0], sizes = [16, 128], strides = [1, 1]} : vector<256x128xf32> to vector<16x128xf32>
    %11 = arith.maximumf %9, %10 : vector<16x128xf32>
    %12 = vector.extract_strided_slice %8 {offsets = [32, 0], sizes = [16, 128], strides = [1, 1]} : vector<256x128xf32> to vector<16x128xf32>
    %13 = arith.maximumf %11, %12 : vector<16x128xf32>
    %14 = vector.extract_strided_slice %8 {offsets = [48, 0], sizes = [16, 128], strides = [1, 1]} : vector<256x128xf32> to vector<16x128xf32>
    %15 = arith.maximumf %13, %14 : vector<16x128xf32>
    %16 = vector.extract_strided_slice %8 {offsets = [64, 0], sizes = [16, 128], strides = [1, 1]} : vector<256x128xf32> to vector<16x128xf32>
    %17 = arith.maximumf %15, %16 : vector<16x128xf32>
    %18 = vector.extract_strided_slice %8 {offsets = [80, 0], sizes = [16, 128], strides = [1, 1]} : vector<256x128xf32> to vector<16x128xf32>
    %19 = arith.maximumf %17, %18 : vector<16x128xf32>
    %20 = vector.extract_strided_slice %8 {offsets = [96, 0], sizes = [16, 128], strides = [1, 1]} : vector<256x128xf32> to vector<16x128xf32>
    %21 = arith.maximumf %19, %20 : vector<16x128xf32>
    %22 = vector.extract_strided_slice %8 {offsets = [112, 0], sizes = [16, 128], strides = [1, 1]} : vector<256x128xf32> to vector<16x128xf32>
    %23 = arith.maximumf %21, %22 : vector<16x128xf32>
    %24 = vector.extract_strided_slice %8 {offsets = [128, 0], sizes = [16, 128], strides = [1, 1]} : vector<256x128xf32> to vector<16x128xf32>
    %25 = arith.maximumf %23, %24 : vector<16x128xf32>
    %26 = vector.extract_strided_slice %8 {offsets = [144, 0], sizes = [16, 128], strides = [1, 1]} : vector<256x128xf32> to vector<16x128xf32>
    %27 = arith.maximumf %25, %26 : vector<16x128xf32>
    %28 = vector.extract_strided_slice %8 {offsets = [160, 0], sizes = [16, 128], strides = [1, 1]} : vector<256x128xf32> to vector<16x128xf32>
    %29 = arith.maximumf %27, %28 : vector<16x128xf32>
    %30 = vector.extract_strided_slice %8 {offsets = [176, 0], sizes = [16, 128], strides = [1, 1]} : vector<256x128xf32> to vector<16x128xf32>
    %31 = arith.maximumf %29, %30 : vector<16x128xf32>
    %32 = vector.extract_strided_slice %8 {offsets = [192, 0], sizes = [16, 128], strides = [1, 1]} : vector<256x128xf32> to vector<16x128xf32>
    %33 = arith.maximumf %31, %32 : vector<16x128xf32>
    %34 = vector.extract_strided_slice %8 {offsets = [208, 0], sizes = [16, 128], strides = [1, 1]} : vector<256x128xf32> to vector<16x128xf32>
    %35 = arith.maximumf %33, %34 : vector<16x128xf32>
    %36 = vector.extract_strided_slice %8 {offsets = [224, 0], sizes = [16, 128], strides = [1, 1]} : vector<256x128xf32> to vector<16x128xf32>
    %37 = arith.maximumf %35, %36 : vector<16x128xf32>
    %38 = vector.extract_strided_slice %8 {offsets = [240, 0], sizes = [16, 128], strides = [1, 1]} : vector<256x128xf32> to vector<16x128xf32>
    %39 = arith.maximumf %37, %38 : vector<16x128xf32>
    %c0_i32 = arith.constant 0 : i32
    %40 = arith.cmpi eq, %arg1, %c0_i32 : i32
    %41 = arith.extui %40 : i1 to i32
    %c0_i32_7 = arith.constant 0 : i32
    %42 = arith.cmpi ne, %41, %c0_i32_7 : i32
    scf.if %42 {
      %cst_13 = arith.constant 0xFF800000 : f32
      %49 = vector.broadcast %cst_13 : f32 to vector<16x128xf32>
      %c0_14 = arith.constant 0 : index
      %c0_15 = arith.constant 0 : index
      %50 = vector.load %arg6[%c0_14, %c0_15] : memref<16x128xf32, #tpu.memory_space<vmem>>, vector<16x128xf32>
      tpu.vector_store %arg6[%c0_14, %c0_15], %49 {strides = array<i32>} : memref<16x128xf32, #tpu.memory_space<vmem>>, vector<16x128xf32>,
    } else {
    }
    %c0_8 = arith.constant 0 : index
    %c0_9 = arith.constant 0 : index
    %43 = vector.load %arg6[%c0_8, %c0_9] : memref<16x128xf32, #tpu.memory_space<vmem>>, vector<16x128xf32>
    %44 = arith.maximumf %43, %39 : vector<16x128xf32>
    %c0_10 = arith.constant 0 : index
    %c0_11 = arith.constant 0 : index
    %45 = vector.load %arg6[%c0_10, %c0_11] : memref<16x128xf32, #tpu.memory_space<vmem>>, vector<16x128xf32>
    tpu.vector_store %arg6[%c0_10, %c0_11], %44 {strides = array<i32>} : memref<16x128xf32, #tpu.memory_space<vmem>>, vector<16x128xf32>,
    %c3_i32 = arith.constant 3 : i32
    %46 = arith.cmpi eq, %arg1, %c3_i32 : i32
    %47 = arith.extui %46 : i1 to i32
    %c0_i32_12 = arith.constant 0 : i32
    %48 = arith.cmpi ne, %47, %c0_i32_12 : i32
    scf.if %48 {
      %c0_13 = arith.constant 0 : index
      %c0_14 = arith.constant 0 : index
      %49 = vector.load %arg6[%c0_13, %c0_14] : memref<16x128xf32, #tpu.memory_space<vmem>>, vector<16x128xf32>
      %50 = arith.truncf %49 : vector<16x128xf32> to vector<16x128xbf16>
      %c0_15 = arith.constant 0 : index
      %c0_16 = arith.constant 0 : index
      %51 = vector.load %arg5[%c0_15, %c0_16] : memref<16x128xbf16, #tpu.memory_space<vmem>>, vector<16x128xbf16>
      tpu.vector_store %arg5[%c0_15, %c0_16], %50 {strides = array<i32>} : memref<16x128xbf16, #tpu.memory_space<vmem>>, vector<16x128xbf16>,
    } else {
    }
    return
  }
  func.func @transform_0(%arg0: i32, %arg1: i32) -> (i32, i32, i32) {
    %c0_i32 = arith.constant 0 : i32
    %c0_i32_0 = arith.constant 0 : i32
    return %arg0, %arg1, %c0_i32 : i32, i32, i32
  }
  func.func @transform_1(%arg0: i32, %arg1: i32) -> (i32, i32) {
    %c0_i32 = arith.constant 0 : i32
    %c0_i32_0 = arith.constant 0 : i32
    %c0_i32_1 = arith.constant 0 : i32
    return %c0_i32, %c0_i32_0 : i32, i32
  }
  func.func @transform_2(%arg0: i32, %arg1: i32) -> (i32, i32) {
    %c0_i32 = arith.constant 0 : i32
    %c0_i32_0 = arith.constant 0 : i32
    %c0_i32_1 = arith.constant 0 : i32
    return %c0_i32, %c0_i32_0 : i32, i32
  }
  func.func @transform_3(%arg0: i32, %arg1: i32) -> (i32, i32) {
    %c0_i32 = arith.constant 0 : i32
    %c0_i32_0 = arith.constant 0 : i32
    return %arg0, %c0_i32 : i32, i32
  }
}

module attributes {stable_mosaic.version = 11 : i64} {
  func.func @_pointconv_last_kernel(%arg0: i32, %arg1: i32, %arg2: memref<1x256x128xbf16, #tpu.memory_space<vmem>>, %arg3: memref<128x256xbf16, #tpu.memory_space<vmem>>, %arg4: memref<1x256xf32, #tpu.memory_space<vmem>>, %arg5: memref<8x256xbf16, #tpu.memory_space<vmem>>, %arg6: memref<8x256xf32, #tpu.memory_space<vmem>>) attributes {dimension_semantics = [#tpu.dimension_semantics<parallel>, #tpu.dimension_semantics<arbitrary>], iteration_bounds = array<i64: 2, 1>, scalar_prefetch = 0 : i64, scratch_operands = 1 : i64, tpu.core_type = #tpu.core_type<tc>, window_params = [{transform_indices = @transform_0, window_bounds = array<i64: 1, 256, 128>}, {pipeline_mode = #tpu.pipeline_mode<synchronous>, transform_indices = @transform_1, window_bounds = array<i64: 128, 256>}, {pipeline_mode = #tpu.pipeline_mode<synchronous>, transform_indices = @transform_2, window_bounds = array<i64: 1, 256>}, {transform_indices = @transform_3, window_bounds = array<i64: 8, 256>}]} {
    %c0 = arith.constant 0 : index
    %c0_0 = arith.constant 0 : index
    %c0_1 = arith.constant 0 : index
    %0 = vector.load %arg2[%c0, %c0_0, %c0_1] : memref<1x256x128xbf16, #tpu.memory_space<vmem>>, vector<1x256x128xbf16>
    %1 = vector.shape_cast %0 : vector<1x256x128xbf16> to vector<256x128xbf16>
    %c0_2 = arith.constant 0 : index
    %c0_3 = arith.constant 0 : index
    %2 = vector.load %arg3[%c0_2, %c0_3] : memref<128x256xbf16, #tpu.memory_space<vmem>>, vector<128x256xbf16>
    %cst = arith.constant dense<0.000000e+00> : vector<256x256xf32>
    %3 = tpu.matmul %1, %2, %cst {dimension_numbers = #tpu.dot_dimension_numbers<[1], [0], [0], [1], [0, 0, 1, 1], [], []>} : vector<256x128xbf16>, vector<128x256xbf16>, vector<256x256xf32> -> vector<256x256xf32>
    %c0_4 = arith.constant 0 : index
    %c0_5 = arith.constant 0 : index
    %4 = vector.load %arg4[%c0_4, %c0_5] : memref<1x256xf32, #tpu.memory_space<vmem>>, vector<1x256xf32>
    %5 = vector.broadcast %4 : vector<1x256xf32> to vector<256x256xf32>
    %6 = arith.addf %3, %5 : vector<256x256xf32>
    %cst_6 = arith.constant 0.000000e+00 : f32
    %7 = vector.broadcast %cst_6 : f32 to vector<256x256xf32>
    %8 = arith.maximumf %6, %7 : vector<256x256xf32>
    %9 = vector.extract_strided_slice %8 {offsets = [0, 0], sizes = [8, 256], strides = [1, 1]} : vector<256x256xf32> to vector<8x256xf32>
    %10 = vector.extract_strided_slice %8 {offsets = [8, 0], sizes = [8, 256], strides = [1, 1]} : vector<256x256xf32> to vector<8x256xf32>
    %11 = arith.maximumf %9, %10 : vector<8x256xf32>
    %12 = vector.extract_strided_slice %8 {offsets = [16, 0], sizes = [8, 256], strides = [1, 1]} : vector<256x256xf32> to vector<8x256xf32>
    %13 = arith.maximumf %11, %12 : vector<8x256xf32>
    %14 = vector.extract_strided_slice %8 {offsets = [24, 0], sizes = [8, 256], strides = [1, 1]} : vector<256x256xf32> to vector<8x256xf32>
    %15 = arith.maximumf %13, %14 : vector<8x256xf32>
    %16 = vector.extract_strided_slice %8 {offsets = [32, 0], sizes = [8, 256], strides = [1, 1]} : vector<256x256xf32> to vector<8x256xf32>
    %17 = arith.maximumf %15, %16 : vector<8x256xf32>
    %18 = vector.extract_strided_slice %8 {offsets = [40, 0], sizes = [8, 256], strides = [1, 1]} : vector<256x256xf32> to vector<8x256xf32>
    %19 = arith.maximumf %17, %18 : vector<8x256xf32>
    %20 = vector.extract_strided_slice %8 {offsets = [48, 0], sizes = [8, 256], strides = [1, 1]} : vector<256x256xf32> to vector<8x256xf32>
    %21 = arith.maximumf %19, %20 : vector<8x256xf32>
    %22 = vector.extract_strided_slice %8 {offsets = [56, 0], sizes = [8, 256], strides = [1, 1]} : vector<256x256xf32> to vector<8x256xf32>
    %23 = arith.maximumf %21, %22 : vector<8x256xf32>
    %24 = vector.extract_strided_slice %8 {offsets = [64, 0], sizes = [8, 256], strides = [1, 1]} : vector<256x256xf32> to vector<8x256xf32>
    %25 = arith.maximumf %23, %24 : vector<8x256xf32>
    %26 = vector.extract_strided_slice %8 {offsets = [72, 0], sizes = [8, 256], strides = [1, 1]} : vector<256x256xf32> to vector<8x256xf32>
    %27 = arith.maximumf %25, %26 : vector<8x256xf32>
    %28 = vector.extract_strided_slice %8 {offsets = [80, 0], sizes = [8, 256], strides = [1, 1]} : vector<256x256xf32> to vector<8x256xf32>
    %29 = arith.maximumf %27, %28 : vector<8x256xf32>
    %30 = vector.extract_strided_slice %8 {offsets = [88, 0], sizes = [8, 256], strides = [1, 1]} : vector<256x256xf32> to vector<8x256xf32>
    %31 = arith.maximumf %29, %30 : vector<8x256xf32>
    %32 = vector.extract_strided_slice %8 {offsets = [96, 0], sizes = [8, 256], strides = [1, 1]} : vector<256x256xf32> to vector<8x256xf32>
    %33 = arith.maximumf %31, %32 : vector<8x256xf32>
    %34 = vector.extract_strided_slice %8 {offsets = [104, 0], sizes = [8, 256], strides = [1, 1]} : vector<256x256xf32> to vector<8x256xf32>
    %35 = arith.maximumf %33, %34 : vector<8x256xf32>
    %36 = vector.extract_strided_slice %8 {offsets = [112, 0], sizes = [8, 256], strides = [1, 1]} : vector<256x256xf32> to vector<8x256xf32>
    %37 = arith.maximumf %35, %36 : vector<8x256xf32>
    %38 = vector.extract_strided_slice %8 {offsets = [120, 0], sizes = [8, 256], strides = [1, 1]} : vector<256x256xf32> to vector<8x256xf32>
    %39 = arith.maximumf %37, %38 : vector<8x256xf32>
    %40 = vector.extract_strided_slice %8 {offsets = [128, 0], sizes = [8, 256], strides = [1, 1]} : vector<256x256xf32> to vector<8x256xf32>
    %41 = arith.maximumf %39, %40 : vector<8x256xf32>
    %42 = vector.extract_strided_slice %8 {offsets = [136, 0], sizes = [8, 256], strides = [1, 1]} : vector<256x256xf32> to vector<8x256xf32>
    %43 = arith.maximumf %41, %42 : vector<8x256xf32>
    %44 = vector.extract_strided_slice %8 {offsets = [144, 0], sizes = [8, 256], strides = [1, 1]} : vector<256x256xf32> to vector<8x256xf32>
    %45 = arith.maximumf %43, %44 : vector<8x256xf32>
    %46 = vector.extract_strided_slice %8 {offsets = [152, 0], sizes = [8, 256], strides = [1, 1]} : vector<256x256xf32> to vector<8x256xf32>
    %47 = arith.maximumf %45, %46 : vector<8x256xf32>
    %48 = vector.extract_strided_slice %8 {offsets = [160, 0], sizes = [8, 256], strides = [1, 1]} : vector<256x256xf32> to vector<8x256xf32>
    %49 = arith.maximumf %47, %48 : vector<8x256xf32>
    %50 = vector.extract_strided_slice %8 {offsets = [168, 0], sizes = [8, 256], strides = [1, 1]} : vector<256x256xf32> to vector<8x256xf32>
    %51 = arith.maximumf %49, %50 : vector<8x256xf32>
    %52 = vector.extract_strided_slice %8 {offsets = [176, 0], sizes = [8, 256], strides = [1, 1]} : vector<256x256xf32> to vector<8x256xf32>
    %53 = arith.maximumf %51, %52 : vector<8x256xf32>
    %54 = vector.extract_strided_slice %8 {offsets = [184, 0], sizes = [8, 256], strides = [1, 1]} : vector<256x256xf32> to vector<8x256xf32>
    %55 = arith.maximumf %53, %54 : vector<8x256xf32>
    %56 = vector.extract_strided_slice %8 {offsets = [192, 0], sizes = [8, 256], strides = [1, 1]} : vector<256x256xf32> to vector<8x256xf32>
    %57 = arith.maximumf %55, %56 : vector<8x256xf32>
    %58 = vector.extract_strided_slice %8 {offsets = [200, 0], sizes = [8, 256], strides = [1, 1]} : vector<256x256xf32> to vector<8x256xf32>
    %59 = arith.maximumf %57, %58 : vector<8x256xf32>
    %60 = vector.extract_strided_slice %8 {offsets = [208, 0], sizes = [8, 256], strides = [1, 1]} : vector<256x256xf32> to vector<8x256xf32>
    %61 = arith.maximumf %59, %60 : vector<8x256xf32>
    %62 = vector.extract_strided_slice %8 {offsets = [216, 0], sizes = [8, 256], strides = [1, 1]} : vector<256x256xf32> to vector<8x256xf32>
    %63 = arith.maximumf %61, %62 : vector<8x256xf32>
    %64 = vector.extract_strided_slice %8 {offsets = [224, 0], sizes = [8, 256], strides = [1, 1]} : vector<256x256xf32> to vector<8x256xf32>
    %65 = arith.maximumf %63, %64 : vector<8x256xf32>
    %66 = vector.extract_strided_slice %8 {offsets = [232, 0], sizes = [8, 256], strides = [1, 1]} : vector<256x256xf32> to vector<8x256xf32>
    %67 = arith.maximumf %65, %66 : vector<8x256xf32>
    %68 = vector.extract_strided_slice %8 {offsets = [240, 0], sizes = [8, 256], strides = [1, 1]} : vector<256x256xf32> to vector<8x256xf32>
    %69 = arith.maximumf %67, %68 : vector<8x256xf32>
    %70 = vector.extract_strided_slice %8 {offsets = [248, 0], sizes = [8, 256], strides = [1, 1]} : vector<256x256xf32> to vector<8x256xf32>
    %71 = arith.maximumf %69, %70 : vector<8x256xf32>
    %c0_i32 = arith.constant 0 : i32
    %72 = arith.cmpi eq, %arg1, %c0_i32 : i32
    %73 = arith.extui %72 : i1 to i32
    %c0_i32_7 = arith.constant 0 : i32
    %74 = arith.cmpi ne, %73, %c0_i32_7 : i32
    scf.if %74 {
      %cst_14 = arith.constant 0xFF800000 : f32
      %81 = vector.broadcast %cst_14 : f32 to vector<8x256xf32>
      %c0_15 = arith.constant 0 : index
      %c0_16 = arith.constant 0 : index
      %82 = vector.load %arg6[%c0_15, %c0_16] : memref<8x256xf32, #tpu.memory_space<vmem>>, vector<8x256xf32>
      tpu.vector_store %arg6[%c0_15, %c0_16], %81 {strides = array<i32>} : memref<8x256xf32, #tpu.memory_space<vmem>>, vector<8x256xf32>,
    } else {
    }
    %c0_8 = arith.constant 0 : index
    %c0_9 = arith.constant 0 : index
    %75 = vector.load %arg6[%c0_8, %c0_9] : memref<8x256xf32, #tpu.memory_space<vmem>>, vector<8x256xf32>
    %76 = arith.maximumf %75, %71 : vector<8x256xf32>
    %c0_10 = arith.constant 0 : index
    %c0_11 = arith.constant 0 : index
    %77 = vector.load %arg6[%c0_10, %c0_11] : memref<8x256xf32, #tpu.memory_space<vmem>>, vector<8x256xf32>
    tpu.vector_store %arg6[%c0_10, %c0_11], %76 {strides = array<i32>} : memref<8x256xf32, #tpu.memory_space<vmem>>, vector<8x256xf32>,
    %c0_i32_12 = arith.constant 0 : i32
    %78 = arith.cmpi eq, %arg1, %c0_i32_12 : i32
    %79 = arith.extui %78 : i1 to i32
    %c0_i32_13 = arith.constant 0 : i32
    %80 = arith.cmpi ne, %79, %c0_i32_13 : i32
    scf.if %80 {
      %c0_14 = arith.constant 0 : index
      %c0_15 = arith.constant 0 : index
      %81 = vector.load %arg6[%c0_14, %c0_15] : memref<8x256xf32, #tpu.memory_space<vmem>>, vector<8x256xf32>
      %82 = arith.truncf %81 : vector<8x256xf32> to vector<8x256xbf16>
      %c0_16 = arith.constant 0 : index
      %c0_17 = arith.constant 0 : index
      %83 = vector.load %arg5[%c0_16, %c0_17] : memref<8x256xbf16, #tpu.memory_space<vmem>>, vector<8x256xbf16>
      tpu.vector_store %arg5[%c0_16, %c0_17], %82 {strides = array<i32>} : memref<8x256xbf16, #tpu.memory_space<vmem>>, vector<8x256xbf16>,
    } else {
    }
    return
  }
  func.func @transform_0(%arg0: i32, %arg1: i32) -> (i32, i32, i32) {
    %c0_i32 = arith.constant 0 : i32
    %c0_i32_0 = arith.constant 0 : i32
    return %arg0, %arg1, %c0_i32 : i32, i32, i32
  }
  func.func @transform_1(%arg0: i32, %arg1: i32) -> (i32, i32) {
    %c0_i32 = arith.constant 0 : i32
    %c0_i32_0 = arith.constant 0 : i32
    %c0_i32_1 = arith.constant 0 : i32
    return %c0_i32, %c0_i32_0 : i32, i32
  }
  func.func @transform_2(%arg0: i32, %arg1: i32) -> (i32, i32) {
    %c0_i32 = arith.constant 0 : i32
    %c0_i32_0 = arith.constant 0 : i32
    %c0_i32_1 = arith.constant 0 : i32
    return %c0_i32, %c0_i32_0 : i32, i32
  }
  func.func @transform_3(%arg0: i32, %arg1: i32) -> (i32, i32) {
    %c0_i32 = arith.constant 0 : i32
    %c0_i32_0 = arith.constant 0 : i32
    return %arg0, %c0_i32 : i32, i32
  }
}

module attributes {stable_mosaic.version = 11 : i64} {
  func.func @_mlp_chain_kernel(%arg0: i32, %arg1: memref<256x131xbf16, #tpu.memory_space<vmem>>, %arg2: memref<131x128xbf16, #tpu.memory_space<vmem>>, %arg3: memref<1x128xf32, #tpu.memory_space<vmem>>, %arg4: memref<128x128xbf16, #tpu.memory_space<vmem>>, %arg5: memref<1x128xf32, #tpu.memory_space<vmem>>, %arg6: memref<256x128xbf16, #tpu.memory_space<vmem>>, %arg7: memref<256x128xbf16, #tpu.memory_space<vmem>>) attributes {dimension_semantics = [#tpu.dimension_semantics<parallel>], iteration_bounds = array<i64: 2>, scalar_prefetch = 0 : i64, scratch_operands = 1 : i64, tpu.core_type = #tpu.core_type<tc>, window_params = [{transform_indices = @transform_0, window_bounds = array<i64: 256, 131>}, {pipeline_mode = #tpu.pipeline_mode<synchronous>, transform_indices = @transform_1, window_bounds = array<i64: 131, 128>}, {pipeline_mode = #tpu.pipeline_mode<synchronous>, transform_indices = @transform_2, window_bounds = array<i64: 1, 128>}, {pipeline_mode = #tpu.pipeline_mode<synchronous>, transform_indices = @transform_3, window_bounds = array<i64: 128, 128>}, {pipeline_mode = #tpu.pipeline_mode<synchronous>, transform_indices = @transform_4, window_bounds = array<i64: 1, 128>}, {transform_indices = @transform_5, window_bounds = array<i64: 256, 128>}]} {
    %c0 = arith.constant 0 : index
    %c0_0 = arith.constant 0 : index
    %0 = vector.load %arg1[%c0, %c0_0] : memref<256x131xbf16, #tpu.memory_space<vmem>>, vector<256x131xbf16>
    %c0_1 = arith.constant 0 : index
    %c0_2 = arith.constant 0 : index
    %1 = vector.load %arg2[%c0_1, %c0_2] : memref<131x128xbf16, #tpu.memory_space<vmem>>, vector<131x128xbf16>
    %cst = arith.constant dense<0.000000e+00> : vector<256x128xf32>
    %2 = tpu.matmul %0, %1, %cst {dimension_numbers = #tpu.dot_dimension_numbers<[1], [0], [0], [1], [0, 0, 1, 1], [], []>} : vector<256x131xbf16>, vector<131x128xbf16>, vector<256x128xf32> -> vector<256x128xf32>
    %c0_3 = arith.constant 0 : index
    %c0_4 = arith.constant 0 : index
    %3 = vector.load %arg3[%c0_3, %c0_4] : memref<1x128xf32, #tpu.memory_space<vmem>>, vector<1x128xf32>
    %4 = vector.broadcast %3 : vector<1x128xf32> to vector<256x128xf32>
    %5 = arith.addf %2, %4 : vector<256x128xf32>
    %cst_5 = arith.constant 0.000000e+00 : f32
    %6 = vector.broadcast %cst_5 : f32 to vector<256x128xf32>
    %7 = arith.maximumf %5, %6 : vector<256x128xf32>
    %8 = arith.truncf %7 : vector<256x128xf32> to vector<256x128xbf16>
    %c0_6 = arith.constant 0 : index
    %c0_7 = arith.constant 0 : index
    %9 = vector.load %arg7[%c0_6, %c0_7] : memref<256x128xbf16, #tpu.memory_space<vmem>>, vector<256x128xbf16>
    tpu.vector_store %arg7[%c0_6, %c0_7], %8 {strides = array<i32>} : memref<256x128xbf16, #tpu.memory_space<vmem>>, vector<256x128xbf16>,
    %c0_8 = arith.constant 0 : index
    %c0_9 = arith.constant 0 : index
    %10 = vector.load %arg7[%c0_8, %c0_9] : memref<256x128xbf16, #tpu.memory_space<vmem>>, vector<256x128xbf16>
    %c0_10 = arith.constant 0 : index
    %c0_11 = arith.constant 0 : index
    %11 = vector.load %arg4[%c0_10, %c0_11] : memref<128x128xbf16, #tpu.memory_space<vmem>>, vector<128x128xbf16>
    %cst_12 = arith.constant dense<0.000000e+00> : vector<256x128xf32>
    %12 = tpu.matmul %10, %11, %cst_12 {dimension_numbers = #tpu.dot_dimension_numbers<[1], [0], [0], [1], [0, 0, 1, 1], [], []>} : vector<256x128xbf16>, vector<128x128xbf16>, vector<256x128xf32> -> vector<256x128xf32>
    %c0_13 = arith.constant 0 : index
    %c0_14 = arith.constant 0 : index
    %13 = vector.load %arg5[%c0_13, %c0_14] : memref<1x128xf32, #tpu.memory_space<vmem>>, vector<1x128xf32>
    %14 = vector.broadcast %13 : vector<1x128xf32> to vector<256x128xf32>
    %15 = arith.addf %12, %14 : vector<256x128xf32>
    %cst_15 = arith.constant 0.000000e+00 : f32
    %16 = vector.broadcast %cst_15 : f32 to vector<256x128xf32>
    %17 = arith.maximumf %15, %16 : vector<256x128xf32>
    %18 = arith.truncf %17 : vector<256x128xf32> to vector<256x128xbf16>
    %c0_16 = arith.constant 0 : index
    %c0_17 = arith.constant 0 : index
    %19 = vector.load %arg6[%c0_16, %c0_17] : memref<256x128xbf16, #tpu.memory_space<vmem>>, vector<256x128xbf16>
    tpu.vector_store %arg6[%c0_16, %c0_17], %18 {strides = array<i32>} : memref<256x128xbf16, #tpu.memory_space<vmem>>, vector<256x128xbf16>,
    return
  }
  func.func @transform_0(%arg0: i32) -> (i32, i32) {
    %c0_i32 = arith.constant 0 : i32
    %c0_i32_0 = arith.constant 0 : i32
    return %arg0, %c0_i32 : i32, i32
  }
  func.func @transform_1(%arg0: i32) -> (i32, i32) {
    %c0_i32 = arith.constant 0 : i32
    %c0_i32_0 = arith.constant 0 : i32
    %c0_i32_1 = arith.constant 0 : i32
    return %c0_i32, %c0_i32_0 : i32, i32
  }
  func.func @transform_2(%arg0: i32) -> (i32, i32) {
    %c0_i32 = arith.constant 0 : i32
    %c0_i32_0 = arith.constant 0 : i32
    %c0_i32_1 = arith.constant 0 : i32
    return %c0_i32, %c0_i32_0 : i32, i32
  }
  func.func @transform_3(%arg0: i32) -> (i32, i32) {
    %c0_i32 = arith.constant 0 : i32
    %c0_i32_0 = arith.constant 0 : i32
    %c0_i32_1 = arith.constant 0 : i32
    return %c0_i32, %c0_i32_0 : i32, i32
  }
  func.func @transform_4(%arg0: i32) -> (i32, i32) {
    %c0_i32 = arith.constant 0 : i32
    %c0_i32_0 = arith.constant 0 : i32
    %c0_i32_1 = arith.constant 0 : i32
    return %c0_i32, %c0_i32_0 : i32, i32
  }
  func.func @transform_5(%arg0: i32) -> (i32, i32) {
    %c0_i32 = arith.constant 0 : i32
    %c0_i32_0 = arith.constant 0 : i32
    return %arg0, %c0_i32 : i32, i32
  }
}

module attributes {stable_mosaic.version = 11 : i64} {
  func.func @_mlp_chain_kernel(%arg0: i32, %arg1: memref<104x259xbf16, #tpu.memory_space<vmem>>, %arg2: memref<259x256xbf16, #tpu.memory_space<vmem>>, %arg3: memref<1x256xf32, #tpu.memory_space<vmem>>, %arg4: memref<256x256xbf16, #tpu.memory_space<vmem>>, %arg5: memref<1x256xf32, #tpu.memory_space<vmem>>, %arg6: memref<104x256xbf16, #tpu.memory_space<vmem>>, %arg7: memref<104x256xbf16, #tpu.memory_space<vmem>>) attributes {dimension_semantics = [#tpu.dimension_semantics<parallel>], iteration_bounds = array<i64: 1>, scalar_prefetch = 0 : i64, scratch_operands = 1 : i64, tpu.core_type = #tpu.core_type<tc>, window_params = [{transform_indices = @transform_0, window_bounds = array<i64: 104, 259>}, {pipeline_mode = #tpu.pipeline_mode<synchronous>, transform_indices = @transform_1, window_bounds = array<i64: 259, 256>}, {pipeline_mode = #tpu.pipeline_mode<synchronous>, transform_indices = @transform_2, window_bounds = array<i64: 1, 256>}, {pipeline_mode = #tpu.pipeline_mode<synchronous>, transform_indices = @transform_3, window_bounds = array<i64: 256, 256>}, {pipeline_mode = #tpu.pipeline_mode<synchronous>, transform_indices = @transform_4, window_bounds = array<i64: 1, 256>}, {transform_indices = @transform_5, window_bounds = array<i64: 104, 256>}]} {
    %c0 = arith.constant 0 : index
    %c0_0 = arith.constant 0 : index
    %0 = vector.load %arg1[%c0, %c0_0] : memref<104x259xbf16, #tpu.memory_space<vmem>>, vector<104x259xbf16>
    %c0_1 = arith.constant 0 : index
    %c0_2 = arith.constant 0 : index
    %1 = vector.load %arg2[%c0_1, %c0_2] : memref<259x256xbf16, #tpu.memory_space<vmem>>, vector<259x256xbf16>
    %cst = arith.constant dense<0.000000e+00> : vector<104x256xf32>
    %2 = tpu.matmul %0, %1, %cst {dimension_numbers = #tpu.dot_dimension_numbers<[1], [0], [0], [1], [0, 0, 1, 1], [], []>} : vector<104x259xbf16>, vector<259x256xbf16>, vector<104x256xf32> -> vector<104x256xf32>
    %c0_3 = arith.constant 0 : index
    %c0_4 = arith.constant 0 : index
    %3 = vector.load %arg3[%c0_3, %c0_4] : memref<1x256xf32, #tpu.memory_space<vmem>>, vector<1x256xf32>
    %4 = vector.broadcast %3 : vector<1x256xf32> to vector<104x256xf32>
    %5 = arith.addf %2, %4 : vector<104x256xf32>
    %cst_5 = arith.constant 0.000000e+00 : f32
    %6 = vector.broadcast %cst_5 : f32 to vector<104x256xf32>
    %7 = arith.maximumf %5, %6 : vector<104x256xf32>
    %8 = arith.truncf %7 : vector<104x256xf32> to vector<104x256xbf16>
    %c0_6 = arith.constant 0 : index
    %c0_7 = arith.constant 0 : index
    %9 = vector.load %arg7[%c0_6, %c0_7] : memref<104x256xbf16, #tpu.memory_space<vmem>>, vector<104x256xbf16>
    tpu.vector_store %arg7[%c0_6, %c0_7], %8 {strides = array<i32>} : memref<104x256xbf16, #tpu.memory_space<vmem>>, vector<104x256xbf16>,
    %c0_8 = arith.constant 0 : index
    %c0_9 = arith.constant 0 : index
    %10 = vector.load %arg7[%c0_8, %c0_9] : memref<104x256xbf16, #tpu.memory_space<vmem>>, vector<104x256xbf16>
    %c0_10 = arith.constant 0 : index
    %c0_11 = arith.constant 0 : index
    %11 = vector.load %arg4[%c0_10, %c0_11] : memref<256x256xbf16, #tpu.memory_space<vmem>>, vector<256x256xbf16>
    %cst_12 = arith.constant dense<0.000000e+00> : vector<104x256xf32>
    %12 = tpu.matmul %10, %11, %cst_12 {dimension_numbers = #tpu.dot_dimension_numbers<[1], [0], [0], [1], [0, 0, 1, 1], [], []>} : vector<104x256xbf16>, vector<256x256xbf16>, vector<104x256xf32> -> vector<104x256xf32>
    %c0_13 = arith.constant 0 : index
    %c0_14 = arith.constant 0 : index
    %13 = vector.load %arg5[%c0_13, %c0_14] : memref<1x256xf32, #tpu.memory_space<vmem>>, vector<1x256xf32>
    %14 = vector.broadcast %13 : vector<1x256xf32> to vector<104x256xf32>
    %15 = arith.addf %12, %14 : vector<104x256xf32>
    %cst_15 = arith.constant 0.000000e+00 : f32
    %16 = vector.broadcast %cst_15 : f32 to vector<104x256xf32>
    %17 = arith.maximumf %15, %16 : vector<104x256xf32>
    %18 = arith.truncf %17 : vector<104x256xf32> to vector<104x256xbf16>
    %c0_16 = arith.constant 0 : index
    %c0_17 = arith.constant 0 : index
    %19 = vector.load %arg6[%c0_16, %c0_17] : memref<104x256xbf16, #tpu.memory_space<vmem>>, vector<104x256xbf16>
    tpu.vector_store %arg6[%c0_16, %c0_17], %18 {strides = array<i32>} : memref<104x256xbf16, #tpu.memory_space<vmem>>, vector<104x256xbf16>,
    return
  }
  func.func @transform_0(%arg0: i32) -> (i32, i32) {
    %c0_i32 = arith.constant 0 : i32
    %c0_i32_0 = arith.constant 0 : i32
    return %arg0, %c0_i32 : i32, i32
  }
  func.func @transform_1(%arg0: i32) -> (i32, i32) {
    %c0_i32 = arith.constant 0 : i32
    %c0_i32_0 = arith.constant 0 : i32
    %c0_i32_1 = arith.constant 0 : i32
    return %c0_i32, %c0_i32_0 : i32, i32
  }
  func.func @transform_2(%arg0: i32) -> (i32, i32) {
    %c0_i32 = arith.constant 0 : i32
    %c0_i32_0 = arith.constant 0 : i32
    %c0_i32_1 = arith.constant 0 : i32
    return %c0_i32, %c0_i32_0 : i32, i32
  }
  func.func @transform_3(%arg0: i32) -> (i32, i32) {
    %c0_i32 = arith.constant 0 : i32
    %c0_i32_0 = arith.constant 0 : i32
    %c0_i32_1 = arith.constant 0 : i32
    return %c0_i32, %c0_i32_0 : i32, i32
  }
  func.func @transform_4(%arg0: i32) -> (i32, i32) {
    %c0_i32 = arith.constant 0 : i32
    %c0_i32_0 = arith.constant 0 : i32
    %c0_i32_1 = arith.constant 0 : i32
    return %c0_i32, %c0_i32_0 : i32, i32
  }
  func.func @transform_5(%arg0: i32) -> (i32, i32) {
    %c0_i32 = arith.constant 0 : i32
    %c0_i32_0 = arith.constant 0 : i32
    return %arg0, %c0_i32 : i32, i32
  }
}

module attributes {stable_mosaic.version = 11 : i64} {
  func.func @_pointconv_last_kernel(%arg0: i32, %arg1: i32, %arg2: memref<1x104x256xbf16, #tpu.memory_space<vmem>>, %arg3: memref<256x256xbf16, #tpu.memory_space<vmem>>, %arg4: memref<1x256xf32, #tpu.memory_space<vmem>>, %arg5: memref<8x256xbf16, #tpu.memory_space<vmem>>, %arg6: memref<8x256xf32, #tpu.memory_space<vmem>>) attributes {dimension_semantics = [#tpu.dimension_semantics<parallel>, #tpu.dimension_semantics<arbitrary>], iteration_bounds = array<i64: 1, 1>, scalar_prefetch = 0 : i64, scratch_operands = 1 : i64, tpu.core_type = #tpu.core_type<tc>, window_params = [{transform_indices = @transform_0, window_bounds = array<i64: 1, 104, 256>}, {pipeline_mode = #tpu.pipeline_mode<synchronous>, transform_indices = @transform_1, window_bounds = array<i64: 256, 256>}, {pipeline_mode = #tpu.pipeline_mode<synchronous>, transform_indices = @transform_2, window_bounds = array<i64: 1, 256>}, {transform_indices = @transform_3, window_bounds = array<i64: 8, 256>}]} {
    %c0 = arith.constant 0 : index
    %c0_0 = arith.constant 0 : index
    %c0_1 = arith.constant 0 : index
    %0 = vector.load %arg2[%c0, %c0_0, %c0_1] : memref<1x104x256xbf16, #tpu.memory_space<vmem>>, vector<1x104x256xbf16>
    %1 = vector.shape_cast %0 : vector<1x104x256xbf16> to vector<104x256xbf16>
    %c0_2 = arith.constant 0 : index
    %c0_3 = arith.constant 0 : index
    %2 = vector.load %arg3[%c0_2, %c0_3] : memref<256x256xbf16, #tpu.memory_space<vmem>>, vector<256x256xbf16>
    %cst = arith.constant dense<0.000000e+00> : vector<104x256xf32>
    %3 = tpu.matmul %1, %2, %cst {dimension_numbers = #tpu.dot_dimension_numbers<[1], [0], [0], [1], [0, 0, 1, 1], [], []>} : vector<104x256xbf16>, vector<256x256xbf16>, vector<104x256xf32> -> vector<104x256xf32>
    %c0_4 = arith.constant 0 : index
    %c0_5 = arith.constant 0 : index
    %4 = vector.load %arg4[%c0_4, %c0_5] : memref<1x256xf32, #tpu.memory_space<vmem>>, vector<1x256xf32>
    %5 = vector.broadcast %4 : vector<1x256xf32> to vector<104x256xf32>
    %6 = arith.addf %3, %5 : vector<104x256xf32>
    %cst_6 = arith.constant 0.000000e+00 : f32
    %7 = vector.broadcast %cst_6 : f32 to vector<104x256xf32>
    %8 = arith.maximumf %6, %7 : vector<104x256xf32>
    %9 = vector.extract_strided_slice %8 {offsets = [0, 0], sizes = [8, 256], strides = [1, 1]} : vector<104x256xf32> to vector<8x256xf32>
    %10 = vector.extract_strided_slice %8 {offsets = [8, 0], sizes = [8, 256], strides = [1, 1]} : vector<104x256xf32> to vector<8x256xf32>
    %11 = arith.maximumf %9, %10 : vector<8x256xf32>
    %12 = vector.extract_strided_slice %8 {offsets = [16, 0], sizes = [8, 256], strides = [1, 1]} : vector<104x256xf32> to vector<8x256xf32>
    %13 = arith.maximumf %11, %12 : vector<8x256xf32>
    %14 = vector.extract_strided_slice %8 {offsets = [24, 0], sizes = [8, 256], strides = [1, 1]} : vector<104x256xf32> to vector<8x256xf32>
    %15 = arith.maximumf %13, %14 : vector<8x256xf32>
    %16 = vector.extract_strided_slice %8 {offsets = [32, 0], sizes = [8, 256], strides = [1, 1]} : vector<104x256xf32> to vector<8x256xf32>
    %17 = arith.maximumf %15, %16 : vector<8x256xf32>
    %18 = vector.extract_strided_slice %8 {offsets = [40, 0], sizes = [8, 256], strides = [1, 1]} : vector<104x256xf32> to vector<8x256xf32>
    %19 = arith.maximumf %17, %18 : vector<8x256xf32>
    %20 = vector.extract_strided_slice %8 {offsets = [48, 0], sizes = [8, 256], strides = [1, 1]} : vector<104x256xf32> to vector<8x256xf32>
    %21 = arith.maximumf %19, %20 : vector<8x256xf32>
    %22 = vector.extract_strided_slice %8 {offsets = [56, 0], sizes = [8, 256], strides = [1, 1]} : vector<104x256xf32> to vector<8x256xf32>
    %23 = arith.maximumf %21, %22 : vector<8x256xf32>
    %24 = vector.extract_strided_slice %8 {offsets = [64, 0], sizes = [8, 256], strides = [1, 1]} : vector<104x256xf32> to vector<8x256xf32>
    %25 = arith.maximumf %23, %24 : vector<8x256xf32>
    %26 = vector.extract_strided_slice %8 {offsets = [72, 0], sizes = [8, 256], strides = [1, 1]} : vector<104x256xf32> to vector<8x256xf32>
    %27 = arith.maximumf %25, %26 : vector<8x256xf32>
    %28 = vector.extract_strided_slice %8 {offsets = [80, 0], sizes = [8, 256], strides = [1, 1]} : vector<104x256xf32> to vector<8x256xf32>
    %29 = arith.maximumf %27, %28 : vector<8x256xf32>
    %30 = vector.extract_strided_slice %8 {offsets = [88, 0], sizes = [8, 256], strides = [1, 1]} : vector<104x256xf32> to vector<8x256xf32>
    %31 = arith.maximumf %29, %30 : vector<8x256xf32>
    %32 = vector.extract_strided_slice %8 {offsets = [96, 0], sizes = [8, 256], strides = [1, 1]} : vector<104x256xf32> to vector<8x256xf32>
    %33 = arith.maximumf %31, %32 : vector<8x256xf32>
    %c0_i32 = arith.constant 0 : i32
    %34 = arith.cmpi eq, %arg1, %c0_i32 : i32
    %35 = arith.extui %34 : i1 to i32
    %c0_i32_7 = arith.constant 0 : i32
    %36 = arith.cmpi ne, %35, %c0_i32_7 : i32
    scf.if %36 {
      %cst_14 = arith.constant 0xFF800000 : f32
      %43 = vector.broadcast %cst_14 : f32 to vector<8x256xf32>
      %c0_15 = arith.constant 0 : index
      %c0_16 = arith.constant 0 : index
      %44 = vector.load %arg6[%c0_15, %c0_16] : memref<8x256xf32, #tpu.memory_space<vmem>>, vector<8x256xf32>
      tpu.vector_store %arg6[%c0_15, %c0_16], %43 {strides = array<i32>} : memref<8x256xf32, #tpu.memory_space<vmem>>, vector<8x256xf32>,
    } else {
    }
    %c0_8 = arith.constant 0 : index
    %c0_9 = arith.constant 0 : index
    %37 = vector.load %arg6[%c0_8, %c0_9] : memref<8x256xf32, #tpu.memory_space<vmem>>, vector<8x256xf32>
    %38 = arith.maximumf %37, %33 : vector<8x256xf32>
    %c0_10 = arith.constant 0 : index
    %c0_11 = arith.constant 0 : index
    %39 = vector.load %arg6[%c0_10, %c0_11] : memref<8x256xf32, #tpu.memory_space<vmem>>, vector<8x256xf32>
    tpu.vector_store %arg6[%c0_10, %c0_11], %38 {strides = array<i32>} : memref<8x256xf32, #tpu.memory_space<vmem>>, vector<8x256xf32>,
    %c0_i32_12 = arith.constant 0 : i32
    %40 = arith.cmpi eq, %arg1, %c0_i32_12 : i32
    %41 = arith.extui %40 : i1 to i32
    %c0_i32_13 = arith.constant 0 : i32
    %42 = arith.cmpi ne, %41, %c0_i32_13 : i32
    scf.if %42 {
      %c0_14 = arith.constant 0 : index
      %c0_15 = arith.constant 0 : index
      %43 = vector.load %arg6[%c0_14, %c0_15] : memref<8x256xf32, #tpu.memory_space<vmem>>, vector<8x256xf32>
      %44 = arith.truncf %43 : vector<8x256xf32> to vector<8x256xbf16>
      %c0_16 = arith.constant 0 : index
      %c0_17 = arith.constant 0 : index
      %45 = vector.load %arg5[%c0_16, %c0_17] : memref<8x256xbf16, #tpu.memory_space<vmem>>, vector<8x256xbf16>
      tpu.vector_store %arg5[%c0_16, %c0_17], %44 {strides = array<i32>} : memref<8x256xbf16, #tpu.memory_space<vmem>>, vector<8x256xbf16>,
    } else {
    }
    return
  }
  func.func @transform_0(%arg0: i32, %arg1: i32) -> (i32, i32, i32) {
    %c0_i32 = arith.constant 0 : i32
    %c0_i32_0 = arith.constant 0 : i32
    return %arg0, %arg1, %c0_i32 : i32, i32, i32
  }
  func.func @transform_1(%arg0: i32, %arg1: i32) -> (i32, i32) {
    %c0_i32 = arith.constant 0 : i32
    %c0_i32_0 = arith.constant 0 : i32
    %c0_i32_1 = arith.constant 0 : i32
    return %c0_i32, %c0_i32_0 : i32, i32
  }
  func.func @transform_2(%arg0: i32, %arg1: i32) -> (i32, i32) {
    %c0_i32 = arith.constant 0 : i32
    %c0_i32_0 = arith.constant 0 : i32
    %c0_i32_1 = arith.constant 0 : i32
    return %c0_i32, %c0_i32_0 : i32, i32
  }
  func.func @transform_3(%arg0: i32, %arg1: i32) -> (i32, i32) {
    %c0_i32 = arith.constant 0 : i32
    %c0_i32_0 = arith.constant 0 : i32
    return %arg0, %c0_i32 : i32, i32
  }
}

module attributes {stable_mosaic.version = 11 : i64} {
  func.func @_mlp_chain_kernel(%arg0: i32, %arg1: memref<8x259xbf16, #tpu.memory_space<vmem>>, %arg2: memref<259x256xbf16, #tpu.memory_space<vmem>>, %arg3: memref<1x256xf32, #tpu.memory_space<vmem>>, %arg4: memref<256x512xbf16, #tpu.memory_space<vmem>>, %arg5: memref<1x512xf32, #tpu.memory_space<vmem>>, %arg6: memref<8x512xbf16, #tpu.memory_space<vmem>>, %arg7: memref<8x256xbf16, #tpu.memory_space<vmem>>) attributes {dimension_semantics = [#tpu.dimension_semantics<parallel>], iteration_bounds = array<i64: 1>, scalar_prefetch = 0 : i64, scratch_operands = 1 : i64, tpu.core_type = #tpu.core_type<tc>, window_params = [{transform_indices = @transform_0, window_bounds = array<i64: 8, 259>}, {pipeline_mode = #tpu.pipeline_mode<synchronous>, transform_indices = @transform_1, window_bounds = array<i64: 259, 256>}, {pipeline_mode = #tpu.pipeline_mode<synchronous>, transform_indices = @transform_2, window_bounds = array<i64: 1, 256>}, {pipeline_mode = #tpu.pipeline_mode<synchronous>, transform_indices = @transform_3, window_bounds = array<i64: 256, 512>}, {pipeline_mode = #tpu.pipeline_mode<synchronous>, transform_indices = @transform_4, window_bounds = array<i64: 1, 512>}, {transform_indices = @transform_5, window_bounds = array<i64: 8, 512>}]} {
    %c0 = arith.constant 0 : index
    %c0_0 = arith.constant 0 : index
    %0 = vector.load %arg1[%c0, %c0_0] : memref<8x259xbf16, #tpu.memory_space<vmem>>, vector<8x259xbf16>
    %c0_1 = arith.constant 0 : index
    %c0_2 = arith.constant 0 : index
    %1 = vector.load %arg2[%c0_1, %c0_2] : memref<259x256xbf16, #tpu.memory_space<vmem>>, vector<259x256xbf16>
    %cst = arith.constant dense<0.000000e+00> : vector<8x256xf32>
    %2 = tpu.matmul %0, %1, %cst {dimension_numbers = #tpu.dot_dimension_numbers<[1], [0], [0], [1], [0, 0, 1, 1], [], []>} : vector<8x259xbf16>, vector<259x256xbf16>, vector<8x256xf32> -> vector<8x256xf32>
    %c0_3 = arith.constant 0 : index
    %c0_4 = arith.constant 0 : index
    %3 = vector.load %arg3[%c0_3, %c0_4] : memref<1x256xf32, #tpu.memory_space<vmem>>, vector<1x256xf32>
    %4 = vector.broadcast %3 : vector<1x256xf32> to vector<8x256xf32>
    %5 = arith.addf %2, %4 : vector<8x256xf32>
    %cst_5 = arith.constant 0.000000e+00 : f32
    %6 = vector.broadcast %cst_5 : f32 to vector<8x256xf32>
    %7 = arith.maximumf %5, %6 : vector<8x256xf32>
    %8 = arith.truncf %7 : vector<8x256xf32> to vector<8x256xbf16>
    %c0_6 = arith.constant 0 : index
    %c0_7 = arith.constant 0 : index
    %9 = vector.load %arg7[%c0_6, %c0_7] : memref<8x256xbf16, #tpu.memory_space<vmem>>, vector<8x256xbf16>
    tpu.vector_store %arg7[%c0_6, %c0_7], %8 {strides = array<i32>} : memref<8x256xbf16, #tpu.memory_space<vmem>>, vector<8x256xbf16>,
    %c0_8 = arith.constant 0 : index
    %c0_9 = arith.constant 0 : index
    %10 = vector.load %arg7[%c0_8, %c0_9] : memref<8x256xbf16, #tpu.memory_space<vmem>>, vector<8x256xbf16>
    %c0_10 = arith.constant 0 : index
    %c0_11 = arith.constant 0 : index
    %11 = vector.load %arg4[%c0_10, %c0_11] : memref<256x512xbf16, #tpu.memory_space<vmem>>, vector<256x512xbf16>
    %cst_12 = arith.constant dense<0.000000e+00> : vector<8x512xf32>
    %12 = tpu.matmul %10, %11, %cst_12 {dimension_numbers = #tpu.dot_dimension_numbers<[1], [0], [0], [1], [0, 0, 1, 1], [], []>} : vector<8x256xbf16>, vector<256x512xbf16>, vector<8x512xf32> -> vector<8x512xf32>
    %c0_13 = arith.constant 0 : index
    %c0_14 = arith.constant 0 : index
    %13 = vector.load %arg5[%c0_13, %c0_14] : memref<1x512xf32, #tpu.memory_space<vmem>>, vector<1x512xf32>
    %14 = vector.broadcast %13 : vector<1x512xf32> to vector<8x512xf32>
    %15 = arith.addf %12, %14 : vector<8x512xf32>
    %cst_15 = arith.constant 0.000000e+00 : f32
    %16 = vector.broadcast %cst_15 : f32 to vector<8x512xf32>
    %17 = arith.maximumf %15, %16 : vector<8x512xf32>
    %18 = arith.truncf %17 : vector<8x512xf32> to vector<8x512xbf16>
    %c0_16 = arith.constant 0 : index
    %c0_17 = arith.constant 0 : index
    %19 = vector.load %arg6[%c0_16, %c0_17] : memref<8x512xbf16, #tpu.memory_space<vmem>>, vector<8x512xbf16>
    tpu.vector_store %arg6[%c0_16, %c0_17], %18 {strides = array<i32>} : memref<8x512xbf16, #tpu.memory_space<vmem>>, vector<8x512xbf16>,
    return
  }
  func.func @transform_0(%arg0: i32) -> (i32, i32) {
    %c0_i32 = arith.constant 0 : i32
    %c0_i32_0 = arith.constant 0 : i32
    return %arg0, %c0_i32 : i32, i32
  }
  func.func @transform_1(%arg0: i32) -> (i32, i32) {
    %c0_i32 = arith.constant 0 : i32
    %c0_i32_0 = arith.constant 0 : i32
    %c0_i32_1 = arith.constant 0 : i32
    return %c0_i32, %c0_i32_0 : i32, i32
  }
  func.func @transform_2(%arg0: i32) -> (i32, i32) {
    %c0_i32 = arith.constant 0 : i32
    %c0_i32_0 = arith.constant 0 : i32
    %c0_i32_1 = arith.constant 0 : i32
    return %c0_i32, %c0_i32_0 : i32, i32
  }
  func.func @transform_3(%arg0: i32) -> (i32, i32) {
    %c0_i32 = arith.constant 0 : i32
    %c0_i32_0 = arith.constant 0 : i32
    %c0_i32_1 = arith.constant 0 : i32
    return %c0_i32, %c0_i32_0 : i32, i32
  }
  func.func @transform_4(%arg0: i32) -> (i32, i32) {
    %c0_i32 = arith.constant 0 : i32
    %c0_i32_0 = arith.constant 0 : i32
    %c0_i32_1 = arith.constant 0 : i32
    return %c0_i32, %c0_i32_0 : i32, i32
  }
  func.func @transform_5(%arg0: i32) -> (i32, i32) {
    %c0_i32 = arith.constant 0 : i32
    %c0_i32_0 = arith.constant 0 : i32
    return %arg0, %c0_i32 : i32, i32
  }
}

module attributes {stable_mosaic.version = 11 : i64} {
  func.func @_linear_rowmax_kernel(%arg0: i32, %arg1: memref<8x512xbf16, #tpu.memory_space<vmem>>, %arg2: memref<512x1024xbf16, #tpu.memory_space<vmem>>, %arg3: memref<1x1024xf32, #tpu.memory_space<vmem>>, %arg4: memref<1x1024xbf16, #tpu.memory_space<vmem>>, %arg5: memref<1x1024xf32, #tpu.memory_space<vmem>>) attributes {dimension_semantics = [#tpu.dimension_semantics<arbitrary>], iteration_bounds = array<i64: 1>, scalar_prefetch = 0 : i64, scratch_operands = 1 : i64, tpu.core_type = #tpu.core_type<tc>, window_params = [{transform_indices = @transform_0, window_bounds = array<i64: 8, 512>}, {pipeline_mode = #tpu.pipeline_mode<synchronous>, transform_indices = @transform_1, window_bounds = array<i64: 512, 1024>}, {pipeline_mode = #tpu.pipeline_mode<synchronous>, transform_indices = @transform_2, window_bounds = array<i64: 1, 1024>}, {pipeline_mode = #tpu.pipeline_mode<synchronous>, transform_indices = @transform_3, window_bounds = array<i64: 1, 1024>}]} {
    %c0 = arith.constant 0 : index
    %c0_0 = arith.constant 0 : index
    %0 = vector.load %arg1[%c0, %c0_0] : memref<8x512xbf16, #tpu.memory_space<vmem>>, vector<8x512xbf16>
    %c0_1 = arith.constant 0 : index
    %c0_2 = arith.constant 0 : index
    %1 = vector.load %arg2[%c0_1, %c0_2] : memref<512x1024xbf16, #tpu.memory_space<vmem>>, vector<512x1024xbf16>
    %cst = arith.constant dense<0.000000e+00> : vector<8x1024xf32>
    %2 = tpu.matmul %0, %1, %cst {dimension_numbers = #tpu.dot_dimension_numbers<[1], [0], [0], [1], [0, 0, 1, 1], [], []>} : vector<8x512xbf16>, vector<512x1024xbf16>, vector<8x1024xf32> -> vector<8x1024xf32>
    %c0_3 = arith.constant 0 : index
    %c0_4 = arith.constant 0 : index
    %3 = vector.load %arg3[%c0_3, %c0_4] : memref<1x1024xf32, #tpu.memory_space<vmem>>, vector<1x1024xf32>
    %4 = vector.broadcast %3 : vector<1x1024xf32> to vector<8x1024xf32>
    %5 = arith.addf %2, %4 : vector<8x1024xf32>
    %cst_5 = arith.constant 0.000000e+00 : f32
    %6 = vector.broadcast %cst_5 : f32 to vector<8x1024xf32>
    %7 = arith.maximumf %5, %6 : vector<8x1024xf32>
    %8 = tpu.iota {dimensions = array<i32: 0>} : vector<8x1024xi32>
    %c8_i32 = arith.constant 8 : i32
    %9 = arith.muli %arg0, %c8_i32 : i32
    %10 = vector.broadcast %9 : i32 to vector<8x1024xi32>
    %11 = arith.addi %8, %10 : vector<8x1024xi32>
    %c6_i32 = arith.constant 6 : i32
    %12 = vector.broadcast %c6_i32 : i32 to vector<8x1024xi32>
    %13 = arith.cmpi slt, %11, %12 : vector<8x1024xi32>
    %cst_6 = arith.constant 0xFF800000 : f32
    %14 = vector.broadcast %cst_6 : f32 to vector<8x1024xf32>
    %15 = arith.select %13, %7, %14 : vector<8x1024xi1>, vector<8x1024xf32>
    %c0_i32 = arith.constant 0 : i32
    %16 = arith.cmpi eq, %arg0, %c0_i32 : i32
    %17 = arith.extui %16 : i1 to i32
    %c0_i32_7 = arith.constant 0 : i32
    %18 = arith.cmpi ne, %17, %c0_i32_7 : i32
    scf.if %18 {
      %cst_15 = arith.constant 0xFF800000 : f32
      %27 = vector.broadcast %cst_15 : f32 to vector<1x1024xf32>
      %c0_16 = arith.constant 0 : index
      %c0_17 = arith.constant 0 : index
      %28 = vector.load %arg5[%c0_16, %c0_17] : memref<1x1024xf32, #tpu.memory_space<vmem>>, vector<1x1024xf32>
      tpu.vector_store %arg5[%c0_16, %c0_17], %27 {strides = array<i32>} : memref<1x1024xf32, #tpu.memory_space<vmem>>, vector<1x1024xf32>,
    } else {
    }
    %c0_8 = arith.constant 0 : index
    %c0_9 = arith.constant 0 : index
    %19 = vector.load %arg5[%c0_8, %c0_9] : memref<1x1024xf32, #tpu.memory_space<vmem>>, vector<1x1024xf32>
    %cst_10 = arith.constant dense<0xFF800000> : vector<1024xf32>
    %20 = vector.multi_reduction <maximumf>, %15, %cst_10 [0] : vector<8x1024xf32> to vector<1024xf32>
    %21 = vector.shape_cast %20 : vector<1024xf32> to vector<1x1024xf32>
    %22 = arith.maximumf %19, %21 : vector<1x1024xf32>
    %c0_11 = arith.constant 0 : index
    %c0_12 = arith.constant 0 : index
    %23 = vector.load %arg5[%c0_11, %c0_12] : memref<1x1024xf32, #tpu.memory_space<vmem>>, vector<1x1024xf32>
    tpu.vector_store %arg5[%c0_11, %c0_12], %22 {strides = array<i32>} : memref<1x1024xf32, #tpu.memory_space<vmem>>, vector<1x1024xf32>,
    %c0_i32_13 = arith.constant 0 : i32
    %24 = arith.cmpi eq, %arg0, %c0_i32_13 : i32
    %25 = arith.extui %24 : i1 to i32
    %c0_i32_14 = arith.constant 0 : i32
    %26 = arith.cmpi ne, %25, %c0_i32_14 : i32
    scf.if %26 {
      %c0_15 = arith.constant 0 : index
      %c0_16 = arith.constant 0 : index
      %27 = vector.load %arg5[%c0_15, %c0_16] : memref<1x1024xf32, #tpu.memory_space<vmem>>, vector<1x1024xf32>
      %28 = arith.truncf %27 : vector<1x1024xf32> to vector<1x1024xbf16>
      %c0_17 = arith.constant 0 : index
      %c0_18 = arith.constant 0 : index
      %29 = vector.load %arg4[%c0_17, %c0_18] : memref<1x1024xbf16, #tpu.memory_space<vmem>>, vector<1x1024xbf16>
      tpu.vector_store %arg4[%c0_17, %c0_18], %28 {strides = array<i32>} : memref<1x1024xbf16, #tpu.memory_space<vmem>>, vector<1x1024xbf16>,
    } else {
    }
    return
  }
  func.func @transform_0(%arg0: i32) -> (i32, i32) {
    %c0_i32 = arith.constant 0 : i32
    %c0_i32_0 = arith.constant 0 : i32
    return %arg0, %c0_i32 : i32, i32
  }
  func.func @transform_1(%arg0: i32) -> (i32, i32) {
    %c0_i32 = arith.constant 0 : i32
    %c0_i32_0 = arith.constant 0 : i32
    %c0_i32_1 = arith.constant 0 : i32
    return %c0_i32, %c0_i32_0 : i32, i32
  }
  func.func @transform_2(%arg0: i32) -> (i32, i32) {
    %c0_i32 = arith.constant 0 : i32
    %c0_i32_0 = arith.constant 0 : i32
    %c0_i32_1 = arith.constant 0 : i32
    return %c0_i32, %c0_i32_0 : i32, i32
  }
  func.func @transform_3(%arg0: i32) -> (i32, i32) {
    %c0_i32 = arith.constant 0 : i32
    %c0_i32_0 = arith.constant 0 : i32
    %c0_i32_1 = arith.constant 0 : i32
    return %c0_i32, %c0_i32_0 : i32, i32
  }
}

module attributes {stable_mosaic.version = 11 : i64} {
  func.func @_mlp_chain_kernel(%arg0: i32, %arg1: memref<8x1280xbf16, #tpu.memory_space<vmem>>, %arg2: memref<1280x256xbf16, #tpu.memory_space<vmem>>, %arg3: memref<1x256xf32, #tpu.memory_space<vmem>>, %arg4: memref<256x256xbf16, #tpu.memory_space<vmem>>, %arg5: memref<1x256xf32, #tpu.memory_space<vmem>>, %arg6: memref<8x256xbf16, #tpu.memory_space<vmem>>, %arg7: memref<8x256xbf16, #tpu.memory_space<vmem>>) attributes {dimension_semantics = [#tpu.dimension_semantics<parallel>], iteration_bounds = array<i64: 1>, scalar_prefetch = 0 : i64, scratch_operands = 1 : i64, tpu.core_type = #tpu.core_type<tc>, window_params = [{transform_indices = @transform_0, window_bounds = array<i64: 8, 1280>}, {pipeline_mode = #tpu.pipeline_mode<synchronous>, transform_indices = @transform_1, window_bounds = array<i64: 1280, 256>}, {pipeline_mode = #tpu.pipeline_mode<synchronous>, transform_indices = @transform_2, window_bounds = array<i64: 1, 256>}, {pipeline_mode = #tpu.pipeline_mode<synchronous>, transform_indices = @transform_3, window_bounds = array<i64: 256, 256>}, {pipeline_mode = #tpu.pipeline_mode<synchronous>, transform_indices = @transform_4, window_bounds = array<i64: 1, 256>}, {transform_indices = @transform_5, window_bounds = array<i64: 8, 256>}]} {
    %c0 = arith.constant 0 : index
    %c0_0 = arith.constant 0 : index
    %0 = vector.load %arg1[%c0, %c0_0] : memref<8x1280xbf16, #tpu.memory_space<vmem>>, vector<8x1280xbf16>
    %c0_1 = arith.constant 0 : index
    %c0_2 = arith.constant 0 : index
    %1 = vector.load %arg2[%c0_1, %c0_2] : memref<1280x256xbf16, #tpu.memory_space<vmem>>, vector<1280x256xbf16>
    %cst = arith.constant dense<0.000000e+00> : vector<8x256xf32>
    %2 = tpu.matmul %0, %1, %cst {dimension_numbers = #tpu.dot_dimension_numbers<[1], [0], [0], [1], [0, 0, 1, 1], [], []>} : vector<8x1280xbf16>, vector<1280x256xbf16>, vector<8x256xf32> -> vector<8x256xf32>
    %c0_3 = arith.constant 0 : index
    %c0_4 = arith.constant 0 : index
    %3 = vector.load %arg3[%c0_3, %c0_4] : memref<1x256xf32, #tpu.memory_space<vmem>>, vector<1x256xf32>
    %4 = vector.broadcast %3 : vector<1x256xf32> to vector<8x256xf32>
    %5 = arith.addf %2, %4 : vector<8x256xf32>
    %cst_5 = arith.constant 0.000000e+00 : f32
    %6 = vector.broadcast %cst_5 : f32 to vector<8x256xf32>
    %7 = arith.maximumf %5, %6 : vector<8x256xf32>
    %8 = arith.truncf %7 : vector<8x256xf32> to vector<8x256xbf16>
    %c0_6 = arith.constant 0 : index
    %c0_7 = arith.constant 0 : index
    %9 = vector.load %arg7[%c0_6, %c0_7] : memref<8x256xbf16, #tpu.memory_space<vmem>>, vector<8x256xbf16>
    tpu.vector_store %arg7[%c0_6, %c0_7], %8 {strides = array<i32>} : memref<8x256xbf16, #tpu.memory_space<vmem>>, vector<8x256xbf16>,
    %c0_8 = arith.constant 0 : index
    %c0_9 = arith.constant 0 : index
    %10 = vector.load %arg7[%c0_8, %c0_9] : memref<8x256xbf16, #tpu.memory_space<vmem>>, vector<8x256xbf16>
    %c0_10 = arith.constant 0 : index
    %c0_11 = arith.constant 0 : index
    %11 = vector.load %arg4[%c0_10, %c0_11] : memref<256x256xbf16, #tpu.memory_space<vmem>>, vector<256x256xbf16>
    %cst_12 = arith.constant dense<0.000000e+00> : vector<8x256xf32>
    %12 = tpu.matmul %10, %11, %cst_12 {dimension_numbers = #tpu.dot_dimension_numbers<[1], [0], [0], [1], [0, 0, 1, 1], [], []>} : vector<8x256xbf16>, vector<256x256xbf16>, vector<8x256xf32> -> vector<8x256xf32>
    %c0_13 = arith.constant 0 : index
    %c0_14 = arith.constant 0 : index
    %13 = vector.load %arg5[%c0_13, %c0_14] : memref<1x256xf32, #tpu.memory_space<vmem>>, vector<1x256xf32>
    %14 = vector.broadcast %13 : vector<1x256xf32> to vector<8x256xf32>
    %15 = arith.addf %12, %14 : vector<8x256xf32>
    %cst_15 = arith.constant 0.000000e+00 : f32
    %16 = vector.broadcast %cst_15 : f32 to vector<8x256xf32>
    %17 = arith.maximumf %15, %16 : vector<8x256xf32>
    %18 = arith.truncf %17 : vector<8x256xf32> to vector<8x256xbf16>
    %c0_16 = arith.constant 0 : index
    %c0_17 = arith.constant 0 : index
    %19 = vector.load %arg6[%c0_16, %c0_17] : memref<8x256xbf16, #tpu.memory_space<vmem>>, vector<8x256xbf16>
    tpu.vector_store %arg6[%c0_16, %c0_17], %18 {strides = array<i32>} : memref<8x256xbf16, #tpu.memory_space<vmem>>, vector<8x256xbf16>,
    return
  }
  func.func @transform_0(%arg0: i32) -> (i32, i32) {
    %c0_i32 = arith.constant 0 : i32
    %c0_i32_0 = arith.constant 0 : i32
    return %arg0, %c0_i32 : i32, i32
  }
  func.func @transform_1(%arg0: i32) -> (i32, i32) {
    %c0_i32 = arith.constant 0 : i32
    %c0_i32_0 = arith.constant 0 : i32
    %c0_i32_1 = arith.constant 0 : i32
    return %c0_i32, %c0_i32_0 : i32, i32
  }
  func.func @transform_2(%arg0: i32) -> (i32, i32) {
    %c0_i32 = arith.constant 0 : i32
    %c0_i32_0 = arith.constant 0 : i32
    %c0_i32_1 = arith.constant 0 : i32
    return %c0_i32, %c0_i32_0 : i32, i32
  }
  func.func @transform_3(%arg0: i32) -> (i32, i32) {
    %c0_i32 = arith.constant 0 : i32
    %c0_i32_0 = arith.constant 0 : i32
    %c0_i32_1 = arith.constant 0 : i32
    return %c0_i32, %c0_i32_0 : i32, i32
  }
  func.func @transform_4(%arg0: i32) -> (i32, i32) {
    %c0_i32 = arith.constant 0 : i32
    %c0_i32_0 = arith.constant 0 : i32
    %c0_i32_1 = arith.constant 0 : i32
    return %c0_i32, %c0_i32_0 : i32, i32
  }
  func.func @transform_5(%arg0: i32) -> (i32, i32) {
    %c0_i32 = arith.constant 0 : i32
    %c0_i32_0 = arith.constant 0 : i32
    return %arg0, %c0_i32 : i32, i32
  }
}

module attributes {stable_mosaic.version = 11 : i64} {
  func.func @_mlp_chain_kernel(%arg0: i32, %arg1: memref<16x512xbf16, #tpu.memory_space<vmem>>, %arg2: memref<512x256xbf16, #tpu.memory_space<vmem>>, %arg3: memref<1x256xf32, #tpu.memory_space<vmem>>, %arg4: memref<256x256xbf16, #tpu.memory_space<vmem>>, %arg5: memref<1x256xf32, #tpu.memory_space<vmem>>, %arg6: memref<16x256xbf16, #tpu.memory_space<vmem>>, %arg7: memref<16x256xbf16, #tpu.memory_space<vmem>>) attributes {dimension_semantics = [#tpu.dimension_semantics<parallel>], iteration_bounds = array<i64: 1>, scalar_prefetch = 0 : i64, scratch_operands = 1 : i64, tpu.core_type = #tpu.core_type<tc>, window_params = [{transform_indices = @transform_0, window_bounds = array<i64: 16, 512>}, {pipeline_mode = #tpu.pipeline_mode<synchronous>, transform_indices = @transform_1, window_bounds = array<i64: 512, 256>}, {pipeline_mode = #tpu.pipeline_mode<synchronous>, transform_indices = @transform_2, window_bounds = array<i64: 1, 256>}, {pipeline_mode = #tpu.pipeline_mode<synchronous>, transform_indices = @transform_3, window_bounds = array<i64: 256, 256>}, {pipeline_mode = #tpu.pipeline_mode<synchronous>, transform_indices = @transform_4, window_bounds = array<i64: 1, 256>}, {transform_indices = @transform_5, window_bounds = array<i64: 16, 256>}]} {
    %c0 = arith.constant 0 : index
    %c0_0 = arith.constant 0 : index
    %0 = vector.load %arg1[%c0, %c0_0] : memref<16x512xbf16, #tpu.memory_space<vmem>>, vector<16x512xbf16>
    %c0_1 = arith.constant 0 : index
    %c0_2 = arith.constant 0 : index
    %1 = vector.load %arg2[%c0_1, %c0_2] : memref<512x256xbf16, #tpu.memory_space<vmem>>, vector<512x256xbf16>
    %cst = arith.constant dense<0.000000e+00> : vector<16x256xf32>
    %2 = tpu.matmul %0, %1, %cst {dimension_numbers = #tpu.dot_dimension_numbers<[1], [0], [0], [1], [0, 0, 1, 1], [], []>} : vector<16x512xbf16>, vector<512x256xbf16>, vector<16x256xf32> -> vector<16x256xf32>
    %c0_3 = arith.constant 0 : index
    %c0_4 = arith.constant 0 : index
    %3 = vector.load %arg3[%c0_3, %c0_4] : memref<1x256xf32, #tpu.memory_space<vmem>>, vector<1x256xf32>
    %4 = vector.broadcast %3 : vector<1x256xf32> to vector<16x256xf32>
    %5 = arith.addf %2, %4 : vector<16x256xf32>
    %cst_5 = arith.constant 0.000000e+00 : f32
    %6 = vector.broadcast %cst_5 : f32 to vector<16x256xf32>
    %7 = arith.maximumf %5, %6 : vector<16x256xf32>
    %8 = arith.truncf %7 : vector<16x256xf32> to vector<16x256xbf16>
    %c0_6 = arith.constant 0 : index
    %c0_7 = arith.constant 0 : index
    %9 = vector.load %arg7[%c0_6, %c0_7] : memref<16x256xbf16, #tpu.memory_space<vmem>>, vector<16x256xbf16>
    tpu.vector_store %arg7[%c0_6, %c0_7], %8 {strides = array<i32>} : memref<16x256xbf16, #tpu.memory_space<vmem>>, vector<16x256xbf16>,
    %c0_8 = arith.constant 0 : index
    %c0_9 = arith.constant 0 : index
    %10 = vector.load %arg7[%c0_8, %c0_9] : memref<16x256xbf16, #tpu.memory_space<vmem>>, vector<16x256xbf16>
    %c0_10 = arith.constant 0 : index
    %c0_11 = arith.constant 0 : index
    %11 = vector.load %arg4[%c0_10, %c0_11] : memref<256x256xbf16, #tpu.memory_space<vmem>>, vector<256x256xbf16>
    %cst_12 = arith.constant dense<0.000000e+00> : vector<16x256xf32>
    %12 = tpu.matmul %10, %11, %cst_12 {dimension_numbers = #tpu.dot_dimension_numbers<[1], [0], [0], [1], [0, 0, 1, 1], [], []>} : vector<16x256xbf16>, vector<256x256xbf16>, vector<16x256xf32> -> vector<16x256xf32>
    %c0_13 = arith.constant 0 : index
    %c0_14 = arith.constant 0 : index
    %13 = vector.load %arg5[%c0_13, %c0_14] : memref<1x256xf32, #tpu.memory_space<vmem>>, vector<1x256xf32>
    %14 = vector.broadcast %13 : vector<1x256xf32> to vector<16x256xf32>
    %15 = arith.addf %12, %14 : vector<16x256xf32>
    %cst_15 = arith.constant 0.000000e+00 : f32
    %16 = vector.broadcast %cst_15 : f32 to vector<16x256xf32>
    %17 = arith.maximumf %15, %16 : vector<16x256xf32>
    %18 = arith.truncf %17 : vector<16x256xf32> to vector<16x256xbf16>
    %c0_16 = arith.constant 0 : index
    %c0_17 = arith.constant 0 : index
    %19 = vector.load %arg6[%c0_16, %c0_17] : memref<16x256xbf16, #tpu.memory_space<vmem>>, vector<16x256xbf16>
    tpu.vector_store %arg6[%c0_16, %c0_17], %18 {strides = array<i32>} : memref<16x256xbf16, #tpu.memory_space<vmem>>, vector<16x256xbf16>,
    return
  }
  func.func @transform_0(%arg0: i32) -> (i32, i32) {
    %c0_i32 = arith.constant 0 : i32
    %c0_i32_0 = arith.constant 0 : i32
    return %arg0, %c0_i32 : i32, i32
  }
  func.func @transform_1(%arg0: i32) -> (i32, i32) {
    %c0_i32 = arith.constant 0 : i32
    %c0_i32_0 = arith.constant 0 : i32
    %c0_i32_1 = arith.constant 0 : i32
    return %c0_i32, %c0_i32_0 : i32, i32
  }
  func.func @transform_2(%arg0: i32) -> (i32, i32) {
    %c0_i32 = arith.constant 0 : i32
    %c0_i32_0 = arith.constant 0 : i32
    %c0_i32_1 = arith.constant 0 : i32
    return %c0_i32, %c0_i32_0 : i32, i32
  }
  func.func @transform_3(%arg0: i32) -> (i32, i32) {
    %c0_i32 = arith.constant 0 : i32
    %c0_i32_0 = arith.constant 0 : i32
    %c0_i32_1 = arith.constant 0 : i32
    return %c0_i32, %c0_i32_0 : i32, i32
  }
  func.func @transform_4(%arg0: i32) -> (i32, i32) {
    %c0_i32 = arith.constant 0 : i32
    %c0_i32_0 = arith.constant 0 : i32
    %c0_i32_1 = arith.constant 0 : i32
    return %c0_i32, %c0_i32_0 : i32, i32
  }
  func.func @transform_5(%arg0: i32) -> (i32, i32) {
    %c0_i32 = arith.constant 0 : i32
    %c0_i32_0 = arith.constant 0 : i32
    return %arg0, %c0_i32 : i32, i32
  }
}

module attributes {stable_mosaic.version = 11 : i64} {
  func.func @_mlp_chain_kernel(%arg0: i32, %arg1: memref<32x384xbf16, #tpu.memory_space<vmem>>, %arg2: memref<384x256xbf16, #tpu.memory_space<vmem>>, %arg3: memref<1x256xf32, #tpu.memory_space<vmem>>, %arg4: memref<256x128xbf16, #tpu.memory_space<vmem>>, %arg5: memref<1x128xf32, #tpu.memory_space<vmem>>, %arg6: memref<32x128xbf16, #tpu.memory_space<vmem>>, %arg7: memref<32x256xbf16, #tpu.memory_space<vmem>>) attributes {dimension_semantics = [#tpu.dimension_semantics<parallel>], iteration_bounds = array<i64: 1>, scalar_prefetch = 0 : i64, scratch_operands = 1 : i64, tpu.core_type = #tpu.core_type<tc>, window_params = [{transform_indices = @transform_0, window_bounds = array<i64: 32, 384>}, {pipeline_mode = #tpu.pipeline_mode<synchronous>, transform_indices = @transform_1, window_bounds = array<i64: 384, 256>}, {pipeline_mode = #tpu.pipeline_mode<synchronous>, transform_indices = @transform_2, window_bounds = array<i64: 1, 256>}, {pipeline_mode = #tpu.pipeline_mode<synchronous>, transform_indices = @transform_3, window_bounds = array<i64: 256, 128>}, {pipeline_mode = #tpu.pipeline_mode<synchronous>, transform_indices = @transform_4, window_bounds = array<i64: 1, 128>}, {transform_indices = @transform_5, window_bounds = array<i64: 32, 128>}]} {
    %c0 = arith.constant 0 : index
    %c0_0 = arith.constant 0 : index
    %0 = vector.load %arg1[%c0, %c0_0] : memref<32x384xbf16, #tpu.memory_space<vmem>>, vector<32x384xbf16>
    %c0_1 = arith.constant 0 : index
    %c0_2 = arith.constant 0 : index
    %1 = vector.load %arg2[%c0_1, %c0_2] : memref<384x256xbf16, #tpu.memory_space<vmem>>, vector<384x256xbf16>
    %cst = arith.constant dense<0.000000e+00> : vector<32x256xf32>
    %2 = tpu.matmul %0, %1, %cst {dimension_numbers = #tpu.dot_dimension_numbers<[1], [0], [0], [1], [0, 0, 1, 1], [], []>} : vector<32x384xbf16>, vector<384x256xbf16>, vector<32x256xf32> -> vector<32x256xf32>
    %c0_3 = arith.constant 0 : index
    %c0_4 = arith.constant 0 : index
    %3 = vector.load %arg3[%c0_3, %c0_4] : memref<1x256xf32, #tpu.memory_space<vmem>>, vector<1x256xf32>
    %4 = vector.broadcast %3 : vector<1x256xf32> to vector<32x256xf32>
    %5 = arith.addf %2, %4 : vector<32x256xf32>
    %cst_5 = arith.constant 0.000000e+00 : f32
    %6 = vector.broadcast %cst_5 : f32 to vector<32x256xf32>
    %7 = arith.maximumf %5, %6 : vector<32x256xf32>
    %8 = arith.truncf %7 : vector<32x256xf32> to vector<32x256xbf16>
    %c0_6 = arith.constant 0 : index
    %c0_7 = arith.constant 0 : index
    %9 = vector.load %arg7[%c0_6, %c0_7] : memref<32x256xbf16, #tpu.memory_space<vmem>>, vector<32x256xbf16>
    tpu.vector_store %arg7[%c0_6, %c0_7], %8 {strides = array<i32>} : memref<32x256xbf16, #tpu.memory_space<vmem>>, vector<32x256xbf16>,
    %c0_8 = arith.constant 0 : index
    %c0_9 = arith.constant 0 : index
    %10 = vector.load %arg7[%c0_8, %c0_9] : memref<32x256xbf16, #tpu.memory_space<vmem>>, vector<32x256xbf16>
    %c0_10 = arith.constant 0 : index
    %c0_11 = arith.constant 0 : index
    %11 = vector.load %arg4[%c0_10, %c0_11] : memref<256x128xbf16, #tpu.memory_space<vmem>>, vector<256x128xbf16>
    %cst_12 = arith.constant dense<0.000000e+00> : vector<32x128xf32>
    %12 = tpu.matmul %10, %11, %cst_12 {dimension_numbers = #tpu.dot_dimension_numbers<[1], [0], [0], [1], [0, 0, 1, 1], [], []>} : vector<32x256xbf16>, vector<256x128xbf16>, vector<32x128xf32> -> vector<32x128xf32>
    %c0_13 = arith.constant 0 : index
    %c0_14 = arith.constant 0 : index
    %13 = vector.load %arg5[%c0_13, %c0_14] : memref<1x128xf32, #tpu.memory_space<vmem>>, vector<1x128xf32>
    %14 = vector.broadcast %13 : vector<1x128xf32> to vector<32x128xf32>
    %15 = arith.addf %12, %14 : vector<32x128xf32>
    %cst_15 = arith.constant 0.000000e+00 : f32
    %16 = vector.broadcast %cst_15 : f32 to vector<32x128xf32>
    %17 = arith.maximumf %15, %16 : vector<32x128xf32>
    %18 = arith.truncf %17 : vector<32x128xf32> to vector<32x128xbf16>
    %c0_16 = arith.constant 0 : index
    %c0_17 = arith.constant 0 : index
    %19 = vector.load %arg6[%c0_16, %c0_17] : memref<32x128xbf16, #tpu.memory_space<vmem>>, vector<32x128xbf16>
    tpu.vector_store %arg6[%c0_16, %c0_17], %18 {strides = array<i32>} : memref<32x128xbf16, #tpu.memory_space<vmem>>, vector<32x128xbf16>,
    return
  }
  func.func @transform_0(%arg0: i32) -> (i32, i32) {
    %c0_i32 = arith.constant 0 : i32
    %c0_i32_0 = arith.constant 0 : i32
    return %arg0, %c0_i32 : i32, i32
  }
  func.func @transform_1(%arg0: i32) -> (i32, i32) {
    %c0_i32 = arith.constant 0 : i32
    %c0_i32_0 = arith.constant 0 : i32
    %c0_i32_1 = arith.constant 0 : i32
    return %c0_i32, %c0_i32_0 : i32, i32
  }
  func.func @transform_2(%arg0: i32) -> (i32, i32) {
    %c0_i32 = arith.constant 0 : i32
    %c0_i32_0 = arith.constant 0 : i32
    %c0_i32_1 = arith.constant 0 : i32
    return %c0_i32, %c0_i32_0 : i32, i32
  }
  func.func @transform_3(%arg0: i32) -> (i32, i32) {
    %c0_i32 = arith.constant 0 : i32
    %c0_i32_0 = arith.constant 0 : i32
    %c0_i32_1 = arith.constant 0 : i32
    return %c0_i32, %c0_i32_0 : i32, i32
  }
  func.func @transform_4(%arg0: i32) -> (i32, i32) {
    %c0_i32 = arith.constant 0 : i32
    %c0_i32_0 = arith.constant 0 : i32
    %c0_i32_1 = arith.constant 0 : i32
    return %c0_i32, %c0_i32_0 : i32, i32
  }
  func.func @transform_5(%arg0: i32) -> (i32, i32) {
    %c0_i32 = arith.constant 0 : i32
    %c0_i32_0 = arith.constant 0 : i32
    return %arg0, %c0_i32 : i32, i32
  }
}

module attributes {stable_mosaic.version = 11 : i64} {
  func.func @_mlp_chain_kernel(%arg0: i32, %arg1: memref<64x132xbf16, #tpu.memory_space<vmem>>, %arg2: memref<132x128xbf16, #tpu.memory_space<vmem>>, %arg3: memref<1x128xf32, #tpu.memory_space<vmem>>, %arg4: memref<128x128xbf16, #tpu.memory_space<vmem>>, %arg5: memref<1x128xf32, #tpu.memory_space<vmem>>, %arg6: memref<64x128xbf16, #tpu.memory_space<vmem>>, %arg7: memref<64x128xbf16, #tpu.memory_space<vmem>>) attributes {dimension_semantics = [#tpu.dimension_semantics<parallel>], iteration_bounds = array<i64: 1>, scalar_prefetch = 0 : i64, scratch_operands = 1 : i64, tpu.core_type = #tpu.core_type<tc>, window_params = [{transform_indices = @transform_0, window_bounds = array<i64: 64, 132>}, {pipeline_mode = #tpu.pipeline_mode<synchronous>, transform_indices = @transform_1, window_bounds = array<i64: 132, 128>}, {pipeline_mode = #tpu.pipeline_mode<synchronous>, transform_indices = @transform_2, window_bounds = array<i64: 1, 128>}, {pipeline_mode = #tpu.pipeline_mode<synchronous>, transform_indices = @transform_3, window_bounds = array<i64: 128, 128>}, {pipeline_mode = #tpu.pipeline_mode<synchronous>, transform_indices = @transform_4, window_bounds = array<i64: 1, 128>}, {transform_indices = @transform_5, window_bounds = array<i64: 64, 128>}]} {
    %c0 = arith.constant 0 : index
    %c0_0 = arith.constant 0 : index
    %0 = vector.load %arg1[%c0, %c0_0] : memref<64x132xbf16, #tpu.memory_space<vmem>>, vector<64x132xbf16>
    %c0_1 = arith.constant 0 : index
    %c0_2 = arith.constant 0 : index
    %1 = vector.load %arg2[%c0_1, %c0_2] : memref<132x128xbf16, #tpu.memory_space<vmem>>, vector<132x128xbf16>
    %cst = arith.constant dense<0.000000e+00> : vector<64x128xf32>
    %2 = tpu.matmul %0, %1, %cst {dimension_numbers = #tpu.dot_dimension_numbers<[1], [0], [0], [1], [0, 0, 1, 1], [], []>} : vector<64x132xbf16>, vector<132x128xbf16>, vector<64x128xf32> -> vector<64x128xf32>
    %c0_3 = arith.constant 0 : index
    %c0_4 = arith.constant 0 : index
    %3 = vector.load %arg3[%c0_3, %c0_4] : memref<1x128xf32, #tpu.memory_space<vmem>>, vector<1x128xf32>
    %4 = vector.broadcast %3 : vector<1x128xf32> to vector<64x128xf32>
    %5 = arith.addf %2, %4 : vector<64x128xf32>
    %cst_5 = arith.constant 0.000000e+00 : f32
    %6 = vector.broadcast %cst_5 : f32 to vector<64x128xf32>
    %7 = arith.maximumf %5, %6 : vector<64x128xf32>
    %8 = arith.truncf %7 : vector<64x128xf32> to vector<64x128xbf16>
    %c0_6 = arith.constant 0 : index
    %c0_7 = arith.constant 0 : index
    %9 = vector.load %arg7[%c0_6, %c0_7] : memref<64x128xbf16, #tpu.memory_space<vmem>>, vector<64x128xbf16>
    tpu.vector_store %arg7[%c0_6, %c0_7], %8 {strides = array<i32>} : memref<64x128xbf16, #tpu.memory_space<vmem>>, vector<64x128xbf16>,
    %c0_8 = arith.constant 0 : index
    %c0_9 = arith.constant 0 : index
    %10 = vector.load %arg7[%c0_8, %c0_9] : memref<64x128xbf16, #tpu.memory_space<vmem>>, vector<64x128xbf16>
    %c0_10 = arith.constant 0 : index
    %c0_11 = arith.constant 0 : index
    %11 = vector.load %arg4[%c0_10, %c0_11] : memref<128x128xbf16, #tpu.memory_space<vmem>>, vector<128x128xbf16>
    %cst_12 = arith.constant dense<0.000000e+00> : vector<64x128xf32>
    %12 = tpu.matmul %10, %11, %cst_12 {dimension_numbers = #tpu.dot_dimension_numbers<[1], [0], [0], [1], [0, 0, 1, 1], [], []>} : vector<64x128xbf16>, vector<128x128xbf16>, vector<64x128xf32> -> vector<64x128xf32>
    %c0_13 = arith.constant 0 : index
    %c0_14 = arith.constant 0 : index
    %13 = vector.load %arg5[%c0_13, %c0_14] : memref<1x128xf32, #tpu.memory_space<vmem>>, vector<1x128xf32>
    %14 = vector.broadcast %13 : vector<1x128xf32> to vector<64x128xf32>
    %15 = arith.addf %12, %14 : vector<64x128xf32>
    %cst_15 = arith.constant 0.000000e+00 : f32
    %16 = vector.broadcast %cst_15 : f32 to vector<64x128xf32>
    %17 = arith.maximumf %15, %16 : vector<64x128xf32>
    %18 = arith.truncf %17 : vector<64x128xf32> to vector<64x128xbf16>
    %c0_16 = arith.constant 0 : index
    %c0_17 = arith.constant 0 : index
    %19 = vector.load %arg6[%c0_16, %c0_17] : memref<64x128xbf16, #tpu.memory_space<vmem>>, vector<64x128xbf16>
    tpu.vector_store %arg6[%c0_16, %c0_17], %18 {strides = array<i32>} : memref<64x128xbf16, #tpu.memory_space<vmem>>, vector<64x128xbf16>,
    return
  }
  func.func @transform_0(%arg0: i32) -> (i32, i32) {
    %c0_i32 = arith.constant 0 : i32
    %c0_i32_0 = arith.constant 0 : i32
    return %arg0, %c0_i32 : i32, i32
  }
  func.func @transform_1(%arg0: i32) -> (i32, i32) {
    %c0_i32 = arith.constant 0 : i32
    %c0_i32_0 = arith.constant 0 : i32
    %c0_i32_1 = arith.constant 0 : i32
    return %c0_i32, %c0_i32_0 : i32, i32
  }
  func.func @transform_2(%arg0: i32) -> (i32, i32) {
    %c0_i32 = arith.constant 0 : i32
    %c0_i32_0 = arith.constant 0 : i32
    %c0_i32_1 = arith.constant 0 : i32
    return %c0_i32, %c0_i32_0 : i32, i32
  }
  func.func @transform_3(%arg0: i32) -> (i32, i32) {
    %c0_i32 = arith.constant 0 : i32
    %c0_i32_0 = arith.constant 0 : i32
    %c0_i32_1 = arith.constant 0 : i32
    return %c0_i32, %c0_i32_0 : i32, i32
  }
  func.func @transform_4(%arg0: i32) -> (i32, i32) {
    %c0_i32 = arith.constant 0 : i32
    %c0_i32_0 = arith.constant 0 : i32
    %c0_i32_1 = arith.constant 0 : i32
    return %c0_i32, %c0_i32_0 : i32, i32
  }
  func.func @transform_5(%arg0: i32) -> (i32, i32) {
    %c0_i32 = arith.constant 0 : i32
    %c0_i32_0 = arith.constant 0 : i32
    return %arg0, %c0_i32 : i32, i32
  }
}

module attributes {stable_mosaic.version = 11 : i64} {
  func.func @_mlp_chain_kernel(%arg0: i32, %arg1: memref<64x128xbf16, #tpu.memory_space<vmem>>, %arg2: memref<128x128xbf16, #tpu.memory_space<vmem>>, %arg3: memref<1x128xf32, #tpu.memory_space<vmem>>, %arg4: memref<128x128xbf16, #tpu.memory_space<vmem>>, %arg5: memref<1x128xf32, #tpu.memory_space<vmem>>, %arg6: memref<64x128xbf16, #tpu.memory_space<vmem>>, %arg7: memref<64x128xbf16, #tpu.memory_space<vmem>>) attributes {dimension_semantics = [#tpu.dimension_semantics<parallel>], iteration_bounds = array<i64: 1>, scalar_prefetch = 0 : i64, scratch_operands = 1 : i64, tpu.core_type = #tpu.core_type<tc>, window_params = [{transform_indices = @transform_0, window_bounds = array<i64: 64, 128>}, {pipeline_mode = #tpu.pipeline_mode<synchronous>, transform_indices = @transform_1, window_bounds = array<i64: 128, 128>}, {pipeline_mode = #tpu.pipeline_mode<synchronous>, transform_indices = @transform_2, window_bounds = array<i64: 1, 128>}, {pipeline_mode = #tpu.pipeline_mode<synchronous>, transform_indices = @transform_3, window_bounds = array<i64: 128, 128>}, {pipeline_mode = #tpu.pipeline_mode<synchronous>, transform_indices = @transform_4, window_bounds = array<i64: 1, 128>}, {transform_indices = @transform_5, window_bounds = array<i64: 64, 128>}]} {
    %c0 = arith.constant 0 : index
    %c0_0 = arith.constant 0 : index
    %0 = vector.load %arg1[%c0, %c0_0] : memref<64x128xbf16, #tpu.memory_space<vmem>>, vector<64x128xbf16>
    %c0_1 = arith.constant 0 : index
    %c0_2 = arith.constant 0 : index
    %1 = vector.load %arg2[%c0_1, %c0_2] : memref<128x128xbf16, #tpu.memory_space<vmem>>, vector<128x128xbf16>
    %cst = arith.constant dense<0.000000e+00> : vector<64x128xf32>
    %2 = tpu.matmul %0, %1, %cst {dimension_numbers = #tpu.dot_dimension_numbers<[1], [0], [0], [1], [0, 0, 1, 1], [], []>} : vector<64x128xbf16>, vector<128x128xbf16>, vector<64x128xf32> -> vector<64x128xf32>
    %c0_3 = arith.constant 0 : index
    %c0_4 = arith.constant 0 : index
    %3 = vector.load %arg3[%c0_3, %c0_4] : memref<1x128xf32, #tpu.memory_space<vmem>>, vector<1x128xf32>
    %4 = vector.broadcast %3 : vector<1x128xf32> to vector<64x128xf32>
    %5 = arith.addf %2, %4 : vector<64x128xf32>
    %cst_5 = arith.constant 0.000000e+00 : f32
    %6 = vector.broadcast %cst_5 : f32 to vector<64x128xf32>
    %7 = arith.maximumf %5, %6 : vector<64x128xf32>
    %8 = arith.truncf %7 : vector<64x128xf32> to vector<64x128xbf16>
    %c0_6 = arith.constant 0 : index
    %c0_7 = arith.constant 0 : index
    %9 = vector.load %arg7[%c0_6, %c0_7] : memref<64x128xbf16, #tpu.memory_space<vmem>>, vector<64x128xbf16>
    tpu.vector_store %arg7[%c0_6, %c0_7], %8 {strides = array<i32>} : memref<64x128xbf16, #tpu.memory_space<vmem>>, vector<64x128xbf16>,
    %c0_8 = arith.constant 0 : index
    %c0_9 = arith.constant 0 : index
    %10 = vector.load %arg7[%c0_8, %c0_9] : memref<64x128xbf16, #tpu.memory_space<vmem>>, vector<64x128xbf16>
    %c0_10 = arith.constant 0 : index
    %c0_11 = arith.constant 0 : index
    %11 = vector.load %arg4[%c0_10, %c0_11] : memref<128x128xbf16, #tpu.memory_space<vmem>>, vector<128x128xbf16>
    %cst_12 = arith.constant dense<0.000000e+00> : vector<64x128xf32>
    %12 = tpu.matmul %10, %11, %cst_12 {dimension_numbers = #tpu.dot_dimension_numbers<[1], [0], [0], [1], [0, 0, 1, 1], [], []>} : vector<64x128xbf16>, vector<128x128xbf16>, vector<64x128xf32> -> vector<64x128xf32>
    %c0_13 = arith.constant 0 : index
    %c0_14 = arith.constant 0 : index
    %13 = vector.load %arg5[%c0_13, %c0_14] : memref<1x128xf32, #tpu.memory_space<vmem>>, vector<1x128xf32>
    %14 = vector.broadcast %13 : vector<1x128xf32> to vector<64x128xf32>
    %15 = arith.addf %12, %14 : vector<64x128xf32>
    %16 = arith.truncf %15 : vector<64x128xf32> to vector<64x128xbf16>
    %c0_15 = arith.constant 0 : index
    %c0_16 = arith.constant 0 : index
    %17 = vector.load %arg6[%c0_15, %c0_16] : memref<64x128xbf16, #tpu.memory_space<vmem>>, vector<64x128xbf16>
    tpu.vector_store %arg6[%c0_15, %c0_16], %16 {strides = array<i32>} : memref<64x128xbf16, #tpu.memory_space<vmem>>, vector<64x128xbf16>,
    return
  }
  func.func @transform_0(%arg0: i32) -> (i32, i32) {
    %c0_i32 = arith.constant 0 : i32
    %c0_i32_0 = arith.constant 0 : i32
    return %arg0, %c0_i32 : i32, i32
  }
  func.func @transform_1(%arg0: i32) -> (i32, i32) {
    %c0_i32 = arith.constant 0 : i32
    %c0_i32_0 = arith.constant 0 : i32
    %c0_i32_1 = arith.constant 0 : i32
    return %c0_i32, %c0_i32_0 : i32, i32
  }
  func.func @transform_2(%arg0: i32) -> (i32, i32) {
    %c0_i32 = arith.constant 0 : i32
    %c0_i32_0 = arith.constant 0 : i32
    %c0_i32_1 = arith.constant 0 : i32
    return %c0_i32, %c0_i32_0 : i32, i32
  }
  func.func @transform_3(%arg0: i32) -> (i32, i32) {
    %c0_i32 = arith.constant 0 : i32
    %c0_i32_0 = arith.constant 0 : i32
    %c0_i32_1 = arith.constant 0 : i32
    return %c0_i32, %c0_i32_0 : i32, i32
  }
  func.func @transform_4(%arg0: i32) -> (i32, i32) {
    %c0_i32 = arith.constant 0 : i32
    %c0_i32_0 = arith.constant 0 : i32
    %c0_i32_1 = arith.constant 0 : i32
    return %c0_i32, %c0_i32_0 : i32, i32
  }
  func.func @transform_5(%arg0: i32) -> (i32, i32) {
    %c0_i32 = arith.constant 0 : i32
    %c0_i32_0 = arith.constant 0 : i32
    return %arg0, %c0_i32 : i32, i32
  }
}

</mosaic_0001>

<bundles_post_ra>
// kernel: custom-call
= control target key start
LH: loop header
LB: loop body
LE: loop exit
PB: predicated region body
PF: predicated region fallthrough
CT: control target
= control target key end

     0   :  { %s6_s0 = inlined_call_operand.vmem [shape: f32[64], index: 0, kind: output, shape index: {}]  }

// kernel: custom-call.1
= control target key start
LH: loop header
LB: loop body
LE: loop exit
PB: predicated region body
PF: predicated region fallthrough
CT: control target
= control target key end

     0   :  { %s6_s0 = inlined_call_operand.vmem [shape: f32[32], index: 0, kind: output, shape index: {}]  }

// kernel: pointnet_forward.13
= control target key start
LH: loop header
LB: loop body
LE: loop exit
PB: predicated region body
PF: predicated region fallthrough
CT: control target
= control target key end

     0   :  { %s1549_s18 = smov 0   ;;  %s1726_s0 = inlined_call_operand.vmem [shape: bf16[2048,7], index: 0, kind: input, shape index: {}]   ;;  %s1727_s1 = inlined_call_operand.vmem [shape: bf16[7,128], index: 1, kind: input, shape index: {}]   ;;  %s1728_s2 = inlined_call_operand.vmem [shape: f32[1,128], index: 2, kind: input, shape index: {}]   ;;  %s1729_s3 = inlined_call_operand.vmem [shape: bf16[128,128], index: 3, kind: input, shape index: {}]   ;;  %s1730_s4 = inlined_call_operand.vmem [shape: f32[1,128], index: 4, kind: input, shape index: {}]   ;;  %s1731_s5 = inlined_call_operand.vmem [shape: bf16[2048,128], index: 5, kind: output, shape index: {}]  }
   0x1 LB: > { %s1126_s19 = sadd.s32 4294967295, %s1516_s18   ;;  %p1130_p0 = scmp.ge.s32.totalorder %s1516_s18, 1  ;;  %s1516_s18 = sphi %s1549_s18, %s15_s18  }
   0x2   : > { %p188_p1 = scmp.lt.s32.totalorder %s1516_s18, 9 }
   0x4   : > { %p189_p2 = pnand %p1130_p0, %p188_p1 }
   0x5   : > { %v261_v0 = vld [vmem:[%s1727_s1] sm:$0xf] (!%p189_p2)  ;;  %vm398_vm0 = vcmask (!%p189_p2), 1042432   ;;  %vm399_vm1 = vcmask (!%p189_p2), 1043456   ;;  %s1131_s22 = sshll.u32 (!%p189_p2), %s1126_s19, 5  ;;  %v1518_v1 = vmov (!%p189_p2), 65535  }
   0x6   : > { %192 = sbr.rel (%p189_p2) target bundleno = 518 (0x206), region = 40  ;;  %v400_v2 = vsel (!%p189_p2), %vm398_vm0, 4294967295, %v1518_v1  ;;  %p217_p3 = scmp.lt.s32.totalorder (!%p189_p2), %s1131_s22, 255  ;;  %v1502_v3 = vld [vmem:[%s1729_s3] sm:$0xff] (!%p189_p2)   ;;  %v1503_v6 = vld [vmem:[%s1729_s3 + $0x8] sm:$0xff] (!%p189_p2)   ;;  %vm349_vm2 = vcmask (!%p189_p2), 56320  }
   0x7   : > { %v401_v4 = vsel (!%p189_p2), %vm399_vm1, %v400_v2, 0  ;;  %1461 = vmatprep.subr.bf16.mxu1 (!%p189_p2), %v1502_v3  ;;  %v1504_v7 = vld [vmem:[%s1729_s3 + $0x10] sm:$0xff] (!%p189_p2)   ;;  %v1505_v11 = vld [vmem:[%s1729_s3 + $0x18] sm:$0xff] (!%p189_p2)   ;;  %v1506_v12 = vld [vmem:[%s1729_s3 + $0x20] sm:$0xff] (!%p189_p2)  }
   0x8   : > { %v403_v5 = vand.u32 (!%p189_p2), %v401_v4, %v261_v0  ;;  %1469 = vmatpush3.bf16.msra.mxu1 (!%p189_p2), %v1502_v3  ;;  %v1507_v17 = vld [vmem:[%s1729_s3 + $0x28] sm:$0xff] (!%p189_p2)   ;;  %v1508_v27 = vld [vmem:[%s1729_s3 + $0x30] sm:$0xff] (!%p189_p2)   ;;  %v1509_v28 = vld [vmem:[%s1729_s3 + $0x38] sm:$0xff] (!%p189_p2)  }
   0x9   : > { %1462 = vmatprep.subr.bf16.mxu1 (!%p189_p2), %v1503_v6  ;;  %v1629_v29 = vld [vmem:[%s1728_s2] ss:$0 sm:$0xff] (!%p189_p2) }
   0xa   : > { %1379 = vmatprep.subr.bf16.mxu0 (!%p189_p2), %v403_v5 }
   0xb   : > { %1380 = vmatpush3.bf16.msra.mxu0 (!%p189_p2), %v403_v5 }
   0xc   : > { %1413 = vmatprep.subr.bf16.mxu0 (!%p189_p2), %v1502_v3  ;;  %1470 = vmatpush3.bf16.msra.mxu1 (!%p189_p2), %v1503_v6 }
   0xd   : > { %s1733_s22 = smov (!%p217_p3, %s1131_s22), 255  ;;  %1463 = vmatprep.subr.bf16.mxu1 %v1504_v7 }
   0xe   : > { %s1132_s27 = sshll.u32 %s1733_s22, 2 }
   0xf   : > { %s1574_s30 = scalar_lea.vmem %s1726_s0, %s1132_s27  ;;  %s1677_s26 = scalar_lea.vmem %s1731_s5, %s1132_s27 }
  0x10   : > { %v1486_v8 = vld [vmem:[%s1574_s30] sm:$0xff]   ;;  %v1487_v9 = vld [vmem:[%s1574_s30 + $0x8] sm:$0xff]   ;;  %v1488_v10 = vld [vmem:[%s1574_s30 + $0x10] sm:$0xff]   ;;  %1471 = vmatpush3.bf16.msra.mxu1 %v1504_v7 }
  0x11   : > { %1381 = vmatprep.mubr.msk.bf16.mxu0 %vm349_vm2, %v1486_v8  ;;  %1464 = vmatprep.subr.bf16.mxu1 %v1505_v11  ;;  %v1489_v13 = vld [vmem:[%s1574_s30 + $0x18] sm:$0xff]   ;;  %v1490_v14 = vld [vmem:[%s1574_s30 + $0x20] sm:$0xff]   ;;  %v1491_v15 = vld [vmem:[%s1574_s30 + $0x28] sm:$0xff]  }
  0x12   : > { %1382 = vmatmul.mubr.msk.bf16.vlgmr.msra.gmra.mrb[0].mxu0 %vm349_vm2, %v1487_v9  ;;  %v1492_v16 = vld [vmem:[%s1574_s30 + $0x30] sm:$0xff]   ;;  %v1493_v18 = vld [vmem:[%s1574_s30 + $0x38] sm:$0xff]   ;;  %v1494_v19 = vld [vmem:[%s1574_s30 + $0x40] sm:$0xff]  }
  0x13   : > { %1385 = vmatprep.mubr.msk.bf16.mxu0 %vm349_vm2, %v1488_v10  ;;  %1414 = vmatpush3.bf16.msra.mxu0 %v1502_v3  ;;  %v1495_v20 = vld [vmem:[%s1574_s30 + $0x48] sm:$0xff]   ;;  %v1496_v21 = vld [vmem:[%s1574_s30 + $0x50] sm:$0xff]   ;;  %v1497_v22 = vld [vmem:[%s1574_s30 + $0x58] sm:$0xff]  }
  0x14   : > { %1415 = vmatprep.subr.bf16.mxu0 %v1503_v6  ;;  %1472 = vmatpush3.bf16.msra.mxu1 %v1505_v11  ;;  %v1498_v23 = vld [vmem:[%s1574_s30 + $0x60] sm:$0xff]   ;;  %v1499_v24 = vld [vmem:[%s1574_s30 + $0x68] sm:$0xff]   ;;  %v1500_v25 = vld [vmem:[%s1574_s30 + $0x70] sm:$0xff]  }
  0x15   : > { %1465 = vmatprep.subr.bf16.mxu1 %v1506_v12  ;;  %v1501_v26 = vld [vmem:[%s1574_s30 + $0x78] sm:$0xff]  }
  0x17   : > { %1416 = vmatpush3.bf16.msra.mxu0 %v1503_v6 }
  0x18   : > { %1417 = vmatprep.subr.bf16.mxu0 %v1504_v7  ;;  %1473 = vmatpush3.bf16.msra.mxu1 %v1506_v12 }
  0x19   : > { %1466 = vmatprep.subr.bf16.mxu1 %v1507_v17 }
  0x1a   : > { %1386 = vmatmul.mubr.msk.bf16.gmra.mrb[4].mxu0 %vm349_vm2, %v1489_v13 }
  0x1b   : > { %1389 = vmatprep.mubr.msk.bf16.mxu0 %vm349_vm2, %v1490_v14  ;;  %1418 = vmatpush3.bf16.msra.mxu0 %v1504_v7 }
  0x1c   : > { %1419 = vmatprep.subr.bf16.mxu0 %v1505_v11  ;;  %1474 = vmatpush3.bf16.msra.mxu1 %v1507_v17 }
  0x1d   : > { %1467 = vmatprep.subr.bf16.mxu1 %v1508_v27 }
  0x1f   : > { %1420 = vmatpush3.bf16.msra.mxu0 %v1505_v11 }
  0x20   : > { %1421 = vmatprep.subr.bf16.mxu0 %v1506_v12  ;;  %1475 = vmatpush3.bf16.msra.mxu1 %v1508_v27 }
  0x21   : > { %1468 = vmatprep.subr.bf16.mxu1 %v1509_v28 }
  0x22   : > { %1390 = vmatmul.mubr.msk.bf16.gmra.mrb[8].mxu0 %vm349_vm2, %v1491_v15 }
  0x23   : > { %1393 = vmatprep.mubr.msk.bf16.mxu0 %vm349_vm2, %v1492_v16  ;;  %1422 = vmatpush3.bf16.msra.mxu0 %v1506_v12 }
  0x24   : > { %1423 = vmatprep.subr.bf16.mxu0 %v1507_v17  ;;  %1476 = vmatpush3.bf16.msra.mxu1 %v1509_v28 }
  0x27   : > { %1424 = vmatpush3.bf16.msra.mxu0 %v1507_v17 }
  0x28   : > { %1425 = vmatprep.subr.bf16.mxu0 %v1508_v27 }
  0x2a   : > { %1394 = vmatmul.mubr.msk.bf16.gmra.mrb[12].mxu0 %vm349_vm2, %v1493_v18 }
  0x2b   : > { %1397 = vmatprep.mubr.msk.bf16.mxu0 %vm349_vm2, %v1494_v19  ;;  %1426 = vmatpush3.bf16.msra.mxu0 %v1508_v27 }
  0x2c   : > { %1427 = vmatprep.subr.bf16.mxu0 %v1509_v28 }
  0x2f   : > { %1428 = vmatpush3.bf16.msra.mxu0 %v1509_v28 }
  0x32   : > { %1398 = vmatmul.mubr.msk.bf16.gmra.mrb[16].mxu0 %vm349_vm2, %v1495_v20 }
  0x33   : > { %1401 = vmatprep.mubr.msk.bf16.mxu0 %vm349_vm2, %v1496_v21 }
  0x3a   : > { %1402 = vmatmul.mubr.msk.bf16.gmra.mrb[20].mxu0 %vm349_vm2, %v1497_v22 }
  0x3b   : > { %1405 = vmatprep.mubr.msk.bf16.mxu0 %vm349_vm2, %v1498_v23 }
  0x42   : > { %1406 = vmatmul.mubr.msk.bf16.gmra.mrb[24].mxu0 %vm349_vm2, %v1499_v24 }
  0x43   : > { %1409 = vmatprep.mubr.msk.bf16.mxu0 %vm349_vm2, %v1500_v25 }
  0x4a   : > { %1410 = vmatmul.mubr.msk.bf16.gmra.mrb[28].mxu0 %vm349_vm2, %v1501_v26 }
  0xe5   : > { %v1383_v30 = vpop.f32.mrb[0].mxu0 }
  0xe6   : > { %v448_v31 = vadd.f32 %v1383_v30, %v1629_v29  ;;  %v439_v32 = vpop.f32.mrb[1].mxu0 }
  0xe7   : > { %v440_v33 = vadd.f32 %v1629_v29, %v439_v32  ;;  %v1384_v34 = vpop.f32.mrb[2].mxu0 }
  0xe8   : > { %v451_v35 = vadd.f32 %v1384_v34, %v1629_v29  ;;  %v442_v36 = vpop.f32.mrb[3].mxu0  ;;  %v568_v38 = vmax.f32 %v448_v31, 0.0 }
  0xe9   : > { %v443_v37 = vadd.f32 %v1629_v29, %v442_v36  ;;  %v566_v40 = vmax.f32 %v440_v33, 0.0 }
  0xea   : > { %v569_v39 = vmax.f32 %v451_v35, 0.0 }
  0xeb   : > { %v567_v41 = vmax.f32 %v443_v37, 0.0 }
  0xec   : > { %v599_v42 = vpack.c.bf16 %v569_v39, %v568_v38 }
  0xed   : > { %v598_v43 = vpack.c.bf16 %v567_v41, %v566_v40  ;;  %v1387_v44 = vpop.f32.mrb[4].mxu0 }
  0xee   : > { %v464_v45 = vadd.f32 %v1387_v44, %v1629_v29  ;;  %v455_v46 = vpop.f32.mrb[5].mxu0 }
  0xef   : > { %v456_v47 = vadd.f32 %v1629_v29, %v455_v46  ;;  %v1388_v48 = vpop.f32.mrb[6].mxu0  ;;  %1429 = vmatprep.mubr.bf16.mxu0 %v598_v43 }
  0xf0   : > { %v467_v49 = vadd.f32 %v1388_v48, %v1629_v29  ;;  %v458_v50 = vpop.f32.mrb[7].mxu0  ;;  %1430 = vmatmul.mubr.bf16.vlgmr.msra.gmra.mrb[32].mxu0 %v599_v42  ;;  %v572_v52 = vmax.f32 %v464_v45, 0.0 }
  0xf1   : > { %v459_v51 = vadd.f32 %v1629_v29, %v458_v50  ;;  %v570_v54 = vmax.f32 %v456_v47, 0.0 }
  0xf2   : > { %v573_v53 = vmax.f32 %v467_v49, 0.0 }
  0xf3   : > { %v571_v55 = vmax.f32 %v459_v51, 0.0 }
  0xf4   : > { %v601_v56 = vpack.c.bf16 %v573_v53, %v572_v52 }
  0xf5   : > { %v1391_v57 = vpop.f32.mrb[8].mxu0  ;;  %v600_v58 = vpack.c.bf16 %v571_v55, %v570_v54 }
  0xf6   : > { %v480_v59 = vadd.f32 %v1391_v57, %v1629_v29  ;;  %v471_v60 = vpop.f32.mrb[9].mxu0 }
  0xf7   : > { %v472_v61 = vadd.f32 %v1629_v29, %v471_v60  ;;  %v1392_v62 = vpop.f32.mrb[10].mxu0  ;;  %1433 = vmatprep.mubr.bf16.mxu1 %v600_v58 }
  0xf8   : > { %v483_v63 = vadd.f32 %v1392_v62, %v1629_v29  ;;  %v474_v0 = vpop.f32.mrb[11].mxu0  ;;  %1434 = vmatmul.mubr.bf16.vlgmr.msra.gmra.mrb[0].mxu1 %v601_v56  ;;  %v576_v2 = vmax.f32 %v480_v59, 0.0 }
  0xf9   : > { %v475_v1 = vadd.f32 %v1629_v29, %v474_v0  ;;  %v574_v4 = vmax.f32 %v472_v61, 0.0 }
  0xfa   : > { %v577_v3 = vmax.f32 %v483_v63, 0.0 }
  0xfb   : > { %v575_v5 = vmax.f32 %v475_v1, 0.0 }
  0xfc   : > { %v603_v6 = vpack.c.bf16 %v577_v3, %v576_v2 }
  0xfd   : > { %v602_v7 = vpack.c.bf16 %v575_v5, %v574_v4  ;;  %v1395_v8 = vpop.f32.mrb[12].mxu0 }
  0xfe   : > { %v496_v9 = vadd.f32 %v1395_v8, %v1629_v29  ;;  %v487_v10 = vpop.f32.mrb[13].mxu0 }
  0xff   : > { %v488_v11 = vadd.f32 %v1629_v29, %v487_v10  ;;  %v1396_v12 = vpop.f32.mrb[14].mxu0  ;;  %1437 = vmatprep.mubr.bf16.mxu1 %v602_v7 }
 0x100   : > { %v499_v13 = vadd.f32 %v1396_v12, %v1629_v29  ;;  %v490_v14 = vpop.f32.mrb[15].mxu0  ;;  %1438 = vmatmul.mubr.bf16.gmra.mrb[4].mxu1 %v603_v6  ;;  %v580_v16 = vmax.f32 %v496_v9, 0.0 }
 0x101   : > { %v491_v15 = vadd.f32 %v1629_v29, %v490_v14  ;;  %v578_v18 = vmax.f32 %v488_v11, 0.0 }
 0x102   : > { %v581_v17 = vmax.f32 %v499_v13, 0.0 }
 0x103   : > { %v579_v19 = vmax.f32 %v491_v15, 0.0  ;;  %v1666_v15 = vld [vmem:[%s1730_s4] ss:$0 sm:$0xff] }
 0x104   : > { %v605_v20 = vpack.c.bf16 %v581_v17, %v580_v16 }
 0x105   : > { %v604_v21 = vpack.c.bf16 %v579_v19, %v578_v18  ;;  %v1399_v22 = vpop.f32.mrb[16].mxu0 }
 0x106   : > { %v512_v23 = vadd.f32 %v1399_v22, %v1629_v29  ;;  %v503_v24 = vpop.f32.mrb[17].mxu0 }
 0x107   : > { %v504_v25 = vadd.f32 %v1629_v29, %v503_v24  ;;  %v1400_v26 = vpop.f32.mrb[18].mxu0  ;;  %1441 = vmatprep.mubr.bf16.mxu1 %v604_v21 }
 0x108   : > { %v515_v27 = vadd.f32 %v1400_v26, %v1629_v29  ;;  %v506_v28 = vpop.f32.mrb[19].mxu0  ;;  %1442 = vmatmul.mubr.bf16.gmra.mrb[8].mxu1 %v605_v20  ;;  %v584_v31 = vmax.f32 %v512_v23, 0.0 }
 0x109   : > { %v507_v30 = vadd.f32 %v1629_v29, %v506_v28  ;;  %v582_v33 = vmax.f32 %v504_v25, 0.0 }
 0x10a   : > { %v585_v32 = vmax.f32 %v515_v27, 0.0 }
 0x10b   : > { %v583_v34 = vmax.f32 %v507_v30, 0.0 }
 0x10c   : > { %v607_v35 = vpack.c.bf16 %v585_v32, %v584_v31 }
 0x10d   : > { %v606_v36 = vpack.c.bf16 %v583_v34, %v582_v33  ;;  %v1403_v37 = vpop.f32.mrb[20].mxu0 }
 0x10e   : > { %v528_v38 = vadd.f32 %v1403_v37, %v1629_v29  ;;  %v519_v39 = vpop.f32.mrb[21].mxu0 }
 0x10f   : > { %v520_v40 = vadd.f32 %v1629_v29, %v519_v39  ;;  %v1404_v41 = vpop.f32.mrb[22].mxu0  ;;  %1445 = vmatprep.mubr.bf16.mxu1 %v606_v36 }
 0x110   : > { %v531_v42 = vadd.f32 %v1404_v41, %v1629_v29  ;;  %v522_v43 = vpop.f32.mrb[23].mxu0  ;;  %1446 = vmatmul.mubr.bf16.gmra.mrb[12].mxu1 %v607_v35  ;;  %v588_v45 = vmax.f32 %v528_v38, 0.0 }
 0x111   : > { %v523_v44 = vadd.f32 %v1629_v29, %v522_v43  ;;  %v586_v47 = vmax.f32 %v520_v40, 0.0 }
 0x112   : > { %v589_v46 = vmax.f32 %v531_v42, 0.0 }
 0x113   : > { %v587_v48 = vmax.f32 %v523_v44, 0.0 }
 0x114   : > { %v609_v49 = vpack.c.bf16 %v589_v46, %v588_v45 }
 0x115   : > { %v608_v50 = vpack.c.bf16 %v587_v48, %v586_v47  ;;  %v1407_v51 = vpop.f32.mrb[24].mxu0 }
 0x116   : > { %v544_v52 = vadd.f32 %v1407_v51, %v1629_v29  ;;  %v535_v53 = vpop.f32.mrb[25].mxu0 }
 0x117   : > { %v536_v54 = vadd.f32 %v1629_v29, %v535_v53  ;;  %v1408_v55 = vpop.f32.mrb[26].mxu0  ;;  %1449 = vmatprep.mubr.bf16.mxu1 %v608_v50 }
 0x118   : > { %v547_v56 = vadd.f32 %v1408_v55, %v1629_v29  ;;  %v538_v57 = vpop.f32.mrb[27].mxu0  ;;  %1450 = vmatmul.mubr.bf16.gmra.mrb[16].mxu1 %v609_v49  ;;  %v592_v59 = vmax.f32 %v544_v52, 0.0 }
 0x119   : > { %v539_v58 = vadd.f32 %v1629_v29, %v538_v57  ;;  %v590_v61 = vmax.f32 %v536_v54, 0.0 }
 0x11a   : > { %v593_v60 = vmax.f32 %v547_v56, 0.0 }
 0x11b   : > { %v591_v62 = vmax.f32 %v539_v58, 0.0 }
 0x11c   : > { %v611_v63 = vpack.c.bf16 %v593_v60, %v592_v59 }
 0x11d   : > { %v610_v0 = vpack.c.bf16 %v591_v62, %v590_v61  ;;  %v1411_v1 = vpop.f32.mrb[28].mxu0 }
 0x11e   : > { %v560_v2 = vadd.f32 %v1411_v1, %v1629_v29  ;;  %v551_v3 = vpop.f32.mrb[29].mxu0 }
 0x11f   : > { %v552_v4 = vadd.f32 %v1629_v29, %v551_v3  ;;  %v1412_v5 = vpop.f32.mrb[30].mxu0  ;;  %1453 = vmatprep.mubr.bf16.mxu1 %v610_v0 }
 0x120   : > { %v563_v6 = vadd.f32 %v1412_v5, %v1629_v29  ;;  %v554_v7 = vpop.f32.mrb[31].mxu0  ;;  %1454 = vmatmul.mubr.bf16.gmra.mrb[20].mxu1 %v611_v63  ;;  %v596_v9 = vmax.f32 %v560_v2, 0.0 }
 0x121   : > { %v555_v8 = vadd.f32 %v1629_v29, %v554_v7  ;;  %v594_v11 = vmax.f32 %v552_v4, 0.0 }
 0x122   : > { %v597_v10 = vmax.f32 %v563_v6, 0.0 }
 0x123   : > { %v595_v12 = vmax.f32 %v555_v8, 0.0 }
 0x124   : > { %v613_v13 = vpack.c.bf16 %v597_v10, %v596_v9 }
 0x125   : > { %v612_v14 = vpack.c.bf16 %v595_v12, %v594_v11 }
 0x127   : > { %1457 = vmatprep.mubr.bf16.mxu1 %v612_v14 }
 0x128   : > { %1458 = vmatmul.mubr.bf16.gmra.mrb[24].mxu1 %v613_v13 }
 0x1c3   : > { %v1431_v16 = vpop.f32.mrb[32].mxu0 }
 0x1c4   : > { %v760_v17 = vadd.f32 %v1431_v16, %v1666_v15  ;;  %v751_v18 = vpop.f32.mrb[33].mxu0 }
 0x1c5   : > { %v752_v29 = vadd.f32 %v1666_v15, %v751_v18  ;;  %v1432_v19 = vpop.f32.mrb[34].mxu0 }
 0x1c6   : > { %v763_v20 = vadd.f32 %v1432_v19, %v1666_v15  ;;  %v754_v21 = vpop.f32.mrb[35].mxu0  ;;  %v880_v23 = vmax.f32 %v760_v17, 0.0 }
 0x1c7   : > { %v755_v22 = vadd.f32 %v1666_v15, %v754_v21  ;;  %v878_v25 = vmax.f32 %v752_v29, 0.0 }
 0x1c8   : > { %v881_v24 = vmax.f32 %v763_v20, 0.0 }
 0x1c9   : > { %v879_v26 = vmax.f32 %v755_v22, 0.0 }
 0x1ca   : > { %v1251_v27 = vpack.c.bf16 %v881_v24, %v880_v23 }
 0x1cb   : > { %v1246_v28 = vpack.c.bf16 %v879_v26, %v878_v25  ;;  %v1435_v30 = vpop.f32.mrb[0].mxu1 }
 0x1cc   : > { %1323 = vst [vmem:[%s1677_s26 + $0x8] sm:$0xff] %v1251_v27   ;;  %v776_v31 = vadd.f32 %v1435_v30, %v1666_v15  ;;  %v767_v32 = vpop.f32.mrb[1].mxu1 }
 0x1cd   : > { %1247 = vst [vmem:[%s1677_s26] sm:$0xff] %v1246_v28   ;;  %v768_v33 = vadd.f32 %v1666_v15, %v767_v32  ;;  %v1436_v34 = vpop.f32.mrb[2].mxu1 }
 0x1ce   : > { %v779_v35 = vadd.f32 %v1436_v34, %v1666_v15  ;;  %v770_v36 = vpop.f32.mrb[3].mxu1  ;;  %v884_v38 = vmax.f32 %v776_v31, 0.0 }
 0x1cf   : > { %v771_v37 = vadd.f32 %v1666_v15, %v770_v36  ;;  %v882_v40 = vmax.f32 %v768_v33, 0.0 }
 0x1d0   : > { %v885_v39 = vmax.f32 %v779_v35, 0.0 }
 0x1d1   : > { %v883_v41 = vmax.f32 %v771_v37, 0.0 }
 0x1d2   : > { %v1261_v42 = vpack.c.bf16 %v885_v39, %v884_v38 }
 0x1d3   : > { %v1256_v43 = vpack.c.bf16 %v883_v41, %v882_v40  ;;  %v1439_v44 = vpop.f32.mrb[4].mxu1 }
 0x1d4   : > { %1325 = vst [vmem:[%s1677_s26 + $0x18] sm:$0xff] %v1261_v42   ;;  %v792_v45 = vadd.f32 %v1439_v44, %v1666_v15  ;;  %v783_v46 = vpop.f32.mrb[5].mxu1 }
 0x1d5   : > { %1324 = vst [vmem:[%s1677_s26 + $0x10] sm:$0xff] %v1256_v43   ;;  %v784_v47 = vadd.f32 %v1666_v15, %v783_v46  ;;  %v1440_v48 = vpop.f32.mrb[6].mxu1 }
 0x1d6   : > { %v795_v49 = vadd.f32 %v1440_v48, %v1666_v15  ;;  %v786_v50 = vpop.f32.mrb[7].mxu1  ;;  %v888_v52 = vmax.f32 %v792_v45, 0.0 }
 0x1d7   : > { %v787_v51 = vadd.f32 %v1666_v15, %v786_v50  ;;  %v886_v54 = vmax.f32 %v784_v47, 0.0 }
 0x1d8   : > { %v889_v53 = vmax.f32 %v795_v49, 0.0 }
 0x1d9   : > { %v887_v55 = vmax.f32 %v787_v51, 0.0 }
 0x1da   : > { %v1271_v56 = vpack.c.bf16 %v889_v53, %v888_v52 }
 0x1db   : > { %v1266_v57 = vpack.c.bf16 %v887_v55, %v886_v54  ;;  %v1443_v58 = vpop.f32.mrb[8].mxu1 }
 0x1dc   : > { %1327 = vst [vmem:[%s1677_s26 + $0x28] sm:$0xff] %v1271_v56   ;;  %v808_v59 = vadd.f32 %v1443_v58, %v1666_v15  ;;  %v799_v60 = vpop.f32.mrb[9].mxu1 }
 0x1dd   : > { %1326 = vst [vmem:[%s1677_s26 + $0x20] sm:$0xff] %v1266_v57   ;;  %v800_v61 = vadd.f32 %v1666_v15, %v799_v60  ;;  %v1444_v62 = vpop.f32.mrb[10].mxu1 }
 0x1de   : > { %v811_v63 = vadd.f32 %v1444_v62, %v1666_v15  ;;  %v802_v0 = vpop.f32.mrb[11].mxu1  ;;  %v892_v2 = vmax.f32 %v808_v59, 0.0 }
 0x1df   : > { %v803_v1 = vadd.f32 %v1666_v15, %v802_v0  ;;  %v890_v4 = vmax.f32 %v800_v61, 0.0 }
 0x1e0   : > { %v893_v3 = vmax.f32 %v811_v63, 0.0 }
 0x1e1   : > { %v891_v5 = vmax.f32 %v803_v1, 0.0 }
 0x1e2   : > { %v1281_v6 = vpack.c.bf16 %v893_v3, %v892_v2 }
 0x1e3   : > { %v1276_v7 = vpack.c.bf16 %v891_v5, %v890_v4  ;;  %v1447_v8 = vpop.f32.mrb[12].mxu1 }
 0x1e4   : > { %1329 = vst [vmem:[%s1677_s26 + $0x38] sm:$0xff] %v1281_v6   ;;  %v824_v9 = vadd.f32 %v1447_v8, %v1666_v15  ;;  %v815_v10 = vpop.f32.mrb[13].mxu1 }
 0x1e5   : > { %1328 = vst [vmem:[%s1677_s26 + $0x30] sm:$0xff] %v1276_v7   ;;  %v816_v11 = vadd.f32 %v1666_v15, %v815_v10  ;;  %v1448_v12 = vpop.f32.mrb[14].mxu1 }
 0x1e6   : > { %v827_v13 = vadd.f32 %v1448_v12, %v1666_v15  ;;  %v818_v14 = vpop.f32.mrb[15].mxu1  ;;  %v896_v17 = vmax.f32 %v824_v9, 0.0 }
 0x1e7   : > { %v819_v16 = vadd.f32 %v1666_v15, %v818_v14  ;;  %v894_v29 = vmax.f32 %v816_v11, 0.0 }
 0x1e8   : > { %v897_v18 = vmax.f32 %v827_v13, 0.0 }
 0x1e9   : > { %v895_v19 = vmax.f32 %v819_v16, 0.0 }
 0x1ea   : > { %v1291_v20 = vpack.c.bf16 %v897_v18, %v896_v17 }
 0x1eb   : > { %v1286_v21 = vpack.c.bf16 %v895_v19, %v894_v29  ;;  %v1451_v22 = vpop.f32.mrb[16].mxu1 }
 0x1ec   : > { %1331 = vst [vmem:[%s1677_s26 + $0x48] sm:$0xff] %v1291_v20   ;;  %v840_v23 = vadd.f32 %v1451_v22, %v1666_v15  ;;  %v831_v24 = vpop.f32.mrb[17].mxu1 }
 0x1ed   : > { %1330 = vst [vmem:[%s1677_s26 + $0x40] sm:$0xff] %v1286_v21   ;;  %v832_v25 = vadd.f32 %v1666_v15, %v831_v24  ;;  %v1452_v26 = vpop.f32.mrb[18].mxu1 }
 0x1ee   : > { %v843_v27 = vadd.f32 %v1452_v26, %v1666_v15  ;;  %v834_v28 = vpop.f32.mrb[19].mxu1  ;;  %v900_v31 = vmax.f32 %v840_v23, 0.0 }
 0x1ef   : > { %v835_v30 = vadd.f32 %v1666_v15, %v834_v28  ;;  %v898_v33 = vmax.f32 %v832_v25, 0.0 }
 0x1f0   : > { %v901_v32 = vmax.f32 %v843_v27, 0.0 }
 0x1f1   : > { %v899_v34 = vmax.f32 %v835_v30, 0.0 }
 0x1f2   : > { %v1301_v35 = vpack.c.bf16 %v901_v32, %v900_v31 }
 0x1f3   : > { %v1296_v36 = vpack.c.bf16 %v899_v34, %v898_v33  ;;  %v1455_v37 = vpop.f32.mrb[20].mxu1 }
 0x1f4   : > { %1333 = vst [vmem:[%s1677_s26 + $0x58] sm:$0xff] %v1301_v35   ;;  %v856_v38 = vadd.f32 %v1455_v37, %v1666_v15  ;;  %v847_v39 = vpop.f32.mrb[21].mxu1 }
 0x1f5   : > { %1332 = vst [vmem:[%s1677_s26 + $0x50] sm:$0xff] %v1296_v36   ;;  %v848_v40 = vadd.f32 %v1666_v15, %v847_v39  ;;  %v1456_v41 = vpop.f32.mrb[22].mxu1 }
 0x1f6   : > { %v859_v42 = vadd.f32 %v1456_v41, %v1666_v15  ;;  %v850_v43 = vpop.f32.mrb[23].mxu1  ;;  %v904_v45 = vmax.f32 %v856_v38, 0.0 }
 0x1f7   : > { %v851_v44 = vadd.f32 %v1666_v15, %v850_v43  ;;  %v902_v47 = vmax.f32 %v848_v40, 0.0 }
 0x1f8   : > { %v905_v46 = vmax.f32 %v859_v42, 0.0 }
 0x1f9   : > { %v903_v48 = vmax.f32 %v851_v44, 0.0 }
 0x1fa   : > { %v1311_v49 = vpack.c.bf16 %v905_v46, %v904_v45 }
 0x1fb   : > { %v1306_v50 = vpack.c.bf16 %v903_v48, %v902_v47  ;;  %v1459_v51 = vpop.f32.mrb[24].mxu1 }
 0x1fc   : > { %1335 = vst [vmem:[%s1677_s26 + $0x68] sm:$0xff] %v1311_v49   ;;  %v872_v52 = vadd.f32 %v1459_v51, %v1666_v15  ;;  %v863_v53 = vpop.f32.mrb[25].mxu1 }
 0x1fd   : > { %1334 = vst [vmem:[%s1677_s26 + $0x60] sm:$0xff] %v1306_v50   ;;  %v864_v54 = vadd.f32 %v1666_v15, %v863_v53  ;;  %v1460_v55 = vpop.f32.mrb[26].mxu1 }
 0x1fe   : > { %v875_v56 = vadd.f32 %v1460_v55, %v1666_v15  ;;  %v866_v57 = vpop.f32.mrb[27].mxu1  ;;  %v908_v59 = vmax.f32 %v872_v52, 0.0 }
 0x1ff   : > { %v867_v58 = vadd.f32 %v1666_v15, %v866_v57  ;;  %v906_v61 = vmax.f32 %v864_v54, 0.0 }
 0x200   : > { %v909_v60 = vmax.f32 %v875_v56, 0.0 }
 0x201   : > { %v907_v62 = vmax.f32 %v867_v58, 0.0 }
 0x202   : > { %v1321_v63 = vpack.c.bf16 %v909_v60, %v908_v59 }
 0x203   : > { %v1316_v0 = vpack.c.bf16 %v907_v62, %v906_v61 }
 0x204   : > { %1337 = vst [vmem:[%s1677_s26 + $0x78] sm:$0xff] %v1321_v63  }
 0x205   : > { %1336 = vst [vmem:[%s1677_s26 + $0x70] sm:$0xff] %v1316_v0  }
 0x206 PF: > { %s15_s18 = sadd.s32 1, %s1516_s18  }
 0x207   : > { %p12_p4 = scmp.ge.s32.totalorder %s15_s18, 10  }
 0x209   :  { %14 = sbr.rel (!%p12_p4) target bundleno = 1 (0x1), region = 70 }

// kernel: pointnet_forward.14
= control target key start
LH: loop header
LB: loop body
LE: loop exit
PB: predicated region body
PF: predicated region fallthrough
CT: control target
= control target key end

     0   :  { %s987_s12 = smov 0   ;;  %s989_s13 = smov 0   ;;  %s1142_s0 = inlined_call_operand.vmem [shape: bf16[2,1024,128], index: 0, kind: input, shape index: {}]   ;;  %s1143_s1 = inlined_call_operand.vmem [shape: bf16[128,128], index: 1, kind: input, shape index: {}]   ;;  %s1144_s2 = inlined_call_operand.vmem [shape: f32[1,128], index: 2, kind: input, shape index: {}]   ;;  %s1145_s3 = inlined_call_operand.vmem [shape: bf16[32,128], index: 3, kind: output, shape index: {}]  }
   0x1   :  { %s991_s14 = smov 0   ;;  %s993_s15 = smov 0  }
   0x2   :  { %s995_s16 = smov 0  }
   0x3 LB: > { %s22_s17 = sadd.s32 1, %s956_s14  ;;  %s25_s18 = sadd.s32 1, %s960_s15  ;;  %s964_s16 = sphi %s995_s16, %s13_s16   ;;  %s960_s15 = sphi %s993_s15, %s1149_s15   ;;  %s956_s14 = sphi %s991_s14, %s1148_s14   ;;  %s952_s13 = sphi %s989_s13, %s1147_s13   ;;  %s948_s12 = sphi %s987_s12, %s1146_s12  }
   0x4   : > { %p23_p0 = scmp.ge.s32.totalorder %s22_s17, 4  ;;  %p729_p1 = scmp.ge.s32.totalorder %s964_s16, 1 }
   0x5   : > { %p156_p2 = scmp.lt.s32.totalorder %s964_s16, 9 }
   0x6   : > { %s1151_s17 = smov (%p23_p0, %s22_s17), 0  ;;  %s1153_s18 = smov (!%p23_p0, %s25_s18), %s960_s15 }
   0x7   : > { %p157_p3 = pnand %p729_p1, %p156_p2  ;;  %p27_p4 = scmp.ge.s32.totalorder %s1153_s18, 2 }
   0x8   : > { %s733_s19 = sshll.u32 (!%p157_p3), %s952_s13, 1  ;;  %v902_v0 = vld [vmem:[%s1143_s1] sm:$0xff] (!%p157_p3)   ;;  %v903_v1 = vld [vmem:[%s1143_s1 + $0x8] sm:$0xff] (!%p157_p3)   ;;  %s730_s24 = sshll.u32 (!%p157_p3), %s948_s12, 5  ;;  %v904_v2 = vld [vmem:[%s1143_s1 + $0x10] sm:$0xff] (!%p157_p3)  }
   0x9   : > { %s1155_s18 = smov (%p27_p4, %s1153_s18), 0  ;;  %160 = sbr.rel (%p157_p3) target bundleno = 318 (0x13e), region = 32 }
   0xa   : > { %p195_p5 = scmp.lt.s32.totalorder (!%p157_p3), %s733_s19, 3  ;;  %797 = vmatprep.subr.bf16.mxu0 (!%p157_p3), %v902_v0  ;;  %845 = vmatprep.subr.bf16.mxu1 (!%p157_p3), %v902_v0  ;;  %p185_p6 = scmp.lt.s32.totalorder (!%p157_p3), %s952_s13, 1  ;;  %v905_v3 = vld [vmem:[%s1143_s1 + $0x18] sm:$0xff] (!%p157_p3)   ;;  %v906_v4 = vld [vmem:[%s1143_s1 + $0x20] sm:$0xff] (!%p157_p3)   ;;  %v907_v6 = vld [vmem:[%s1143_s1 + $0x28] sm:$0xff] (!%p157_p3)  }
   0xb   : > { %798 = vmatpush3.bf16.msra.mxu0 (!%p157_p3), %v902_v0  ;;  %853 = vmatpush3.bf16.msra.mxu1 (!%p157_p3), %v902_v0  ;;  %p187_p7 = scmp.lt.s32.totalorder (!%p157_p3), %s730_s24, 127  ;;  %v908_v8 = vld [vmem:[%s1143_s1 + $0x30] sm:$0xff] (!%p157_p3)   ;;  %v909_v9 = vld [vmem:[%s1143_s1 + $0x38] sm:$0xff] (!%p157_p3)   ;;  %v1078_v24 = vld [vmem:[%s1144_s2] ss:$0 sm:$0xff] (!%p157_p3)  ;;  %p760_p8 = scmp.ne.s32.totalorder (!%p157_p3), %s948_s12, 0 }
   0xc   : > { %799 = vmatprep.subr.bf16.mxu0 (!%p157_p3), %v903_v1  ;;  %846 = vmatprep.subr.bf16.mxu1 (!%p157_p3), %v903_v1 }
   0xf   : > { %800 = vmatpush3.bf16.msra.mxu0 (!%p157_p3), %v903_v1  ;;  %854 = vmatpush3.bf16.msra.mxu1 (!%p157_p3), %v903_v1 }
  0x10   : > { %s1157_s19 = smov (!%p195_p5, %s733_s19), 3  ;;  %s1159_s13 = smov (!%p185_p6, %s952_s13), 1  ;;  %801 = vmatprep.subr.bf16.mxu0 %v904_v2  ;;  %847 = vmatprep.subr.bf16.mxu1 %v904_v2 }
  0x11   : > { %s734_s27 = sshll.u32 %s1157_s19, 2  ;;  %s1161_s24 = smov (!%p187_p7, %s730_s24), 127 }
  0x12   : > { %s1036_s30 = scalar_lea.vmem %s1145_s3, %s734_s27  ;;  %s731_s6 = sshll.u32 %s1159_s13, 7 }
  0x13   : > { %s190_s7 = sadd.s32 %s731_s6, %s1161_s24  ;;  %802 = vmatpush3.bf16.msra.mxu0 %v904_v2  ;;  %855 = vmatpush3.bf16.msra.mxu1 %v904_v2 }
  0x14   : > { %s732_s8 = sshll.u32 %s190_s7, 2  ;;  %803 = vmatprep.subr.bf16.mxu0 %v905_v3  ;;  %848 = vmatprep.subr.bf16.mxu1 %v905_v3 }
  0x15   : > { %s1048_s20 = scalar_lea.vmem %s1142_s0, %s732_s8 }
  0x16   : > { %v910_v5 = vld [vmem:[%s1048_s20] sm:$0xff]   ;;  %v911_v10 = vld [vmem:[%s1048_s20 + $0x8] sm:$0xff]   ;;  %v912_v12 = vld [vmem:[%s1048_s20 + $0x10] sm:$0xff]  }
  0x17   : > { %804 = vmatpush3.bf16.msra.mxu0 %v905_v3  ;;  %856 = vmatpush3.bf16.msra.mxu1 %v905_v3  ;;  %v914_v7 = vld [vmem:[%s1048_s20 + $0x40] sm:$0xff]   ;;  %v915_v11 = vld [vmem:[%s1048_s20 + $0x48] sm:$0xff]   ;;  %v918_v13 = vld [vmem:[%s1048_s20 + $0x50] sm:$0xff]  }
  0x18   : > { %805 = vmatprep.subr.bf16.mxu0 %v906_v4  ;;  %849 = vmatprep.subr.bf16.mxu1 %v906_v4  ;;  %v913_v14 = vld [vmem:[%s1048_s20 + $0x18] sm:$0xff]   ;;  %v916_v16 = vld [vmem:[%s1048_s20 + $0x20] sm:$0xff]   ;;  %v917_v18 = vld [vmem:[%s1048_s20 + $0x28] sm:$0xff]  }
  0x19   : > { %813 = vmatprep.mubr.bf16.mxu0 %v910_v5  ;;  %829 = vmatprep.mubr.bf16.mxu1 %v914_v7  ;;  %v919_v15 = vld [vmem:[%s1048_s20 + $0x58] sm:$0xff]   ;;  %v922_v17 = vld [vmem:[%s1048_s20 + $0x60] sm:$0xff]   ;;  %v923_v19 = vld [vmem:[%s1048_s20 + $0x68] sm:$0xff]  }
  0x1a   : > { %v920_v20 = vld [vmem:[%s1048_s20 + $0x30] sm:$0xff]   ;;  %v921_v22 = vld [vmem:[%s1048_s20 + $0x38] sm:$0xff]  }
  0x1b   : > { %806 = vmatpush3.bf16.msra.mxu0 %v906_v4  ;;  %857 = vmatpush3.bf16.msra.mxu1 %v906_v4  ;;  %v924_v21 = vld [vmem:[%s1048_s20 + $0x70] sm:$0xff]   ;;  %v925_v23 = vld [vmem:[%s1048_s20 + $0x78] sm:$0xff]  }
  0x1c   : > { %807 = vmatprep.subr.bf16.mxu0 %v907_v6  ;;  %850 = vmatprep.subr.bf16.mxu1 %v907_v6 }
  0x1f   : > { %808 = vmatpush3.bf16.msra.mxu0 %v907_v6  ;;  %858 = vmatpush3.bf16.msra.mxu1 %v907_v6 }
  0x20   : > { %809 = vmatprep.subr.bf16.mxu0 %v908_v8  ;;  %851 = vmatprep.subr.bf16.mxu1 %v908_v8 }
  0x23   : > { %810 = vmatpush3.bf16.msra.mxu0 %v908_v8  ;;  %859 = vmatpush3.bf16.msra.mxu1 %v908_v8 }
  0x24   : > { %811 = vmatprep.subr.bf16.mxu0 %v909_v9  ;;  %852 = vmatprep.subr.bf16.mxu1 %v909_v9 }
  0x27   : > { %812 = vmatpush3.bf16.msra.mxu0 %v909_v9  ;;  %860 = vmatpush3.bf16.msra.mxu1 %v909_v9 }
  0x2a   : > { %814 = vmatmul.mubr.bf16.vlgmr.msra.gmra.mrb[0].mxu0 %v911_v10  ;;  %830 = vmatmul.mubr.bf16.vlgmr.msra.gmra.mrb[0].mxu1 %v915_v11 }
  0x2b   : > { %817 = vmatprep.mubr.bf16.mxu0 %v912_v12  ;;  %833 = vmatprep.mubr.bf16.mxu1 %v918_v13 }
  0x32   : > { %818 = vmatmul.mubr.bf16.gmra.mrb[4].mxu0 %v913_v14  ;;  %834 = vmatmul.mubr.bf16.gmra.mrb[4].mxu1 %v919_v15 }
  0x33   : > { %821 = vmatprep.mubr.bf16.mxu0 %v916_v16  ;;  %837 = vmatprep.mubr.bf16.mxu1 %v922_v17 }
  0x3a   : > { %822 = vmatmul.mubr.bf16.gmra.mrb[8].mxu0 %v917_v18  ;;  %838 = vmatmul.mubr.bf16.gmra.mrb[8].mxu1 %v923_v19 }
  0x3b   : > { %825 = vmatprep.mubr.bf16.mxu0 %v920_v20  ;;  %841 = vmatprep.mubr.bf16.mxu1 %v924_v21 }
  0x42   : > { %826 = vmatmul.mubr.bf16.gmra.mrb[12].mxu0 %v921_v22  ;;  %842 = vmatmul.mubr.bf16.gmra.mrb[12].mxu1 %v925_v23 }
  0xfd   : > { %v815_v25 = vpop.f32.mrb[0].mxu0  ;;  %v1080_v26 = vpop.f32.mrb[0].mxu1 }
  0xfe   : > { %v443_v27 = vadd.f32 %v815_v25, %v1078_v24  ;;  %v434_v28 = vpop.f32.mrb[1].mxu0  ;;  %v498_v29 = vpop.f32.mrb[1].mxu1 }
  0xff   : > { %v435_v30 = vadd.f32 %v1078_v24, %v434_v28  ;;  %v816_v31 = vpop.f32.mrb[2].mxu0  ;;  %v1084_v32 = vpop.f32.mrb[2].mxu1 }
 0x100   : > { %v563_v33 = vmax.f32 %v443_v27, 0.0  ;;  %v446_v34 = vadd.f32 %v816_v31, %v1078_v24  ;;  %v437_v35 = vpop.f32.mrb[3].mxu0  ;;  %v501_v36 = vpop.f32.mrb[3].mxu1 }
 0x101   : > { %v561_v37 = vmax.f32 %v435_v30, 0.0  ;;  %v438_v38 = vadd.f32 %v1078_v24, %v437_v35  ;;  %v499_v30 = vadd.f32 %v1078_v24, %v498_v29 }
 0x102   : > { %v564_v39 = vmax.f32 %v446_v34, 0.0 }
 0x103   : > { %v593_v40 = vmax.f32 %v561_v37, %v563_v33  ;;  %v562_v41 = vmax.f32 %v438_v38, 0.0  ;;  %v507_v38 = vadd.f32 %v1080_v26, %v1078_v24 }
 0x105   : > { %v594_v42 = vmax.f32 %v562_v41, %v564_v39  ;;  %v819_v43 = vpop.f32.mrb[4].mxu0  ;;  %v1088_v44 = vpop.f32.mrb[4].mxu1  ;;  %v502_v39 = vadd.f32 %v1078_v24, %v501_v36 }
 0x106   : > { %v450_v45 = vpop.f32.mrb[5].mxu0  ;;  %v514_v46 = vpop.f32.mrb[5].mxu1  ;;  %v459_v47 = vadd.f32 %v819_v43, %v1078_v24  ;;  %v577_v43 = vmax.f32 %v499_v30, 0.0 }
 0x107   : > { %v451_v48 = vadd.f32 %v1078_v24, %v450_v45  ;;  %v820_v49 = vpop.f32.mrb[6].mxu0  ;;  %v1092_v50 = vpop.f32.mrb[6].mxu1  ;;  %v510_v45 = vadd.f32 %v1084_v32, %v1078_v24  ;;  %v515_v29 = vadd.f32 %v1078_v24, %v514_v46 }
 0x108   : > { %v453_v51 = vpop.f32.mrb[7].mxu0  ;;  %v517_v52 = vpop.f32.mrb[7].mxu1  ;;  %v462_v54 = vadd.f32 %v820_v49, %v1078_v24  ;;  %v567_v56 = vmax.f32 %v459_v47, 0.0 }
 0x109   : > { %v565_v53 = vmax.f32 %v451_v48, 0.0  ;;  %v454_v55 = vadd.f32 %v1078_v24, %v453_v51  ;;  %v579_v51 = vmax.f32 %v507_v38, 0.0  ;;  %v518_v26 = vadd.f32 %v1078_v24, %v517_v52 }
 0x10a   : > { %v568_v59 = vmax.f32 %v462_v54, 0.0  ;;  %v578_v54 = vmax.f32 %v502_v39, 0.0 }
 0x10b   : > { %v595_v57 = vmax.f32 %v593_v40, %v565_v53  ;;  %v566_v58 = vmax.f32 %v454_v55, 0.0  ;;  %v523_v53 = vadd.f32 %v1088_v44, %v1078_v24  ;;  %v582_v44 = vmax.f32 %v518_v26, 0.0 }
 0x10d   : > { %v596_v60 = vmax.f32 %v594_v42, %v566_v58  ;;  %v823_v61 = vpop.f32.mrb[8].mxu0  ;;  %v597_v62 = vmax.f32 %v595_v57, %v567_v56  ;;  %v839_v63 = vpop.f32.mrb[8].mxu1  ;;  %v580_v56 = vmax.f32 %v510_v45, 0.0  ;;  %v526_v57 = vadd.f32 %v1092_v50, %v1078_v24 }
 0x10e   : > { %v466_v0 = vpop.f32.mrb[9].mxu0  ;;  %v530_v1 = vpop.f32.mrb[9].mxu1  ;;  %v475_v2 = vadd.f32 %v823_v61, %v1078_v24  ;;  %v581_v58 = vmax.f32 %v515_v29, 0.0  ;;  %v539_v61 = vadd.f32 %v839_v63, %v1078_v24 }
 0x10f   : > { %v467_v3 = vadd.f32 %v1078_v24, %v466_v0  ;;  %v824_v4 = vpop.f32.mrb[10].mxu0  ;;  %v598_v5 = vmax.f32 %v596_v60, %v568_v59  ;;  %v840_v6 = vpop.f32.mrb[10].mxu1  ;;  %v531_v46 = vadd.f32 %v1078_v24, %v530_v1  ;;  %v583_v60 = vmax.f32 %v523_v53, 0.0 }
 0x110   : > { %v469_v7 = vpop.f32.mrb[11].mxu0  ;;  %v533_v8 = vpop.f32.mrb[11].mxu1  ;;  %v478_v10 = vadd.f32 %v824_v4, %v1078_v24  ;;  %v571_v12 = vmax.f32 %v475_v2, 0.0  ;;  %v542_v50 = vadd.f32 %v840_v6, %v1078_v24 }
 0x111   : > { %v569_v9 = vmax.f32 %v467_v3, 0.0  ;;  %v470_v11 = vadd.f32 %v1078_v24, %v469_v7  ;;  %v584_v3 = vmax.f32 %v526_v57, 0.0  ;;  %v585_v4 = vmax.f32 %v531_v46, 0.0 }
 0x112   : > { %v572_v15 = vmax.f32 %v478_v10, 0.0 }
 0x113   : > { %v599_v13 = vmax.f32 %v597_v62, %v569_v9  ;;  %v570_v14 = vmax.f32 %v470_v11, 0.0  ;;  %v534_v62 = vadd.f32 %v1078_v24, %v533_v8  ;;  %v587_v9 = vmax.f32 %v539_v61, 0.0 }
 0x115   : > { %v600_v16 = vmax.f32 %v598_v5, %v570_v14  ;;  %v827_v17 = vpop.f32.mrb[12].mxu0  ;;  %v601_v18 = vmax.f32 %v599_v13, %v571_v12  ;;  %v843_v19 = vpop.f32.mrb[12].mxu1  ;;  %v586_v10 = vmax.f32 %v534_v62, 0.0  ;;  %v588_v13 = vmax.f32 %v542_v50, 0.0 }
 0x116   : > { %v482_v20 = vpop.f32.mrb[13].mxu0  ;;  %v546_v21 = vpop.f32.mrb[13].mxu1  ;;  %v491_v22 = vadd.f32 %v827_v17, %v1078_v24  ;;  %v555_v1 = vadd.f32 %v843_v19, %v1078_v24  ;;  %v966_v19 = vmov (!%p760_p8), -inf  }
 0x117   : > { %v483_v23 = vadd.f32 %v1078_v24, %v482_v20  ;;  %v828_v25 = vpop.f32.mrb[14].mxu0  ;;  %v602_v27 = vmax.f32 %v600_v16, %v572_v15  ;;  %v844_v28 = vpop.f32.mrb[14].mxu1  ;;  %v547_v52 = vadd.f32 %v1078_v24, %v546_v21  ;;  %627 = vst [vmem:[#allocation2] sm:$0xff] (!%p760_p8), %v966_v19  ;;  %628 = vst [vmem:[#allocation2 + $0x8] sm:$0xff] (!%p760_p8), %v966_v19 }
 0x118   : > { %v485_v31 = vpop.f32.mrb[15].mxu0  ;;  %v549_v33 = vpop.f32.mrb[15].mxu1  ;;  %v494_v35 = vadd.f32 %v828_v25, %v1078_v24  ;;  %v575_v40 = vmax.f32 %v491_v22, 0.0  ;;  %v558_v16 = vadd.f32 %v844_v28, %v1078_v24  ;;  %v591_v17 = vmax.f32 %v555_v1, 0.0 }
 0x119   : > { %v573_v34 = vmax.f32 %v483_v23, 0.0  ;;  %v486_v37 = vadd.f32 %v1078_v24, %v485_v31  ;;  %v589_v63 = vmax.f32 %v547_v52, 0.0  ;;  %v550_v8 = vadd.f32 %v1078_v24, %v549_v33 }
 0x11a   : > { %v576_v48 = vmax.f32 %v494_v35, 0.0  ;;  %v592_v22 = vmax.f32 %v558_v16, 0.0 }
 0x11b   : > { %v603_v41 = vmax.f32 %v601_v18, %v573_v34  ;;  %v574_v42 = vmax.f32 %v486_v37, 0.0  ;;  %v590_v20 = vmax.f32 %v550_v8, 0.0 }
 0x11d   : > { %v605_v47 = vmax.f32 %v603_v41, %v575_v40  ;;  %v604_v49 = vmax.f32 %v602_v27, %v574_v42 }
 0x11f   : > { %v607_v36 = vmax.f32 %v605_v47, %v577_v43  ;;  %v606_v55 = vmax.f32 %v604_v49, %v576_v48 }
 0x121   : > { %v608_v32 = vmax.f32 %v606_v55, %v578_v54  ;;  %v609_v59 = vmax.f32 %v607_v36, %v579_v51 }
 0x123   : > { %v611_v0 = vmax.f32 %v609_v59, %v581_v58  ;;  %v610_v2 = vmax.f32 %v608_v32, %v580_v56 }
 0x125   : > { %v613_v5 = vmax.f32 %v611_v0, %v583_v60  ;;  %v612_v7 = vmax.f32 %v610_v2, %v582_v44 }
 0x127   : > { %v615_v11 = vmax.f32 %v613_v5, %v585_v4  ;;  %v614_v12 = vmax.f32 %v612_v7, %v584_v3 }
 0x129   : > { %v616_v14 = vmax.f32 %v614_v12, %v586_v10  ;;  %v617_v15 = vmax.f32 %v615_v11, %v587_v9  ;;  %626 = sbr.rel (%p760_p8) target bundleno = 304 (0x130), region = 36 }
 0x12b   : > { %v619_v18 = vmax.f32 %v617_v15, %v589_v63  ;;  %v618_v21 = vmax.f32 %v616_v14, %v588_v13 }
 0x12d   : > { %v621_v6 = vmax.f32 %v619_v18, %v591_v17  ;;  %v620_v23 = vmax.f32 %v618_v21, %v590_v20 }
 0x12f   : > { %v622_v25 = vmax.f32 %v620_v23, %v592_v22 }
 0x130 PF: > { %v629_v27 = vld [vmem:[#allocation2] sm:$0xff]  ;;  %v630_v30 = vld [vmem:[#allocation2 + $0x8] sm:$0xff]  ;;  %p761_p9 = scmp.ne.s32.totalorder %s948_s12, 3 }
 0x131   : > { %v631_v31 = vmax.f32 %v629_v27, %v621_v6  ;;  %v632_v33 = vmax.f32 %v630_v30, %v622_v25 }
 0x132   : > { %638 = sbr.rel (%p761_p9) target bundleno = 318 (0x13e), region = 40 }
 0x133   : > { %633 = vst [vmem:[#allocation2] sm:$0xff] %v631_v31  ;;  %634 = vst [vmem:[#allocation2 + $0x8] sm:$0xff] %v632_v33 }
 0x13a   : > { %v639_v24 = vld [vmem:[#allocation2] sm:$0xff]  ;;  %v640_v28 = vld [vmem:[#allocation2 + $0x8] sm:$0xff] }
 0x13b   : > { %v771_v34 = vpack.c.bf16 %v640_v28, %v639_v24 }
 0x13d   : > { %772 = vst [vmem:[%s1036_s30] sm:$0xff] %v771_v34  }
 0x13e PF: > { %s13_s16 = sadd.s32 1, %s964_s16   ;;  %s1146_s12 = smov %s956_s14 }
 0x13f   : > { %p10_p10 = scmp.ge.s32.totalorder %s13_s16, 10   ;;  %s1147_s13 = smov %s960_s15 }
 0x140   : > { %s1148_s14 = smov %s1151_s17  ;;  %s1149_s15 = smov %s1155_s18 }
 0x141   :  { %12 = sbr.rel (!%p10_p10) target bundleno = 3 (0x3), region = 70 }

// kernel: custom-call.2
= control target key start
LH: loop header
LB: loop body
LE: loop exit
PB: predicated region body
PF: predicated region fallthrough
CT: control target
= control target key end

     0   :  { %s6_s0 = inlined_call_operand.vmem [shape: f32[13], index: 0, kind: output, shape index: {}]  }

// kernel: pointnet_forward.16
= control target key start
LH: loop header
LB: loop body
LE: loop exit
PB: predicated region body
PF: predicated region fallthrough
CT: control target
= control target key end

     0   :  { %s1023_s12 = smov 0   ;;  %s1025_s13 = smov 0   ;;  %s1309_s0 = inlined_call_operand.vmem [shape: bf16[2,256,128], index: 0, kind: input, shape index: {}]   ;;  %s1310_s1 = inlined_call_operand.vmem [shape: bf16[128,256], index: 1, kind: input, shape index: {}]   ;;  %s1311_s2 = inlined_call_operand.vmem [shape: f32[1,256], index: 2, kind: input, shape index: {}]   ;;  %s1312_s3 = inlined_call_operand.vmem [shape: bf16[16,256], index: 3, kind: output, shape index: {}]  }
   0x1   :  { %s1027_s14 = smov 0  }
   0x2 LB: > { %s25_s15 = sadd.s32 1, %s996_s13  ;;  %p854_p0 = scmp.ge.s32.totalorder %s1000_s14, 1  ;;  %s1000_s14 = sphi %s1027_s14, %s13_s14   ;;  %s996_s13 = sphi %s1025_s13, %s1314_s13   ;;  %s992_s12 = sphi %s1023_s12, %s1313_s12  }
   0x3   : > { %p27_p1 = scmp.ge.s32.totalorder %s25_s15, 2  ;;  %p156_p2 = scmp.lt.s32.totalorder %s1000_s14, 3 }
   0x5   : > { %s1316_s15 = smov (%p27_p1, %s25_s15), 0  ;;  %p157_p3 = pnand %p854_p0, %p156_p2 }
   0x6   : > { %v938_v0 = vld [vmem:[%s1310_s1 + $0x4] ss:$8 sps:$4 sm:$0xff] (!%p157_p3)   ;;  %p185_p4 = scmp.lt.s32.totalorder (!%p157_p3), %s992_s12, 1  ;;  %v940_v1 = vld [vmem:[%s1310_s1] ss:$8 sps:$4 sm:$0xff] (!%p157_p3)   ;;  %v1002_v2 = vmov (!%p157_p3), 0   ;;  %v250_v33 = vlaneseq (!%p157_p3) }
   0x7   : > { %160 = sbr.rel (%p157_p3) target bundleno = 352 (0x160), region = 32  ;;  %468 = vmatprep.mubr.bf16.mxu0 (!%p157_p3), %v1002_v2  ;;  %548 = vmatprep.mubr.bf16.mxu1 (!%p157_p3), %v1002_v2  ;;  %v941_v3 = vld [vmem:[%s1310_s1 + $0x14] ss:$8 sps:$4 sm:$0xff] (!%p157_p3)   ;;  %v943_v4 = vld [vmem:[%s1310_s1 + $0x10] ss:$8 sps:$4 sm:$0xff] (!%p157_p3)  }
   0x8   : > { %436 = vmatprep.subr.bf16.mxu0 (!%p157_p3), %v938_v0  ;;  %897 = vmatprep.subr.bf16.mxu1 (!%p157_p3), %v938_v0  ;;  %v944_v5 = vld [vmem:[%s1310_s1 + $0x24] ss:$8 sps:$4 sm:$0xff] (!%p157_p3)   ;;  %v946_v6 = vld [vmem:[%s1310_s1 + $0x20] ss:$8 sps:$4 sm:$0xff] (!%p157_p3)   ;;  %v947_v7 = vld [vmem:[%s1310_s1 + $0x34] ss:$8 sps:$4 sm:$0xff] (!%p157_p3)  }
   0x9   : > { %437 = vmatpush1.bf16.msra.mxu0 (!%p157_p3), %v940_v1  ;;  %905 = vmatpush1.bf16.msra.mxu1 (!%p157_p3), %v940_v1  ;;  %v949_v8 = vld [vmem:[%s1310_s1 + $0x30] ss:$8 sps:$4 sm:$0xff] (!%p157_p3)   ;;  %v950_v9 = vld [vmem:[%s1310_s1 + $0x44] ss:$8 sps:$4 sm:$0xff] (!%p157_p3)   ;;  %v952_v10 = vld [vmem:[%s1310_s1 + $0x40] ss:$8 sps:$4 sm:$0xff] (!%p157_p3)  }
   0xa   : > { %438 = vmatprep.subr.bf16.mxu0 (!%p157_p3), %v941_v3  ;;  %898 = vmatprep.subr.bf16.mxu1 (!%p157_p3), %v941_v3  ;;  %v953_v11 = vld [vmem:[%s1310_s1 + $0x54] ss:$8 sps:$4 sm:$0xff] (!%p157_p3)   ;;  %v955_v12 = vld [vmem:[%s1310_s1 + $0x50] ss:$8 sps:$4 sm:$0xff] (!%p157_p3)   ;;  %v956_v13 = vld [vmem:[%s1310_s1 + $0x64] ss:$8 sps:$4 sm:$0xff] (!%p157_p3)  }
   0xb   : > { %v958_v14 = vld [vmem:[%s1310_s1 + $0x60] ss:$8 sps:$4 sm:$0xff] (!%p157_p3)   ;;  %v959_v15 = vld [vmem:[%s1310_s1 + $0x74] ss:$8 sps:$4 sm:$0xff] (!%p157_p3)   ;;  %v961_v16 = vld [vmem:[%s1310_s1 + $0x70] ss:$8 sps:$4 sm:$0xff] (!%p157_p3)  }
   0xc   : > { %v251_v34 = vshrl.u32 (!%p157_p3), %v250_v33, 7  ;;  %v248_v36 = vld [vmem:[%s1311_s2] sm:$0x3] (!%p157_p3) }
   0xd   : > { %439 = vmatpush1.bf16.msra.mxu0 (!%p157_p3), %v943_v4  ;;  %906 = vmatpush1.bf16.msra.mxu1 (!%p157_p3), %v943_v4 }
   0xe   : > { %s1318_s12 = smov (!%p185_p4, %s992_s12), 1  ;;  %440 = vmatprep.subr.bf16.mxu0 %v944_v5  ;;  %899 = vmatprep.subr.bf16.mxu1 %v944_v5  ;;  %v252_v35 = vsub.s32 0, %v251_v34  ;;  %v256_v37 = vsub.s32 1, %v251_v34 }
   0xf   : > { %s894_s26 = sshll.u32 %s1318_s12, 7  ;;  %s895_s4 = sshll.u32 %s1318_s12, 3 }
  0x10   : > { %s1070_s6 = scalar_lea.vmem %s1309_s0, %s894_s26  ;;  %v1132_v38 = vrot.slane %v248_v36, %v252_v35  ;;  %v1134_v39 = vrot.slane %v248_v36, %v256_v37  ;;  %s198_s7 = scalar_lea.vmem %s1312_s3, %s895_s4 }
  0x11   : > { %441 = vmatpush1.bf16.msra.mxu0 %v946_v6  ;;  %907 = vmatpush1.bf16.msra.mxu1 %v946_v6  ;;  %v962_v17 = vld [vmem:[%s1070_s6] sm:$0xff]   ;;  %v963_v19 = vld [vmem:[%s1070_s6 + $0x8] sm:$0xff]   ;;  %v964_v21 = vld [vmem:[%s1070_s6 + $0x10] sm:$0xff]  }
  0x12   : > { %442 = vmatprep.subr.bf16.mxu0 %v947_v7  ;;  %900 = vmatprep.subr.bf16.mxu1 %v947_v7  ;;  %v966_v18 = vld [vmem:[%s1070_s6 + $0x40] sm:$0xff]   ;;  %v968_v20 = vld [vmem:[%s1070_s6 + $0x48] sm:$0xff]   ;;  %v970_v22 = vld [vmem:[%s1070_s6 + $0x50] sm:$0xff]  }
  0x13   : > { %v965_v23 = vld [vmem:[%s1070_s6 + $0x18] sm:$0xff]   ;;  %v967_v25 = vld [vmem:[%s1070_s6 + $0x20] sm:$0xff]   ;;  %v969_v27 = vld [vmem:[%s1070_s6 + $0x28] sm:$0xff]  }
  0x14   : > { %v972_v24 = vld [vmem:[%s1070_s6 + $0x58] sm:$0xff]   ;;  %v974_v26 = vld [vmem:[%s1070_s6 + $0x60] sm:$0xff]   ;;  %v975_v28 = vld [vmem:[%s1070_s6 + $0x68] sm:$0xff]  }
  0x15   : > { %443 = vmatpush1.bf16.msra.mxu0 %v949_v8  ;;  %908 = vmatpush1.bf16.msra.mxu1 %v949_v8  ;;  %v971_v29 = vld [vmem:[%s1070_s6 + $0x30] sm:$0xff]   ;;  %v973_v31 = vld [vmem:[%s1070_s6 + $0x38] sm:$0xff]  }
  0x16   : > { %444 = vmatprep.subr.bf16.mxu0 %v950_v9  ;;  %901 = vmatprep.subr.bf16.mxu1 %v950_v9  ;;  %v976_v30 = vld [vmem:[%s1070_s6 + $0x70] sm:$0xff]   ;;  %v977_v32 = vld [vmem:[%s1070_s6 + $0x78] sm:$0xff]  }
  0x19   : > { %445 = vmatpush1.bf16.msra.mxu0 %v952_v10  ;;  %909 = vmatpush1.bf16.msra.mxu1 %v952_v10 }
  0x1a   : > { %446 = vmatprep.subr.bf16.mxu0 %v953_v11  ;;  %902 = vmatprep.subr.bf16.mxu1 %v953_v11 }
  0x1d   : > { %447 = vmatpush1.bf16.msra.mxu0 %v955_v12  ;;  %910 = vmatpush1.bf16.msra.mxu1 %v955_v12 }
  0x1e   : > { %448 = vmatprep.subr.bf16.mxu0 %v956_v13  ;;  %903 = vmatprep.subr.bf16.mxu1 %v956_v13 }
  0x21   : > { %449 = vmatpush1.bf16.msra.mxu0 %v958_v14  ;;  %911 = vmatpush1.bf16.msra.mxu1 %v958_v14 }
  0x22   : > { %450 = vmatprep.subr.bf16.mxu0 %v959_v15  ;;  %904 = vmatprep.subr.bf16.mxu1 %v959_v15 }
  0x25   : > { %451 = vmatpush1.bf16.msra.mxu0 %v961_v16  ;;  %912 = vmatpush1.bf16.msra.mxu1 %v961_v16 }
  0x28   : > { %469 = vmatmul.mubr.bf16.vlgmr.msra.gmra.mrb[0].mxu0 %v962_v17  ;;  %549 = vmatmul.mubr.bf16.vlgmr.msra.gmra.mrb[0].mxu1 %v966_v18 }
  0x29   : > { %478 = vmatprep.mubr.bf16.mxu0 %v1002_v2  ;;  %558 = vmatprep.mubr.bf16.mxu1 %v1002_v2 }
  0x30   : > { %479 = vmatmul.mubr.bf16.gmra.mrb[4].mxu0 %v963_v19  ;;  %559 = vmatmul.mubr.bf16.gmra.mrb[4].mxu1 %v968_v20 }
  0x31   : > { %488 = vmatprep.mubr.bf16.mxu0 %v1002_v2  ;;  %568 = vmatprep.mubr.bf16.mxu1 %v1002_v2 }
  0x38   : > { %489 = vmatmul.mubr.bf16.gmra.mrb[8].mxu0 %v964_v21  ;;  %569 = vmatmul.mubr.bf16.gmra.mrb[8].mxu1 %v970_v22 }
  0x39   : > { %498 = vmatprep.mubr.bf16.mxu0 %v1002_v2  ;;  %578 = vmatprep.mubr.bf16.mxu1 %v1002_v2 }
  0x40   : > { %499 = vmatmul.mubr.bf16.gmra.mrb[12].mxu0 %v965_v23  ;;  %579 = vmatmul.mubr.bf16.gmra.mrb[12].mxu1 %v972_v24 }
  0x41   : > { %508 = vmatprep.mubr.bf16.mxu0 %v1002_v2  ;;  %588 = vmatprep.mubr.bf16.mxu1 %v1002_v2 }
  0x48   : > { %509 = vmatmul.mubr.bf16.gmra.mrb[16].mxu0 %v967_v25  ;;  %589 = vmatmul.mubr.bf16.gmra.mrb[16].mxu1 %v974_v26 }
  0x49   : > { %518 = vmatprep.mubr.bf16.mxu0 %v1002_v2  ;;  %598 = vmatprep.mubr.bf16.mxu1 %v1002_v2 }
  0x50   : > { %519 = vmatmul.mubr.bf16.gmra.mrb[20].mxu0 %v969_v27  ;;  %599 = vmatmul.mubr.bf16.gmra.mrb[20].mxu1 %v975_v28 }
  0x51   : > { %528 = vmatprep.mubr.bf16.mxu0 %v1002_v2  ;;  %608 = vmatprep.mubr.bf16.mxu1 %v1002_v2 }
  0x58   : > { %529 = vmatmul.mubr.bf16.gmra.mrb[24].mxu0 %v971_v29  ;;  %609 = vmatmul.mubr.bf16.gmra.mrb[24].mxu1 %v976_v30 }
  0x59   : > { %538 = vmatprep.mubr.bf16.mxu0 %v1002_v2  ;;  %618 = vmatprep.mubr.bf16.mxu1 %v1002_v2 }
  0x60   : > { %539 = vmatmul.mubr.bf16.gmra.mrb[28].mxu0 %v973_v31  ;;  %619 = vmatmul.mubr.bf16.gmra.mrb[28].mxu1 %v977_v32 }
  0xfb   : > { %v470_v40 = vpop.f32.mrb[0].mxu0  ;;  %v1136_v41 = vpop.f32.mrb[0].mxu1 }
  0xfc   : > { %v471_v42 = vadd.f32 %v470_v40, %v1132_v38  ;;  %v472_v43 = vpop.f32.mrb[1].mxu0  ;;  %v1139_v44 = vpop.f32.mrb[1].mxu1 }
  0xfd   : > { %v473_v45 = vadd.f32 %v472_v43, %v1134_v39  ;;  %v474_v46 = vpop.f32.mrb[2].mxu0  ;;  %v1142_v47 = vpop.f32.mrb[2].mxu1 }
  0xfe   : > { %v475_v48 = vadd.f32 %v474_v46, %v1132_v38  ;;  %v476_v49 = vpop.f32.mrb[3].mxu0  ;;  %v1145_v50 = vpop.f32.mrb[3].mxu1  ;;  %v629_v52 = vmax.f32 %v471_v42, 0.0 }
  0xff   : > { %v477_v51 = vadd.f32 %v476_v49, %v1134_v39  ;;  %v630_v54 = vmax.f32 %v473_v45, 0.0 }
 0x100   : > { %v631_v53 = vmax.f32 %v475_v48, 0.0 }
 0x101   : > { %v632_v55 = vmax.f32 %v477_v51, 0.0 }
 0x102   : > { %v693_v56 = vmax.f32 %v629_v52, %v631_v53 }
 0x103   : > { %v694_v57 = vmax.f32 %v630_v54, %v632_v55  ;;  %v480_v58 = vpop.f32.mrb[4].mxu0  ;;  %v1148_v59 = vpop.f32.mrb[4].mxu1 }
 0x104   : > { %v481_v60 = vadd.f32 %v480_v58, %v1132_v38  ;;  %v482_v61 = vpop.f32.mrb[5].mxu0  ;;  %v1151_v62 = vpop.f32.mrb[5].mxu1 }
 0x105   : > { %v483_v63 = vadd.f32 %v482_v61, %v1134_v39  ;;  %v484_v0 = vpop.f32.mrb[6].mxu0  ;;  %v1154_v1 = vpop.f32.mrb[6].mxu1 }
 0x106   : > { %v633_v2 = vmax.f32 %v481_v60, 0.0  ;;  %v485_v3 = vadd.f32 %v484_v0, %v1132_v38  ;;  %v486_v4 = vpop.f32.mrb[7].mxu0  ;;  %v1157_v5 = vpop.f32.mrb[7].mxu1 }
 0x107   : > { %v634_v6 = vmax.f32 %v483_v63, 0.0  ;;  %v487_v7 = vadd.f32 %v486_v4, %v1134_v39 }
 0x108   : > { %v695_v8 = vmax.f32 %v693_v56, %v633_v2  ;;  %v635_v9 = vmax.f32 %v485_v3, 0.0 }
 0x109   : > { %v696_v10 = vmax.f32 %v694_v57, %v634_v6  ;;  %v636_v11 = vmax.f32 %v487_v7, 0.0 }
 0x10a   : > { %v697_v12 = vmax.f32 %v695_v8, %v635_v9 }
 0x10b   : > { %v698_v13 = vmax.f32 %v696_v10, %v636_v11  ;;  %v490_v14 = vpop.f32.mrb[8].mxu0  ;;  %v1160_v15 = vpop.f32.mrb[8].mxu1 }
 0x10c   : > { %v491_v16 = vadd.f32 %v490_v14, %v1132_v38  ;;  %v492_v17 = vpop.f32.mrb[9].mxu0  ;;  %v1163_v18 = vpop.f32.mrb[9].mxu1 }
 0x10d   : > { %v493_v19 = vadd.f32 %v492_v17, %v1134_v39  ;;  %v494_v20 = vpop.f32.mrb[10].mxu0  ;;  %v1166_v21 = vpop.f32.mrb[10].mxu1 }
 0x10e   : > { %v637_v22 = vmax.f32 %v491_v16, 0.0  ;;  %v495_v23 = vadd.f32 %v494_v20, %v1132_v38  ;;  %v496_v24 = vpop.f32.mrb[11].mxu0  ;;  %v1169_v25 = vpop.f32.mrb[11].mxu1 }
 0x10f   : > { %v638_v26 = vmax.f32 %v493_v19, 0.0  ;;  %v497_v27 = vadd.f32 %v496_v24, %v1134_v39 }
 0x110   : > { %v699_v28 = vmax.f32 %v697_v12, %v637_v22  ;;  %v639_v29 = vmax.f32 %v495_v23, 0.0 }
 0x111   : > { %v700_v30 = vmax.f32 %v698_v13, %v638_v26  ;;  %v640_v31 = vmax.f32 %v497_v27, 0.0 }
 0x112   : > { %v701_v32 = vmax.f32 %v699_v28, %v639_v29 }
 0x113   : > { %v702_v33 = vmax.f32 %v700_v30, %v640_v31  ;;  %v500_v34 = vpop.f32.mrb[12].mxu0  ;;  %v1172_v35 = vpop.f32.mrb[12].mxu1 }
 0x114   : > { %v501_v36 = vadd.f32 %v500_v34, %v1132_v38  ;;  %v502_v37 = vpop.f32.mrb[13].mxu0  ;;  %v1175_v40 = vpop.f32.mrb[13].mxu1 }
 0x115   : > { %v503_v42 = vadd.f32 %v502_v37, %v1134_v39  ;;  %v504_v43 = vpop.f32.mrb[14].mxu0  ;;  %v1178_v45 = vpop.f32.mrb[14].mxu1 }
 0x116   : > { %v641_v46 = vmax.f32 %v501_v36, 0.0  ;;  %v505_v48 = vadd.f32 %v504_v43, %v1132_v38  ;;  %v506_v49 = vpop.f32.mrb[15].mxu0  ;;  %v1181_v51 = vpop.f32.mrb[15].mxu1 }
 0x117   : > { %v642_v52 = vmax.f32 %v503_v42, 0.0  ;;  %v507_v53 = vadd.f32 %v506_v49, %v1134_v39 }
 0x118   : > { %v703_v54 = vmax.f32 %v701_v32, %v641_v46  ;;  %v643_v55 = vmax.f32 %v505_v48, 0.0 }
 0x119   : > { %v704_v56 = vmax.f32 %v702_v33, %v642_v52  ;;  %v644_v57 = vmax.f32 %v507_v53, 0.0 }
 0x11a   : > { %v705_v58 = vmax.f32 %v703_v54, %v643_v55 }
 0x11b   : > { %v706_v60 = vmax.f32 %v704_v56, %v644_v57  ;;  %v510_v61 = vpop.f32.mrb[16].mxu0  ;;  %v1184_v63 = vpop.f32.mrb[16].mxu1 }
 0x11c   : > { %v511_v0 = vadd.f32 %v510_v61, %v1132_v38  ;;  %v512_v2 = vpop.f32.mrb[17].mxu0  ;;  %v1187_v3 = vpop.f32.mrb[17].mxu1 }
 0x11d   : > { %v513_v4 = vadd.f32 %v512_v2, %v1134_v39  ;;  %v514_v6 = vpop.f32.mrb[18].mxu0  ;;  %v1190_v7 = vpop.f32.mrb[18].mxu1 }
 0x11e   : > { %v645_v8 = vmax.f32 %v511_v0, 0.0  ;;  %v515_v9 = vadd.f32 %v514_v6, %v1132_v38  ;;  %v516_v10 = vpop.f32.mrb[19].mxu0  ;;  %v1193_v11 = vpop.f32.mrb[19].mxu1 }
 0x11f   : > { %v646_v12 = vmax.f32 %v513_v4, 0.0  ;;  %v517_v13 = vadd.f32 %v516_v10, %v1134_v39 }
 0x120   : > { %v707_v14 = vmax.f32 %v705_v58, %v645_v8  ;;  %v647_v16 = vmax.f32 %v515_v9, 0.0 }
 0x121   : > { %v708_v17 = vmax.f32 %v706_v60, %v646_v12  ;;  %v648_v19 = vmax.f32 %v517_v13, 0.0 }
 0x122   : > { %v709_v20 = vmax.f32 %v707_v14, %v647_v16 }
 0x123   : > { %v710_v22 = vmax.f32 %v708_v17, %v648_v19  ;;  %v520_v23 = vpop.f32.mrb[20].mxu0  ;;  %v1196_v24 = vpop.f32.mrb[20].mxu1 }
 0x124   : > { %v521_v26 = vadd.f32 %v520_v23, %v1132_v38  ;;  %v522_v27 = vpop.f32.mrb[21].mxu0  ;;  %v1199_v28 = vpop.f32.mrb[21].mxu1 }
 0x125   : > { %v523_v29 = vadd.f32 %v522_v27, %v1134_v39  ;;  %v524_v30 = vpop.f32.mrb[22].mxu0  ;;  %v1202_v31 = vpop.f32.mrb[22].mxu1 }
 0x126   : > { %v649_v32 = vmax.f32 %v521_v26, 0.0  ;;  %v525_v33 = vadd.f32 %v524_v30, %v1132_v38  ;;  %v526_v34 = vpop.f32.mrb[23].mxu0  ;;  %v1205_v36 = vpop.f32.mrb[23].mxu1 }
 0x127   : > { %v650_v37 = vmax.f32 %v523_v29, 0.0  ;;  %v527_v42 = vadd.f32 %v526_v34, %v1134_v39 }
 0x128   : > { %v711_v43 = vmax.f32 %v709_v20, %v649_v32  ;;  %v651_v46 = vmax.f32 %v525_v33, 0.0  ;;  %v551_v33 = vadd.f32 %v1136_v41, %v1132_v38  ;;  %v557_v41 = vadd.f32 %v1145_v50, %v1134_v39 }
 0x129   : > { %v712_v48 = vmax.f32 %v710_v22, %v650_v37  ;;  %v652_v49 = vmax.f32 %v527_v42, 0.0  ;;  %v567_v50 = vadd.f32 %v1157_v5, %v1134_v39  ;;  %v577_v5 = vadd.f32 %v1169_v25, %v1134_v39 }
 0x12a   : > { %v713_v52 = vmax.f32 %v711_v43, %v651_v46  ;;  %v553_v46 = vadd.f32 %v1139_v44, %v1134_v39  ;;  %v563_v44 = vadd.f32 %v1151_v62, %v1134_v39  ;;  %v573_v62 = vadd.f32 %v1163_v18, %v1134_v39 }
 0x12b   : > { %v714_v53 = vmax.f32 %v712_v48, %v652_v49  ;;  %v530_v54 = vpop.f32.mrb[24].mxu0  ;;  %v1208_v55 = vpop.f32.mrb[24].mxu1  ;;  %v583_v18 = vadd.f32 %v1175_v40, %v1134_v39  ;;  %v587_v25 = vadd.f32 %v1181_v51, %v1134_v39  ;;  %v593_v40 = vadd.f32 %v1187_v3, %v1134_v39 }
 0x12c   : > { %v531_v56 = vadd.f32 %v530_v54, %v1132_v38  ;;  %v532_v57 = vpop.f32.mrb[25].mxu0  ;;  %v1211_v58 = vpop.f32.mrb[25].mxu1  ;;  %v597_v51 = vadd.f32 %v1193_v11, %v1134_v39  ;;  %v603_v3 = vadd.f32 %v1199_v28, %v1134_v39  ;;  %v607_v11 = vadd.f32 %v1205_v36, %v1134_v39 }
 0x12d   : > { %v533_v60 = vadd.f32 %v532_v57, %v1134_v39  ;;  %v534_v61 = vpop.f32.mrb[26].mxu0  ;;  %v1214_v0 = vpop.f32.mrb[26].mxu1  ;;  %v613_v28 = vadd.f32 %v1211_v58, %v1134_v39 }
 0x12e   : > { %v653_v2 = vmax.f32 %v531_v56, 0.0  ;;  %v535_v4 = vadd.f32 %v534_v61, %v1132_v38  ;;  %v536_v6 = vpop.f32.mrb[27].mxu0  ;;  %v1217_v8 = vpop.f32.mrb[27].mxu1  ;;  %v561_v61 = vadd.f32 %v1148_v59, %v1132_v38  ;;  %v571_v59 = vadd.f32 %v1160_v15, %v1132_v38 }
 0x12f   : > { %v654_v9 = vmax.f32 %v533_v60, 0.0  ;;  %v537_v10 = vadd.f32 %v536_v6, %v1134_v39  ;;  %v661_v60 = vmax.f32 %v551_v33, 0.0  ;;  %v581_v15 = vadd.f32 %v1172_v35, %v1132_v38 }
 0x130   : > { %v715_v12 = vmax.f32 %v713_v52, %v653_v2  ;;  %v655_v13 = vmax.f32 %v535_v4, 0.0  ;;  %v555_v52 = vadd.f32 %v1142_v47, %v1132_v38  ;;  %v662_v4 = vmax.f32 %v553_v46, 0.0 }
 0x131   : > { %v716_v14 = vmax.f32 %v714_v53, %v654_v9  ;;  %v656_v16 = vmax.f32 %v537_v10, 0.0  ;;  %v565_v47 = vadd.f32 %v1154_v1, %v1132_v38  ;;  %v575_v1 = vadd.f32 %v1166_v21, %v1132_v38 }
 0x132   : > { %v717_v17 = vmax.f32 %v715_v12, %v655_v13  ;;  %v663_v9 = vmax.f32 %v555_v52, 0.0  ;;  %v664_v12 = vmax.f32 %v557_v41, 0.0  ;;  %v585_v21 = vadd.f32 %v1178_v45, %v1132_v38 }
 0x133   : > { %v718_v19 = vmax.f32 %v716_v14, %v656_v16  ;;  %v540_v20 = vpop.f32.mrb[28].mxu0  ;;  %v1220_v22 = vpop.f32.mrb[28].mxu1  ;;  %v665_v14 = vmax.f32 %v561_v61, 0.0  ;;  %v673_v52 = vmax.f32 %v581_v15, 0.0  ;;  %v591_v35 = vadd.f32 %v1184_v63, %v1132_v38 }
 0x134   : > { %v541_v23 = vadd.f32 %v540_v20, %v1132_v38  ;;  %v542_v26 = vpop.f32.mrb[29].mxu0  ;;  %v1223_v27 = vpop.f32.mrb[29].mxu1  ;;  %v667_v20 = vmax.f32 %v565_v47, 0.0  ;;  %v595_v45 = vadd.f32 %v1190_v7, %v1132_v38  ;;  %v601_v63 = vadd.f32 %v1196_v24, %v1132_v38 }
 0x135   : > { %v543_v29 = vadd.f32 %v542_v26, %v1134_v39  ;;  %v544_v30 = vpop.f32.mrb[30].mxu0  ;;  %v1226_v32 = vpop.f32.mrb[30].mxu1  ;;  %v668_v26 = vmax.f32 %v567_v50, 0.0  ;;  %v605_v7 = vadd.f32 %v1202_v31, %v1132_v38  ;;  %v611_v24 = vadd.f32 %v1208_v55, %v1132_v38 }
 0x136   : > { %v657_v34 = vmax.f32 %v541_v23, 0.0  ;;  %v545_v37 = vadd.f32 %v544_v30, %v1132_v38  ;;  %v546_v42 = vpop.f32.mrb[31].mxu0  ;;  %v1231_v43 = vpop.f32.mrb[31].mxu1  ;;  %v669_v30 = vmax.f32 %v571_v59, 0.0  ;;  %v679_v47 = vmax.f32 %v595_v45, 0.0 }
 0x137   : > { %v658_v48 = vmax.f32 %v543_v29, 0.0  ;;  %v547_v49 = vadd.f32 %v546_v42, %v1134_v39  ;;  %v671_v42 = vmax.f32 %v575_v1, 0.0  ;;  %v682_v59 = vmax.f32 %v603_v3, 0.0 }
 0x138   : > { %v719_v53 = vmax.f32 %v717_v17, %v657_v34  ;;  %v659_v54 = vmax.f32 %v545_v37, 0.0  ;;  %v666_v17 = vmax.f32 %v563_v44, 0.0  ;;  %v670_v34 = vmax.f32 %v573_v62, 0.0 }
 0x139   : > { %v720_v56 = vmax.f32 %v718_v19, %v658_v48  ;;  %v660_v57 = vmax.f32 %v547_v49, 0.0  ;;  %v672_v48 = vmax.f32 %v577_v5, 0.0  ;;  %v678_v44 = vmax.f32 %v593_v40, 0.0 }
 0x13a   : > { %v721_v2 = vmax.f32 %v719_v53, %v659_v54  ;;  %v674_v54 = vmax.f32 %v583_v18, 0.0  ;;  %v615_v31 = vadd.f32 %v1214_v0, %v1132_v38  ;;  %v621_v62 = vadd.f32 %v1220_v22, %v1132_v38 }
 0x13b   : > { %v722_v6 = vmax.f32 %v720_v56, %v660_v57  ;;  %v675_v56 = vmax.f32 %v585_v21, 0.0  ;;  %v684_v36 = vmax.f32 %v607_v11, 0.0  ;;  %v623_v55 = vadd.f32 %v1223_v27, %v1134_v39 }
 0x13c   : > { %v723_v10 = vmax.f32 %v721_v2, %v661_v60  ;;  %v676_v60 = vmax.f32 %v587_v25, 0.0  ;;  %v677_v2 = vmax.f32 %v591_v35, 0.0  ;;  %v625_v0 = vadd.f32 %v1226_v32, %v1132_v38 }
 0x13d   : > { %v724_v13 = vmax.f32 %v722_v6, %v662_v4 }
 0x13e   : > { %v725_v16 = vmax.f32 %v723_v10, %v663_v9 }
 0x13f   : > { %v726_v19 = vmax.f32 %v724_v13, %v664_v12  ;;  %v680_v12 = vmax.f32 %v597_v51, 0.0  ;;  %v681_v13 = vmax.f32 %v601_v63, 0.0 }
 0x140   : > { %v727_v23 = vmax.f32 %v725_v16, %v665_v14 }
 0x141   : > { %v728_v29 = vmax.f32 %v726_v19, %v666_v17  ;;  %v683_v17 = vmax.f32 %v605_v7, 0.0 }
 0x142   : > { %v729_v33 = vmax.f32 %v727_v23, %v667_v20  ;;  %v617_v20 = vadd.f32 %v1217_v8, %v1134_v39  ;;  %v685_v23 = vmax.f32 %v611_v24, 0.0  ;;  %v627_v8 = vadd.f32 %v1231_v43, %v1134_v39 }
 0x143   : > { %v730_v37 = vmax.f32 %v728_v29, %v668_v26  ;;  %v686_v26 = vmax.f32 %v613_v28, 0.0  ;;  %v687_v29 = vmax.f32 %v615_v31, 0.0 }
 0x144   : > { %v731_v46 = vmax.f32 %v729_v33, %v669_v30  ;;  %v689_v30 = vmax.f32 %v621_v62, 0.0  ;;  %v688_v15 = vmax.f32 %v617_v20, 0.0  ;;  %v690_v33 = vmax.f32 %v623_v55, 0.0 }
 0x145   : > { %v732_v49 = vmax.f32 %v730_v37, %v670_v34  ;;  %v691_v37 = vmax.f32 %v625_v0, 0.0  ;;  %v692_v21 = vmax.f32 %v627_v8, 0.0 }
 0x146   : > { %v733_v53 = vmax.f32 %v731_v46, %v671_v42 }
 0x147   : > { %v734_v41 = vmax.f32 %v732_v49, %v672_v48 }
 0x148   : > { %v735_v57 = vmax.f32 %v733_v53, %v673_v52 }
 0x149   : > { %v736_v61 = vmax.f32 %v734_v41, %v674_v54 }
 0x14a   : > { %v737_v4 = vmax.f32 %v735_v57, %v675_v56 }
 0x14b   : > { %v738_v6 = vmax.f32 %v736_v61, %v676_v60 }
 0x14c   : > { %v739_v9 = vmax.f32 %v737_v4, %v677_v2 }
 0x14d   : > { %v740_v10 = vmax.f32 %v738_v6, %v678_v44 }
 0x14e   : > { %v741_v50 = vmax.f32 %v739_v9, %v679_v47 }
 0x14f   : > { %v742_v14 = vmax.f32 %v740_v10, %v680_v12 }
 0x150   : > { %v743_v16 = vmax.f32 %v741_v50, %v681_v13 }
 0x151   : > { %v744_v19 = vmax.f32 %v742_v14, %v682_v59 }
 0x152   : > { %v745_v1 = vmax.f32 %v743_v16, %v683_v17 }
 0x153   : > { %v746_v58 = vmax.f32 %v744_v19, %v684_v36 }
 0x154   : > { %v747_v5 = vmax.f32 %v745_v1, %v685_v23 }
 0x155   : > { %v748_v22 = vmax.f32 %v746_v58, %v686_v26 }
 0x156   : > { %v749_v34 = vmax.f32 %v747_v5, %v687_v29 }
 0x157   : > { %v750_v18 = vmax.f32 %v748_v22, %v688_v15 }
 0x158   : > { %v751_v27 = vmax.f32 %v749_v34, %v689_v30 }
 0x159   : > { %v752_v42 = vmax.f32 %v750_v18, %v690_v33 }
 0x15a   : > { %v753_v46 = vmax.f32 %v751_v27, %v691_v37 }
 0x15b   : > { %v754_v48 = vmax.f32 %v752_v42, %v692_v21 }
 0x15d   : > { %v896_v38 = vpack.c.bf16 %v754_v48, %v753_v46 }
 0x15f   : > { %780 = vst [vmem:[%s198_s7] sm:$0xff] %v896_v38 }
 0x160 PF: > { %s13_s14 = sadd.s32 1, %s1000_s14   ;;  %s1313_s12 = smov %s996_s13 }
 0x161   : > { %p10_p5 = scmp.ge.s32.totalorder %s13_s14, 4   ;;  %s1314_s13 = smov %s1316_s15 }
 0x163   :  { %12 = sbr.rel (!%p10_p5) target bundleno = 2 (0x2), region = 70 }

// kernel: pointnet_forward.15
= control target key start
LH: loop header
LB: loop body
LE: loop exit
PB: predicated region body
PF: predicated region fallthrough
CT: control target
= control target key end

     0   :  { %s1704_s18 = smov 0   ;;  %s1930_s0 = inlined_call_operand.vmem [shape: bf16[512,131], index: 0, kind: input, shape index: {}]   ;;  %s1931_s1 = inlined_call_operand.vmem [shape: bf16[131,128], index: 1, kind: input, shape index: {}]   ;;  %s1932_s2 = inlined_call_operand.vmem [shape: f32[1,128], index: 2, kind: input, shape index: {}]   ;;  %s1933_s3 = inlined_call_operand.vmem [shape: bf16[128,128], index: 3, kind: input, shape index: {}]   ;;  %s1934_s4 = inlined_call_operand.vmem [shape: f32[1,128], index: 4, kind: input, shape index: {}]   ;;  %s1935_s5 = inlined_call_operand.vmem [shape: bf16[512,128], index: 5, kind: output, shape index: {}]  }
   0x1 LB: > { %s1260_s19 = sadd.s32 4294967295, %s1670_s18   ;;  %p1264_p0 = scmp.ge.s32.totalorder %s1670_s18, 1  ;;  %s1670_s18 = sphi %s1704_s18, %s15_s18  }
   0x2   : > { %p189_p1 = scmp.lt.s32.totalorder %s1670_s18, 3 }
   0x4   : > { %p190_p2 = pnand %p1264_p0, %p189_p1 }
   0x5   : > { %v1599_v0 = vld [vmem:[%s1931_s1] sm:$0xff] (!%p190_p2)   ;;  %v1672_v1 = vmov (!%p190_p2), 0   ;;  %v1600_v2 = vld [vmem:[%s1931_s1 + $0x8] sm:$0xff] (!%p190_p2)   ;;  %v1601_v3 = vld [vmem:[%s1931_s1 + $0x10] sm:$0xff] (!%p190_p2)   ;;  %s1265_s26 = sshll.u32 (!%p190_p2), %s1260_s19, 5  ;;  %vm483_vm0 = vcmask (!%p190_p2), 23552  }
   0x6   : > { %193 = sbr.rel (%p190_p2) target bundleno = 588 (0x24c), region = 40  ;;  %539 = vmatprep.subr.bf16.mxu0 (!%p190_p2), %v1672_v1  ;;  %1571 = vmatprep.subr.bf16.mxu1 (!%p190_p2), %v1672_v1  ;;  %p219_p3 = scmp.lt.s32.totalorder (!%p190_p2), %s1265_s26, 63  ;;  %v1602_v4 = vld [vmem:[%s1931_s1 + $0x18] sm:$0xff] (!%p190_p2)   ;;  %v1603_v5 = vld [vmem:[%s1931_s1 + $0x20] sm:$0xff] (!%p190_p2)   ;;  %v1604_v7 = vld [vmem:[%s1931_s1 + $0x28] sm:$0xff] (!%p190_p2)   ;;  %vm532_vm1 = vcmask (!%p190_p2), 1040384  }
   0x7   : > { %540 = vmatpush1.bf16.msra.mxu0 (!%p190_p2), %v1599_v0  ;;  %1580 = vmatpush1.bf16.msra.mxu1 (!%p190_p2), %v1599_v0  ;;  %v1605_v8 = vld [vmem:[%s1931_s1 + $0x30] sm:$0xff] (!%p190_p2)   ;;  %vm533_vm2 = vcmask (!%p190_p2), 1041408   ;;  %v1673_v9 = vmov (!%p190_p2), 65535   ;;  %v1606_v11 = vld [vmem:[%s1931_s1 + $0x38] sm:$0xff] (!%p190_p2)   ;;  %v1656_v16 = vld [vmem:[%s1933_s3] sm:$0xff] (!%p190_p2)  }
   0x8   : > { %541 = vmatprep.subr.bf16.mxu0 (!%p190_p2), %v1672_v1  ;;  %1572 = vmatprep.subr.bf16.mxu1 (!%p190_p2), %v1672_v1  ;;  %v534_v10 = vsel (!%p190_p2), %vm532_vm1, 4294967295, %v1673_v9  ;;  %v1607_v12 = vld [vmem:[%s1931_s1 + $0x40] ss:$0 sps:$4 sm:$0x33] (!%p190_p2)   ;;  %v1657_v21 = vld [vmem:[%s1933_s3 + $0x8] sm:$0xff] (!%p190_p2)   ;;  %v1658_v22 = vld [vmem:[%s1933_s3 + $0x10] sm:$0xff] (!%p190_p2)  }
   0x9   : > { %v535_v13 = vsel (!%p190_p2), %vm533_vm2, %v534_v10, 0  ;;  %v1659_v27 = vld [vmem:[%s1933_s3 + $0x18] sm:$0xff] (!%p190_p2)   ;;  %v1660_v49 = vld [vmem:[%s1933_s3 + $0x20] sm:$0xff] (!%p190_p2)   ;;  %v1661_v51 = vld [vmem:[%s1933_s3 + $0x28] sm:$0xff] (!%p190_p2)  }
   0xa   : > { %v537_v15 = vand.u32 (!%p190_p2), %v1607_v12, %v535_v13  ;;  %v1662_v52 = vld [vmem:[%s1933_s3 + $0x30] sm:$0xff] (!%p190_p2)   ;;  %v1663_v53 = vld [vmem:[%s1933_s3 + $0x38] sm:$0xff] (!%p190_p2)   ;;  %v1822_v54 = vld [vmem:[%s1932_s2] ss:$0 sm:$0xff] (!%p190_p2) }
   0xb   : > { %542 = vmatpush1.bf16.msra.mxu0 (!%p190_p2), %v1600_v2  ;;  %1581 = vmatpush1.bf16.msra.mxu1 (!%p190_p2), %v1600_v2 }
   0xc   : > { %543 = vmatprep.subr.bf16.mxu0 (!%p190_p2), %v1672_v1  ;;  %1573 = vmatprep.subr.bf16.mxu1 (!%p190_p2), %v1672_v1 }
   0xd   : > { %s1937_s26 = smov (!%p219_p3, %s1265_s26), 63 }
   0xe   : > { %s1371_s29 = sshll.u32 %s1937_s26, 3  ;;  %s1269_s15 = sshll.u32 %s1937_s26, 2 }
   0xf   : > { %544 = vmatpush1.bf16.msra.mxu0 %v1601_v3  ;;  %1582 = vmatpush1.bf16.msra.mxu1 %v1601_v3  ;;  %s1730_s7 = scalar_lea.vmem %s1930_s0, %s1371_s29  ;;  %s1881_s19 = scalar_lea.vmem %s1935_s5, %s1269_s15 }
  0x10   : > { %545 = vmatprep.subr.bf16.mxu0 %v1672_v1  ;;  %1574 = vmatprep.subr.bf16.mxu1 %v1672_v1  ;;  %v1610_v6 = vld [vmem:[%s1730_s7 + $0x4] ss:$8 sps:$4 sm:$0xff]   ;;  %v1608_v17 = vld [vmem:[%s1730_s7] ss:$8 sps:$4 sm:$0xff]   ;;  %v1611_v19 = vld [vmem:[%s1730_s7 + $0x14] ss:$8 sps:$4 sm:$0xff]  }
  0x11   : > { %1312 = vmatprep.mubr.msk.bf16.mxu0 %vm483_vm0, %v1610_v6  ;;  %v1640_v14 = vld [vmem:[%s1730_s7 + $0xc4] ss:$8 sps:$4 sm:$0xff]   ;;  %v1638_v18 = vld [vmem:[%s1730_s7 + $0xc0] ss:$8 sps:$4 sm:$0xff]   ;;  %v1644_v20 = vld [vmem:[%s1730_s7 + $0xd4] ss:$8 sps:$4 sm:$0xff]  }
  0x12   : > { %1324 = vmatprep.mubr.msk.bf16.mxu1 %vm483_vm0, %v1640_v14  ;;  %v1613_v23 = vld [vmem:[%s1730_s7 + $0x10] ss:$8 sps:$4 sm:$0xff]   ;;  %v1614_v25 = vld [vmem:[%s1730_s7 + $0x24] ss:$8 sps:$4 sm:$0xff]   ;;  %v1616_v28 = vld [vmem:[%s1730_s7 + $0x20] ss:$8 sps:$4 sm:$0xff]  }
  0x13   : > { %546 = vmatpush1.bf16.msra.mxu0 %v1602_v4  ;;  %1583 = vmatpush1.bf16.msra.mxu1 %v1602_v4  ;;  %v1646_v24 = vld [vmem:[%s1730_s7 + $0xd0] ss:$8 sps:$4 sm:$0xff]   ;;  %v1650_v26 = vld [vmem:[%s1730_s7 + $0xe4] ss:$8 sps:$4 sm:$0xff]   ;;  %v1652_v29 = vld [vmem:[%s1730_s7 + $0xe0] ss:$8 sps:$4 sm:$0xff]  }
  0x14   : > { %547 = vmatprep.subr.bf16.mxu0 %v1672_v1  ;;  %1575 = vmatprep.subr.bf16.mxu1 %v1672_v1  ;;  %v1617_v30 = vld [vmem:[%s1730_s7 + $0x34] ss:$8 sps:$4 sm:$0xff]   ;;  %v1619_v32 = vld [vmem:[%s1730_s7 + $0x30] ss:$8 sps:$4 sm:$0xff]   ;;  %v1620_v34 = vld [vmem:[%s1730_s7 + $0x44] ss:$8 sps:$4 sm:$0xff]  }
  0x15   : > { %v1653_v31 = vld [vmem:[%s1730_s7 + $0xf4] ss:$8 sps:$4 sm:$0xff]   ;;  %v1655_v33 = vld [vmem:[%s1730_s7 + $0xf0] ss:$8 sps:$4 sm:$0xff]   ;;  %v1622_v35 = vld [vmem:[%s1730_s7 + $0x40] ss:$8 sps:$4 sm:$0xff]  }
  0x16   : > { %v1623_v36 = vld [vmem:[%s1730_s7 + $0x54] ss:$8 sps:$4 sm:$0xff]   ;;  %v1625_v37 = vld [vmem:[%s1730_s7 + $0x50] ss:$8 sps:$4 sm:$0xff]   ;;  %v1626_v38 = vld [vmem:[%s1730_s7 + $0x64] ss:$8 sps:$4 sm:$0xff]  }
  0x17   : > { %548 = vmatpush1.bf16.msra.mxu0 %v1603_v5  ;;  %1584 = vmatpush1.bf16.msra.mxu1 %v1603_v5  ;;  %v1628_v39 = vld [vmem:[%s1730_s7 + $0x60] ss:$8 sps:$4 sm:$0xff]   ;;  %v1629_v40 = vld [vmem:[%s1730_s7 + $0x74] ss:$8 sps:$4 sm:$0xff]   ;;  %v1631_v41 = vld [vmem:[%s1730_s7 + $0x70] ss:$8 sps:$4 sm:$0xff]  }
  0x18   : > { %549 = vmatprep.subr.bf16.mxu0 %v1672_v1  ;;  %1576 = vmatprep.subr.bf16.mxu1 %v1672_v1  ;;  %v1632_v42 = vld [vmem:[%s1730_s7 + $0x84] ss:$8 sps:$4 sm:$0xff]   ;;  %v1634_v43 = vld [vmem:[%s1730_s7 + $0x80] ss:$8 sps:$4 sm:$0xff]   ;;  %v1635_v44 = vld [vmem:[%s1730_s7 + $0x94] ss:$8 sps:$4 sm:$0xff]  }
  0x19   : > { %v1637_v45 = vld [vmem:[%s1730_s7 + $0x90] ss:$8 sps:$4 sm:$0xff]   ;;  %v1641_v46 = vld [vmem:[%s1730_s7 + $0xa4] ss:$8 sps:$4 sm:$0xff]   ;;  %v1643_v47 = vld [vmem:[%s1730_s7 + $0xa0] ss:$8 sps:$4 sm:$0xff]  }
  0x1a   : > { %v1647_v48 = vld [vmem:[%s1730_s7 + $0xb4] ss:$8 sps:$4 sm:$0xff]   ;;  %v1649_v50 = vld [vmem:[%s1730_s7 + $0xb0] ss:$8 sps:$4 sm:$0xff]  }
  0x1b   : > { %550 = vmatpush1.bf16.msra.mxu0 %v1604_v7  ;;  %1585 = vmatpush1.bf16.msra.mxu1 %v1604_v7 }
  0x1c   : > { %551 = vmatprep.subr.bf16.mxu0 %v1672_v1  ;;  %1577 = vmatprep.subr.bf16.mxu1 %v1672_v1 }
  0x1f   : > { %552 = vmatpush1.bf16.msra.mxu0 %v1605_v8  ;;  %1586 = vmatpush1.bf16.msra.mxu1 %v1605_v8 }
  0x20   : > { %553 = vmatprep.subr.bf16.mxu0 %v1672_v1  ;;  %1578 = vmatprep.subr.bf16.mxu1 %v1672_v1 }
  0x23   : > { %554 = vmatpush1.bf16.msra.mxu0 %v1606_v11  ;;  %1587 = vmatpush1.bf16.msra.mxu1 %v1606_v11 }
  0x24   : > { %555 = vmatprep.subr.bf16.mxu0 %v1672_v1  ;;  %1579 = vmatprep.subr.bf16.mxu1 %v1672_v1 }
  0x27   : > { %556 = vmatpush1.bf16.msra.mxu0 %v537_v15  ;;  %1588 = vmatpush1.bf16.msra.mxu1 %v537_v15 }
  0x28   : > { %1523 = vmatprep.subr.bf16.mxu1 %v1656_v16 }
  0x2a   : > { %572 = vmatmul.mubr.bf16.vlgmr.msra.gmra.mrb[0].mxu0 %v1608_v17  ;;  %668 = vmatmul.mubr.bf16.vlgmr.msra.gmra.mrb[0].mxu1 %v1638_v18 }
  0x2b   : > { %1313 = vmatprep.mubr.msk.bf16.mxu0 %vm483_vm0, %v1611_v19  ;;  %1325 = vmatprep.mubr.msk.bf16.mxu1 %vm483_vm0, %v1644_v20 }
  0x2c   : > { %1524 = vmatpush3.bf16.msra.mxu1 %v1656_v16 }
  0x2d   : > { %1525 = vmatprep.subr.bf16.mxu1 %v1657_v21 }
  0x30   : > { %1526 = vmatpush3.bf16.msra.mxu1 %v1657_v21 }
  0x31   : > { %1527 = vmatprep.subr.bf16.mxu1 %v1658_v22 }
  0x32   : > { %580 = vmatmul.mubr.bf16.gmra.mrb[4].mxu0 %v1613_v23  ;;  %676 = vmatmul.mubr.bf16.gmra.mrb[4].mxu1 %v1646_v24 }
  0x33   : > { %1314 = vmatprep.mubr.msk.bf16.mxu0 %vm483_vm0, %v1614_v25  ;;  %1326 = vmatprep.mubr.msk.bf16.mxu1 %vm483_vm0, %v1650_v26 }
  0x34   : > { %1528 = vmatpush3.bf16.msra.mxu1 %v1658_v22 }
  0x35   : > { %1529 = vmatprep.subr.bf16.mxu1 %v1659_v27 }
  0x38   : > { %1530 = vmatpush3.bf16.msra.mxu1 %v1659_v27 }
  0x39   : > { %1531 = vmatprep.subr.bf16.mxu1 %v1660_v49 }
  0x3a   : > { %588 = vmatmul.mubr.bf16.gmra.mrb[8].mxu0 %v1616_v28  ;;  %684 = vmatmul.mubr.bf16.gmra.mrb[8].mxu1 %v1652_v29 }
  0x3b   : > { %1315 = vmatprep.mubr.msk.bf16.mxu0 %vm483_vm0, %v1617_v30  ;;  %1327 = vmatprep.mubr.msk.bf16.mxu1 %vm483_vm0, %v1653_v31 }
  0x3c   : > { %1532 = vmatpush3.bf16.msra.mxu1 %v1660_v49 }
  0x3d   : > { %1533 = vmatprep.subr.bf16.mxu1 %v1661_v51 }
  0x40   : > { %1534 = vmatpush3.bf16.msra.mxu1 %v1661_v51 }
  0x41   : > { %1535 = vmatprep.subr.bf16.mxu1 %v1662_v52 }
  0x42   : > { %596 = vmatmul.mubr.bf16.gmra.mrb[12].mxu0 %v1619_v32  ;;  %692 = vmatmul.mubr.bf16.gmra.mrb[12].mxu1 %v1655_v33 }
  0x43   : > { %1316 = vmatprep.mubr.msk.bf16.mxu0 %vm483_vm0, %v1620_v34 }
  0x44   : > { %1536 = vmatpush3.bf16.msra.mxu1 %v1662_v52 }
  0x45   : > { %1537 = vmatprep.subr.bf16.mxu1 %v1663_v53 }
  0x48   : > { %1538 = vmatpush3.bf16.msra.mxu1 %v1663_v53 }
  0x4a   : > { %604 = vmatmul.mubr.bf16.gmra.mrb[16].mxu0 %v1622_v35 }
  0x4b   : > { %1317 = vmatprep.mubr.msk.bf16.mxu0 %vm483_vm0, %v1623_v36 }
  0x52   : > { %612 = vmatmul.mubr.bf16.gmra.mrb[20].mxu0 %v1625_v37 }
  0x53   : > { %1318 = vmatprep.mubr.msk.bf16.mxu0 %vm483_vm0, %v1626_v38 }
  0x5a   : > { %620 = vmatmul.mubr.bf16.gmra.mrb[24].mxu0 %v1628_v39 }
  0x5b   : > { %1319 = vmatprep.mubr.msk.bf16.mxu0 %vm483_vm0, %v1629_v40 }
  0x62   : > { %628 = vmatmul.mubr.bf16.gmra.mrb[28].mxu0 %v1631_v41 }
  0x63   : > { %1320 = vmatprep.mubr.msk.bf16.mxu0 %vm483_vm0, %v1632_v42 }
  0x6a   : > { %636 = vmatmul.mubr.bf16.gmra.mrb[32].mxu0 %v1634_v43 }
  0x6b   : > { %1321 = vmatprep.mubr.msk.bf16.mxu0 %vm483_vm0, %v1635_v44 }
  0x72   : > { %644 = vmatmul.mubr.bf16.gmra.mrb[36].mxu0 %v1637_v45 }
  0x73   : > { %1322 = vmatprep.mubr.msk.bf16.mxu0 %vm483_vm0, %v1641_v46 }
  0x7a   : > { %652 = vmatmul.mubr.bf16.gmra.mrb[40].mxu0 %v1643_v47 }
  0x7b   : > { %1323 = vmatprep.mubr.msk.bf16.mxu0 %vm483_vm0, %v1647_v48 }
  0x82   : > { %660 = vmatmul.mubr.bf16.gmra.mrb[44].mxu0 %v1649_v50 }
  0xfd   : > { %v573_v55 = vpop.f32.mrb[0].mxu0  ;;  %v669_v56 = vpop.f32.mrb[0].mxu1 }
  0xfe   : > { %v574_v57 = vadd.f32 %v1822_v54, %v573_v55  ;;  %v575_v58 = vpop.f32.mrb[1].mxu0  ;;  %v670_v59 = vadd.f32 %v1822_v54, %v669_v56  ;;  %v671_v60 = vpop.f32.mrb[1].mxu1 }
  0xff   : > { %v576_v61 = vpop.f32.mrb[2].mxu0  ;;  %v672_v62 = vpop.f32.mrb[2].mxu1 }
 0x100   : > { %v577_v63 = vadd.f32 %v1822_v54, %v576_v61  ;;  %v578_v0 = vpop.f32.mrb[3].mxu0  ;;  %v724_v1 = vmax.f32 %v670_v59, 0.0  ;;  %v673_v2 = vadd.f32 %v1822_v54, %v672_v62  ;;  %v674_v3 = vpop.f32.mrb[3].mxu1  ;;  %v700_v4 = vmax.f32 %v574_v57, 0.0 }
 0x102   : > { %v701_v5 = vmax.f32 %v577_v63, 0.0  ;;  %v725_v6 = vmax.f32 %v673_v2, 0.0 }
 0x104   : > { %v732_v7 = vpack.c.bf16 %v701_v5, %v700_v4  ;;  %v1828_v8 = vpack.c.bf16 %v725_v6, %v724_v1 }
 0x105   : > { %v581_v9 = vpop.f32.mrb[4].mxu0  ;;  %v677_v10 = vpop.f32.mrb[4].mxu1 }
 0x106   : > { %v582_v11 = vadd.f32 %v1822_v54, %v581_v9  ;;  %v583_v12 = vpop.f32.mrb[5].mxu0  ;;  %1539 = vmatprep.mubr.bf16.mxu1 %v732_v7  ;;  %v678_v13 = vadd.f32 %v1822_v54, %v677_v10  ;;  %v679_v14 = vpop.f32.mrb[5].mxu1 }
 0x107   : > { %v584_v15 = vpop.f32.mrb[6].mxu0  ;;  %v680_v16 = vpop.f32.mrb[6].mxu1 }
 0x108   : > { %v585_v17 = vadd.f32 %v1822_v54, %v584_v15  ;;  %v586_v18 = vpop.f32.mrb[7].mxu0  ;;  %v726_v19 = vmax.f32 %v678_v13, 0.0  ;;  %v681_v20 = vadd.f32 %v1822_v54, %v680_v16  ;;  %v682_v21 = vpop.f32.mrb[7].mxu1  ;;  %v702_v22 = vmax.f32 %v582_v11, 0.0 }
 0x10a   : > { %v703_v23 = vmax.f32 %v585_v17, 0.0  ;;  %v727_v24 = vmax.f32 %v681_v20, 0.0 }
 0x10c   : > { %v733_v25 = vpack.c.bf16 %v703_v23, %v702_v22  ;;  %v1834_v26 = vpack.c.bf16 %v727_v24, %v726_v19 }
 0x10d   : > { %v589_v27 = vpop.f32.mrb[8].mxu0  ;;  %v685_v28 = vpop.f32.mrb[8].mxu1 }
 0x10e   : > { %v590_v29 = vadd.f32 %v1822_v54, %v589_v27  ;;  %v591_v30 = vpop.f32.mrb[9].mxu0  ;;  %1540 = vmatmul.mubr.bf16.vlgmr.msra.gmra.mrb[16].mxu1 %v733_v25  ;;  %v686_v31 = vadd.f32 %v1822_v54, %v685_v28  ;;  %v687_v32 = vpop.f32.mrb[9].mxu1 }
 0x10f   : > { %v592_v33 = vpop.f32.mrb[10].mxu0  ;;  %v688_v34 = vpop.f32.mrb[10].mxu1 }
 0x110   : > { %v593_v35 = vadd.f32 %v1822_v54, %v592_v33  ;;  %v594_v36 = vpop.f32.mrb[11].mxu0  ;;  %v728_v37 = vmax.f32 %v686_v31, 0.0  ;;  %v689_v38 = vadd.f32 %v1822_v54, %v688_v34  ;;  %v690_v39 = vpop.f32.mrb[11].mxu1  ;;  %v704_v40 = vmax.f32 %v590_v29, 0.0 }
 0x112   : > { %v705_v41 = vmax.f32 %v593_v35, 0.0  ;;  %v729_v42 = vmax.f32 %v689_v38, 0.0 }
 0x114   : > { %v734_v43 = vpack.c.bf16 %v705_v41, %v704_v40  ;;  %v1840_v44 = vpack.c.bf16 %v729_v42, %v728_v37 }
 0x115   : > { %v597_v45 = vpop.f32.mrb[12].mxu0  ;;  %v693_v46 = vpop.f32.mrb[12].mxu1 }
 0x116   : > { %v598_v47 = vadd.f32 %v1822_v54, %v597_v45  ;;  %v599_v48 = vpop.f32.mrb[13].mxu0  ;;  %1543 = vmatprep.mubr.bf16.mxu1 %v734_v43  ;;  %v694_v49 = vadd.f32 %v1822_v54, %v693_v46  ;;  %v695_v50 = vpop.f32.mrb[13].mxu1 }
 0x117   : > { %v600_v51 = vpop.f32.mrb[14].mxu0  ;;  %v696_v52 = vpop.f32.mrb[14].mxu1 }
 0x118   : > { %v601_v53 = vadd.f32 %v1822_v54, %v600_v51  ;;  %v602_v55 = vpop.f32.mrb[15].mxu0  ;;  %v730_v56 = vmax.f32 %v694_v49, 0.0  ;;  %v697_v57 = vadd.f32 %v1822_v54, %v696_v52  ;;  %v698_v58 = vpop.f32.mrb[15].mxu1  ;;  %v706_v59 = vmax.f32 %v598_v47, 0.0 }
 0x11a   : > { %v707_v60 = vmax.f32 %v601_v53, 0.0  ;;  %v731_v61 = vmax.f32 %v697_v57, 0.0 }
 0x11c   : > { %v735_v62 = vpack.c.bf16 %v707_v60, %v706_v59  ;;  %v1846_v63 = vpack.c.bf16 %v731_v61, %v730_v56 }
 0x11d   : > { %v605_v0 = vpop.f32.mrb[16].mxu0 }
 0x11e   : > { %v606_v1 = vadd.f32 %v1822_v54, %v605_v0  ;;  %v607_v2 = vpop.f32.mrb[17].mxu0  ;;  %1544 = vmatmul.mubr.bf16.gmra.mrb[20].mxu1 %v735_v62 }
 0x11f   : > { %v608_v3 = vpop.f32.mrb[18].mxu0 }
 0x120   : > { %v609_v4 = vadd.f32 %v1822_v54, %v608_v3  ;;  %v610_v5 = vpop.f32.mrb[19].mxu0  ;;  %v708_v6 = vmax.f32 %v606_v1, 0.0 }
 0x122   : > { %v709_v7 = vmax.f32 %v609_v4, 0.0 }
 0x124   : > { %v736_v9 = vpack.c.bf16 %v709_v7, %v708_v6 }
 0x125   : > { %v613_v10 = vpop.f32.mrb[20].mxu0 }
 0x126   : > { %v614_v11 = vadd.f32 %v1822_v54, %v613_v10  ;;  %v615_v12 = vpop.f32.mrb[21].mxu0  ;;  %1547 = vmatprep.mubr.bf16.mxu1 %v736_v9 }
 0x127   : > { %v616_v13 = vpop.f32.mrb[22].mxu0 }
 0x128   : > { %v617_v14 = vadd.f32 %v1822_v54, %v616_v13  ;;  %v618_v15 = vpop.f32.mrb[23].mxu0  ;;  %v710_v16 = vmax.f32 %v614_v11, 0.0 }
 0x12a   : > { %v711_v17 = vmax.f32 %v617_v14, 0.0  ;;  %v1871_v14 = vld [vmem:[%s1934_s4] ss:$0 sm:$0xff] }
 0x12c   : > { %v737_v18 = vpack.c.bf16 %v711_v17, %v710_v16 }
 0x12d   : > { %v621_v19 = vpop.f32.mrb[24].mxu0 }
 0x12e   : > { %v622_v20 = vadd.f32 %v1822_v54, %v621_v19  ;;  %v623_v21 = vpop.f32.mrb[25].mxu0  ;;  %1548 = vmatmul.mubr.bf16.gmra.mrb[24].mxu1 %v737_v18 }
 0x12f   : > { %v624_v22 = vpop.f32.mrb[26].mxu0 }
 0x130   : > { %v625_v23 = vadd.f32 %v1822_v54, %v624_v22  ;;  %v626_v24 = vpop.f32.mrb[27].mxu0  ;;  %v712_v25 = vmax.f32 %v622_v20, 0.0 }
 0x132   : > { %v713_v27 = vmax.f32 %v625_v23, 0.0 }
 0x134   : > { %v738_v28 = vpack.c.bf16 %v713_v27, %v712_v25 }
 0x135   : > { %v629_v29 = vpop.f32.mrb[28].mxu0 }
 0x136   : > { %v630_v30 = vadd.f32 %v1822_v54, %v629_v29  ;;  %v631_v31 = vpop.f32.mrb[29].mxu0  ;;  %1551 = vmatprep.mubr.bf16.mxu1 %v738_v28 }
 0x137   : > { %v632_v32 = vpop.f32.mrb[30].mxu0 }
 0x138   : > { %v633_v33 = vadd.f32 %v1822_v54, %v632_v32  ;;  %v634_v34 = vpop.f32.mrb[31].mxu0  ;;  %v714_v35 = vmax.f32 %v630_v30, 0.0 }
 0x13a   : > { %v715_v36 = vmax.f32 %v633_v33, 0.0 }
 0x13c   : > { %v739_v37 = vpack.c.bf16 %v715_v36, %v714_v35 }
 0x13d   : > { %v637_v38 = vpop.f32.mrb[32].mxu0 }
 0x13e   : > { %v638_v39 = vadd.f32 %v1822_v54, %v637_v38  ;;  %v639_v40 = vpop.f32.mrb[33].mxu0  ;;  %1552 = vmatmul.mubr.bf16.gmra.mrb[28].mxu1 %v739_v37 }
 0x13f   : > { %v640_v41 = vpop.f32.mrb[34].mxu0 }
 0x140   : > { %v641_v42 = vadd.f32 %v1822_v54, %v640_v41  ;;  %v642_v43 = vpop.f32.mrb[35].mxu0  ;;  %v716_v45 = vmax.f32 %v638_v39, 0.0 }
 0x142   : > { %v717_v46 = vmax.f32 %v641_v42, 0.0 }
 0x144   : > { %v740_v47 = vpack.c.bf16 %v717_v46, %v716_v45 }
 0x145   : > { %v645_v48 = vpop.f32.mrb[36].mxu0 }
 0x146   : > { %v646_v49 = vadd.f32 %v1822_v54, %v645_v48  ;;  %v647_v50 = vpop.f32.mrb[37].mxu0  ;;  %1555 = vmatprep.mubr.bf16.mxu1 %v740_v47 }
 0x147   : > { %v648_v51 = vpop.f32.mrb[38].mxu0 }
 0x148   : > { %v649_v52 = vadd.f32 %v1822_v54, %v648_v51  ;;  %v650_v53 = vpop.f32.mrb[39].mxu0  ;;  %v718_v55 = vmax.f32 %v646_v49, 0.0 }
 0x14a   : > { %v719_v56 = vmax.f32 %v649_v52, 0.0 }
 0x14c   : > { %v741_v57 = vpack.c.bf16 %v719_v56, %v718_v55 }
 0x14d   : > { %v653_v58 = vpop.f32.mrb[40].mxu0 }
 0x14e   : > { %v654_v59 = vadd.f32 %v1822_v54, %v653_v58  ;;  %v655_v60 = vpop.f32.mrb[41].mxu0  ;;  %1556 = vmatmul.mubr.bf16.gmra.mrb[32].mxu1 %v741_v57 }
 0x14f   : > { %v656_v61 = vpop.f32.mrb[42].mxu0 }
 0x150   : > { %v657_v62 = vadd.f32 %v1822_v54, %v656_v61  ;;  %v658_v0 = vpop.f32.mrb[43].mxu0  ;;  %v720_v1 = vmax.f32 %v654_v59, 0.0 }
 0x152   : > { %v721_v2 = vmax.f32 %v657_v62, 0.0 }
 0x154   : > { %v742_v3 = vpack.c.bf16 %v721_v2, %v720_v1 }
 0x155   : > { %v661_v4 = vpop.f32.mrb[44].mxu0 }
 0x156   : > { %v662_v5 = vadd.f32 %v1822_v54, %v661_v4  ;;  %v663_v6 = vpop.f32.mrb[45].mxu0  ;;  %1559 = vmatprep.mubr.bf16.mxu1 %v742_v3 }
 0x157   : > { %v664_v7 = vpop.f32.mrb[46].mxu0 }
 0x158   : > { %v665_v9 = vadd.f32 %v1822_v54, %v664_v7  ;;  %v666_v10 = vpop.f32.mrb[47].mxu0  ;;  %v722_v11 = vmax.f32 %v662_v5, 0.0 }
 0x15a   : > { %v723_v12 = vmax.f32 %v665_v9, 0.0 }
 0x15c   : > { %v743_v13 = vpack.c.bf16 %v723_v12, %v722_v11 }
 0x15e   : > { %1560 = vmatmul.mubr.bf16.gmra.mrb[36].mxu1 %v743_v13 }
 0x15f   : > { %1563 = vmatprep.mubr.bf16.mxu1 %v1828_v8 }
 0x166   : > { %1564 = vmatmul.mubr.bf16.gmra.mrb[40].mxu1 %v1834_v26 }
 0x167   : > { %1567 = vmatprep.mubr.bf16.mxu1 %v1840_v44 }
 0x16e   : > { %1568 = vmatmul.mubr.bf16.gmra.mrb[44].mxu1 %v1846_v63 }
 0x1e1   : > { %v1541_v54 = vpop.f32.mrb[16].mxu1 }
 0x1e2   : > { %v894_v15 = vadd.f32 %v1541_v54, %v1871_v14  ;;  %v885_v16 = vpop.f32.mrb[17].mxu1 }
 0x1e3   : > { %v886_v17 = vadd.f32 %v1871_v14, %v885_v16  ;;  %v1542_v18 = vpop.f32.mrb[18].mxu1 }
 0x1e4   : > { %v897_v8 = vadd.f32 %v1542_v18, %v1871_v14  ;;  %v888_v26 = vpop.f32.mrb[19].mxu1  ;;  %v1014_v19 = vmax.f32 %v894_v15, 0.0 }
 0x1e5   : > { %v889_v44 = vadd.f32 %v1871_v14, %v888_v26  ;;  %v1012_v20 = vmax.f32 %v886_v17, 0.0 }
 0x1e6   : > { %v1015_v63 = vmax.f32 %v897_v8, 0.0 }
 0x1e7   : > { %v1013_v21 = vmax.f32 %v889_v44, 0.0 }
 0x1e8   : > { %v1412_v22 = vpack.c.bf16 %v1015_v63, %v1014_v19 }
 0x1e9   : > { %v1407_v23 = vpack.c.bf16 %v1013_v21, %v1012_v20 }
 0x1ea   : > { %1484 = vst [vmem:[%s1881_s19 + $0x8] sm:$0xff] %v1412_v22  }
 0x1eb   : > { %1408 = vst [vmem:[%s1881_s19] sm:$0xff] %v1407_v23  }
 0x1f1   : > { %v1545_v24 = vpop.f32.mrb[20].mxu1 }
 0x1f2   : > { %v910_v25 = vadd.f32 %v1545_v24, %v1871_v14  ;;  %v901_v27 = vpop.f32.mrb[21].mxu1 }
 0x1f3   : > { %v902_v28 = vadd.f32 %v1871_v14, %v901_v27  ;;  %v1546_v29 = vpop.f32.mrb[22].mxu1 }
 0x1f4   : > { %v913_v30 = vadd.f32 %v1546_v29, %v1871_v14  ;;  %v904_v31 = vpop.f32.mrb[23].mxu1  ;;  %v1018_v33 = vmax.f32 %v910_v25, 0.0 }
 0x1f5   : > { %v905_v32 = vadd.f32 %v1871_v14, %v904_v31  ;;  %v1016_v35 = vmax.f32 %v902_v28, 0.0 }
 0x1f6   : > { %v1019_v34 = vmax.f32 %v913_v30, 0.0 }
 0x1f7   : > { %v1017_v36 = vmax.f32 %v905_v32, 0.0 }
 0x1f8   : > { %v1422_v37 = vpack.c.bf16 %v1019_v34, %v1018_v33 }
 0x1f9   : > { %v1417_v38 = vpack.c.bf16 %v1017_v36, %v1016_v35 }
 0x1fa   : > { %1486 = vst [vmem:[%s1881_s19 + $0x18] sm:$0xff] %v1422_v37  }
 0x1fb   : > { %1485 = vst [vmem:[%s1881_s19 + $0x10] sm:$0xff] %v1417_v38  }
 0x201   : > { %v1549_v39 = vpop.f32.mrb[24].mxu1 }
 0x202   : > { %v926_v40 = vadd.f32 %v1549_v39, %v1871_v14  ;;  %v917_v41 = vpop.f32.mrb[25].mxu1 }
 0x203   : > { %v918_v42 = vadd.f32 %v1871_v14, %v917_v41  ;;  %v1550_v43 = vpop.f32.mrb[26].mxu1 }
 0x204   : > { %v929_v45 = vadd.f32 %v1550_v43, %v1871_v14  ;;  %v920_v46 = vpop.f32.mrb[27].mxu1  ;;  %v1022_v48 = vmax.f32 %v926_v40, 0.0 }
 0x205   : > { %v921_v47 = vadd.f32 %v1871_v14, %v920_v46  ;;  %v1020_v50 = vmax.f32 %v918_v42, 0.0 }
 0x206   : > { %v1023_v49 = vmax.f32 %v929_v45, 0.0 }
 0x207   : > { %v1021_v51 = vmax.f32 %v921_v47, 0.0 }
 0x208   : > { %v1432_v52 = vpack.c.bf16 %v1023_v49, %v1022_v48 }
 0x209   : > { %v1427_v53 = vpack.c.bf16 %v1021_v51, %v1020_v50 }
 0x20a   : > { %1488 = vst [vmem:[%s1881_s19 + $0x28] sm:$0xff] %v1432_v52  }
 0x20b   : > { %1487 = vst [vmem:[%s1881_s19 + $0x20] sm:$0xff] %v1427_v53  }
 0x211   : > { %v1553_v55 = vpop.f32.mrb[28].mxu1 }
 0x212   : > { %v942_v56 = vadd.f32 %v1553_v55, %v1871_v14  ;;  %v933_v57 = vpop.f32.mrb[29].mxu1 }
 0x213   : > { %v934_v58 = vadd.f32 %v1871_v14, %v933_v57  ;;  %v1554_v59 = vpop.f32.mrb[30].mxu1 }
 0x214   : > { %v945_v60 = vadd.f32 %v1554_v59, %v1871_v14  ;;  %v936_v61 = vpop.f32.mrb[31].mxu1  ;;  %v1026_v0 = vmax.f32 %v942_v56, 0.0 }
 0x215   : > { %v937_v62 = vadd.f32 %v1871_v14, %v936_v61  ;;  %v1024_v2 = vmax.f32 %v934_v58, 0.0 }
 0x216   : > { %v1027_v1 = vmax.f32 %v945_v60, 0.0 }
 0x217   : > { %v1025_v3 = vmax.f32 %v937_v62, 0.0 }
 0x218   : > { %v1442_v4 = vpack.c.bf16 %v1027_v1, %v1026_v0 }
 0x219   : > { %v1437_v5 = vpack.c.bf16 %v1025_v3, %v1024_v2 }
 0x21a   : > { %1490 = vst [vmem:[%s1881_s19 + $0x38] sm:$0xff] %v1442_v4  }
 0x21b   : > { %1489 = vst [vmem:[%s1881_s19 + $0x30] sm:$0xff] %v1437_v5  }
 0x221   : > { %v1557_v6 = vpop.f32.mrb[32].mxu1 }
 0x222   : > { %v958_v7 = vadd.f32 %v1557_v6, %v1871_v14  ;;  %v949_v9 = vpop.f32.mrb[33].mxu1 }
 0x223   : > { %v950_v10 = vadd.f32 %v1871_v14, %v949_v9  ;;  %v1558_v11 = vpop.f32.mrb[34].mxu1 }
 0x224   : > { %v961_v12 = vadd.f32 %v1558_v11, %v1871_v14  ;;  %v952_v13 = vpop.f32.mrb[35].mxu1  ;;  %v1030_v15 = vmax.f32 %v958_v7, 0.0 }
 0x225   : > { %v953_v54 = vadd.f32 %v1871_v14, %v952_v13  ;;  %v1028_v17 = vmax.f32 %v950_v10, 0.0 }
 0x226   : > { %v1031_v16 = vmax.f32 %v961_v12, 0.0 }
 0x227   : > { %v1029_v18 = vmax.f32 %v953_v54, 0.0 }
 0x228   : > { %v1452_v8 = vpack.c.bf16 %v1031_v16, %v1030_v15 }
 0x229   : > { %v1447_v26 = vpack.c.bf16 %v1029_v18, %v1028_v17 }
 0x22a   : > { %1492 = vst [vmem:[%s1881_s19 + $0x48] sm:$0xff] %v1452_v8  }
 0x22b   : > { %1491 = vst [vmem:[%s1881_s19 + $0x40] sm:$0xff] %v1447_v26  }
 0x231   : > { %v1561_v44 = vpop.f32.mrb[36].mxu1 }
 0x232   : > { %v974_v19 = vadd.f32 %v1561_v44, %v1871_v14  ;;  %v965_v63 = vpop.f32.mrb[37].mxu1 }
 0x233   : > { %v966_v20 = vadd.f32 %v1871_v14, %v965_v63  ;;  %v1562_v21 = vpop.f32.mrb[38].mxu1 }
 0x234   : > { %v977_v22 = vadd.f32 %v1562_v21, %v1871_v14  ;;  %v968_v23 = vpop.f32.mrb[39].mxu1  ;;  %v1034_v25 = vmax.f32 %v974_v19, 0.0 }
 0x235   : > { %v969_v24 = vadd.f32 %v1871_v14, %v968_v23  ;;  %v1032_v28 = vmax.f32 %v966_v20, 0.0 }
 0x236   : > { %v1035_v27 = vmax.f32 %v977_v22, 0.0 }
 0x237   : > { %v1033_v29 = vmax.f32 %v969_v24, 0.0 }
 0x238   : > { %v1462_v30 = vpack.c.bf16 %v1035_v27, %v1034_v25 }
 0x239   : > { %v1457_v31 = vpack.c.bf16 %v1033_v29, %v1032_v28  ;;  %v1565_v32 = vpop.f32.mrb[40].mxu1 }
 0x23a   : > { %1494 = vst [vmem:[%s1881_s19 + $0x58] sm:$0xff] %v1462_v30   ;;  %v990_v33 = vadd.f32 %v1565_v32, %v1871_v14  ;;  %v981_v34 = vpop.f32.mrb[41].mxu1 }
 0x23b   : > { %1493 = vst [vmem:[%s1881_s19 + $0x50] sm:$0xff] %v1457_v31   ;;  %v982_v35 = vadd.f32 %v1871_v14, %v981_v34  ;;  %v1566_v36 = vpop.f32.mrb[42].mxu1 }
 0x23c   : > { %v993_v37 = vadd.f32 %v1566_v36, %v1871_v14  ;;  %v984_v38 = vpop.f32.mrb[43].mxu1  ;;  %v1038_v40 = vmax.f32 %v990_v33, 0.0 }
 0x23d   : > { %v985_v39 = vadd.f32 %v1871_v14, %v984_v38  ;;  %v1036_v42 = vmax.f32 %v982_v35, 0.0 }
 0x23e   : > { %v1039_v41 = vmax.f32 %v993_v37, 0.0 }
 0x23f   : > { %v1037_v43 = vmax.f32 %v985_v39, 0.0 }
 0x240   : > { %v1472_v45 = vpack.c.bf16 %v1039_v41, %v1038_v40 }
 0x241   : > { %v1467_v46 = vpack.c.bf16 %v1037_v43, %v1036_v42  ;;  %v1569_v47 = vpop.f32.mrb[44].mxu1 }
 0x242   : > { %1496 = vst [vmem:[%s1881_s19 + $0x68] sm:$0xff] %v1472_v45   ;;  %v1006_v48 = vadd.f32 %v1569_v47, %v1871_v14  ;;  %v997_v49 = vpop.f32.mrb[45].mxu1 }
 0x243   : > { %1495 = vst [vmem:[%s1881_s19 + $0x60] sm:$0xff] %v1467_v46   ;;  %v998_v50 = vadd.f32 %v1871_v14, %v997_v49  ;;  %v1570_v51 = vpop.f32.mrb[46].mxu1 }
 0x244   : > { %v1009_v52 = vadd.f32 %v1570_v51, %v1871_v14  ;;  %v1000_v53 = vpop.f32.mrb[47].mxu1  ;;  %v1042_v56 = vmax.f32 %v1006_v48, 0.0 }
 0x245   : > { %v1001_v55 = vadd.f32 %v1871_v14, %v1000_v53  ;;  %v1040_v58 = vmax.f32 %v998_v50, 0.0 }
 0x246   : > { %v1043_v57 = vmax.f32 %v1009_v52, 0.0 }
 0x247   : > { %v1041_v59 = vmax.f32 %v1001_v55, 0.0 }
 0x248   : > { %v1482_v60 = vpack.c.bf16 %v1043_v57, %v1042_v56 }
 0x249   : > { %v1477_v61 = vpack.c.bf16 %v1041_v59, %v1040_v58 }
 0x24a   : > { %1498 = vst [vmem:[%s1881_s19 + $0x78] sm:$0xff] %v1482_v60  }
 0x24b   : > { %1497 = vst [vmem:[%s1881_s19 + $0x70] sm:$0xff] %v1477_v61  }
 0x24c PF: > { %s15_s18 = sadd.s32 1, %s1670_s18  }
 0x24d   : > { %p12_p4 = scmp.ge.s32.totalorder %s15_s18, 4  }
 0x24f   :  { %14 = sbr.rel (!%p12_p4) target bundleno = 1 (0x1), region = 70 }

// kernel: pointnet_forward.18
= control target key start
LH: loop header
LB: loop body
LE: loop exit
PB: predicated region body
PF: predicated region fallthrough
CT: control target
= control target key end

     0   :  { %v61_v47 = vlaneseq  ;;  %s827_s1 = inlined_call_operand.vmem [shape: bf16[256,256], index: 1, kind: input, shape index: {}]   ;;  %s828_s0 = inlined_call_operand.vmem [shape: bf16[1,104,256], index: 0, kind: input, shape index: {}]   ;;  %s829_s2 = inlined_call_operand.vmem [shape: f32[1,256], index: 2, kind: input, shape index: {}]   ;;  %s830_s3 = inlined_call_operand.vmem [shape: bf16[8,256], index: 3, kind: output, shape index: {}]  }
   0x1   :  { %v559_v0 = vld [vmem:[%s827_s1 + $0x4] ss:$8 sps:$4 sm:$0xff]   ;;  %v561_v1 = vld [vmem:[%s827_s1] ss:$8 sps:$4 sm:$0xff]   ;;  %v562_v2 = vld [vmem:[%s827_s1 + $0x14] ss:$8 sps:$4 sm:$0xff]  }
   0x2   :  { %298 = vmatprep.subr.bf16.mxu0 %v559_v0  ;;  %527 = vmatprep.subr.bf16.mxu1 %v559_v0  ;;  %v564_v3 = vld [vmem:[%s827_s1 + $0x10] ss:$8 sps:$4 sm:$0xff]   ;;  %v565_v4 = vld [vmem:[%s827_s1 + $0x24] ss:$8 sps:$4 sm:$0xff]   ;;  %v567_v5 = vld [vmem:[%s827_s1 + $0x20] ss:$8 sps:$4 sm:$0xff]  }
   0x3   :  { %299 = vmatpush1.bf16.msra.mxu0 %v561_v1  ;;  %543 = vmatpush1.bf16.msra.mxu1 %v561_v1  ;;  %v568_v6 = vld [vmem:[%s827_s1 + $0x34] ss:$8 sps:$4 sm:$0xff]   ;;  %v570_v7 = vld [vmem:[%s827_s1 + $0x30] ss:$8 sps:$4 sm:$0xff]   ;;  %v571_v8 = vld [vmem:[%s827_s1 + $0x44] ss:$8 sps:$4 sm:$0xff]  }
   0x4   :  { %300 = vmatprep.subr.bf16.mxu0 %v562_v2  ;;  %528 = vmatprep.subr.bf16.mxu1 %v562_v2  ;;  %v573_v9 = vld [vmem:[%s827_s1 + $0x40] ss:$8 sps:$4 sm:$0xff]   ;;  %v574_v10 = vld [vmem:[%s827_s1 + $0x54] ss:$8 sps:$4 sm:$0xff]   ;;  %v576_v11 = vld [vmem:[%s827_s1 + $0x50] ss:$8 sps:$4 sm:$0xff]  }
   0x5   :  { %v577_v12 = vld [vmem:[%s827_s1 + $0x64] ss:$8 sps:$4 sm:$0xff]   ;;  %v579_v14 = vld [vmem:[%s827_s1 + $0x60] ss:$8 sps:$4 sm:$0xff]   ;;  %v580_v15 = vld [vmem:[%s827_s1 + $0x74] ss:$8 sps:$4 sm:$0xff]  }
   0x6   :  { %v609_v13 = vld [vmem:[%s828_s0 + $0x4] ss:$8 sps:$4 sm:$0xff]   ;;  %v582_v17 = vld [vmem:[%s827_s1 + $0x70] ss:$8 sps:$4 sm:$0xff]   ;;  %v585_v19 = vld [vmem:[%s827_s1 + $0x80] ss:$8 sps:$4 sm:$0xff]  }
   0x7   :  { %301 = vmatpush1.bf16.msra.mxu0 %v564_v3  ;;  %544 = vmatpush1.bf16.msra.mxu1 %v564_v3  ;;  %v618_v16 = vld [vmem:[%s828_s0 + $0x44] ss:$8 sps:$4 sm:$0xff]   ;;  %v586_v20 = vld [vmem:[%s827_s1 + $0x94] ss:$8 sps:$4 sm:$0xff]   ;;  %v588_v21 = vld [vmem:[%s827_s1 + $0x90] ss:$8 sps:$4 sm:$0xff]  }
   0x8   :  { %302 = vmatprep.subr.bf16.mxu0 %v565_v4  ;;  %529 = vmatprep.subr.bf16.mxu1 %v565_v4  ;;  %v583_v18 = vld [vmem:[%s827_s1 + $0x84] ss:$8 sps:$4 sm:$0xff]   ;;  %v591_v23 = vld [vmem:[%s827_s1 + $0xa0] ss:$8 sps:$4 sm:$0xff]   ;;  %v592_v24 = vld [vmem:[%s827_s1 + $0xb4] ss:$8 sps:$4 sm:$0xff]  }
   0x9   :  { %330 = vmatprep.mubr.bf16.mxu0 %v609_v13  ;;  %370 = vmatprep.mubr.bf16.mxu1 %v618_v16  ;;  %v589_v22 = vld [vmem:[%s827_s1 + $0xa4] ss:$8 sps:$4 sm:$0xff]   ;;  %v594_v25 = vld [vmem:[%s827_s1 + $0xb0] ss:$8 sps:$4 sm:$0xff]   ;;  %v597_v27 = vld [vmem:[%s827_s1 + $0xc0] ss:$8 sps:$4 sm:$0xff]  }
   0xa   :  { %v595_v26 = vld [vmem:[%s827_s1 + $0xc4] ss:$8 sps:$4 sm:$0xff]   ;;  %v598_v28 = vld [vmem:[%s827_s1 + $0xd4] ss:$8 sps:$4 sm:$0xff]   ;;  %v600_v29 = vld [vmem:[%s827_s1 + $0xd0] ss:$8 sps:$4 sm:$0xff]  }
   0xb   :  { %303 = vmatpush1.bf16.msra.mxu0 %v567_v5  ;;  %545 = vmatpush1.bf16.msra.mxu1 %v567_v5  ;;  %v601_v30 = vld [vmem:[%s827_s1 + $0xe4] ss:$8 sps:$4 sm:$0xff]   ;;  %v603_v31 = vld [vmem:[%s827_s1 + $0xe0] ss:$8 sps:$4 sm:$0xff]   ;;  %v604_v32 = vld [vmem:[%s827_s1 + $0xf4] ss:$8 sps:$4 sm:$0xff]  }
   0xc   :  { %304 = vmatprep.subr.bf16.mxu0 %v568_v6  ;;  %530 = vmatprep.subr.bf16.mxu1 %v568_v6  ;;  %v606_v33 = vld [vmem:[%s827_s1 + $0xf0] ss:$8 sps:$4 sm:$0xff]   ;;  %v607_v34 = vld [vmem:[%s828_s0] ss:$8 sps:$4 sm:$0xff]   ;;  %v610_v36 = vld [vmem:[%s828_s0 + $0x14] ss:$8 sps:$4 sm:$0xff]  }
   0xd   :  { %v616_v35 = vld [vmem:[%s828_s0 + $0x40] ss:$8 sps:$4 sm:$0xff]   ;;  %v622_v37 = vld [vmem:[%s828_s0 + $0x54] ss:$8 sps:$4 sm:$0xff]   ;;  %v612_v39 = vld [vmem:[%s828_s0 + $0x10] ss:$8 sps:$4 sm:$0xff]  }
   0xe   :  { %v26_v38 = vld [vmem:[%s828_s0 + $0x60] sm:$0xff]  ;;  %v624_v40 = vld [vmem:[%s828_s0 + $0x50] ss:$8 sps:$4 sm:$0xff]   ;;  %v619_v45 = vld [vmem:[%s828_s0 + $0x34] ss:$8 sps:$4 sm:$0xff]   ;;  %v62_v48 = vshrl.u32 %v61_v47, 7 }
   0xf   :  { %305 = vmatpush1.bf16.msra.mxu0 %v570_v7  ;;  %546 = vmatpush1.bf16.msra.mxu1 %v570_v7  ;;  %v613_v41 = vld [vmem:[%s828_s0 + $0x24] ss:$8 sps:$4 sm:$0xff]   ;;  %v492_v42 = vcombine.high %v26_v38, %v26_v38  ;;  %v615_v43 = vld [vmem:[%s828_s0 + $0x20] ss:$8 sps:$4 sm:$0xff]   ;;  %v491_v44 = vcombine.low %v26_v38, %v26_v38  ;;  %v621_v46 = vld [vmem:[%s828_s0 + $0x30] ss:$8 sps:$4 sm:$0xff]  }
  0x10   :  { %306 = vmatprep.subr.bf16.mxu0 %v571_v8  ;;  %531 = vmatprep.subr.bf16.mxu1 %v571_v8  ;;  %v63_v49 = vsub.s32 0, %v62_v48  ;;  %v59_v50 = vld [vmem:[%s829_s2] sm:$0x3]  ;;  %v67_v51 = vsub.s32 1, %v62_v48 }
  0x12   :  { %v785_v52 = vrot.slane %v59_v50, %v63_v49  ;;  %v787_v53 = vrot.slane %v59_v50, %v67_v51 }
  0x13   :  { %307 = vmatpush1.bf16.msra.mxu0 %v573_v9  ;;  %547 = vmatpush1.bf16.msra.mxu1 %v573_v9 }
  0x14   :  { %308 = vmatprep.subr.bf16.mxu0 %v574_v10  ;;  %532 = vmatprep.subr.bf16.mxu1 %v574_v10 }
  0x17   :  { %309 = vmatpush1.bf16.msra.mxu0 %v576_v11  ;;  %548 = vmatpush1.bf16.msra.mxu1 %v576_v11 }
  0x18   :  { %310 = vmatprep.subr.bf16.mxu0 %v577_v12  ;;  %533 = vmatprep.subr.bf16.mxu1 %v577_v12 }
  0x1b   :  { %311 = vmatpush1.bf16.msra.mxu0 %v579_v14  ;;  %549 = vmatpush1.bf16.msra.mxu1 %v579_v14 }
  0x1c   :  { %312 = vmatprep.subr.bf16.mxu0 %v580_v15  ;;  %534 = vmatprep.subr.bf16.mxu1 %v580_v15 }
  0x1f   :  { %313 = vmatpush1.bf16.msra.mxu0 %v582_v17  ;;  %550 = vmatpush1.bf16.msra.mxu1 %v582_v17 }
  0x20   :  { %314 = vmatprep.subr.bf16.mxu0 %v583_v18  ;;  %535 = vmatprep.subr.bf16.mxu1 %v583_v18 }
  0x23   :  { %315 = vmatpush1.bf16.msra.mxu0 %v585_v19  ;;  %551 = vmatpush1.bf16.msra.mxu1 %v585_v19 }
  0x24   :  { %316 = vmatprep.subr.bf16.mxu0 %v586_v20  ;;  %536 = vmatprep.subr.bf16.mxu1 %v586_v20 }
  0x27   :  { %317 = vmatpush1.bf16.msra.mxu0 %v588_v21  ;;  %552 = vmatpush1.bf16.msra.mxu1 %v588_v21 }
  0x28   :  { %318 = vmatprep.subr.bf16.mxu0 %v589_v22  ;;  %537 = vmatprep.subr.bf16.mxu1 %v589_v22 }
  0x2b   :  { %319 = vmatpush1.bf16.msra.mxu0 %v591_v23  ;;  %553 = vmatpush1.bf16.msra.mxu1 %v591_v23 }
  0x2c   :  { %320 = vmatprep.subr.bf16.mxu0 %v592_v24  ;;  %538 = vmatprep.subr.bf16.mxu1 %v592_v24 }
  0x2f   :  { %321 = vmatpush1.bf16.msra.mxu0 %v594_v25  ;;  %554 = vmatpush1.bf16.msra.mxu1 %v594_v25 }
  0x30   :  { %322 = vmatprep.subr.bf16.mxu0 %v595_v26  ;;  %539 = vmatprep.subr.bf16.mxu1 %v595_v26 }
  0x33   :  { %323 = vmatpush1.bf16.msra.mxu0 %v597_v27  ;;  %555 = vmatpush1.bf16.msra.mxu1 %v597_v27 }
  0x34   :  { %324 = vmatprep.subr.bf16.mxu0 %v598_v28  ;;  %540 = vmatprep.subr.bf16.mxu1 %v598_v28 }
  0x37   :  { %325 = vmatpush1.bf16.msra.mxu0 %v600_v29  ;;  %556 = vmatpush1.bf16.msra.mxu1 %v600_v29 }
  0x38   :  { %326 = vmatprep.subr.bf16.mxu0 %v601_v30  ;;  %541 = vmatprep.subr.bf16.mxu1 %v601_v30 }
  0x3b   :  { %327 = vmatpush1.bf16.msra.mxu0 %v603_v31  ;;  %557 = vmatpush1.bf16.msra.mxu1 %v603_v31 }
  0x3c   :  { %328 = vmatprep.subr.bf16.mxu0 %v604_v32  ;;  %542 = vmatprep.subr.bf16.mxu1 %v604_v32 }
  0x3f   :  { %329 = vmatpush1.bf16.msra.mxu0 %v606_v33  ;;  %558 = vmatpush1.bf16.msra.mxu1 %v606_v33 }
  0x42   :  { %331 = vmatmul.mubr.bf16.vlgmr.msra.gmra.mrb[0].mxu0 %v607_v34  ;;  %371 = vmatmul.mubr.bf16.vlgmr.msra.gmra.mrb[0].mxu1 %v616_v35 }
  0x43   :  { %340 = vmatprep.mubr.bf16.mxu0 %v610_v36  ;;  %380 = vmatprep.mubr.bf16.mxu1 %v622_v37 }
  0x4a   :  { %341 = vmatmul.mubr.bf16.gmra.mrb[4].mxu0 %v612_v39  ;;  %381 = vmatmul.mubr.bf16.gmra.mrb[4].mxu1 %v624_v40 }
  0x4b   :  { %350 = vmatprep.mubr.bf16.mxu0 %v613_v41  ;;  %390 = vmatprep.mubr.bf16.mxu1 %v492_v42 }
  0x52   :  { %351 = vmatmul.mubr.bf16.gmra.mrb[8].mxu0 %v615_v43  ;;  %391 = vmatmul.mubr.bf16.gmra.mrb[8].mxu1 %v491_v44 }
  0x53   :  { %360 = vmatprep.mubr.bf16.mxu0 %v619_v45 }
  0x5a   :  { %361 = vmatmul.mubr.bf16.gmra.mrb[12].mxu0 %v621_v46 }
 0x115   :  { %v332_v54 = vpop.f32.mrb[0].mxu0  ;;  %v372_v55 = vpop.f32.mrb[0].mxu1 }
 0x116   :  { %v333_v56 = vadd.f32 %v332_v54, %v785_v52  ;;  %v334_v57 = vpop.f32.mrb[1].mxu0  ;;  %v790_v58 = vpop.f32.mrb[1].mxu1 }
 0x117   :  { %v335_v59 = vadd.f32 %v334_v57, %v787_v53  ;;  %v336_v60 = vpop.f32.mrb[2].mxu0  ;;  %v793_v61 = vpop.f32.mrb[2].mxu1 }
 0x118   :  { %v337_v62 = vadd.f32 %v336_v60, %v785_v52  ;;  %v338_v63 = vpop.f32.mrb[3].mxu0  ;;  %v796_v0 = vpop.f32.mrb[3].mxu1  ;;  %v399_v2 = vmax.f32 %v333_v56, 0.0  ;;  %v373_v56 = vadd.f32 %v372_v55, %v785_v52 }
 0x119   :  { %v339_v1 = vadd.f32 %v338_v63, %v787_v53  ;;  %v400_v4 = vmax.f32 %v335_v59, 0.0 }
 0x11a   :  { %v401_v3 = vmax.f32 %v337_v62, 0.0  ;;  %v375_v62 = vadd.f32 %v790_v58, %v787_v53 }
 0x11b   :  { %v402_v5 = vmax.f32 %v339_v1, 0.0 }
 0x11c   :  { %v425_v6 = vmax.f32 %v399_v2, %v401_v3  ;;  %v377_v2 = vadd.f32 %v793_v61, %v785_v52 }
 0x11d   :  { %v426_v7 = vmax.f32 %v400_v4, %v402_v5  ;;  %v342_v8 = vpop.f32.mrb[4].mxu0  ;;  %v382_v9 = vpop.f32.mrb[4].mxu1  ;;  %v379_v5 = vadd.f32 %v796_v0, %v787_v53 }
 0x11e   :  { %v343_v10 = vadd.f32 %v342_v8, %v785_v52  ;;  %v344_v11 = vpop.f32.mrb[5].mxu0  ;;  %v384_v12 = vpop.f32.mrb[5].mxu1  ;;  %v383_v8 = vadd.f32 %v382_v9, %v785_v52 }
 0x11f   :  { %v345_v13 = vadd.f32 %v344_v11, %v787_v53  ;;  %v346_v14 = vpop.f32.mrb[6].mxu0  ;;  %v386_v15 = vpop.f32.mrb[6].mxu1  ;;  %v416_v11 = vmax.f32 %v375_v62, 0.0  ;;  %v385_v58 = vadd.f32 %v384_v12, %v787_v53 }
 0x120   :  { %v403_v16 = vmax.f32 %v343_v10, 0.0  ;;  %v347_v17 = vadd.f32 %v346_v14, %v785_v52  ;;  %v348_v18 = vpop.f32.mrb[7].mxu0  ;;  %v388_v19 = vpop.f32.mrb[7].mxu1  ;;  %v417_v14 = vmax.f32 %v377_v2, 0.0 }
 0x121   :  { %v404_v20 = vmax.f32 %v345_v13, 0.0  ;;  %v349_v21 = vadd.f32 %v348_v18, %v787_v53  ;;  %v418_v18 = vmax.f32 %v379_v5, 0.0  ;;  %v389_v0 = vadd.f32 %v388_v19, %v787_v53 }
 0x122   :  { %v427_v22 = vmax.f32 %v425_v6, %v403_v16  ;;  %v405_v23 = vmax.f32 %v347_v17, 0.0  ;;  %v387_v17 = vadd.f32 %v386_v15, %v785_v52  ;;  %v420_v9 = vmax.f32 %v385_v58, 0.0 }
 0x123   :  { %v428_v24 = vmax.f32 %v426_v7, %v404_v20  ;;  %v406_v25 = vmax.f32 %v349_v21, 0.0  ;;  %v415_v7 = vmax.f32 %v373_v56, 0.0 }
 0x124   :  { %v429_v26 = vmax.f32 %v427_v22, %v405_v23  ;;  %v419_v22 = vmax.f32 %v383_v8, 0.0 }
 0x125   :  { %v430_v27 = vmax.f32 %v428_v24, %v406_v25  ;;  %v352_v28 = vpop.f32.mrb[8].mxu0  ;;  %v392_v29 = vpop.f32.mrb[8].mxu1  ;;  %v421_v25 = vmax.f32 %v387_v17, 0.0 }
 0x126   :  { %v353_v30 = vadd.f32 %v352_v28, %v785_v52  ;;  %v354_v31 = vpop.f32.mrb[9].mxu0  ;;  %v394_v32 = vpop.f32.mrb[9].mxu1  ;;  %v393_v61 = vadd.f32 %v392_v29, %v785_v52 }
 0x127   :  { %v355_v33 = vadd.f32 %v354_v31, %v787_v53  ;;  %v356_v34 = vpop.f32.mrb[10].mxu0  ;;  %v396_v35 = vpop.f32.mrb[10].mxu1  ;;  %v395_v21 = vadd.f32 %v394_v32, %v787_v53 }
 0x128   :  { %v407_v36 = vmax.f32 %v353_v30, 0.0  ;;  %v357_v37 = vadd.f32 %v356_v34, %v785_v52  ;;  %v358_v38 = vpop.f32.mrb[11].mxu0  ;;  %v397_v39 = vpop.f32.mrb[11].mxu1  ;;  %v423_v12 = vmax.f32 %v393_v61, 0.0 }
 0x129   :  { %v408_v40 = vmax.f32 %v355_v33, 0.0  ;;  %v359_v41 = vadd.f32 %v358_v38, %v787_v53  ;;  %v424_v30 = vmax.f32 %v395_v21, 0.0 }
 0x12a   :  { %v431_v42 = vmax.f32 %v429_v26, %v407_v36  ;;  %v409_v43 = vmax.f32 %v357_v37, 0.0 }
 0x12b   :  { %v432_v44 = vmax.f32 %v430_v27, %v408_v40  ;;  %v410_v45 = vmax.f32 %v359_v41, 0.0  ;;  %v422_v27 = vmax.f32 %v389_v0, 0.0 }
 0x12c   :  { %v433_v46 = vmax.f32 %v431_v42, %v409_v43 }
 0x12d   :  { %v434_v47 = vmax.f32 %v432_v44, %v410_v45  ;;  %v362_v48 = vpop.f32.mrb[12].mxu0 }
 0x12e   :  { %v363_v49 = vadd.f32 %v362_v48, %v785_v52  ;;  %v364_v50 = vpop.f32.mrb[13].mxu0 }
 0x12f   :  { %v365_v51 = vadd.f32 %v364_v50, %v787_v53  ;;  %v366_v54 = vpop.f32.mrb[14].mxu0 }
 0x130   :  { %v411_v57 = vmax.f32 %v363_v49, 0.0  ;;  %v367_v59 = vadd.f32 %v366_v54, %v785_v52  ;;  %v368_v60 = vpop.f32.mrb[15].mxu0 }
 0x131   :  { %v412_v63 = vmax.f32 %v365_v51, 0.0  ;;  %v369_v1 = vadd.f32 %v368_v60, %v787_v53 }
 0x132   :  { %v435_v3 = vmax.f32 %v433_v46, %v411_v57  ;;  %v413_v4 = vmax.f32 %v367_v59, 0.0 }
 0x133   :  { %v436_v6 = vmax.f32 %v434_v47, %v412_v63  ;;  %v414_v55 = vmax.f32 %v369_v1, 0.0 }
 0x134   :  { %v437_v10 = vmax.f32 %v435_v3, %v413_v4 }
 0x135   :  { %v438_v13 = vmax.f32 %v436_v6, %v414_v55 }
 0x136   :  { %v439_v16 = vmax.f32 %v437_v10, %v415_v7 }
 0x137   :  { %v440_v20 = vmax.f32 %v438_v13, %v416_v11 }
 0x138   :  { %v441_v23 = vmax.f32 %v439_v16, %v417_v14 }
 0x139   :  { %v442_v24 = vmax.f32 %v440_v20, %v418_v18 }
 0x13a   :  { %v443_v26 = vmax.f32 %v441_v23, %v419_v22 }
 0x13b   :  { %v444_v28 = vmax.f32 %v442_v24, %v420_v9 }
 0x13c   :  { %v445_v31 = vmax.f32 %v443_v26, %v421_v25 }
 0x13d   :  { %v446_v15 = vmax.f32 %v444_v28, %v422_v27 }
 0x13e   :  { %v447_v33 = vmax.f32 %v445_v31, %v423_v12 }
 0x13f   :  { %v448_v52 = vmax.f32 %v446_v15, %v424_v30 }
 0x141   :  { %v526_v29 = vpack.c.bf16 %v448_v52, %v447_v33 }
 0x143   :  { %474 = vst [vmem:[%s830_s3] sm:$0xff] %v526_v29 }

// kernel: pointnet_forward.17
= control target key start
LH: loop header
LB: loop body
LE: loop exit
PB: predicated region body
PF: predicated region fallthrough
CT: control target
= control target key end

     0   :  { %v1571_v1 = vmov 0   ;;  %vm379_vm0 = vcmask 1040384   ;;  %vm380_vm1 = vcmask 1041408   ;;  %v1572_v12 = vmov 65535   ;;  %s2043_s1 = inlined_call_operand.vmem [shape: bf16[259,256], index: 1, kind: input, shape index: {}]   ;;  %s2044_s0 = inlined_call_operand.vmem [shape: bf16[104,259], index: 0, kind: input, shape index: {}]   ;;  %s2045_s3 = inlined_call_operand.vmem [shape: bf16[256,256], index: 3, kind: input, shape index: {}]   ;;  %s2046_s2 = inlined_call_operand.vmem [shape: f32[1,256], index: 2, kind: input, shape index: {}]   ;;  %s2047_s4 = inlined_call_operand.vmem [shape: f32[1,256], index: 4, kind: input, shape index: {}]   ;;  %s2048_s5 = inlined_call_operand.vmem [shape: bf16[104,256], index: 5, kind: output, shape index: {}]  }
   0x1   :  { %v1446_v0 = vld [vmem:[%s2043_s1 + $0x4] ss:$8 sps:$4 sm:$0xff]   ;;  %522 = vmatprep.mubr.bf16.mxu1 %v1571_v1  ;;  %v1448_v2 = vld [vmem:[%s2043_s1] ss:$8 sps:$4 sm:$0xff]   ;;  %v1449_v3 = vld [vmem:[%s2043_s1 + $0x14] ss:$8 sps:$4 sm:$0xff]  }
   0x2   :  { %389 = vmatprep.subr.bf16.mxu0 %v1446_v0  ;;  %v1451_v4 = vld [vmem:[%s2043_s1 + $0x10] ss:$8 sps:$4 sm:$0xff]   ;;  %v1452_v5 = vld [vmem:[%s2043_s1 + $0x24] ss:$8 sps:$4 sm:$0xff]   ;;  %v1454_v6 = vld [vmem:[%s2043_s1 + $0x20] ss:$8 sps:$4 sm:$0xff]  }
   0x3   :  { %390 = vmatpush1.bf16.msra.mxu0 %v1448_v2  ;;  %v1455_v7 = vld [vmem:[%s2043_s1 + $0x34] ss:$8 sps:$4 sm:$0xff]   ;;  %v1457_v8 = vld [vmem:[%s2043_s1 + $0x30] ss:$8 sps:$4 sm:$0xff]   ;;  %v1458_v9 = vld [vmem:[%s2043_s1 + $0x44] ss:$8 sps:$4 sm:$0xff]  }
   0x4   :  { %391 = vmatprep.subr.bf16.mxu0 %v1449_v3  ;;  %v1460_v10 = vld [vmem:[%s2043_s1 + $0x40] ss:$8 sps:$4 sm:$0xff]   ;;  %v1461_v11 = vld [vmem:[%s2043_s1 + $0x54] ss:$8 sps:$4 sm:$0xff]   ;;  %v381_v13 = vsel %vm379_vm0, 4294967295, %v1572_v12  ;;  %vm357_vm2 = vcmask 23552  }
   0x5   :  { %v1463_v14 = vld [vmem:[%s2043_s1 + $0x50] ss:$8 sps:$4 sm:$0xff]   ;;  %v1464_v15 = vld [vmem:[%s2043_s1 + $0x64] ss:$8 sps:$4 sm:$0xff]   ;;  %v382_v17 = vsel %vm380_vm1, %v381_v13, 0 }
   0x6   :  { %v79_v16 = vld [vmem:[%s2043_s1 + $0x100] sm:$0x33]  ;;  %v1467_v24 = vld [vmem:[%s2043_s1 + $0x74] ss:$8 sps:$4 sm:$0xff]   ;;  %v1469_v26 = vld [vmem:[%s2043_s1 + $0x70] ss:$8 sps:$4 sm:$0xff]  }
   0x7   :  { %392 = vmatpush1.bf16.msra.mxu0 %v1451_v4  ;;  %v1272_v18 = vcombine.high %v79_v16, %v79_v16  ;;  %v1271_v19 = vcombine.low %v79_v16, %v79_v16  ;;  %v1498_v20 = vld [vmem:[%s2044_s0 + $0x4] ss:$12 sps:$4 sm:$0xff]   ;;  %v1466_v21 = vld [vmem:[%s2043_s1 + $0x60] ss:$8 sps:$4 sm:$0xff]   ;;  %v1473_v29 = vld [vmem:[%s2043_s1 + $0x94] ss:$8 sps:$4 sm:$0xff]  }
   0x8   :  { %393 = vmatprep.subr.bf16.mxu0 %v1452_v5  ;;  %421 = vmatprep.mubr.bf16.mxu0 %v1498_v20  ;;  %v1499_v25 = vld [vmem:[%s2044_s0 + $0x8] ss:$12 sps:$4 sm:$0xff]   ;;  %v1470_v27 = vld [vmem:[%s2043_s1 + $0x84] ss:$8 sps:$4 sm:$0xff]   ;;  %v1475_v31 = vld [vmem:[%s2043_s1 + $0x90] ss:$8 sps:$4 sm:$0xff]  }
   0x9   :  { %v387_v22 = vand.u32 %v1272_v18, %v382_v17  ;;  %v384_v23 = vand.u32 %v1271_v19, %v382_v17  ;;  %v1472_v28 = vld [vmem:[%s2043_s1 + $0x80] ss:$8 sps:$4 sm:$0xff]   ;;  %v1476_v32 = vld [vmem:[%s2043_s1 + $0xa4] ss:$8 sps:$4 sm:$0xff]   ;;  %v1528_v36 = vld [vmem:[%s2045_s3 + $0x14] ss:$8 sps:$4 sm:$0xff]  }
   0xa   :  { %v1502_v30 = vld [vmem:[%s2044_s0 + $0x20] ss:$12 sps:$4 sm:$0xff]   ;;  %v1479_v37 = vld [vmem:[%s2043_s1 + $0xb4] ss:$8 sps:$4 sm:$0xff]   ;;  %v1526_v38 = vld [vmem:[%s2045_s3 + $0x10] ss:$8 sps:$4 sm:$0xff]  }
   0xb   :  { %394 = vmatpush1.bf16.msra.mxu0 %v1454_v6  ;;  %490 = vmatprep.subr.bf16.mxu1 %v387_v22  ;;  %v1523_v33 = vld [vmem:[%s2045_s3] ss:$8 sps:$4 sm:$0xff]   ;;  %v1525_v34 = vld [vmem:[%s2045_s3 + $0x4] ss:$8 sps:$4 sm:$0xff]   ;;  %v1481_v41 = vld [vmem:[%s2043_s1 + $0xb0] ss:$8 sps:$4 sm:$0xff]  }
   0xc   :  { %395 = vmatprep.subr.bf16.mxu0 %v1455_v7  ;;  %491 = vmatpush1.bf16.msra.mxu1 %v384_v23  ;;  %v1478_v35 = vld [vmem:[%s2043_s1 + $0xa0] ss:$8 sps:$4 sm:$0xff]   ;;  %v1506_v39 = vld [vmem:[%s2044_s0 + $0x38] ss:$12 sps:$4 sm:$0xff]   ;;  %v1534_v44 = vld [vmem:[%s2045_s3 + $0x34] ss:$8 sps:$4 sm:$0xff]  }
   0xd   :  { %994 = vmatprep.subr.bf16.mxu1 %v1525_v34  ;;  %v1531_v40 = vld [vmem:[%s2045_s3 + $0x24] ss:$8 sps:$4 sm:$0xff]   ;;  %v1529_v43 = vld [vmem:[%s2045_s3 + $0x20] ss:$8 sps:$4 sm:$0xff]   ;;  %v1485_v46 = vld [vmem:[%s2043_s1 + $0xd4] ss:$8 sps:$4 sm:$0xff]  }
   0xe   :  { %v1482_v42 = vld [vmem:[%s2043_s1 + $0xc4] ss:$8 sps:$4 sm:$0xff]   ;;  %v1484_v45 = vld [vmem:[%s2043_s1 + $0xc0] ss:$8 sps:$4 sm:$0xff]   ;;  %v1532_v47 = vld [vmem:[%s2045_s3 + $0x30] ss:$8 sps:$4 sm:$0xff]  }
   0xf   :  { %396 = vmatpush1.bf16.msra.mxu0 %v1457_v8  ;;  %1273 = vmatmul.mubr.msk.bf16.vlgmr.msra.gmra.mrb[0].mxu1 %vm357_vm2, %v1499_v25  ;;  %v1510_v48 = vld [vmem:[%s2044_s0 + $0x50] ss:$12 sps:$4 sm:$0xff]   ;;  %v1537_v49 = vld [vmem:[%s2045_s3 + $0x44] ss:$8 sps:$4 sm:$0xff]   ;;  %v1535_v52 = vld [vmem:[%s2045_s3 + $0x40] ss:$8 sps:$4 sm:$0xff]  }
  0x10   :  { %397 = vmatprep.subr.bf16.mxu0 %v1458_v9  ;;  %532 = vmatprep.mubr.bf16.mxu1 %v1571_v1  ;;  %v1487_v50 = vld [vmem:[%s2043_s1 + $0xd0] ss:$8 sps:$4 sm:$0xff]   ;;  %v1488_v51 = vld [vmem:[%s2043_s1 + $0xe4] ss:$8 sps:$4 sm:$0xff]   ;;  %v1490_v53 = vld [vmem:[%s2043_s1 + $0xe0] ss:$8 sps:$4 sm:$0xff]  }
  0x11   :  { %995 = vmatpush1.bf16.msra.mxu1 %v1523_v33  ;;  %v1540_v54 = vld [vmem:[%s2045_s3 + $0x54] ss:$8 sps:$4 sm:$0xff]   ;;  %v1538_v56 = vld [vmem:[%s2045_s3 + $0x50] ss:$8 sps:$4 sm:$0xff]   ;;  %v1543_v58 = vld [vmem:[%s2045_s3 + $0x64] ss:$8 sps:$4 sm:$0xff]  }
  0x12   :  { %996 = vmatprep.subr.bf16.mxu1 %v1528_v36  ;;  %v1492_v55 = vld [vmem:[%s2043_s1 + $0xf4] ss:$8 sps:$4 sm:$0xff]   ;;  %v1495_v59 = vld [vmem:[%s2043_s1 + $0xf0] ss:$8 sps:$4 sm:$0xff]   ;;  %v1541_v60 = vld [vmem:[%s2045_s3 + $0x60] ss:$8 sps:$4 sm:$0xff]  }
  0x13   :  { %398 = vmatpush1.bf16.msra.mxu0 %v1460_v10  ;;  %v1514_v57 = vld [vmem:[%s2044_s0 + $0x68] ss:$12 sps:$4 sm:$0xff]   ;;  %v1496_v62 = vld [vmem:[%s2044_s0] ss:$12 sps:$4 sm:$0xff]   ;;  %v1544_v0 = vld [vmem:[%s2045_s3 + $0x70] ss:$8 sps:$4 sm:$0xff]  }
  0x14   :  { %399 = vmatprep.subr.bf16.mxu0 %v1461_v11  ;;  %v1546_v61 = vld [vmem:[%s2045_s3 + $0x74] ss:$8 sps:$4 sm:$0xff]   ;;  %v1518_v2 = vld [vmem:[%s2044_s0 + $0x80] ss:$12 sps:$4 sm:$0xff]   ;;  %v1503_v6 = vld [vmem:[%s2044_s0 + $0x18] ss:$12 sps:$4 sm:$0xff]  }
  0x15   :  { %997 = vmatpush1.bf16.msra.mxu1 %v1526_v38  ;;  %v1500_v63 = vld [vmem:[%s2044_s0 + $0x1c] ss:$12 sps:$4 sm:$0xff]   ;;  %v1549_v3 = vld [vmem:[%s2045_s3 + $0x84] ss:$8 sps:$4 sm:$0xff]   ;;  %v1504_v7 = vld [vmem:[%s2044_s0 + $0x34] ss:$12 sps:$4 sm:$0xff]  }
  0x16   :  { %998 = vmatprep.subr.bf16.mxu1 %v1531_v40  ;;  %v1547_v4 = vld [vmem:[%s2045_s3 + $0x80] ss:$8 sps:$4 sm:$0xff]   ;;  %v1552_v5 = vld [vmem:[%s2045_s3 + $0x94] ss:$8 sps:$4 sm:$0xff]   ;;  %v1550_v8 = vld [vmem:[%s2045_s3 + $0x90] ss:$8 sps:$4 sm:$0xff]  }
  0x17   :  { %400 = vmatpush1.bf16.msra.mxu0 %v1463_v14  ;;  %1274 = vmatmul.mubr.msk.bf16.gmra.mrb[4].mxu1 %vm357_vm2, %v1502_v30  ;;  %v1522_v9 = vld [vmem:[%s2044_s0 + $0x98] ss:$0 sps:$4 sm:$0xff]   ;;  %v1555_v10 = vld [vmem:[%s2045_s3 + $0xa4] ss:$8 sps:$4 sm:$0xff]   ;;  %v1558_v11 = vld [vmem:[%s2045_s3 + $0xb4] ss:$8 sps:$4 sm:$0xff]  }
  0x18   :  { %401 = vmatprep.subr.bf16.mxu0 %v1464_v15  ;;  %542 = vmatprep.mubr.bf16.mxu1 %v1571_v1  ;;  %v1507_v12 = vld [vmem:[%s2044_s0 + $0x30] ss:$12 sps:$4 sm:$0xff]   ;;  %v1508_v13 = vld [vmem:[%s2044_s0 + $0x4c] ss:$12 sps:$4 sm:$0xff]   ;;  %v1559_v16 = vld [vmem:[%s2045_s3 + $0xc0] ss:$8 sps:$4 sm:$0xff]  }
  0x19   :  { %999 = vmatpush1.bf16.msra.mxu1 %v1529_v43  ;;  %v1556_v14 = vld [vmem:[%s2045_s3 + $0xb0] ss:$8 sps:$4 sm:$0xff]   ;;  %v1561_v15 = vld [vmem:[%s2045_s3 + $0xc4] ss:$8 sps:$4 sm:$0xff]   ;;  %v1511_v17 = vld [vmem:[%s2044_s0 + $0x48] ss:$12 sps:$4 sm:$0xff]   ;;  %v82_v43 = vlaneseq }
  0x1a   :  { %1000 = vmatprep.subr.bf16.mxu1 %v1534_v44  ;;  %v1512_v18 = vld [vmem:[%s2044_s0 + $0x64] ss:$12 sps:$4 sm:$0xff]   ;;  %v1515_v19 = vld [vmem:[%s2044_s0 + $0x60] ss:$12 sps:$4 sm:$0xff]   ;;  %v1516_v20 = vld [vmem:[%s2044_s0 + $0x7c] ss:$12 sps:$4 sm:$0xff]  }
  0x1b   :  { %402 = vmatpush1.bf16.msra.mxu0 %v1466_v21  ;;  %v45_v21 = vld [vmem:[%s2044_s0 + $0x90] sm:$0xff]  ;;  %v1519_v22 = vld [vmem:[%s2044_s0 + $0x78] ss:$12 sps:$4 sm:$0xff]  }
  0x1c   :  { %403 = vmatprep.subr.bf16.mxu0 %v1467_v24  ;;  %v1237_v23 = vcombine.high %v45_v21, %v45_v21  ;;  %v1236_v24 = vcombine.low %v45_v21, %v45_v21  ;;  %v1564_v25 = vld [vmem:[%s2045_s3 + $0xd4] ss:$8 sps:$4 sm:$0xff]   ;;  %v1568_v30 = vld [vmem:[%s2045_s3 + $0xf0] ss:$8 sps:$4 sm:$0xff]  }
  0x1d   :  { %1001 = vmatpush1.bf16.msra.mxu1 %v1532_v47 }
  0x1e   :  { %1002 = vmatprep.subr.bf16.mxu1 %v1537_v49 }
  0x1f   :  { %404 = vmatpush1.bf16.msra.mxu0 %v1469_v26  ;;  %1275 = vmatmul.mubr.msk.bf16.gmra.mrb[8].mxu1 %vm357_vm2, %v1506_v39  ;;  %v1562_v26 = vld [vmem:[%s2045_s3 + $0xd0] ss:$8 sps:$4 sm:$0xff]  }
  0x20   :  { %405 = vmatprep.subr.bf16.mxu0 %v1470_v27  ;;  %552 = vmatprep.mubr.bf16.mxu1 %v1571_v1  ;;  %v1567_v27 = vld [vmem:[%s2045_s3 + $0xe4] ss:$8 sps:$4 sm:$0xff]  }
  0x21   :  { %1003 = vmatpush1.bf16.msra.mxu1 %v1535_v52 }
  0x22   :  { %1004 = vmatprep.subr.bf16.mxu1 %v1540_v54 }
  0x23   :  { %406 = vmatpush1.bf16.msra.mxu0 %v1472_v28  ;;  %v1565_v28 = vld [vmem:[%s2045_s3 + $0xe0] ss:$8 sps:$4 sm:$0xff]  }
  0x24   :  { %407 = vmatprep.subr.bf16.mxu0 %v1473_v29  ;;  %v1570_v29 = vld [vmem:[%s2045_s3 + $0xf4] ss:$8 sps:$4 sm:$0xff]  }
  0x25   :  { %1005 = vmatpush1.bf16.msra.mxu1 %v1538_v56 }
  0x26   :  { %1006 = vmatprep.subr.bf16.mxu1 %v1543_v58 }
  0x27   :  { %408 = vmatpush1.bf16.msra.mxu0 %v1475_v31  ;;  %1276 = vmatmul.mubr.msk.bf16.gmra.mrb[12].mxu1 %vm357_vm2, %v1510_v48 }
  0x28   :  { %409 = vmatprep.subr.bf16.mxu0 %v1476_v32  ;;  %562 = vmatprep.mubr.bf16.mxu1 %v1571_v1 }
  0x29   :  { %1007 = vmatpush1.bf16.msra.mxu1 %v1541_v60 }
  0x2a   :  { %1008 = vmatprep.subr.bf16.mxu1 %v1546_v61 }
  0x2b   :  { %410 = vmatpush1.bf16.msra.mxu0 %v1478_v35 }
  0x2c   :  { %411 = vmatprep.subr.bf16.mxu0 %v1479_v37 }
  0x2d   :  { %1009 = vmatpush1.bf16.msra.mxu1 %v1544_v0 }
  0x2e   :  { %1010 = vmatprep.subr.bf16.mxu1 %v1549_v3 }
  0x2f   :  { %412 = vmatpush1.bf16.msra.mxu0 %v1481_v41  ;;  %1277 = vmatmul.mubr.msk.bf16.gmra.mrb[16].mxu1 %vm357_vm2, %v1514_v57 }
  0x30   :  { %413 = vmatprep.subr.bf16.mxu0 %v1482_v42  ;;  %572 = vmatprep.mubr.bf16.mxu1 %v1571_v1 }
  0x31   :  { %1011 = vmatpush1.bf16.msra.mxu1 %v1547_v4 }
  0x32   :  { %1012 = vmatprep.subr.bf16.mxu1 %v1552_v5 }
  0x33   :  { %414 = vmatpush1.bf16.msra.mxu0 %v1484_v45 }
  0x34   :  { %415 = vmatprep.subr.bf16.mxu0 %v1485_v46  ;;  %v1884_v46 = vshrl.u32 %v82_v43, 7 }
  0x35   :  { %1013 = vmatpush1.bf16.msra.mxu1 %v1550_v8 }
  0x36   :  { %1014 = vmatprep.subr.bf16.mxu1 %v1555_v10  ;;  %v84_v49 = vsub.s32 0, %v1884_v46 }
  0x37   :  { %416 = vmatpush1.bf16.msra.mxu0 %v1487_v50  ;;  %1278 = vmatmul.mubr.msk.bf16.gmra.mrb[20].mxu1 %vm357_vm2, %v1518_v2  ;;  %v80_v50 = vld [vmem:[%s2046_s2] sm:$0x3] }
  0x38   :  { %417 = vmatprep.subr.bf16.mxu0 %v1488_v51  ;;  %582 = vmatprep.mubr.bf16.mxu1 %v1571_v1  ;;  %v1553_v1 = vld [vmem:[%s2045_s3 + $0xa0] ss:$8 sps:$4 sm:$0xff]   ;;  %v88_v51 = vsub.s32 1, %v1884_v46  ;;  %v1901_v54 = vrot.slane %v80_v50, %v84_v49 }
  0x39   :  { %1015 = vmatpush1.bf16.msra.mxu1 %v1553_v1 }
  0x3a   :  { %1016 = vmatprep.subr.bf16.mxu1 %v1558_v11  ;;  %v1907_v56 = vrot.slane %v80_v50, %v88_v51 }
  0x3b   :  { %418 = vmatpush1.bf16.msra.mxu0 %v1490_v53 }
  0x3c   :  { %419 = vmatprep.subr.bf16.mxu0 %v1492_v55 }
  0x3d   :  { %1017 = vmatpush1.bf16.msra.mxu1 %v1556_v14 }
  0x3e   :  { %1018 = vmatprep.subr.bf16.mxu1 %v1561_v15 }
  0x3f   :  { %420 = vmatpush1.bf16.msra.mxu0 %v1495_v59  ;;  %1279 = vmatmul.mubr.msk.bf16.gmra.mrb[24].mxu1 %vm357_vm2, %v1522_v9 }
  0x41   :  { %1019 = vmatpush1.bf16.msra.mxu1 %v1559_v16 }
  0x42   :  { %422 = vmatmul.mubr.bf16.vlgmr.msra.gmra.mrb[0].mxu0 %v1496_v62  ;;  %1020 = vmatprep.subr.bf16.mxu1 %v1564_v25 }
  0x43   :  { %431 = vmatprep.mubr.bf16.mxu0 %v1500_v63 }
  0x45   :  { %1021 = vmatpush1.bf16.msra.mxu1 %v1562_v26 }
  0x46   :  { %1022 = vmatprep.subr.bf16.mxu1 %v1567_v27 }
  0x49   :  { %1023 = vmatpush1.bf16.msra.mxu1 %v1565_v28 }
  0x4a   :  { %432 = vmatmul.mubr.bf16.gmra.mrb[4].mxu0 %v1503_v6  ;;  %1024 = vmatprep.subr.bf16.mxu1 %v1570_v29 }
  0x4b   :  { %441 = vmatprep.mubr.bf16.mxu0 %v1504_v7 }
  0x4d   :  { %1025 = vmatpush1.bf16.msra.mxu1 %v1568_v30 }
  0x52   :  { %442 = vmatmul.mubr.bf16.gmra.mrb[8].mxu0 %v1507_v12 }
  0x53   :  { %451 = vmatprep.mubr.bf16.mxu0 %v1508_v13 }
  0x5a   :  { %452 = vmatmul.mubr.bf16.gmra.mrb[12].mxu0 %v1511_v17 }
  0x5b   :  { %461 = vmatprep.mubr.bf16.mxu0 %v1512_v18 }
  0x62   :  { %462 = vmatmul.mubr.bf16.gmra.mrb[16].mxu0 %v1515_v19 }
  0x63   :  { %471 = vmatprep.mubr.bf16.mxu0 %v1516_v20 }
  0x6a   :  { %472 = vmatmul.mubr.bf16.gmra.mrb[20].mxu0 %v1519_v22 }
  0x6b   :  { %481 = vmatprep.mubr.bf16.mxu0 %v1237_v23 }
  0x72   :  { %482 = vmatmul.mubr.bf16.gmra.mrb[24].mxu0 %v1236_v24 }
  0xe2   :  { %v524_v31 = vpop.f32.mrb[0].mxu1 }
  0xe3   :  { %v526_v32 = vpop.f32.mrb[1].mxu1 }
  0xe4   :  { %v528_v33 = vpop.f32.mrb[2].mxu1 }
  0xe5   :  { %v530_v34 = vpop.f32.mrb[3].mxu1 }
  0xea   :  { %v534_v35 = vpop.f32.mrb[4].mxu1 }
  0xeb   :  { %v536_v36 = vpop.f32.mrb[5].mxu1 }
  0xec   :  { %v538_v37 = vpop.f32.mrb[6].mxu1 }
  0xed   :  { %v540_v38 = vpop.f32.mrb[7].mxu1 }
  0xf2   :  { %v1872_v39 = vpop.f32.mrb[8].mxu1 }
  0xf3   :  { %v1874_v40 = vpop.f32.mrb[9].mxu1 }
  0xf4   :  { %v1876_v41 = vpop.f32.mrb[10].mxu1 }
  0xf5   :  { %v1878_v42 = vpop.f32.mrb[11].mxu1 }
  0xfa   :  { %v1880_v44 = vpop.f32.mrb[12].mxu1 }
  0xfb   :  { %v1882_v45 = vpop.f32.mrb[13].mxu1 }
  0xfc   :  { %v1886_v47 = vpop.f32.mrb[14].mxu1 }
  0xfd   :  { %v1888_v48 = vpop.f32.mrb[15].mxu1 }
 0x102   :  { %v1895_v52 = vpop.f32.mrb[16].mxu1 }
 0x103   :  { %v1897_v53 = vpop.f32.mrb[17].mxu1 }
 0x104   :  { %v1903_v55 = vpop.f32.mrb[18].mxu1 }
 0x105   :  { %v1909_v57 = vpop.f32.mrb[19].mxu1 }
 0x10a   :  { %v1914_v3 = vpop.f32.mrb[20].mxu1 }
 0x10b   :  { %v1917_v6 = vpop.f32.mrb[21].mxu1 }
 0x10c   :  { %v1919_v8 = vpop.f32.mrb[22].mxu1 }
 0x10d   :  { %v1921_v10 = vpop.f32.mrb[23].mxu1 }
 0x112   :  { %v1926_v24 = vpop.f32.mrb[24].mxu1 }
 0x113   :  { %v1929_v27 = vpop.f32.mrb[25].mxu1 }
 0x114   :  { %v588_v29 = vpop.f32.mrb[26].mxu1 }
 0x115   :  { %v423_v58 = vpop.f32.mrb[0].mxu0 }
 0x116   :  { %v424_v59 = vadd.f32 %v423_v58, %v1901_v54  ;;  %v425_v60 = vpop.f32.mrb[1].mxu0 }
 0x117   :  { %v426_v61 = vadd.f32 %v425_v60, %v1907_v56  ;;  %v427_v62 = vpop.f32.mrb[2].mxu0 }
 0x118   :  { %v525_v63 = vadd.f32 %v524_v31, %v424_v59  ;;  %v428_v0 = vadd.f32 %v427_v62, %v1901_v54  ;;  %v429_v2 = vpop.f32.mrb[3].mxu0  ;;  %v589_v31 = vpop.f32.mrb[27].mxu1 }
 0x119   :  { %v527_v4 = vadd.f32 %v526_v32, %v426_v61  ;;  %v430_v5 = vadd.f32 %v429_v2, %v1907_v56 }
 0x11a   :  { %v529_v7 = vadd.f32 %v528_v33, %v428_v0  ;;  %v591_v1 = vmax.f32 %v525_v63, 0.0 }
 0x11b   :  { %v531_v9 = vadd.f32 %v530_v34, %v430_v5  ;;  %v592_v12 = vmax.f32 %v527_v4, 0.0 }
 0x11c   :  { %v593_v11 = vmax.f32 %v529_v7, 0.0 }
 0x11d   :  { %v594_v13 = vmax.f32 %v531_v9, 0.0  ;;  %v433_v14 = vpop.f32.mrb[4].mxu0 }
 0x11e   :  { %v1378_v15 = vpack.c.bf16 %v593_v11, %v591_v1  ;;  %v434_v16 = vadd.f32 %v433_v14, %v1901_v54  ;;  %v435_v17 = vpop.f32.mrb[5].mxu0 }
 0x11f   :  { %v436_v18 = vadd.f32 %v435_v17, %v1907_v56  ;;  %v437_v19 = vpop.f32.mrb[6].mxu0  ;;  %v1379_v20 = vpack.c.bf16 %v594_v13, %v592_v12 }
 0x120   :  { %v535_v21 = vadd.f32 %v534_v35, %v434_v16  ;;  %v438_v22 = vadd.f32 %v437_v19, %v1901_v54  ;;  %v439_v23 = vpop.f32.mrb[7].mxu0 }
 0x121   :  { %v537_v25 = vadd.f32 %v536_v36, %v436_v18  ;;  %v440_v26 = vadd.f32 %v439_v23, %v1907_v56  ;;  %1026 = vmatprep.mubr.bf16.mxu1 %v1379_v20 }
 0x122   :  { %v539_v28 = vadd.f32 %v538_v37, %v438_v22  ;;  %1027 = vmatmul.mubr.bf16.vlgmr.msra.gmra.mrb[28].mxu1 %v1378_v15  ;;  %v595_v32 = vmax.f32 %v535_v21, 0.0 }
 0x123   :  { %v541_v30 = vadd.f32 %v540_v38, %v440_v26  ;;  %v596_v34 = vmax.f32 %v537_v25, 0.0 }
 0x124   :  { %v597_v33 = vmax.f32 %v539_v28, 0.0 }
 0x125   :  { %v598_v35 = vmax.f32 %v541_v30, 0.0  ;;  %v443_v43 = vpop.f32.mrb[8].mxu0 }
 0x126   :  { %v444_v50 = vadd.f32 %v443_v43, %v1901_v54  ;;  %v445_v58 = vpop.f32.mrb[9].mxu0  ;;  %v1380_v59 = vpack.c.bf16 %v597_v33, %v595_v32 }
 0x127   :  { %v446_v36 = vadd.f32 %v445_v58, %v1907_v56  ;;  %v447_v60 = vpop.f32.mrb[10].mxu0  ;;  %v1381_v61 = vpack.c.bf16 %v598_v35, %v596_v34 }
 0x128   :  { %v545_v62 = vadd.f32 %v1872_v39, %v444_v50  ;;  %v448_v37 = vadd.f32 %v447_v60, %v1901_v54  ;;  %v449_v63 = vpop.f32.mrb[11].mxu0 }
 0x129   :  { %v547_v38 = vadd.f32 %v1874_v40, %v446_v36  ;;  %v450_v0 = vadd.f32 %v449_v63, %v1907_v56  ;;  %1036 = vmatprep.mubr.bf16.mxu1 %v1381_v61 }
 0x12a   :  { %v549_v2 = vadd.f32 %v1876_v41, %v448_v37  ;;  %1037 = vmatmul.mubr.bf16.gmra.mrb[32].mxu1 %v1380_v59  ;;  %v599_v5 = vmax.f32 %v545_v62, 0.0 }
 0x12b   :  { %v551_v4 = vadd.f32 %v1878_v42, %v450_v0  ;;  %v600_v9 = vmax.f32 %v547_v38, 0.0 }
 0x12c   :  { %v601_v7 = vmax.f32 %v549_v2, 0.0 }
 0x12d   :  { %v602_v1 = vmax.f32 %v551_v4, 0.0  ;;  %v453_v11 = vpop.f32.mrb[12].mxu0 }
 0x12e   :  { %v454_v39 = vadd.f32 %v453_v11, %v1901_v54  ;;  %v455_v12 = vpop.f32.mrb[13].mxu0  ;;  %v1382_v13 = vpack.c.bf16 %v601_v7, %v599_v5 }
 0x12f   :  { %v456_v14 = vadd.f32 %v455_v12, %v1907_v56  ;;  %v457_v40 = vpop.f32.mrb[14].mxu0  ;;  %v1383_v15 = vpack.c.bf16 %v602_v1, %v600_v9 }
 0x130   :  { %v555_v16 = vadd.f32 %v1880_v44, %v454_v39  ;;  %v458_v41 = vadd.f32 %v457_v40, %v1901_v54  ;;  %v459_v17 = vpop.f32.mrb[15].mxu0 }
 0x131   :  { %v557_v42 = vadd.f32 %v1882_v45, %v456_v14  ;;  %v460_v18 = vadd.f32 %v459_v17, %v1907_v56  ;;  %1046 = vmatprep.mubr.bf16.mxu1 %v1383_v15 }
 0x132   :  { %v559_v19 = vadd.f32 %v1886_v47, %v458_v41  ;;  %1047 = vmatmul.mubr.bf16.gmra.mrb[36].mxu1 %v1382_v13  ;;  %v603_v21 = vmax.f32 %v555_v16, 0.0 }
 0x133   :  { %v561_v20 = vadd.f32 %v1888_v48, %v460_v18  ;;  %v604_v23 = vmax.f32 %v557_v42, 0.0 }
 0x134   :  { %v605_v22 = vmax.f32 %v559_v19, 0.0 }
 0x135   :  { %v606_v25 = vmax.f32 %v561_v20, 0.0  ;;  %v463_v26 = vpop.f32.mrb[16].mxu0 }
 0x136   :  { %v464_v44 = vadd.f32 %v463_v26, %v1901_v54  ;;  %v465_v28 = vpop.f32.mrb[17].mxu0  ;;  %v1384_v29 = vpack.c.bf16 %v605_v22, %v603_v21 }
 0x137   :  { %v466_v30 = vadd.f32 %v465_v28, %v1907_v56  ;;  %v467_v45 = vpop.f32.mrb[18].mxu0  ;;  %v1385_v31 = vpack.c.bf16 %v606_v25, %v604_v23 }
 0x138   :  { %v565_v32 = vadd.f32 %v1895_v52, %v464_v44  ;;  %v468_v47 = vadd.f32 %v467_v45, %v1901_v54  ;;  %v469_v33 = vpop.f32.mrb[19].mxu0 }
 0x139   :  { %v567_v48 = vadd.f32 %v1897_v53, %v466_v30  ;;  %v470_v34 = vadd.f32 %v469_v33, %v1907_v56  ;;  %1056 = vmatprep.mubr.bf16.mxu1 %v1385_v31 }
 0x13a   :  { %v569_v35 = vadd.f32 %v1903_v55, %v468_v47  ;;  %1057 = vmatmul.mubr.bf16.gmra.mrb[40].mxu1 %v1384_v29  ;;  %v607_v50 = vmax.f32 %v565_v32, 0.0 }
 0x13b   :  { %v571_v43 = vadd.f32 %v1909_v57, %v470_v34  ;;  %v608_v59 = vmax.f32 %v567_v48, 0.0 }
 0x13c   :  { %v609_v58 = vmax.f32 %v569_v35, 0.0 }
 0x13d   :  { %v610_v36 = vmax.f32 %v571_v43, 0.0  ;;  %v473_v60 = vpop.f32.mrb[20].mxu0 }
 0x13e   :  { %v474_v52 = vadd.f32 %v473_v60, %v1901_v54  ;;  %v475_v61 = vpop.f32.mrb[21].mxu0  ;;  %v1386_v62 = vpack.c.bf16 %v609_v58, %v607_v50 }
 0x13f   :  { %v476_v37 = vadd.f32 %v475_v61, %v1907_v56  ;;  %v477_v53 = vpop.f32.mrb[22].mxu0  ;;  %v1387_v63 = vpack.c.bf16 %v610_v36, %v608_v59 }
 0x140   :  { %v575_v38 = vadd.f32 %v1914_v3, %v474_v52  ;;  %v478_v55 = vadd.f32 %v477_v53, %v1901_v54  ;;  %v479_v0 = vpop.f32.mrb[23].mxu0 }
 0x141   :  { %v577_v57 = vadd.f32 %v1917_v6, %v476_v37  ;;  %v480_v2 = vadd.f32 %v479_v0, %v1907_v56  ;;  %1066 = vmatprep.mubr.bf16.mxu1 %v1387_v63 }
 0x142   :  { %v579_v4 = vadd.f32 %v1919_v8, %v478_v55  ;;  %1067 = vmatmul.mubr.bf16.gmra.mrb[44].mxu1 %v1386_v62  ;;  %v611_v7 = vmax.f32 %v575_v38, 0.0 }
 0x143   :  { %v581_v5 = vadd.f32 %v1921_v10, %v480_v2  ;;  %v612_v1 = vmax.f32 %v577_v57, 0.0 }
 0x144   :  { %v613_v9 = vmax.f32 %v579_v4, 0.0 }
 0x145   :  { %v614_v11 = vmax.f32 %v581_v5, 0.0  ;;  %v483_v39 = vpop.f32.mrb[24].mxu0 }
 0x146   :  { %v484_v3 = vadd.f32 %v483_v39, %v1901_v54  ;;  %v485_v12 = vpop.f32.mrb[25].mxu0  ;;  %v1388_v13 = vpack.c.bf16 %v613_v9, %v611_v7  ;;  %v755_v54 = vld [vmem:[%s2047_s4] sm:$0x3] }
 0x147   :  { %v486_v14 = vadd.f32 %v485_v12, %v1907_v56  ;;  %v487_v6 = vpop.f32.mrb[26].mxu0  ;;  %v1389_v40 = vpack.c.bf16 %v614_v11, %v612_v1  ;;  %v1972_v56 = vrot.slane %v755_v54, %v84_v49 }
 0x148   :  { %v585_v15 = vadd.f32 %v1926_v24, %v484_v3  ;;  %v488_v16 = vpop.f32.mrb[27].mxu0  ;;  %v1976_v24 = vrot.slane %v755_v54, %v88_v51 }
 0x149   :  { %v587_v8 = vadd.f32 %v1929_v27, %v486_v14  ;;  %1076 = vmatprep.mubr.bf16.mxu1 %v1389_v40 }
 0x14a   :  { %1077 = vmatmul.mubr.bf16.gmra.mrb[48].mxu1 %v1388_v13  ;;  %v615_v41 = vmax.f32 %v585_v15, 0.0 }
 0x14b   :  { %v616_v10 = vmax.f32 %v587_v8, 0.0 }
 0x14c   :  { %v1390_v42 = vpack.c.bf16 %v615_v41, %v615_v41 }
 0x14d   :  { %v1391_v17 = vpack.c.bf16 %v616_v10, %v616_v10 }
 0x14f   :  { %1086 = vmatprep.mubr.bf16.mxu1 %v1391_v17 }
 0x152   :  { %1087 = vmatmul.mubr.bf16.gmra.mrb[52].mxu1 %v1390_v42 }
 0x1f5   :  { %v1028_v27 = vpop.f32.mrb[28].mxu1 }
 0x1f6   :  { %v1029_v18 = vadd.f32 %v1028_v27, %v1972_v56  ;;  %v1030_v19 = vpop.f32.mrb[29].mxu1 }
 0x1f7   :  { %v1031_v20 = vadd.f32 %v1030_v19, %v1976_v24  ;;  %v1032_v21 = vpop.f32.mrb[30].mxu1 }
 0x1f8   :  { %v1095_v22 = vmax.f32 %v1029_v18, 0.0  ;;  %v1033_v23 = vadd.f32 %v1032_v21, %v1972_v56  ;;  %v1034_v25 = vpop.f32.mrb[31].mxu1 }
 0x1f9   :  { %v1096_v26 = vmax.f32 %v1031_v20, 0.0  ;;  %v1035_v44 = vadd.f32 %v1034_v25, %v1976_v24 }
 0x1fa   :  { %v1097_v49 = vmax.f32 %v1033_v23, 0.0 }
 0x1fb   :  { %v1365_v28 = vpack.c.bf16 %v1096_v26, %v1095_v22  ;;  %v1098_v29 = vmax.f32 %v1035_v44, 0.0 }
 0x1fd   :  { %1201 = vst [vmem:[%s2048_s5] sm:$0xff] %v1365_v28  ;;  %v1366_v46 = vpack.c.bf16 %v1098_v29, %v1097_v49  ;;  %v1038_v51 = vpop.f32.mrb[32].mxu1 }
 0x1fe   :  { %v1039_v30 = vadd.f32 %v1038_v51, %v1972_v56  ;;  %v1040_v45 = vpop.f32.mrb[33].mxu1 }
 0x1ff   :  { %1202 = vst [vmem:[%s2048_s5 + $0x8] sm:$0xff] %v1366_v46  ;;  %v1041_v31 = vadd.f32 %v1040_v45, %v1976_v24  ;;  %v1042_v32 = vpop.f32.mrb[34].mxu1 }
 0x200   :  { %v1099_v47 = vmax.f32 %v1039_v30, 0.0  ;;  %v1043_v33 = vadd.f32 %v1042_v32, %v1972_v56  ;;  %v1044_v48 = vpop.f32.mrb[35].mxu1 }
 0x201   :  { %v1100_v34 = vmax.f32 %v1041_v31, 0.0  ;;  %v1045_v35 = vadd.f32 %v1044_v48, %v1976_v24 }
 0x202   :  { %v1101_v43 = vmax.f32 %v1043_v33, 0.0 }
 0x203   :  { %v1367_v50 = vpack.c.bf16 %v1100_v34, %v1099_v47  ;;  %v1102_v58 = vmax.f32 %v1045_v35, 0.0 }
 0x205   :  { %1203 = vst [vmem:[%s2048_s5 + $0x10] sm:$0xff] %v1367_v50  ;;  %v1368_v59 = vpack.c.bf16 %v1102_v58, %v1101_v43  ;;  %v1048_v36 = vpop.f32.mrb[36].mxu1 }
 0x206   :  { %v1049_v60 = vadd.f32 %v1048_v36, %v1972_v56  ;;  %v1050_v52 = vpop.f32.mrb[37].mxu1 }
 0x207   :  { %1204 = vst [vmem:[%s2048_s5 + $0x18] sm:$0xff] %v1368_v59  ;;  %v1051_v61 = vadd.f32 %v1050_v52, %v1976_v24  ;;  %v1052_v62 = vpop.f32.mrb[38].mxu1 }
 0x208   :  { %v1103_v37 = vmax.f32 %v1049_v60, 0.0  ;;  %v1053_v53 = vadd.f32 %v1052_v62, %v1972_v56  ;;  %v1054_v63 = vpop.f32.mrb[39].mxu1 }
 0x209   :  { %v1104_v38 = vmax.f32 %v1051_v61, 0.0  ;;  %v1055_v55 = vadd.f32 %v1054_v63, %v1976_v24 }
 0x20a   :  { %v1105_v0 = vmax.f32 %v1053_v53, 0.0 }
 0x20b   :  { %v1369_v57 = vpack.c.bf16 %v1104_v38, %v1103_v37  ;;  %v1106_v2 = vmax.f32 %v1055_v55, 0.0 }
 0x20d   :  { %1205 = vst [vmem:[%s2048_s5 + $0x20] sm:$0xff] %v1369_v57  ;;  %v1370_v4 = vpack.c.bf16 %v1106_v2, %v1105_v0  ;;  %v1058_v5 = vpop.f32.mrb[40].mxu1 }
 0x20e   :  { %v1059_v7 = vadd.f32 %v1058_v5, %v1972_v56  ;;  %v1060_v9 = vpop.f32.mrb[41].mxu1 }
 0x20f   :  { %1206 = vst [vmem:[%s2048_s5 + $0x28] sm:$0xff] %v1370_v4  ;;  %v1061_v1 = vadd.f32 %v1060_v9, %v1976_v24  ;;  %v1062_v11 = vpop.f32.mrb[42].mxu1 }
 0x210   :  { %v1107_v39 = vmax.f32 %v1059_v7, 0.0  ;;  %v1063_v3 = vadd.f32 %v1062_v11, %v1972_v56  ;;  %v1064_v12 = vpop.f32.mrb[43].mxu1 }
 0x211   :  { %v1108_v13 = vmax.f32 %v1061_v1, 0.0  ;;  %v1065_v14 = vadd.f32 %v1064_v12, %v1976_v24 }
 0x212   :  { %v1109_v6 = vmax.f32 %v1063_v3, 0.0 }
 0x213   :  { %v1371_v40 = vpack.c.bf16 %v1108_v13, %v1107_v39  ;;  %v1110_v15 = vmax.f32 %v1065_v14, 0.0 }
 0x215   :  { %1207 = vst [vmem:[%s2048_s5 + $0x30] sm:$0xff] %v1371_v40  ;;  %v1372_v16 = vpack.c.bf16 %v1110_v15, %v1109_v6  ;;  %v1068_v8 = vpop.f32.mrb[44].mxu1 }
 0x216   :  { %v1069_v10 = vadd.f32 %v1068_v8, %v1972_v56  ;;  %v1070_v41 = vpop.f32.mrb[45].mxu1 }
 0x217   :  { %1208 = vst [vmem:[%s2048_s5 + $0x38] sm:$0xff] %v1372_v16  ;;  %v1071_v17 = vadd.f32 %v1070_v41, %v1976_v24  ;;  %v1072_v42 = vpop.f32.mrb[46].mxu1 }
 0x218   :  { %v1111_v54 = vmax.f32 %v1069_v10, 0.0  ;;  %v1073_v27 = vadd.f32 %v1072_v42, %v1972_v56  ;;  %v1074_v18 = vpop.f32.mrb[47].mxu1 }
 0x219   :  { %v1112_v19 = vmax.f32 %v1071_v17, 0.0  ;;  %v1075_v20 = vadd.f32 %v1074_v18, %v1976_v24 }
 0x21a   :  { %v1113_v21 = vmax.f32 %v1073_v27, 0.0 }
 0x21b   :  { %v1373_v22 = vpack.c.bf16 %v1112_v19, %v1111_v54  ;;  %v1114_v23 = vmax.f32 %v1075_v20, 0.0 }
 0x21d   :  { %1209 = vst [vmem:[%s2048_s5 + $0x40] sm:$0xff] %v1373_v22  ;;  %v1374_v25 = vpack.c.bf16 %v1114_v23, %v1113_v21  ;;  %v1078_v26 = vpop.f32.mrb[48].mxu1 }
 0x21e   :  { %v1079_v44 = vadd.f32 %v1078_v26, %v1972_v56  ;;  %v1080_v49 = vpop.f32.mrb[49].mxu1 }
 0x21f   :  { %1210 = vst [vmem:[%s2048_s5 + $0x48] sm:$0xff] %v1374_v25  ;;  %v1081_v28 = vadd.f32 %v1080_v49, %v1976_v24  ;;  %v1082_v29 = vpop.f32.mrb[50].mxu1 }
 0x220   :  { %v1115_v46 = vmax.f32 %v1079_v44, 0.0  ;;  %v1083_v51 = vadd.f32 %v1082_v29, %v1972_v56  ;;  %v1084_v30 = vpop.f32.mrb[51].mxu1 }
 0x221   :  { %v1116_v45 = vmax.f32 %v1081_v28, 0.0  ;;  %v1085_v31 = vadd.f32 %v1084_v30, %v1976_v24 }
 0x222   :  { %v1117_v32 = vmax.f32 %v1083_v51, 0.0 }
 0x223   :  { %v1375_v47 = vpack.c.bf16 %v1116_v45, %v1115_v46  ;;  %v1118_v33 = vmax.f32 %v1085_v31, 0.0 }
 0x225   :  { %1211 = vst [vmem:[%s2048_s5 + $0x50] sm:$0xff] %v1375_v47  ;;  %v1376_v48 = vpack.c.bf16 %v1118_v33, %v1117_v32  ;;  %v1088_v34 = vpop.f32.mrb[52].mxu1 }
 0x226   :  { %v1089_v35 = vadd.f32 %v1088_v34, %v1972_v56  ;;  %v1090_v43 = vpop.f32.mrb[53].mxu1 }
 0x227   :  { %1212 = vst [vmem:[%s2048_s5 + $0x58] sm:$0xff] %v1376_v48  ;;  %v1091_v50 = vadd.f32 %v1090_v43, %v1976_v24  ;;  %v1092_v58 = vpop.f32.mrb[54].mxu1 }
 0x228   :  { %v1119_v59 = vmax.f32 %v1089_v35, 0.0  ;;  %v1093_v36 = vpop.f32.mrb[55].mxu1 }
 0x229   :  { %v1120_v60 = vmax.f32 %v1091_v50, 0.0 }
 0x22b   :  { %v1377_v52 = vpack.c.bf16 %v1120_v60, %v1119_v59 }
 0x22d   :  { %1213 = vst [vmem:[%s2048_s5 + $0x60] sm:$0xff] %v1377_v52 }

// kernel: neg.17
= control target key start
LH: loop header
LB: loop body
LE: loop exit
PB: predicated region body
PF: predicated region fallthrough
CT: control target
= control target key end

     0   :  { %s24_s0 = inlined_call_operand.vmem [shape: f32[13,6], index: 0, kind: input, shape index: {}]   ;;  %s25_s1 = inlined_call_operand.vmem [shape: f32[13,6], index: 1, kind: output, shape index: {}]  }
   0x1   :  { %v2_v0 = vld [vmem:[%s24_s0] sm:$0x3f] }
   0x2   :  { %v5_v1 = vxor.u32 2147483648, %v2_v0 }
   0x4   :  { %7 = vst [vmem:[%s25_s1] sm:$0xff] %v5_v1 }

// kernel: pointnet_forward.19
= control target key start
LH: loop header
LB: loop body
LE: loop exit
PB: predicated region body
PF: predicated region fallthrough
CT: control target
= control target key end

     0   :  { %vm247_vm0 = vcmask 1040384   ;;  %vm248_vm1 = vcmask 1041408   ;;  %v1141_v49 = vmov 65535   ;;  %vm243_vm2 = vcmask 23552   ;;  %s1506_s1 = inlined_call_operand.vmem [shape: bf16[259,256], index: 1, kind: input, shape index: {}]   ;;  %s1507_s0 = inlined_call_operand.vmem [shape: bf16[8,259], index: 0, kind: input, shape index: {}]   ;;  %s1508_s3 = inlined_call_operand.vmem [shape: bf16[256,512], index: 3, kind: input, shape index: {}]   ;;  %s1509_s2 = inlined_call_operand.vmem [shape: f32[1,256], index: 2, kind: input, shape index: {}]   ;;  %s1510_s4 = inlined_call_operand.vmem [shape: f32[1,512], index: 4, kind: input, shape index: {}]   ;;  %s1511_s5 = inlined_call_operand.vmem [shape: bf16[8,512], index: 5, kind: output, shape index: {}]  }
   0x1   :  { %v992_v0 = vld [vmem:[%s1506_s1 + $0x4] ss:$8 sps:$4 sm:$0xff]   ;;  %v994_v1 = vld [vmem:[%s1506_s1] ss:$8 sps:$4 sm:$0xff]   ;;  %v995_v2 = vld [vmem:[%s1506_s1 + $0x14] ss:$8 sps:$4 sm:$0xff]  }
   0x2   :  { %257 = vmatprep.subr.bf16.mxu0 %v992_v0  ;;  %v997_v3 = vld [vmem:[%s1506_s1 + $0x10] ss:$8 sps:$4 sm:$0xff]   ;;  %v998_v4 = vld [vmem:[%s1506_s1 + $0x24] ss:$8 sps:$4 sm:$0xff]   ;;  %v1000_v5 = vld [vmem:[%s1506_s1 + $0x20] ss:$8 sps:$4 sm:$0xff]  }
   0x3   :  { %258 = vmatpush1.bf16.msra.mxu0 %v994_v1  ;;  %v1001_v6 = vld [vmem:[%s1506_s1 + $0x34] ss:$8 sps:$4 sm:$0xff]   ;;  %v1003_v7 = vld [vmem:[%s1506_s1 + $0x30] ss:$8 sps:$4 sm:$0xff]   ;;  %v1004_v8 = vld [vmem:[%s1506_s1 + $0x44] ss:$8 sps:$4 sm:$0xff]  }
   0x4   :  { %259 = vmatprep.subr.bf16.mxu0 %v995_v2  ;;  %v1006_v9 = vld [vmem:[%s1506_s1 + $0x40] ss:$8 sps:$4 sm:$0xff]   ;;  %v1007_v10 = vld [vmem:[%s1506_s1 + $0x54] ss:$8 sps:$4 sm:$0xff]   ;;  %v1009_v11 = vld [vmem:[%s1506_s1 + $0x50] ss:$8 sps:$4 sm:$0xff]  }
   0x5   :  { %v1010_v12 = vld [vmem:[%s1506_s1 + $0x64] ss:$8 sps:$4 sm:$0xff]   ;;  %v1012_v14 = vld [vmem:[%s1506_s1 + $0x60] ss:$8 sps:$4 sm:$0xff]   ;;  %v1013_v15 = vld [vmem:[%s1506_s1 + $0x74] ss:$8 sps:$4 sm:$0xff]  }
   0x6   :  { %v1215_v13 = vld [vmem:[%s1507_s0] sm:$0xff]  ;;  %v1015_v21 = vld [vmem:[%s1506_s1 + $0x70] ss:$8 sps:$4 sm:$0xff]   ;;  %v1019_v27 = vld [vmem:[%s1506_s1 + $0x94] ss:$8 sps:$4 sm:$0xff]   ;;  %v249_v50 = vsel %vm247_vm0, 4294967295, %v1141_v49 }
   0x7   :  { %260 = vmatpush1.bf16.msra.mxu0 %v997_v3  ;;  %v873_v16 = vcombine.high %v1215_v13, %v1215_v13  ;;  %v1045_v17 = vld [vmem:[%s1508_s3 + $0x4] ss:$16 sps:$4 sm:$0xff]   ;;  %v1047_v18 = vld [vmem:[%s1508_s3] ss:$16 sps:$4 sm:$0xff]   ;;  %v250_v56 = vsel %vm248_vm1, %v249_v50, 0  ;;  %v872_v62 = vcombine.low %v1215_v13, %v1215_v13  ;;  %v1142_v3 = vmov 0  }
   0x8   :  { %261 = vmatprep.subr.bf16.mxu0 %v998_v4  ;;  %v1048_v19 = vld [vmem:[%s1508_s3 + $0x24] ss:$16 sps:$4 sm:$0xff]   ;;  %764 = vmatprep.subr.bf16.mxu1 %v1045_v17  ;;  %v1050_v20 = vld [vmem:[%s1508_s3 + $0x20] ss:$16 sps:$4 sm:$0xff]   ;;  %v1095_v13 = vld [vmem:[%s1508_s3 + $0xc] ss:$16 sps:$4 sm:$0xff]  }
   0x9   :  { %289 = vmatprep.mubr.bf16.mxu0 %v873_v16  ;;  %765 = vmatpush1.bf16.msra.mxu1 %v1047_v18  ;;  %v1051_v22 = vld [vmem:[%s1508_s3 + $0x44] ss:$16 sps:$4 sm:$0xff]   ;;  %v1053_v24 = vld [vmem:[%s1508_s3 + $0x40] ss:$16 sps:$4 sm:$0xff]   ;;  %v1120_v49 = vld [vmem:[%s1508_s3 + $0x128] ss:$16 sps:$4 sm:$0xff]  }
   0xa   :  { %766 = vmatprep.subr.bf16.mxu1 %v1048_v19  ;;  %v1016_v23 = vld [vmem:[%s1506_s1 + $0x84] ss:$8 sps:$4 sm:$0xff]   ;;  %v1018_v25 = vld [vmem:[%s1506_s1 + $0x80] ss:$8 sps:$4 sm:$0xff]   ;;  %v1021_v29 = vld [vmem:[%s1506_s1 + $0x90] ss:$8 sps:$4 sm:$0xff]  }
   0xb   :  { %262 = vmatpush1.bf16.msra.mxu0 %v1000_v5  ;;  %v1054_v26 = vld [vmem:[%s1508_s3 + $0x64] ss:$16 sps:$4 sm:$0xff]   ;;  %v1056_v28 = vld [vmem:[%s1508_s3 + $0x60] ss:$16 sps:$4 sm:$0xff]   ;;  %v1125_v50 = vld [vmem:[%s1508_s3 + $0x14c] ss:$16 sps:$4 sm:$0xff]  }
   0xc   :  { %263 = vmatprep.subr.bf16.mxu0 %v1001_v6  ;;  %v1057_v30 = vld [vmem:[%s1508_s3 + $0x84] ss:$16 sps:$4 sm:$0xff]   ;;  %v1059_v32 = vld [vmem:[%s1508_s3 + $0x80] ss:$16 sps:$4 sm:$0xff]  }
   0xd   :  { %767 = vmatpush1.bf16.msra.mxu1 %v1050_v20  ;;  %v1022_v31 = vld [vmem:[%s1506_s1 + $0xa4] ss:$8 sps:$4 sm:$0xff]   ;;  %v1024_v33 = vld [vmem:[%s1506_s1 + $0xa0] ss:$8 sps:$4 sm:$0xff]   ;;  %v1025_v35 = vld [vmem:[%s1506_s1 + $0xb4] ss:$8 sps:$4 sm:$0xff]  }
   0xe   :  { %768 = vmatprep.subr.bf16.mxu1 %v1051_v22  ;;  %v1060_v34 = vld [vmem:[%s1508_s3 + $0xa4] ss:$16 sps:$4 sm:$0xff]   ;;  %v1027_v36 = vld [vmem:[%s1506_s1 + $0xb0] ss:$8 sps:$4 sm:$0xff]   ;;  %v1030_v41 = vld [vmem:[%s1506_s1 + $0xc0] ss:$8 sps:$4 sm:$0xff]  }
   0xf   :  { %264 = vmatpush1.bf16.msra.mxu0 %v1003_v7  ;;  %v1062_v37 = vld [vmem:[%s1508_s3 + $0xa0] ss:$16 sps:$4 sm:$0xff]   ;;  %v1063_v38 = vld [vmem:[%s1508_s3 + $0xc4] ss:$16 sps:$4 sm:$0xff]   ;;  %v1042_v7 = vld [vmem:[%s1507_s0 + $0x8] ss:$0 sps:$4 sm:$0xff]  }
  0x10   :  { %265 = vmatprep.subr.bf16.mxu0 %v1004_v8  ;;  %v1028_v39 = vld [vmem:[%s1506_s1 + $0xc4] ss:$8 sps:$4 sm:$0xff]   ;;  %v1065_v40 = vld [vmem:[%s1508_s3 + $0xc0] ss:$16 sps:$4 sm:$0xff]   ;;  %v1031_v43 = vld [vmem:[%s1506_s1 + $0xd4] ss:$8 sps:$4 sm:$0xff]  }
  0x11   :  { %769 = vmatpush1.bf16.msra.mxu1 %v1053_v24  ;;  %v1066_v42 = vld [vmem:[%s1508_s3 + $0xe4] ss:$16 sps:$4 sm:$0xff]   ;;  %v1068_v44 = vld [vmem:[%s1508_s3 + $0xe0] ss:$16 sps:$4 sm:$0xff]  }
  0x12   :  { %770 = vmatprep.subr.bf16.mxu1 %v1054_v26  ;;  %v1033_v45 = vld [vmem:[%s1506_s1 + $0xd0] ss:$8 sps:$4 sm:$0xff]   ;;  %v1069_v46 = vld [vmem:[%s1508_s3 + $0x104] ss:$16 sps:$4 sm:$0xff]   ;;  %v1036_v52 = vld [vmem:[%s1506_s1 + $0xe0] ss:$8 sps:$4 sm:$0xff]  }
  0x13   :  { %266 = vmatpush1.bf16.msra.mxu0 %v1006_v9  ;;  %v1034_v47 = vld [vmem:[%s1506_s1 + $0xe4] ss:$8 sps:$4 sm:$0xff]   ;;  %v1071_v51 = vld [vmem:[%s1508_s3 + $0x100] ss:$16 sps:$4 sm:$0xff]   ;;  %v1037_v54 = vld [vmem:[%s1506_s1 + $0xf4] ss:$8 sps:$4 sm:$0xff]  }
  0x14   :  { %267 = vmatprep.subr.bf16.mxu0 %v1007_v10  ;;  %v55_v48 = vld [vmem:[%s1506_s1 + $0x100] sm:$0x33]  ;;  %v1039_v58 = vld [vmem:[%s1506_s1 + $0xf0] ss:$8 sps:$4 sm:$0xff]  }
  0x15   :  { %771 = vmatpush1.bf16.msra.mxu1 %v1056_v28  ;;  %v1072_v53 = vld [vmem:[%s1508_s3 + $0x124] ss:$16 sps:$4 sm:$0xff]   ;;  %v908_v55 = vcombine.high %v55_v48, %v55_v48  ;;  %v1074_v57 = vld [vmem:[%s1508_s3 + $0x120] ss:$16 sps:$4 sm:$0xff]   ;;  %v907_v59 = vcombine.low %v55_v48, %v55_v48  ;;  %v1122_v48 = vld [vmem:[%s1508_s3 + $0x12c] ss:$16 sps:$4 sm:$0xff]  }
  0x16   :  { %772 = vmatprep.subr.bf16.mxu1 %v1057_v30  ;;  %v1075_v60 = vld [vmem:[%s1508_s3 + $0x144] ss:$16 sps:$4 sm:$0xff]   ;;  %v1077_v63 = vld [vmem:[%s1508_s3 + $0x140] ss:$16 sps:$4 sm:$0xff]   ;;  %v1093_v30 = vld [vmem:[%s1508_s3 + $0x8] ss:$16 sps:$4 sm:$0xff]  }
  0x17   :  { %268 = vmatpush1.bf16.msra.mxu0 %v1009_v11  ;;  %v255_v61 = vand.u32 %v908_v55, %v250_v56  ;;  %v252_v0 = vand.u32 %v907_v59, %v250_v56  ;;  %v1078_v1 = vld [vmem:[%s1508_s3 + $0x164] ss:$16 sps:$4 sm:$0xff]   ;;  %v1080_v2 = vld [vmem:[%s1508_s3 + $0x160] ss:$16 sps:$4 sm:$0xff]   ;;  %v1129_v55 = vld [vmem:[%s1508_s3 + $0x188] ss:$16 sps:$4 sm:$0xff]  }
  0x18   :  { %269 = vmatprep.subr.bf16.mxu0 %v1010_v12  ;;  %v1081_v4 = vld [vmem:[%s1508_s3 + $0x184] ss:$16 sps:$4 sm:$0xff]   ;;  %v1083_v5 = vld [vmem:[%s1508_s3 + $0x180] ss:$16 sps:$4 sm:$0xff]   ;;  %v1134_v56 = vld [vmem:[%s1508_s3 + $0x1ac] ss:$16 sps:$4 sm:$0xff]  }
  0x19   :  { %773 = vmatpush1.bf16.msra.mxu1 %v1059_v32  ;;  %v1084_v6 = vld [vmem:[%s1508_s3 + $0x1a4] ss:$16 sps:$4 sm:$0xff]   ;;  %v1086_v8 = vld [vmem:[%s1508_s3 + $0x1a0] ss:$16 sps:$4 sm:$0xff]   ;;  %v1098_v32 = vld [vmem:[%s1508_s3 + $0x2c] ss:$16 sps:$4 sm:$0xff]  }
  0x1a   :  { %774 = vmatprep.subr.bf16.mxu1 %v1060_v34  ;;  %v1087_v9 = vld [vmem:[%s1508_s3 + $0x1c4] ss:$16 sps:$4 sm:$0xff]   ;;  %v1089_v10 = vld [vmem:[%s1508_s3 + $0x1c0] ss:$16 sps:$4 sm:$0xff]   ;;  %v1101_v34 = vld [vmem:[%s1508_s3 + $0x4c] ss:$16 sps:$4 sm:$0xff]  }
  0x1b   :  { %270 = vmatpush1.bf16.msra.mxu0 %v1012_v14  ;;  %v1090_v11 = vld [vmem:[%s1508_s3 + $0x1e4] ss:$16 sps:$4 sm:$0xff]   ;;  %v1092_v12 = vld [vmem:[%s1508_s3 + $0x1e0] ss:$16 sps:$4 sm:$0xff]   ;;  %v58_v14 = vlaneseq  ;;  %v1135_v59 = vld [vmem:[%s1508_s3 + $0x1c8] ss:$16 sps:$4 sm:$0xff]  }
  0x1c   :  { %271 = vmatprep.subr.bf16.mxu0 %v1013_v15  ;;  %v56_v17 = vld [vmem:[%s1509_s2] sm:$0x3] }
  0x1d   :  { %775 = vmatpush1.bf16.msra.mxu1 %v1062_v37  ;;  %v1383_v15 = vshrl.u32 %v58_v14, 7  ;;  %v1102_v37 = vld [vmem:[%s1508_s3 + $0x68] ss:$16 sps:$4 sm:$0xff]  }
  0x1e   :  { %776 = vmatprep.subr.bf16.mxu1 %v1063_v38  ;;  %v1107_v38 = vld [vmem:[%s1508_s3 + $0x8c] ss:$16 sps:$4 sm:$0xff]  }
  0x1f   :  { %272 = vmatpush1.bf16.msra.mxu0 %v1015_v21  ;;  %v60_v16 = vsub.s32 0, %v1383_v15  ;;  %v64_v18 = vsub.s32 1, %v1383_v15 }
  0x20   :  { %273 = vmatprep.subr.bf16.mxu0 %v1016_v23 }
  0x21   :  { %777 = vmatpush1.bf16.msra.mxu1 %v1065_v40  ;;  %v61_v19 = vrot.slane %v56_v17, %v60_v16  ;;  %v65_v20 = vrot.slane %v56_v17, %v64_v18  ;;  %v1110_v40 = vld [vmem:[%s1508_s3 + $0xac] ss:$16 sps:$4 sm:$0xff]  }
  0x22   :  { %778 = vmatprep.subr.bf16.mxu1 %v1066_v42  ;;  %v1113_v42 = vld [vmem:[%s1508_s3 + $0xcc] ss:$16 sps:$4 sm:$0xff]  }
  0x23   :  { %274 = vmatpush1.bf16.msra.mxu0 %v1018_v25 }
  0x24   :  { %275 = vmatprep.subr.bf16.mxu0 %v1019_v27 }
  0x25   :  { %779 = vmatpush1.bf16.msra.mxu1 %v1068_v44  ;;  %v1116_v44 = vld [vmem:[%s1508_s3 + $0xec] ss:$16 sps:$4 sm:$0xff]  }
  0x26   :  { %780 = vmatprep.subr.bf16.mxu1 %v1069_v46  ;;  %v1119_v46 = vld [vmem:[%s1508_s3 + $0x10c] ss:$16 sps:$4 sm:$0xff]  }
  0x27   :  { %276 = vmatpush1.bf16.msra.mxu0 %v1021_v29 }
  0x28   :  { %277 = vmatprep.subr.bf16.mxu0 %v1022_v31 }
  0x29   :  { %781 = vmatpush1.bf16.msra.mxu1 %v1071_v51  ;;  %v1123_v51 = vld [vmem:[%s1508_s3 + $0x148] ss:$16 sps:$4 sm:$0xff]  }
  0x2a   :  { %782 = vmatprep.subr.bf16.mxu1 %v1072_v53  ;;  %v1126_v53 = vld [vmem:[%s1508_s3 + $0x168] ss:$16 sps:$4 sm:$0xff]  }
  0x2b   :  { %278 = vmatpush1.bf16.msra.mxu0 %v1024_v33  ;;  %v1096_v33 = vld [vmem:[%s1508_s3 + $0x28] ss:$16 sps:$4 sm:$0xff]  }
  0x2c   :  { %279 = vmatprep.subr.bf16.mxu0 %v1025_v35  ;;  %v1099_v35 = vld [vmem:[%s1508_s3 + $0x48] ss:$16 sps:$4 sm:$0xff]  }
  0x2d   :  { %783 = vmatpush1.bf16.msra.mxu1 %v1074_v57  ;;  %v1132_v57 = vld [vmem:[%s1508_s3 + $0x1a8] ss:$16 sps:$4 sm:$0xff]  }
  0x2e   :  { %784 = vmatprep.subr.bf16.mxu1 %v1075_v60  ;;  %v1140_v60 = vld [vmem:[%s1508_s3 + $0x1ec] ss:$16 sps:$4 sm:$0xff]  }
  0x2f   :  { %280 = vmatpush1.bf16.msra.mxu0 %v1027_v36  ;;  %v1104_v36 = vld [vmem:[%s1508_s3 + $0x6c] ss:$16 sps:$4 sm:$0xff]  }
  0x30   :  { %281 = vmatprep.subr.bf16.mxu0 %v1028_v39  ;;  %v1105_v39 = vld [vmem:[%s1508_s3 + $0x88] ss:$16 sps:$4 sm:$0xff]  }
  0x31   :  { %785 = vmatpush1.bf16.msra.mxu1 %v1077_v63 }
  0x32   :  { %786 = vmatprep.subr.bf16.mxu1 %v1078_v1 }
  0x33   :  { %282 = vmatpush1.bf16.msra.mxu0 %v1030_v41  ;;  %v1108_v41 = vld [vmem:[%s1508_s3 + $0xa8] ss:$16 sps:$4 sm:$0xff]  }
  0x34   :  { %283 = vmatprep.subr.bf16.mxu0 %v1031_v43  ;;  %v1111_v43 = vld [vmem:[%s1508_s3 + $0xc8] ss:$16 sps:$4 sm:$0xff]  }
  0x35   :  { %787 = vmatpush1.bf16.msra.mxu1 %v1080_v2 }
  0x36   :  { %788 = vmatprep.subr.bf16.mxu1 %v1081_v4 }
  0x37   :  { %284 = vmatpush1.bf16.msra.mxu0 %v1033_v45  ;;  %v1114_v45 = vld [vmem:[%s1508_s3 + $0xe8] ss:$16 sps:$4 sm:$0xff]  }
  0x38   :  { %285 = vmatprep.subr.bf16.mxu0 %v1034_v47  ;;  %v1117_v47 = vld [vmem:[%s1508_s3 + $0x108] ss:$16 sps:$4 sm:$0xff]  }
  0x39   :  { %789 = vmatpush1.bf16.msra.mxu1 %v1083_v5 }
  0x3a   :  { %790 = vmatprep.subr.bf16.mxu1 %v1084_v6 }
  0x3b   :  { %286 = vmatpush1.bf16.msra.mxu0 %v1036_v52  ;;  %v1128_v52 = vld [vmem:[%s1508_s3 + $0x16c] ss:$16 sps:$4 sm:$0xff]  }
  0x3c   :  { %287 = vmatprep.subr.bf16.mxu0 %v1037_v54  ;;  %v1131_v54 = vld [vmem:[%s1508_s3 + $0x18c] ss:$16 sps:$4 sm:$0xff]  }
  0x3d   :  { %791 = vmatpush1.bf16.msra.mxu1 %v1086_v8 }
  0x3e   :  { %792 = vmatprep.subr.bf16.mxu1 %v1087_v9 }
  0x3f   :  { %288 = vmatpush1.bf16.msra.mxu0 %v1039_v58  ;;  %v1137_v58 = vld [vmem:[%s1508_s3 + $0x1cc] ss:$16 sps:$4 sm:$0xff]  }
  0x40   :  { %298 = vmatprep.subr.bf16.mxu0 %v255_v61  ;;  %v1138_v61 = vld [vmem:[%s1508_s3 + $0x1e8] ss:$16 sps:$4 sm:$0xff]  }
  0x41   :  { %793 = vmatpush1.bf16.msra.mxu1 %v1089_v10  ;;  %v427_v10 = vsub.s32 2, %v1383_v15 }
  0x42   :  { %290 = vmatmul.mubr.bf16.vlgmr.msra.gmra.mrb[0].mxu0 %v872_v62  ;;  %794 = vmatprep.subr.bf16.mxu1 %v1090_v11  ;;  %v415_v62 = vld [vmem:[%s1510_s4] sm:$0xf]  ;;  %v431_v11 = vsub.s32 3, %v1383_v15 }
  0x43   :  { %299 = vmatpush1.bf16.msra.mxu0 %v252_v0  ;;  %330 = vmatprep.mubr.bf16.mxu0 %v1142_v3  ;;  %v420_v63 = vrot.slane %v415_v62, %v60_v16  ;;  %v424_v0 = vrot.slane %v415_v62, %v64_v18 }
  0x45   :  { %795 = vmatpush1.bf16.msra.mxu1 %v1092_v12  ;;  %v428_v12 = vrot.slane %v415_v62, %v427_v10 }
  0x46   :  { %805 = vmatprep.subr.bf16.mxu1 %v1095_v13  ;;  %v432_v13 = vrot.slane %v415_v62, %v431_v11 }
  0x4e   :  { %909 = vmatmul.mubr.msk.bf16.vlgmr.msra.gmra.mrb[0].mxu0 %vm243_vm2, %v1042_v7 }
 0x121   :  { %v332_v21 = vpop.f32.mrb[0].mxu0 }
 0x122   :  { %v984_v22 = vadd.f32 %v332_v21, %v61_v19  ;;  %v334_v23 = vpop.f32.mrb[1].mxu0 }
 0x123   :  { %v985_v24 = vadd.f32 %v334_v23, %v65_v20  ;;  %v336_v25 = vpop.f32.mrb[2].mxu0 }
 0x124   :  { %v339_v26 = vmax.f32 %v984_v22, 0.0  ;;  %v337_v27 = vpop.f32.mrb[3].mxu0 }
 0x125   :  { %v340_v28 = vmax.f32 %v985_v24, 0.0 }
 0x126   :  { %v1397_v31 = vpack.c.bf16 %v339_v26, %v339_v26 }
 0x127   :  { %v983_v29 = vpack.c.bf16 %v340_v28, %v340_v28 }
 0x129   :  { %796 = vmatprep.mubr.bf16.mxu1 %v983_v29 }
 0x12a   :  { %797 = vmatmul.mubr.bf16.vlgmr.msra.gmra.mrb[0].mxu1 %v1397_v31 }
 0x12b   :  { %806 = vmatpush1.bf16.msra.mxu1 %v1093_v30  ;;  %837 = vmatprep.mubr.bf16.mxu1 %v983_v29 }
 0x12c   :  { %807 = vmatprep.subr.bf16.mxu1 %v1098_v32 }
 0x12f   :  { %808 = vmatpush1.bf16.msra.mxu1 %v1096_v33 }
 0x130   :  { %809 = vmatprep.subr.bf16.mxu1 %v1101_v34 }
 0x133   :  { %810 = vmatpush1.bf16.msra.mxu1 %v1099_v35 }
 0x134   :  { %811 = vmatprep.subr.bf16.mxu1 %v1104_v36 }
 0x137   :  { %812 = vmatpush1.bf16.msra.mxu1 %v1102_v37 }
 0x138   :  { %813 = vmatprep.subr.bf16.mxu1 %v1107_v38 }
 0x13b   :  { %814 = vmatpush1.bf16.msra.mxu1 %v1105_v39 }
 0x13c   :  { %815 = vmatprep.subr.bf16.mxu1 %v1110_v40 }
 0x13f   :  { %816 = vmatpush1.bf16.msra.mxu1 %v1108_v41 }
 0x140   :  { %817 = vmatprep.subr.bf16.mxu1 %v1113_v42 }
 0x143   :  { %818 = vmatpush1.bf16.msra.mxu1 %v1111_v43 }
 0x144   :  { %819 = vmatprep.subr.bf16.mxu1 %v1116_v44 }
 0x147   :  { %820 = vmatpush1.bf16.msra.mxu1 %v1114_v45 }
 0x148   :  { %821 = vmatprep.subr.bf16.mxu1 %v1119_v46 }
 0x14b   :  { %822 = vmatpush1.bf16.msra.mxu1 %v1117_v47 }
 0x14c   :  { %823 = vmatprep.subr.bf16.mxu1 %v1122_v48 }
 0x14f   :  { %824 = vmatpush1.bf16.msra.mxu1 %v1120_v49 }
 0x150   :  { %825 = vmatprep.subr.bf16.mxu1 %v1125_v50 }
 0x153   :  { %826 = vmatpush1.bf16.msra.mxu1 %v1123_v51 }
 0x154   :  { %827 = vmatprep.subr.bf16.mxu1 %v1128_v52 }
 0x157   :  { %828 = vmatpush1.bf16.msra.mxu1 %v1126_v53 }
 0x158   :  { %829 = vmatprep.subr.bf16.mxu1 %v1131_v54 }
 0x15b   :  { %830 = vmatpush1.bf16.msra.mxu1 %v1129_v55 }
 0x15c   :  { %831 = vmatprep.subr.bf16.mxu1 %v1134_v56 }
 0x15f   :  { %832 = vmatpush1.bf16.msra.mxu1 %v1132_v57 }
 0x160   :  { %833 = vmatprep.subr.bf16.mxu1 %v1137_v58 }
 0x163   :  { %834 = vmatpush1.bf16.msra.mxu1 %v1135_v59 }
 0x164   :  { %835 = vmatprep.subr.bf16.mxu1 %v1140_v60 }
 0x167   :  { %836 = vmatpush1.bf16.msra.mxu1 %v1138_v61 }
 0x16a   :  { %838 = vmatmul.mubr.bf16.vlgmr.msra.gmra.mrb[4].mxu1 %v1397_v31 }
 0x1fd   :  { %v798_v1 = vpop.f32.mrb[0].mxu1 }
 0x1fe   :  { %v799_v2 = vadd.f32 %v798_v1, %v420_v63  ;;  %v800_v3 = vpop.f32.mrb[1].mxu1 }
 0x1ff   :  { %v801_v4 = vadd.f32 %v800_v3, %v424_v0  ;;  %v802_v5 = vpop.f32.mrb[2].mxu1 }
 0x200   :  { %v846_v6 = vmax.f32 %v799_v2, 0.0  ;;  %v803_v7 = vpop.f32.mrb[3].mxu1 }
 0x201   :  { %v847_v8 = vmax.f32 %v801_v4, 0.0 }
 0x203   :  { %v980_v9 = vpack.c.bf16 %v847_v8, %v846_v6 }
 0x205   :  { %866 = vst [vmem:[%s1511_s5] sm:$0xff] %v980_v9 }
 0x23d   :  { %v839_v14 = vpop.f32.mrb[4].mxu1 }
 0x23e   :  { %v840_v16 = vadd.f32 %v839_v14, %v428_v12  ;;  %v841_v17 = vpop.f32.mrb[5].mxu1 }
 0x23f   :  { %v842_v18 = vadd.f32 %v841_v17, %v432_v13  ;;  %v843_v19 = vpop.f32.mrb[6].mxu1 }
 0x240   :  { %v848_v20 = vmax.f32 %v840_v16, 0.0  ;;  %v844_v21 = vpop.f32.mrb[7].mxu1 }
 0x241   :  { %v849_v22 = vmax.f32 %v842_v18, 0.0 }
 0x243   :  { %v981_v23 = vpack.c.bf16 %v849_v22, %v848_v20 }
 0x245   :  { %867 = vst [vmem:[%s1511_s5 + $0x8] sm:$0xff] %v981_v23 }

// kernel: pointnet_forward.21
= control target key start
LH: loop header
LB: loop body
LE: loop exit
PB: predicated region body
PF: predicated region fallthrough
CT: control target
= control target key end

     0   :  { %s2688_s1 = inlined_call_operand.vmem [shape: bf16[1280,256], index: 1, kind: input, shape index: {}]   ;;  %s2689_s0 = inlined_call_operand.vmem [shape: bf16[8,1280], index: 0, kind: input, shape index: {}]   ;;  %s2690_s3 = inlined_call_operand.vmem [shape: bf16[256,256], index: 3, kind: input, shape index: {}]   ;;  %s2691_s2 = inlined_call_operand.vmem [shape: f32[1,256], index: 2, kind: input, shape index: {}]   ;;  %s2692_s4 = inlined_call_operand.vmem [shape: f32[1,256], index: 4, kind: input, shape index: {}]   ;;  %s2693_s5 = inlined_call_operand.vmem [shape: bf16[8,256], index: 5, kind: output, shape index: {}]  }
   0x1   :  { %v1742_v0 = vld [vmem:[%s2688_s1 + $0x4] ss:$8 sps:$4 sm:$0xff]   ;;  %v1746_v2 = vld [vmem:[%s2688_s1] ss:$8 sps:$4 sm:$0xff]   ;;  %v1748_v4 = vld [vmem:[%s2688_s1 + $0x14] ss:$8 sps:$4 sm:$0xff]  }
   0x2   :  { %v1744_v1 = vld [vmem:[%s2688_s1 + $0x204] ss:$8 sps:$4 sm:$0xff]   ;;  %1032 = vmatprep.subr.bf16.mxu1 %v1742_v0  ;;  %v1747_v3 = vld [vmem:[%s2688_s1 + $0x200] ss:$8 sps:$4 sm:$0xff]   ;;  %v1750_v5 = vld [vmem:[%s2688_s1 + $0x214] ss:$8 sps:$4 sm:$0xff]  }
   0x3   :  { %1114 = vmatprep.subr.bf16.mxu0 %v1744_v1  ;;  %1033 = vmatpush1.bf16.msra.mxu1 %v1746_v2  ;;  %v1752_v6 = vld [vmem:[%s2688_s1 + $0x10] ss:$8 sps:$4 sm:$0xff]   ;;  %v1754_v8 = vld [vmem:[%s2688_s1 + $0x24] ss:$8 sps:$4 sm:$0xff]   ;;  %v1758_v10 = vld [vmem:[%s2688_s1 + $0x20] ss:$8 sps:$4 sm:$0xff]  }
   0x4   :  { %1115 = vmatpush1.bf16.msra.mxu0 %v1747_v3  ;;  %1034 = vmatprep.subr.bf16.mxu1 %v1748_v4  ;;  %v1753_v7 = vld [vmem:[%s2688_s1 + $0x210] ss:$8 sps:$4 sm:$0xff]   ;;  %v1756_v9 = vld [vmem:[%s2688_s1 + $0x224] ss:$8 sps:$4 sm:$0xff]   ;;  %v1759_v11 = vld [vmem:[%s2688_s1 + $0x220] ss:$8 sps:$4 sm:$0xff]  }
   0x5   :  { %1116 = vmatprep.subr.bf16.mxu0 %v1750_v5  ;;  %v1760_v12 = vld [vmem:[%s2688_s1 + $0x34] ss:$8 sps:$4 sm:$0xff]   ;;  %v1764_v14 = vld [vmem:[%s2688_s1 + $0x30] ss:$8 sps:$4 sm:$0xff]   ;;  %v1766_v16 = vld [vmem:[%s2688_s1 + $0x44] ss:$8 sps:$4 sm:$0xff]  }
   0x6   :  { %v1762_v13 = vld [vmem:[%s2688_s1 + $0x234] ss:$8 sps:$4 sm:$0xff]   ;;  %v1765_v15 = vld [vmem:[%s2688_s1 + $0x230] ss:$8 sps:$4 sm:$0xff]   ;;  %v1768_v17 = vld [vmem:[%s2688_s1 + $0x244] ss:$8 sps:$4 sm:$0xff]  }
   0x7   :  { %1035 = vmatpush1.bf16.msra.mxu1 %v1752_v6  ;;  %v1770_v18 = vld [vmem:[%s2688_s1 + $0x40] ss:$8 sps:$4 sm:$0xff]   ;;  %v1772_v20 = vld [vmem:[%s2688_s1 + $0x54] ss:$8 sps:$4 sm:$0xff]   ;;  %v1776_v22 = vld [vmem:[%s2688_s1 + $0x50] ss:$8 sps:$4 sm:$0xff]  }
   0x8   :  { %1117 = vmatpush1.bf16.msra.mxu0 %v1753_v7  ;;  %1036 = vmatprep.subr.bf16.mxu1 %v1754_v8  ;;  %v1771_v19 = vld [vmem:[%s2688_s1 + $0x240] ss:$8 sps:$4 sm:$0xff]   ;;  %v1774_v21 = vld [vmem:[%s2688_s1 + $0x254] ss:$8 sps:$4 sm:$0xff]   ;;  %v1777_v23 = vld [vmem:[%s2688_s1 + $0x250] ss:$8 sps:$4 sm:$0xff]  }
   0x9   :  { %1118 = vmatprep.subr.bf16.mxu0 %v1756_v9  ;;  %v1778_v24 = vld [vmem:[%s2688_s1 + $0x64] ss:$8 sps:$4 sm:$0xff]   ;;  %v1782_v26 = vld [vmem:[%s2688_s1 + $0x60] ss:$8 sps:$4 sm:$0xff]   ;;  %v1784_v28 = vld [vmem:[%s2688_s1 + $0x74] ss:$8 sps:$4 sm:$0xff]  }
   0xa   :  { %v1780_v25 = vld [vmem:[%s2688_s1 + $0x264] ss:$8 sps:$4 sm:$0xff]   ;;  %v1783_v27 = vld [vmem:[%s2688_s1 + $0x260] ss:$8 sps:$4 sm:$0xff]   ;;  %v1786_v29 = vld [vmem:[%s2688_s1 + $0x274] ss:$8 sps:$4 sm:$0xff]  }
   0xb   :  { %1037 = vmatpush1.bf16.msra.mxu1 %v1758_v10  ;;  %v1788_v30 = vld [vmem:[%s2688_s1 + $0x70] ss:$8 sps:$4 sm:$0xff]   ;;  %v1790_v32 = vld [vmem:[%s2688_s1 + $0x84] ss:$8 sps:$4 sm:$0xff]   ;;  %v1794_v34 = vld [vmem:[%s2688_s1 + $0x80] ss:$8 sps:$4 sm:$0xff]  }
   0xc   :  { %1119 = vmatpush1.bf16.msra.mxu0 %v1759_v11  ;;  %1038 = vmatprep.subr.bf16.mxu1 %v1760_v12  ;;  %v1789_v31 = vld [vmem:[%s2688_s1 + $0x270] ss:$8 sps:$4 sm:$0xff]   ;;  %v1792_v33 = vld [vmem:[%s2688_s1 + $0x284] ss:$8 sps:$4 sm:$0xff]   ;;  %v1795_v35 = vld [vmem:[%s2688_s1 + $0x280] ss:$8 sps:$4 sm:$0xff]  }
   0xd   :  { %1120 = vmatprep.subr.bf16.mxu0 %v1762_v13  ;;  %v1796_v36 = vld [vmem:[%s2688_s1 + $0x94] ss:$8 sps:$4 sm:$0xff]   ;;  %v1800_v38 = vld [vmem:[%s2688_s1 + $0x90] ss:$8 sps:$4 sm:$0xff]   ;;  %v1802_v40 = vld [vmem:[%s2688_s1 + $0xa4] ss:$8 sps:$4 sm:$0xff]  }
   0xe   :  { %v1798_v37 = vld [vmem:[%s2688_s1 + $0x294] ss:$8 sps:$4 sm:$0xff]   ;;  %v1801_v39 = vld [vmem:[%s2688_s1 + $0x290] ss:$8 sps:$4 sm:$0xff]   ;;  %v1804_v41 = vld [vmem:[%s2688_s1 + $0x2a4] ss:$8 sps:$4 sm:$0xff]  }
   0xf   :  { %1039 = vmatpush1.bf16.msra.mxu1 %v1764_v14  ;;  %v1806_v42 = vld [vmem:[%s2688_s1 + $0xa0] ss:$8 sps:$4 sm:$0xff]   ;;  %v1808_v44 = vld [vmem:[%s2688_s1 + $0xb4] ss:$8 sps:$4 sm:$0xff]   ;;  %v1812_v47 = vld [vmem:[%s2688_s1 + $0xb0] ss:$8 sps:$4 sm:$0xff]  }
  0x10   :  { %1121 = vmatpush1.bf16.msra.mxu0 %v1765_v15  ;;  %1040 = vmatprep.subr.bf16.mxu1 %v1766_v16  ;;  %v1807_v43 = vld [vmem:[%s2688_s1 + $0x2a0] ss:$8 sps:$4 sm:$0xff]   ;;  %v1810_v45 = vld [vmem:[%s2688_s1 + $0x2b4] ss:$8 sps:$4 sm:$0xff]   ;;  %v1813_v49 = vld [vmem:[%s2688_s1 + $0x2b0] ss:$8 sps:$4 sm:$0xff]  }
  0x11   :  { %1122 = vmatprep.subr.bf16.mxu0 %v1768_v17  ;;  %v20_v46 = vld [vmem:[%s2689_s0] sm:$0xff]  ;;  %v22_v50 = vld [vmem:[%s2689_s0 + $0x10] sm:$0xff] }
  0x12   :  { %v1517_v48 = vcombine.high %v20_v46, %v20_v46  ;;  %v1814_v51 = vld [vmem:[%s2688_s1 + $0xc4] ss:$8 sps:$4 sm:$0xff]   ;;  %v1521_v53 = vcombine.high %v22_v50, %v22_v50  ;;  %v1818_v54 = vld [vmem:[%s2688_s1 + $0xc0] ss:$8 sps:$4 sm:$0xff]   ;;  %v1820_v56 = vld [vmem:[%s2688_s1 + $0xd4] ss:$8 sps:$4 sm:$0xff]   ;;  %v1516_v6 = vcombine.low %v20_v46, %v20_v46  ;;  %v1520_v7 = vcombine.low %v22_v50, %v22_v50 }
  0x13   :  { %1041 = vmatpush1.bf16.msra.mxu1 %v1770_v18  ;;  %v1816_v52 = vld [vmem:[%s2688_s1 + $0x2c4] ss:$8 sps:$4 sm:$0xff]   ;;  %v1819_v55 = vld [vmem:[%s2688_s1 + $0x2c0] ss:$8 sps:$4 sm:$0xff]   ;;  %v1822_v57 = vld [vmem:[%s2688_s1 + $0x2d4] ss:$8 sps:$4 sm:$0xff]  }
  0x14   :  { %1123 = vmatpush1.bf16.msra.mxu0 %v1771_v19  ;;  %1042 = vmatprep.subr.bf16.mxu1 %v1772_v20  ;;  %v1824_v58 = vld [vmem:[%s2688_s1 + $0xd0] ss:$8 sps:$4 sm:$0xff]   ;;  %v1826_v60 = vld [vmem:[%s2688_s1 + $0xe4] ss:$8 sps:$4 sm:$0xff]   ;;  %v1830_v62 = vld [vmem:[%s2688_s1 + $0xe0] ss:$8 sps:$4 sm:$0xff]  }
  0x15   :  { %1124 = vmatprep.subr.bf16.mxu0 %v1774_v21  ;;  %1064 = vmatprep.mubr.bf16.mxu1 %v1517_v48  ;;  %v1825_v59 = vld [vmem:[%s2688_s1 + $0x2d0] ss:$8 sps:$4 sm:$0xff]   ;;  %v1828_v61 = vld [vmem:[%s2688_s1 + $0x2e4] ss:$8 sps:$4 sm:$0xff]   ;;  %v1831_v63 = vld [vmem:[%s2688_s1 + $0x2e0] ss:$8 sps:$4 sm:$0xff]  }
  0x16   :  { %1146 = vmatprep.mubr.bf16.mxu0 %v1521_v53  ;;  %v1832_v0 = vld [vmem:[%s2688_s1 + $0xf4] ss:$8 sps:$4 sm:$0xff]   ;;  %v1836_v2 = vld [vmem:[%s2688_s1 + $0xf0] ss:$8 sps:$4 sm:$0xff]   ;;  %v1842_v4 = vld [vmem:[%s2688_s1 + $0x104] ss:$8 sps:$4 sm:$0xff]  }
  0x17   :  { %1043 = vmatpush1.bf16.msra.mxu1 %v1776_v22  ;;  %v1834_v1 = vld [vmem:[%s2688_s1 + $0x2f4] ss:$8 sps:$4 sm:$0xff]   ;;  %v1837_v3 = vld [vmem:[%s2688_s1 + $0x2f0] ss:$8 sps:$4 sm:$0xff]   ;;  %v1847_v5 = vld [vmem:[%s2688_s1 + $0x304] ss:$8 sps:$4 sm:$0xff]  }
  0x18   :  { %1125 = vmatpush1.bf16.msra.mxu0 %v1777_v23  ;;  %1044 = vmatprep.subr.bf16.mxu1 %v1778_v24  ;;  %v1840_v8 = vld [vmem:[%s2688_s1 + $0x100] ss:$8 sps:$4 sm:$0xff]   ;;  %v1850_v10 = vld [vmem:[%s2688_s1 + $0x114] ss:$8 sps:$4 sm:$0xff]   ;;  %v1848_v12 = vld [vmem:[%s2688_s1 + $0x110] ss:$8 sps:$4 sm:$0xff]  }
  0x19   :  { %1126 = vmatprep.subr.bf16.mxu0 %v1780_v25  ;;  %v1845_v9 = vld [vmem:[%s2688_s1 + $0x300] ss:$8 sps:$4 sm:$0xff]   ;;  %v1853_v11 = vld [vmem:[%s2688_s1 + $0x314] ss:$8 sps:$4 sm:$0xff]   ;;  %v1851_v13 = vld [vmem:[%s2688_s1 + $0x310] ss:$8 sps:$4 sm:$0xff]  }
  0x1a   :  { %v1856_v14 = vld [vmem:[%s2688_s1 + $0x124] ss:$8 sps:$4 sm:$0xff]   ;;  %v1854_v16 = vld [vmem:[%s2688_s1 + $0x120] ss:$8 sps:$4 sm:$0xff]   ;;  %v1862_v18 = vld [vmem:[%s2688_s1 + $0x134] ss:$8 sps:$4 sm:$0xff]  }
  0x1b   :  { %1045 = vmatpush1.bf16.msra.mxu1 %v1782_v26  ;;  %v1859_v15 = vld [vmem:[%s2688_s1 + $0x324] ss:$8 sps:$4 sm:$0xff]   ;;  %v1857_v17 = vld [vmem:[%s2688_s1 + $0x320] ss:$8 sps:$4 sm:$0xff]   ;;  %v1865_v19 = vld [vmem:[%s2688_s1 + $0x334] ss:$8 sps:$4 sm:$0xff]  }
  0x1c   :  { %1127 = vmatpush1.bf16.msra.mxu0 %v1783_v27  ;;  %1046 = vmatprep.subr.bf16.mxu1 %v1784_v28  ;;  %v1860_v20 = vld [vmem:[%s2688_s1 + $0x130] ss:$8 sps:$4 sm:$0xff]   ;;  %v1868_v22 = vld [vmem:[%s2688_s1 + $0x144] ss:$8 sps:$4 sm:$0xff]   ;;  %v1866_v24 = vld [vmem:[%s2688_s1 + $0x140] ss:$8 sps:$4 sm:$0xff]  }
  0x1d   :  { %1128 = vmatprep.subr.bf16.mxu0 %v1786_v29  ;;  %v1863_v21 = vld [vmem:[%s2688_s1 + $0x330] ss:$8 sps:$4 sm:$0xff]   ;;  %v1871_v23 = vld [vmem:[%s2688_s1 + $0x344] ss:$8 sps:$4 sm:$0xff]   ;;  %v1869_v25 = vld [vmem:[%s2688_s1 + $0x340] ss:$8 sps:$4 sm:$0xff]  }
  0x1e   :  { %v1874_v26 = vld [vmem:[%s2688_s1 + $0x154] ss:$8 sps:$4 sm:$0xff]   ;;  %v1872_v28 = vld [vmem:[%s2688_s1 + $0x150] ss:$8 sps:$4 sm:$0xff]   ;;  %v1904_v50 = vld [vmem:[%s2688_s1 + $0x1a4] ss:$8 sps:$4 sm:$0xff]  }
  0x1f   :  { %1047 = vmatpush1.bf16.msra.mxu1 %v1788_v30  ;;  %v1877_v27 = vld [vmem:[%s2688_s1 + $0x354] ss:$8 sps:$4 sm:$0xff]   ;;  %v1875_v29 = vld [vmem:[%s2688_s1 + $0x350] ss:$8 sps:$4 sm:$0xff]   ;;  %v1880_v30 = vld [vmem:[%s2688_s1 + $0x164] ss:$8 sps:$4 sm:$0xff]  }
  0x20   :  { %1129 = vmatpush1.bf16.msra.mxu0 %v1789_v31  ;;  %1048 = vmatprep.subr.bf16.mxu1 %v1790_v32  ;;  %v1883_v31 = vld [vmem:[%s2688_s1 + $0x364] ss:$8 sps:$4 sm:$0xff]   ;;  %v1898_v46 = vld [vmem:[%s2688_s1 + $0x194] ss:$8 sps:$4 sm:$0xff]   ;;  %v1896_v48 = vld [vmem:[%s2688_s1 + $0x190] ss:$8 sps:$4 sm:$0xff]  }
  0x21   :  { %1130 = vmatprep.subr.bf16.mxu0 %v1792_v33  ;;  %v2349_v32 = vld [vmem:[%s2689_s0 + $0x8] sm:$0xff]  ;;  %v2354_v33 = vld [vmem:[%s2689_s0 + $0x18] sm:$0xff] }
  0x22   :  { %v1905_v53 = vld [vmem:[%s2688_s1 + $0x3a0] ss:$8 sps:$4 sm:$0xff]  }
  0x23   :  { %1049 = vmatpush1.bf16.msra.mxu1 %v1794_v34  ;;  %v1878_v34 = vld [vmem:[%s2688_s1 + $0x160] ss:$8 sps:$4 sm:$0xff]  }
  0x24   :  { %1131 = vmatpush1.bf16.msra.mxu0 %v1795_v35  ;;  %1050 = vmatprep.subr.bf16.mxu1 %v1796_v36  ;;  %v1881_v35 = vld [vmem:[%s2688_s1 + $0x360] ss:$8 sps:$4 sm:$0xff]   ;;  %v1519_v36 = vcombine.high %v2349_v32, %v2349_v32 }
  0x25   :  { %1132 = vmatprep.subr.bf16.mxu0 %v1798_v37  ;;  %v1523_v37 = vcombine.high %v2354_v33, %v2354_v33 }
  0x27   :  { %1051 = vmatpush1.bf16.msra.mxu1 %v1800_v38  ;;  %v1886_v38 = vld [vmem:[%s2688_s1 + $0x174] ss:$8 sps:$4 sm:$0xff]  }
  0x28   :  { %1133 = vmatpush1.bf16.msra.mxu0 %v1801_v39  ;;  %1052 = vmatprep.subr.bf16.mxu1 %v1802_v40  ;;  %v1889_v39 = vld [vmem:[%s2688_s1 + $0x374] ss:$8 sps:$4 sm:$0xff]   ;;  %v1884_v40 = vld [vmem:[%s2688_s1 + $0x170] ss:$8 sps:$4 sm:$0xff]  }
  0x29   :  { %1134 = vmatprep.subr.bf16.mxu0 %v1804_v41  ;;  %v1887_v41 = vld [vmem:[%s2688_s1 + $0x370] ss:$8 sps:$4 sm:$0xff]  }
  0x2b   :  { %1053 = vmatpush1.bf16.msra.mxu1 %v1806_v42  ;;  %v1892_v42 = vld [vmem:[%s2688_s1 + $0x184] ss:$8 sps:$4 sm:$0xff]  }
  0x2c   :  { %1135 = vmatpush1.bf16.msra.mxu0 %v1807_v43  ;;  %1054 = vmatprep.subr.bf16.mxu1 %v1808_v44  ;;  %v1895_v43 = vld [vmem:[%s2688_s1 + $0x384] ss:$8 sps:$4 sm:$0xff]   ;;  %v1890_v44 = vld [vmem:[%s2688_s1 + $0x180] ss:$8 sps:$4 sm:$0xff]  }
  0x2d   :  { %1136 = vmatprep.subr.bf16.mxu0 %v1810_v45  ;;  %v1893_v45 = vld [vmem:[%s2688_s1 + $0x380] ss:$8 sps:$4 sm:$0xff]  }
  0x2f   :  { %1055 = vmatpush1.bf16.msra.mxu1 %v1812_v47  ;;  %v1901_v47 = vld [vmem:[%s2688_s1 + $0x394] ss:$8 sps:$4 sm:$0xff]  }
  0x30   :  { %1137 = vmatpush1.bf16.msra.mxu0 %v1813_v49  ;;  %1056 = vmatprep.subr.bf16.mxu1 %v1814_v51  ;;  %v1899_v49 = vld [vmem:[%s2688_s1 + $0x390] ss:$8 sps:$4 sm:$0xff]   ;;  %v1907_v51 = vld [vmem:[%s2688_s1 + $0x3a4] ss:$8 sps:$4 sm:$0xff]  }
  0x31   :  { %1138 = vmatprep.subr.bf16.mxu0 %v1816_v52  ;;  %v1902_v52 = vld [vmem:[%s2688_s1 + $0x1a0] ss:$8 sps:$4 sm:$0xff]  }
  0x33   :  { %1057 = vmatpush1.bf16.msra.mxu1 %v1818_v54  ;;  %v1910_v54 = vld [vmem:[%s2688_s1 + $0x1b4] ss:$8 sps:$4 sm:$0xff]  }
  0x34   :  { %1139 = vmatpush1.bf16.msra.mxu0 %v1819_v55  ;;  %1058 = vmatprep.subr.bf16.mxu1 %v1820_v56  ;;  %v1913_v55 = vld [vmem:[%s2688_s1 + $0x3b4] ss:$8 sps:$4 sm:$0xff]   ;;  %v1908_v56 = vld [vmem:[%s2688_s1 + $0x1b0] ss:$8 sps:$4 sm:$0xff]  }
  0x35   :  { %1140 = vmatprep.subr.bf16.mxu0 %v1822_v57  ;;  %v1911_v57 = vld [vmem:[%s2688_s1 + $0x3b0] ss:$8 sps:$4 sm:$0xff]  }
  0x37   :  { %1059 = vmatpush1.bf16.msra.mxu1 %v1824_v58  ;;  %v1916_v58 = vld [vmem:[%s2688_s1 + $0x1c4] ss:$8 sps:$4 sm:$0xff]  }
  0x38   :  { %1141 = vmatpush1.bf16.msra.mxu0 %v1825_v59  ;;  %1060 = vmatprep.subr.bf16.mxu1 %v1826_v60  ;;  %v1919_v59 = vld [vmem:[%s2688_s1 + $0x3c4] ss:$8 sps:$4 sm:$0xff]   ;;  %v1914_v60 = vld [vmem:[%s2688_s1 + $0x1c0] ss:$8 sps:$4 sm:$0xff]  }
  0x39   :  { %1142 = vmatprep.subr.bf16.mxu0 %v1828_v61  ;;  %v1917_v61 = vld [vmem:[%s2688_s1 + $0x3c0] ss:$8 sps:$4 sm:$0xff]  }
  0x3b   :  { %1061 = vmatpush1.bf16.msra.mxu1 %v1830_v62  ;;  %v1922_v62 = vld [vmem:[%s2688_s1 + $0x1d4] ss:$8 sps:$4 sm:$0xff]  }
  0x3c   :  { %1143 = vmatpush1.bf16.msra.mxu0 %v1831_v63  ;;  %1062 = vmatprep.subr.bf16.mxu1 %v1832_v0  ;;  %v1925_v63 = vld [vmem:[%s2688_s1 + $0x3d4] ss:$8 sps:$4 sm:$0xff]   ;;  %v1920_v0 = vld [vmem:[%s2688_s1 + $0x1d0] ss:$8 sps:$4 sm:$0xff]  }
  0x3d   :  { %1144 = vmatprep.subr.bf16.mxu0 %v1834_v1  ;;  %v1923_v1 = vld [vmem:[%s2688_s1 + $0x3d0] ss:$8 sps:$4 sm:$0xff]  }
  0x3f   :  { %1063 = vmatpush1.bf16.msra.mxu1 %v1836_v2  ;;  %v1928_v2 = vld [vmem:[%s2688_s1 + $0x1e4] ss:$8 sps:$4 sm:$0xff]  }
  0x40   :  { %1145 = vmatpush1.bf16.msra.mxu0 %v1837_v3  ;;  %1073 = vmatprep.subr.bf16.mxu1 %v1842_v4  ;;  %v1931_v3 = vld [vmem:[%s2688_s1 + $0x3e4] ss:$8 sps:$4 sm:$0xff]   ;;  %v1926_v4 = vld [vmem:[%s2688_s1 + $0x1e0] ss:$8 sps:$4 sm:$0xff]  }
  0x41   :  { %1155 = vmatprep.subr.bf16.mxu0 %v1847_v5  ;;  %v1929_v5 = vld [vmem:[%s2688_s1 + $0x3e0] ss:$8 sps:$4 sm:$0xff]  }
  0x42   :  { %1065 = vmatmul.mubr.bf16.vlgmr.msra.gmra.mrb[0].mxu1 %v1516_v6  ;;  %v1934_v6 = vld [vmem:[%s2688_s1 + $0x1f4] ss:$8 sps:$4 sm:$0xff]  }
  0x43   :  { %1147 = vmatmul.mubr.bf16.vlgmr.msra.gmra.mrb[0].mxu0 %v1520_v7  ;;  %1074 = vmatpush1.bf16.msra.mxu1 %v1840_v8  ;;  %v1937_v7 = vld [vmem:[%s2688_s1 + $0x3f4] ss:$8 sps:$4 sm:$0xff]   ;;  %v1932_v8 = vld [vmem:[%s2688_s1 + $0x1f0] ss:$8 sps:$4 sm:$0xff]  }
  0x44   :  { %1156 = vmatpush1.bf16.msra.mxu0 %v1845_v9  ;;  %1075 = vmatprep.subr.bf16.mxu1 %v1850_v10  ;;  %v1935_v9 = vld [vmem:[%s2688_s1 + $0x3f0] ss:$8 sps:$4 sm:$0xff]   ;;  %v1944_v10 = vld [vmem:[%s2688_s1 + $0x404] ss:$8 sps:$4 sm:$0xff]  }
  0x45   :  { %1157 = vmatprep.subr.bf16.mxu0 %v1853_v11  ;;  %1105 = vmatprep.mubr.bf16.mxu1 %v1519_v36  ;;  %v2480_v11 = vld [vmem:[%s2689_s0 + $0x20] sm:$0xff]  ;;  %v1977_v36 = vld [vmem:[%s2688_s1 + $0x4b4] ss:$8 sps:$4 sm:$0xff]  }
  0x46   :  { %1187 = vmatprep.mubr.bf16.mxu0 %v1523_v37  ;;  %v1975_v37 = vld [vmem:[%s2688_s1 + $0x4b0] ss:$8 sps:$4 sm:$0xff]  }
  0x47   :  { %1076 = vmatpush1.bf16.msra.mxu1 %v1848_v12  ;;  %v1518_v12 = vcombine.low %v2349_v32, %v2349_v32  ;;  %v1971_v32 = vld [vmem:[%s2688_s1 + $0x494] ss:$8 sps:$4 sm:$0xff]  }
  0x48   :  { %1158 = vmatpush1.bf16.msra.mxu0 %v1851_v13  ;;  %1077 = vmatprep.subr.bf16.mxu1 %v1856_v14  ;;  %v1522_v13 = vcombine.low %v2354_v33, %v2354_v33  ;;  %v1942_v14 = vld [vmem:[%s2688_s1 + $0x400] ss:$8 sps:$4 sm:$0xff]   ;;  %v1969_v33 = vld [vmem:[%s2688_s1 + $0x490] ss:$8 sps:$4 sm:$0xff]  }
  0x49   :  { %1159 = vmatprep.subr.bf16.mxu0 %v1859_v15  ;;  %v1525_v15 = vcombine.high %v2480_v11, %v2480_v11 }
  0x4b   :  { %1078 = vmatpush1.bf16.msra.mxu1 %v1854_v16  ;;  %v1947_v16 = vld [vmem:[%s2688_s1 + $0x414] ss:$8 sps:$4 sm:$0xff]  }
  0x4c   :  { %1160 = vmatpush1.bf16.msra.mxu0 %v1857_v17  ;;  %1079 = vmatprep.subr.bf16.mxu1 %v1862_v18  ;;  %v1945_v17 = vld [vmem:[%s2688_s1 + $0x410] ss:$8 sps:$4 sm:$0xff]   ;;  %v1950_v18 = vld [vmem:[%s2688_s1 + $0x424] ss:$8 sps:$4 sm:$0xff]  }
  0x4d   :  { %1161 = vmatprep.subr.bf16.mxu0 %v1865_v19  ;;  %v1948_v19 = vld [vmem:[%s2688_s1 + $0x420] ss:$8 sps:$4 sm:$0xff]  }
  0x4f   :  { %1080 = vmatpush1.bf16.msra.mxu1 %v1860_v20  ;;  %v1953_v20 = vld [vmem:[%s2688_s1 + $0x434] ss:$8 sps:$4 sm:$0xff]  }
  0x50   :  { %1162 = vmatpush1.bf16.msra.mxu0 %v1863_v21  ;;  %1081 = vmatprep.subr.bf16.mxu1 %v1868_v22  ;;  %v1951_v21 = vld [vmem:[%s2688_s1 + $0x430] ss:$8 sps:$4 sm:$0xff]   ;;  %v1956_v22 = vld [vmem:[%s2688_s1 + $0x444] ss:$8 sps:$4 sm:$0xff]  }
  0x51   :  { %1163 = vmatprep.subr.bf16.mxu0 %v1871_v23  ;;  %v1954_v23 = vld [vmem:[%s2688_s1 + $0x440] ss:$8 sps:$4 sm:$0xff]  }
  0x53   :  { %1082 = vmatpush1.bf16.msra.mxu1 %v1866_v24  ;;  %v1959_v24 = vld [vmem:[%s2688_s1 + $0x454] ss:$8 sps:$4 sm:$0xff]  }
  0x54   :  { %1164 = vmatpush1.bf16.msra.mxu0 %v1869_v25  ;;  %1083 = vmatprep.subr.bf16.mxu1 %v1874_v26  ;;  %v1957_v25 = vld [vmem:[%s2688_s1 + $0x450] ss:$8 sps:$4 sm:$0xff]   ;;  %v1962_v26 = vld [vmem:[%s2688_s1 + $0x464] ss:$8 sps:$4 sm:$0xff]  }
  0x55   :  { %1165 = vmatprep.subr.bf16.mxu0 %v1877_v27  ;;  %v1960_v27 = vld [vmem:[%s2688_s1 + $0x460] ss:$8 sps:$4 sm:$0xff]  }
  0x57   :  { %1084 = vmatpush1.bf16.msra.mxu1 %v1872_v28  ;;  %v1965_v28 = vld [vmem:[%s2688_s1 + $0x474] ss:$8 sps:$4 sm:$0xff]  }
  0x58   :  { %1166 = vmatpush1.bf16.msra.mxu0 %v1875_v29  ;;  %1085 = vmatprep.subr.bf16.mxu1 %v1880_v30  ;;  %v1963_v29 = vld [vmem:[%s2688_s1 + $0x470] ss:$8 sps:$4 sm:$0xff]   ;;  %v1968_v30 = vld [vmem:[%s2688_s1 + $0x484] ss:$8 sps:$4 sm:$0xff]  }
  0x59   :  { %1167 = vmatprep.subr.bf16.mxu0 %v1883_v31  ;;  %v1966_v31 = vld [vmem:[%s2688_s1 + $0x480] ss:$8 sps:$4 sm:$0xff]  }
  0x5b   :  { %1086 = vmatpush1.bf16.msra.mxu1 %v1878_v34  ;;  %v1974_v34 = vld [vmem:[%s2688_s1 + $0x4a4] ss:$8 sps:$4 sm:$0xff]  }
  0x5c   :  { %1168 = vmatpush1.bf16.msra.mxu0 %v1881_v35  ;;  %1087 = vmatprep.subr.bf16.mxu1 %v1886_v38  ;;  %v1972_v35 = vld [vmem:[%s2688_s1 + $0x4a0] ss:$8 sps:$4 sm:$0xff]   ;;  %v1980_v38 = vld [vmem:[%s2688_s1 + $0x4c4] ss:$8 sps:$4 sm:$0xff]  }
  0x5d   :  { %1169 = vmatprep.subr.bf16.mxu0 %v1889_v39  ;;  %v1978_v39 = vld [vmem:[%s2688_s1 + $0x4c0] ss:$8 sps:$4 sm:$0xff]  }
  0x5f   :  { %1088 = vmatpush1.bf16.msra.mxu1 %v1884_v40  ;;  %v1983_v40 = vld [vmem:[%s2688_s1 + $0x4d4] ss:$8 sps:$4 sm:$0xff]  }
  0x60   :  { %1170 = vmatpush1.bf16.msra.mxu0 %v1887_v41  ;;  %1089 = vmatprep.subr.bf16.mxu1 %v1892_v42  ;;  %v1981_v41 = vld [vmem:[%s2688_s1 + $0x4d0] ss:$8 sps:$4 sm:$0xff]   ;;  %v1986_v42 = vld [vmem:[%s2688_s1 + $0x4e4] ss:$8 sps:$4 sm:$0xff]  }
  0x61   :  { %1171 = vmatprep.subr.bf16.mxu0 %v1895_v43  ;;  %v1984_v43 = vld [vmem:[%s2688_s1 + $0x4e0] ss:$8 sps:$4 sm:$0xff]  }
  0x63   :  { %1090 = vmatpush1.bf16.msra.mxu1 %v1890_v44  ;;  %v1989_v44 = vld [vmem:[%s2688_s1 + $0x4f4] ss:$8 sps:$4 sm:$0xff]  }
  0x64   :  { %1172 = vmatpush1.bf16.msra.mxu0 %v1893_v45  ;;  %1091 = vmatprep.subr.bf16.mxu1 %v1898_v46  ;;  %v1987_v45 = vld [vmem:[%s2688_s1 + $0x4f0] ss:$8 sps:$4 sm:$0xff]   ;;  %v1524_v46 = vcombine.low %v2480_v11, %v2480_v11  ;;  %v2036_v11 = vld [vmem:[%s2690_s3 + $0xe4] ss:$8 sps:$4 sm:$0xff]  }
  0x65   :  { %1173 = vmatprep.subr.bf16.mxu0 %v1901_v47  ;;  %v1992_v47 = vld [vmem:[%s2690_s3] ss:$8 sps:$4 sm:$0xff]  }
  0x67   :  { %1092 = vmatpush1.bf16.msra.mxu1 %v1896_v48  ;;  %v1994_v48 = vld [vmem:[%s2690_s3 + $0x4] ss:$8 sps:$4 sm:$0xff]  }
  0x68   :  { %1174 = vmatpush1.bf16.msra.mxu0 %v1899_v49  ;;  %1093 = vmatprep.subr.bf16.mxu1 %v1904_v50  ;;  %v1997_v49 = vld [vmem:[%s2690_s3 + $0x14] ss:$8 sps:$4 sm:$0xff]   ;;  %v1995_v50 = vld [vmem:[%s2690_s3 + $0x10] ss:$8 sps:$4 sm:$0xff]  }
  0x69   :  { %1175 = vmatprep.subr.bf16.mxu0 %v1907_v51  ;;  %v2000_v51 = vld [vmem:[%s2690_s3 + $0x24] ss:$8 sps:$4 sm:$0xff]  }
  0x6b   :  { %1094 = vmatpush1.bf16.msra.mxu1 %v1902_v52  ;;  %v1998_v52 = vld [vmem:[%s2690_s3 + $0x20] ss:$8 sps:$4 sm:$0xff]  }
  0x6c   :  { %1176 = vmatpush1.bf16.msra.mxu0 %v1905_v53  ;;  %1095 = vmatprep.subr.bf16.mxu1 %v1910_v54  ;;  %v2003_v53 = vld [vmem:[%s2690_s3 + $0x34] ss:$8 sps:$4 sm:$0xff]   ;;  %v2001_v54 = vld [vmem:[%s2690_s3 + $0x30] ss:$8 sps:$4 sm:$0xff]  }
  0x6d   :  { %1177 = vmatprep.subr.bf16.mxu0 %v1913_v55  ;;  %v2006_v55 = vld [vmem:[%s2690_s3 + $0x44] ss:$8 sps:$4 sm:$0xff]  }
  0x6f   :  { %1096 = vmatpush1.bf16.msra.mxu1 %v1908_v56  ;;  %v2004_v56 = vld [vmem:[%s2690_s3 + $0x40] ss:$8 sps:$4 sm:$0xff]  }
  0x70   :  { %1178 = vmatpush1.bf16.msra.mxu0 %v1911_v57  ;;  %1097 = vmatprep.subr.bf16.mxu1 %v1916_v58  ;;  %v2009_v57 = vld [vmem:[%s2690_s3 + $0x54] ss:$8 sps:$4 sm:$0xff]   ;;  %v2007_v58 = vld [vmem:[%s2690_s3 + $0x50] ss:$8 sps:$4 sm:$0xff]  }
  0x71   :  { %1179 = vmatprep.subr.bf16.mxu0 %v1919_v59  ;;  %v2012_v59 = vld [vmem:[%s2690_s3 + $0x64] ss:$8 sps:$4 sm:$0xff]  }
  0x73   :  { %1098 = vmatpush1.bf16.msra.mxu1 %v1914_v60  ;;  %v2010_v60 = vld [vmem:[%s2690_s3 + $0x60] ss:$8 sps:$4 sm:$0xff]  }
  0x74   :  { %1180 = vmatpush1.bf16.msra.mxu0 %v1917_v61  ;;  %1099 = vmatprep.subr.bf16.mxu1 %v1922_v62  ;;  %v2015_v61 = vld [vmem:[%s2690_s3 + $0x74] ss:$8 sps:$4 sm:$0xff]   ;;  %v2013_v62 = vld [vmem:[%s2690_s3 + $0x70] ss:$8 sps:$4 sm:$0xff]  }
  0x75   :  { %1181 = vmatprep.subr.bf16.mxu0 %v1925_v63  ;;  %v2018_v63 = vld [vmem:[%s2690_s3 + $0x84] ss:$8 sps:$4 sm:$0xff]  }
  0x77   :  { %1100 = vmatpush1.bf16.msra.mxu1 %v1920_v0  ;;  %v2016_v0 = vld [vmem:[%s2690_s3 + $0x80] ss:$8 sps:$4 sm:$0xff]  }
  0x78   :  { %1182 = vmatpush1.bf16.msra.mxu0 %v1923_v1  ;;  %1101 = vmatprep.subr.bf16.mxu1 %v1928_v2  ;;  %v2021_v1 = vld [vmem:[%s2690_s3 + $0x94] ss:$8 sps:$4 sm:$0xff]   ;;  %v2019_v2 = vld [vmem:[%s2690_s3 + $0x90] ss:$8 sps:$4 sm:$0xff]  }
  0x79   :  { %1183 = vmatprep.subr.bf16.mxu0 %v1931_v3  ;;  %v2024_v3 = vld [vmem:[%s2690_s3 + $0xa4] ss:$8 sps:$4 sm:$0xff]  }
  0x7b   :  { %1102 = vmatpush1.bf16.msra.mxu1 %v1926_v4  ;;  %v2022_v4 = vld [vmem:[%s2690_s3 + $0xa0] ss:$8 sps:$4 sm:$0xff]  }
  0x7c   :  { %1184 = vmatpush1.bf16.msra.mxu0 %v1929_v5  ;;  %1103 = vmatprep.subr.bf16.mxu1 %v1934_v6  ;;  %v2027_v5 = vld [vmem:[%s2690_s3 + $0xb4] ss:$8 sps:$4 sm:$0xff]   ;;  %v2025_v6 = vld [vmem:[%s2690_s3 + $0xb0] ss:$8 sps:$4 sm:$0xff]  }
  0x7d   :  { %1185 = vmatprep.subr.bf16.mxu0 %v1937_v7  ;;  %v2030_v7 = vld [vmem:[%s2690_s3 + $0xc4] ss:$8 sps:$4 sm:$0xff]  }
  0x7f   :  { %1104 = vmatpush1.bf16.msra.mxu1 %v1932_v8  ;;  %v2028_v8 = vld [vmem:[%s2690_s3 + $0xc0] ss:$8 sps:$4 sm:$0xff]  }
  0x80   :  { %1186 = vmatpush1.bf16.msra.mxu0 %v1935_v9  ;;  %1460 = vmatprep.subr.bf16.mxu1 %v1994_v48  ;;  %v2033_v9 = vld [vmem:[%s2690_s3 + $0xd4] ss:$8 sps:$4 sm:$0xff]  }
  0x81   :  { %1196 = vmatprep.subr.bf16.mxu0 %v1944_v10  ;;  %v2031_v10 = vld [vmem:[%s2690_s3 + $0xd0] ss:$8 sps:$4 sm:$0xff]  }
  0x82   :  { %1106 = vmatmul.mubr.bf16.vlgmr.msra.gmra.mrb[0].mxu1 %v1518_v12  ;;  %v2034_v12 = vld [vmem:[%s2690_s3 + $0xe0] ss:$8 sps:$4 sm:$0xff]  }
  0x83   :  { %1188 = vmatmul.mubr.bf16.vlgmr.msra.gmra.mrb[0].mxu0 %v1522_v13  ;;  %1461 = vmatpush1.bf16.msra.mxu1 %v1992_v47  ;;  %v2039_v13 = vld [vmem:[%s2690_s3 + $0xf4] ss:$8 sps:$4 sm:$0xff]  }
  0x84   :  { %1197 = vmatpush1.bf16.msra.mxu0 %v1942_v14  ;;  %1228 = vmatprep.mubr.bf16.mxu0 %v1525_v15  ;;  %v2037_v14 = vld [vmem:[%s2690_s3 + $0xf0] ss:$8 sps:$4 sm:$0xff]  }
  0x85   :  { %1198 = vmatprep.subr.bf16.mxu0 %v1947_v16  ;;  %1462 = vmatprep.subr.bf16.mxu1 %v1997_v49 }
  0x87   :  { %1463 = vmatpush1.bf16.msra.mxu1 %v1995_v50 }
  0x88   :  { %1199 = vmatpush1.bf16.msra.mxu0 %v1945_v17  ;;  %1464 = vmatprep.subr.bf16.mxu1 %v2000_v51 }
  0x89   :  { %1200 = vmatprep.subr.bf16.mxu0 %v1950_v18 }
  0x8b   :  { %1465 = vmatpush1.bf16.msra.mxu1 %v1998_v52 }
  0x8c   :  { %1201 = vmatpush1.bf16.msra.mxu0 %v1948_v19  ;;  %1466 = vmatprep.subr.bf16.mxu1 %v2003_v53  ;;  %v187_v19 = vlaneseq }
  0x8d   :  { %1202 = vmatprep.subr.bf16.mxu0 %v1953_v20 }
  0x8e   :  { %v188_v20 = vshrl.u32 %v187_v19, 7 }
  0x8f   :  { %1467 = vmatpush1.bf16.msra.mxu1 %v2001_v54 }
  0x90   :  { %1203 = vmatpush1.bf16.msra.mxu0 %v1951_v21  ;;  %1468 = vmatprep.subr.bf16.mxu1 %v2006_v55  ;;  %v189_v21 = vsub.s32 0, %v188_v20 }
  0x91   :  { %1204 = vmatprep.subr.bf16.mxu0 %v1956_v22  ;;  %v185_v22 = vld [vmem:[%s2691_s2] sm:$0x3] }
  0x93   :  { %1469 = vmatpush1.bf16.msra.mxu1 %v2004_v56 }
  0x94   :  { %1205 = vmatpush1.bf16.msra.mxu0 %v1954_v23  ;;  %1470 = vmatprep.subr.bf16.mxu1 %v2009_v57  ;;  %v193_v23 = vsub.s32 1, %v188_v20 }
  0x95   :  { %1206 = vmatprep.subr.bf16.mxu0 %v1959_v24  ;;  %v190_v24 = vrot.slane %v185_v22, %v189_v21 }
  0x97   :  { %1471 = vmatpush1.bf16.msra.mxu1 %v2007_v58 }
  0x98   :  { %1207 = vmatpush1.bf16.msra.mxu0 %v1957_v25  ;;  %1472 = vmatprep.subr.bf16.mxu1 %v2012_v59  ;;  %v194_v25 = vrot.slane %v185_v22, %v193_v23 }
  0x99   :  { %1208 = vmatprep.subr.bf16.mxu0 %v1962_v26 }
  0x9b   :  { %1473 = vmatpush1.bf16.msra.mxu1 %v2010_v60 }
  0x9c   :  { %1209 = vmatpush1.bf16.msra.mxu0 %v1960_v27  ;;  %1474 = vmatprep.subr.bf16.mxu1 %v2015_v61 }
  0x9d   :  { %1210 = vmatprep.subr.bf16.mxu0 %v1965_v28 }
  0x9f   :  { %1475 = vmatpush1.bf16.msra.mxu1 %v2013_v62 }
  0xa0   :  { %1211 = vmatpush1.bf16.msra.mxu0 %v1963_v29  ;;  %1476 = vmatprep.subr.bf16.mxu1 %v2018_v63 }
  0xa1   :  { %1212 = vmatprep.subr.bf16.mxu0 %v1968_v30 }
  0xa3   :  { %1477 = vmatpush1.bf16.msra.mxu1 %v2016_v0 }
  0xa4   :  { %1213 = vmatpush1.bf16.msra.mxu0 %v1966_v31  ;;  %1478 = vmatprep.subr.bf16.mxu1 %v2021_v1 }
  0xa5   :  { %1214 = vmatprep.subr.bf16.mxu0 %v1971_v32 }
  0xa7   :  { %1479 = vmatpush1.bf16.msra.mxu1 %v2019_v2 }
  0xa8   :  { %1215 = vmatpush1.bf16.msra.mxu0 %v1969_v33  ;;  %1480 = vmatprep.subr.bf16.mxu1 %v2024_v3 }
  0xa9   :  { %1216 = vmatprep.subr.bf16.mxu0 %v1974_v34 }
  0xab   :  { %1481 = vmatpush1.bf16.msra.mxu1 %v2022_v4 }
  0xac   :  { %1217 = vmatpush1.bf16.msra.mxu0 %v1972_v35  ;;  %1482 = vmatprep.subr.bf16.mxu1 %v2027_v5 }
  0xad   :  { %1218 = vmatprep.subr.bf16.mxu0 %v1977_v36 }
  0xaf   :  { %1483 = vmatpush1.bf16.msra.mxu1 %v2025_v6 }
  0xb0   :  { %1219 = vmatpush1.bf16.msra.mxu0 %v1975_v37  ;;  %1484 = vmatprep.subr.bf16.mxu1 %v2030_v7 }
  0xb1   :  { %1220 = vmatprep.subr.bf16.mxu0 %v1980_v38  ;;  %v1281_v38 = vld [vmem:[%s2692_s4] sm:$0x3] }
  0xb3   :  { %1485 = vmatpush1.bf16.msra.mxu1 %v2028_v8 }
  0xb4   :  { %1221 = vmatpush1.bf16.msra.mxu0 %v1978_v39  ;;  %1486 = vmatprep.subr.bf16.mxu1 %v2033_v9  ;;  %v1286_v39 = vrot.slane %v1281_v38, %v189_v21 }
  0xb5   :  { %1222 = vmatprep.subr.bf16.mxu0 %v1983_v40  ;;  %v1290_v40 = vrot.slane %v1281_v38, %v193_v23 }
  0xb7   :  { %1487 = vmatpush1.bf16.msra.mxu1 %v2031_v10 }
  0xb8   :  { %1223 = vmatpush1.bf16.msra.mxu0 %v1981_v41  ;;  %1488 = vmatprep.subr.bf16.mxu1 %v2036_v11 }
  0xb9   :  { %1224 = vmatprep.subr.bf16.mxu0 %v1986_v42 }
  0xbb   :  { %1489 = vmatpush1.bf16.msra.mxu1 %v2034_v12 }
  0xbc   :  { %1225 = vmatpush1.bf16.msra.mxu0 %v1984_v43  ;;  %1490 = vmatprep.subr.bf16.mxu1 %v2039_v13 }
  0xbd   :  { %1226 = vmatprep.subr.bf16.mxu0 %v1989_v44 }
  0xbf   :  { %1491 = vmatpush1.bf16.msra.mxu1 %v2037_v14 }
  0xc0   :  { %1227 = vmatpush1.bf16.msra.mxu0 %v1987_v45 }
  0xc3   :  { %1229 = vmatmul.mubr.bf16.vlgmr.msra.gmra.mrb[0].mxu0 %v1524_v46 }
 0x155   :  { %v1107_v15 = vpop.f32.mrb[0].mxu1 }
 0x156   :  { %v1109_v16 = vpop.f32.mrb[1].mxu1  ;;  %v1726_v26 = vadd.f32 %v1107_v15, %v190_v24 }
 0x157   :  { %v1111_v17 = vpop.f32.mrb[2].mxu1  ;;  %v1728_v27 = vadd.f32 %v1109_v16, %v194_v25 }
 0x158   :  { %v1112_v18 = vpop.f32.mrb[3].mxu1 }
 0x196   :  { %v1230_v28 = vpop.f32.mrb[0].mxu0 }
 0x197   :  { %v1727_v29 = vadd.f32 %v1726_v26, %v1230_v28  ;;  %v1232_v30 = vpop.f32.mrb[1].mxu0 }
 0x198   :  { %v1729_v31 = vadd.f32 %v1728_v27, %v1232_v30  ;;  %v1234_v32 = vpop.f32.mrb[2].mxu0 }
 0x199   :  { %v1237_v33 = vmax.f32 %v1727_v29, 0.0  ;;  %v1235_v34 = vpop.f32.mrb[3].mxu0 }
 0x19a   :  { %v1238_v35 = vmax.f32 %v1729_v31, 0.0 }
 0x19b   :  { %v1724_v37 = vpack.c.bf16 %v1237_v33, %v1237_v33 }
 0x19c   :  { %v1725_v36 = vpack.c.bf16 %v1238_v35, %v1238_v35 }
 0x19e   :  { %1492 = vmatprep.mubr.bf16.mxu1 %v1725_v36 }
 0x19f   :  { %1493 = vmatmul.mubr.bf16.vlgmr.msra.gmra.mrb[4].mxu1 %v1724_v37 }
 0x272   :  { %v1494_v41 = vpop.f32.mrb[4].mxu1 }
 0x273   :  { %v1495_v42 = vadd.f32 %v1494_v41, %v1286_v39  ;;  %v1496_v43 = vpop.f32.mrb[5].mxu1 }
 0x274   :  { %v1497_v44 = vadd.f32 %v1496_v43, %v1290_v40  ;;  %v1498_v45 = vpop.f32.mrb[6].mxu1 }
 0x275   :  { %v1501_v46 = vmax.f32 %v1495_v42, 0.0  ;;  %v1499_v47 = vpop.f32.mrb[7].mxu1 }
 0x276   :  { %v1502_v48 = vmax.f32 %v1497_v44, 0.0 }
 0x278   :  { %v1723_v49 = vpack.c.bf16 %v1502_v48, %v1501_v46 }
 0x27a   :  { %1511 = vst [vmem:[%s2693_s5] sm:$0xff] %v1723_v49 }

// kernel: neg.19
= control target key start
LH: loop header
LB: loop body
LE: loop exit
PB: predicated region body
PF: predicated region fallthrough
CT: control target
= control target key end

     0   :  { %s40_s0 = inlined_call_operand.vmem [shape: f32[32,13], index: 0, kind: input, shape index: {}]   ;;  %s41_s1 = inlined_call_operand.vmem [shape: f32[32,13], index: 1, kind: output, shape index: {}]  }
   0x1   :  { %v2_v0 = vld [vmem:[%s40_s0] sm:$0xff]  ;;  %v16_v1 = vld [vmem:[%s40_s0 + $0x8] sm:$0xff] }
   0x2   :  { %v5_v2 = vxor.u32 2147483648, %v2_v0  ;;  %v12_v3 = vxor.u32 2147483648, %v16_v1 }
   0x4   :  { %7 = vst [vmem:[%s41_s1] sm:$0xff] %v5_v2  ;;  %17 = vst [vmem:[%s41_s1 + $0x8] sm:$0xff] %v12_v3 }

// kernel: pointnet_forward.20
= control target key start
LH: loop header
LB: loop body
LE: loop exit
PB: predicated region body
PF: predicated region fallthrough
CT: control target
= control target key end

     0   :  { %vm2183_vm1 = vcmask 1040384   ;;  %vm2184_vm2 = vsmask.f32 256  ;;  %vm2186_vm3 = vcmask 1041409   ;;  %vm2187_vm4 = vsmask.f32 1280  ;;  %s3478_s1 = inlined_call_operand.vmem [shape: bf16[512,1024], index: 1, kind: input, shape index: {}]   ;;  %s3479_s0 = inlined_call_operand.vmem [shape: bf16[8,512], index: 0, kind: input, shape index: {}]   ;;  %s3480_s2 = inlined_call_operand.vmem [shape: f32[1,1024], index: 2, kind: input, shape index: {}]   ;;  %s3481_s3 = inlined_call_operand.vmem [shape: bf16[1,1024], index: 3, kind: output, shape index: {}]  }
   0x1   :  { %v16_v0 = vld [vmem:[%s3478_s1] sm:$0xff]  ;;  %v17_v2 = vld [vmem:[%s3478_s1 + $0x8] sm:$0xff]  ;;  %vm3412_vm5 = vmand %vm2183_vm1, %vm2184_vm2  ;;  %vm2190_vm7 = vcmask 1042434   ;;  %vm2191_vm8 = vsmask.f32 2304  ;;  %vm2194_vm11 = vcmask 1043459  }
   0x2   :  { %v20_v1 = vld [vmem:[%s3478_s1 + $0x20] sm:$0xff]  ;;  %v21_v4 = vld [vmem:[%s3478_s1 + $0x28] sm:$0xff]  ;;  %vm3416_vm6 = vmand %vm2186_vm3, %vm2187_vm4  ;;  %vm2195_vm12 = vsmask.f32 3328  ;;  %vm2198_vm15 = vcmask 1044484   ;;  %vm2202_vm3 = vcmask 1045509  }
   0x3   :  { %v2226_v3 = vcombine.high %v16_v0, %v20_v1  ;;  %v2225_v5 = vcombine.low %v16_v0, %v20_v1  ;;  %v24_v6 = vld [vmem:[%s3478_s1 + $0x40] sm:$0xff]  ;;  %v2228_v8 = vcombine.high %v17_v2, %v21_v4  ;;  %v2227_v9 = vcombine.low %v17_v2, %v21_v4  ;;  %v25_v11 = vld [vmem:[%s3478_s1 + $0x48] sm:$0xff]  ;;  %vm2189_vm9 = vmor %vm3416_vm6, %vm3412_vm5 }
   0x4   :  { %v28_v7 = vld [vmem:[%s3478_s1 + $0x60] sm:$0xff]  ;;  %v29_v12 = vld [vmem:[%s3478_s1 + $0x68] sm:$0xff]  ;;  %vm2192_vm10 = vmand %vm2190_vm7, %vm2191_vm8  ;;  %vm2203_vm4 = vsmask.f32 5376  ;;  %vm2206_vm7 = vcmask 1046534  }
   0x5   :  { %v2234_v10 = vcombine.high %v24_v6, %v28_v7  ;;  %v32_v13 = vld [vmem:[%s3478_s1 + $0x80] sm:$0xff]  ;;  %1608 = vmatprep.subr.bf16.mxu0 %v2226_v3  ;;  %v2236_v14 = vcombine.high %v25_v11, %v29_v12  ;;  %v33_v16 = vld [vmem:[%s3478_s1 + $0x88] sm:$0xff]  ;;  %1690 = vmatprep.subr.bf16.mxu1 %v2228_v8  ;;  %v2233_v18 = vcombine.low %v24_v6, %v28_v7  ;;  %vm3424_vm13 = vmor %vm2192_vm10, %vm2189_vm9  ;;  %vm2207_vm8 = vsmask.f32 6400 }
   0x6   :  { %v36_v15 = vld [vmem:[%s3478_s1 + $0xa0] sm:$0xff]  ;;  %v37_v17 = vld [vmem:[%s3478_s1 + $0xa8] sm:$0xff]  ;;  %1609 = vmatpush1.bf16.msra.mxu0 %v2225_v5  ;;  %1691 = vmatpush1.bf16.msra.mxu1 %v2227_v9  ;;  %v2235_v19 = vcombine.low %v25_v11, %v29_v12  ;;  %vm2196_vm14 = vmand %vm2194_vm11, %vm2195_vm12  ;;  %vm2210_vm11 = vcmask 1047559   ;;  %vm2211_vm12 = vsmask.f32 7424 }
   0x7   :  { %1610 = vmatprep.subr.bf16.mxu0 %v2234_v10  ;;  %v2242_v20 = vcombine.high %v32_v13, %v36_v15  ;;  %1692 = vmatprep.subr.bf16.mxu1 %v2236_v14  ;;  %v2244_v21 = vcombine.high %v33_v16, %v37_v17  ;;  %v40_v22 = vld [vmem:[%s3478_s1 + $0xc0] sm:$0xff]  ;;  %v41_v24 = vld [vmem:[%s3478_s1 + $0xc8] sm:$0xff]  ;;  %v2241_v26 = vcombine.low %v32_v13, %v36_v15  ;;  %vm2197_vm1 = vmor %vm2196_vm14, %vm3424_vm13 }
   0x8   :  { %v44_v23 = vld [vmem:[%s3478_s1 + $0xe0] sm:$0xff]  ;;  %v45_v25 = vld [vmem:[%s3478_s1 + $0xe8] sm:$0xff]  ;;  %v2243_v27 = vcombine.low %v33_v16, %v37_v17  ;;  %vm3441_vm6 = vmand %vm2202_vm3, %vm2203_vm4 }
   0x9   :  { %v2250_v28 = vcombine.high %v40_v22, %v44_v23  ;;  %v2252_v29 = vcombine.high %v41_v24, %v45_v25  ;;  %v48_v30 = vld [vmem:[%s3478_s1 + $0x100] sm:$0xff]  ;;  %v49_v32 = vld [vmem:[%s3478_s1 + $0x108] sm:$0xff]  ;;  %v2249_v34 = vcombine.low %v40_v22, %v44_v23  ;;  %v2251_v35 = vcombine.low %v41_v24, %v45_v25  ;;  %vm2208_vm10 = vmand %vm2206_vm7, %vm2207_vm8 }
   0xa   :  { %1611 = vmatpush1.bf16.msra.mxu0 %v2233_v18  ;;  %1693 = vmatpush1.bf16.msra.mxu1 %v2235_v19  ;;  %v52_v31 = vld [vmem:[%s3478_s1 + $0x120] sm:$0xff]  ;;  %v53_v33 = vld [vmem:[%s3478_s1 + $0x128] sm:$0xff]  ;;  %vm2212_vm14 = vmand %vm2210_vm11, %vm2211_vm12 }
   0xb   :  { %1612 = vmatprep.subr.bf16.mxu0 %v2242_v20  ;;  %1694 = vmatprep.subr.bf16.mxu1 %v2244_v21  ;;  %v2258_v36 = vcombine.high %v48_v30, %v52_v31  ;;  %v2260_v37 = vcombine.high %v49_v32, %v53_v33  ;;  %v56_v38 = vld [vmem:[%s3478_s1 + $0x140] sm:$0xff]  ;;  %v57_v40 = vld [vmem:[%s3478_s1 + $0x148] sm:$0xff]  ;;  %v2257_v42 = vcombine.low %v48_v30, %v52_v31 }
   0xc   :  { %v60_v39 = vld [vmem:[%s3478_s1 + $0x160] sm:$0xff]  ;;  %v61_v41 = vld [vmem:[%s3478_s1 + $0x168] sm:$0xff]  ;;  %v2259_v43 = vcombine.low %v49_v32, %v53_v33 }
   0xd   :  { %v2266_v44 = vcombine.high %v56_v38, %v60_v39  ;;  %v2268_v45 = vcombine.high %v57_v40, %v61_v41  ;;  %v64_v46 = vld [vmem:[%s3478_s1 + $0x180] sm:$0xff]  ;;  %v65_v48 = vld [vmem:[%s3478_s1 + $0x188] sm:$0xff]  ;;  %v2265_v50 = vcombine.low %v56_v38, %v60_v39  ;;  %v2267_v51 = vcombine.low %v57_v40, %v61_v41 }
   0xe   :  { %1613 = vmatpush1.bf16.msra.mxu0 %v2241_v26  ;;  %1695 = vmatpush1.bf16.msra.mxu1 %v2243_v27  ;;  %v68_v47 = vld [vmem:[%s3478_s1 + $0x1a0] sm:$0xff]  ;;  %v69_v49 = vld [vmem:[%s3478_s1 + $0x1a8] sm:$0xff] }
   0xf   :  { %1614 = vmatprep.subr.bf16.mxu0 %v2250_v28  ;;  %1696 = vmatprep.subr.bf16.mxu1 %v2252_v29  ;;  %v2274_v52 = vcombine.high %v64_v46, %v68_v47  ;;  %v2622_v53 = vld [vmem:[%s3479_s0] sm:$0xff]  ;;  %v2276_v54 = vcombine.high %v65_v48, %v69_v49  ;;  %v73_v58 = vld [vmem:[%s3478_s1 + $0x1c8] sm:$0xff]  ;;  %v2273_v60 = vcombine.low %v64_v46, %v68_v47 }
  0x10   :  { %v72_v55 = vld [vmem:[%s3478_s1 + $0x1c0] sm:$0xff]  ;;  %v2632_v57 = vcombine.high %v2622_v53, %v2622_v53  ;;  %v77_v59 = vld [vmem:[%s3478_s1 + $0x1e8] sm:$0xff]  ;;  %v2275_v61 = vcombine.low %v65_v48, %v69_v49 }
  0x11   :  { %v76_v56 = vld [vmem:[%s3478_s1 + $0x1e0] sm:$0xff]  ;;  %v2284_v63 = vcombine.high %v73_v58, %v77_v59  ;;  %v81_v2 = vld [vmem:[%s3478_s1 + $0x208] sm:$0xff]  ;;  %v2283_v5 = vcombine.low %v73_v58, %v77_v59 }
  0x12   :  { %1615 = vmatpush1.bf16.msra.mxu0 %v2249_v34  ;;  %1697 = vmatpush1.bf16.msra.mxu1 %v2251_v35  ;;  %v2282_v62 = vcombine.high %v72_v55, %v76_v56  ;;  %v80_v0 = vld [vmem:[%s3478_s1 + $0x200] sm:$0xff]  ;;  %v85_v3 = vld [vmem:[%s3478_s1 + $0x228] sm:$0xff]  ;;  %v2281_v4 = vcombine.low %v72_v55, %v76_v56 }
  0x13   :  { %1616 = vmatprep.subr.bf16.mxu0 %v2258_v36  ;;  %1698 = vmatprep.subr.bf16.mxu1 %v2260_v37  ;;  %v84_v1 = vld [vmem:[%s3478_s1 + $0x220] sm:$0xff]  ;;  %v2292_v7 = vcombine.high %v81_v2, %v85_v3  ;;  %v89_v10 = vld [vmem:[%s3478_s1 + $0x248] sm:$0xff]  ;;  %v2291_v13 = vcombine.low %v81_v2, %v85_v3 }
  0x14   :  { %1640 = vmatprep.mubr.bf16.mxu0 %v2632_v57  ;;  %1722 = vmatprep.mubr.bf16.mxu1 %v2632_v57  ;;  %v2290_v6 = vcombine.high %v80_v0, %v84_v1  ;;  %v88_v8 = vld [vmem:[%s3478_s1 + $0x240] sm:$0xff]  ;;  %v93_v11 = vld [vmem:[%s3478_s1 + $0x268] sm:$0xff]  ;;  %v2289_v12 = vcombine.low %v80_v0, %v84_v1 }
  0x15   :  { %v92_v9 = vld [vmem:[%s3478_s1 + $0x260] sm:$0xff]  ;;  %v2300_v15 = vcombine.high %v89_v10, %v93_v11  ;;  %v97_v18 = vld [vmem:[%s3478_s1 + $0x288] sm:$0xff]  ;;  %v2299_v21 = vcombine.low %v89_v10, %v93_v11 }
  0x16   :  { %1617 = vmatpush1.bf16.msra.mxu0 %v2257_v42  ;;  %1699 = vmatpush1.bf16.msra.mxu1 %v2259_v43  ;;  %v2298_v14 = vcombine.high %v88_v8, %v92_v9  ;;  %v96_v16 = vld [vmem:[%s3478_s1 + $0x280] sm:$0xff]  ;;  %v101_v19 = vld [vmem:[%s3478_s1 + $0x2a8] sm:$0xff]  ;;  %v2297_v20 = vcombine.low %v88_v8, %v92_v9 }
  0x17   :  { %1618 = vmatprep.subr.bf16.mxu0 %v2266_v44  ;;  %1700 = vmatprep.subr.bf16.mxu1 %v2268_v45  ;;  %v100_v17 = vld [vmem:[%s3478_s1 + $0x2a0] sm:$0xff]  ;;  %v2308_v23 = vcombine.high %v97_v18, %v101_v19  ;;  %v105_v26 = vld [vmem:[%s3478_s1 + $0x2c8] sm:$0xff]  ;;  %v2307_v29 = vcombine.low %v97_v18, %v101_v19 }
  0x18   :  { %v2306_v22 = vcombine.high %v96_v16, %v100_v17  ;;  %v104_v24 = vld [vmem:[%s3478_s1 + $0x2c0] sm:$0xff]  ;;  %v109_v27 = vld [vmem:[%s3478_s1 + $0x2e8] sm:$0xff]  ;;  %v2305_v28 = vcombine.low %v96_v16, %v100_v17 }
  0x19   :  { %v108_v25 = vld [vmem:[%s3478_s1 + $0x2e0] sm:$0xff]  ;;  %v2316_v31 = vcombine.high %v105_v26, %v109_v27  ;;  %v113_v34 = vld [vmem:[%s3478_s1 + $0x308] sm:$0xff]  ;;  %v2315_v37 = vcombine.low %v105_v26, %v109_v27 }
  0x1a   :  { %1619 = vmatpush1.bf16.msra.mxu0 %v2265_v50  ;;  %1701 = vmatpush1.bf16.msra.mxu1 %v2267_v51  ;;  %v2314_v30 = vcombine.high %v104_v24, %v108_v25  ;;  %v112_v32 = vld [vmem:[%s3478_s1 + $0x300] sm:$0xff]  ;;  %v117_v35 = vld [vmem:[%s3478_s1 + $0x328] sm:$0xff]  ;;  %v2313_v36 = vcombine.low %v104_v24, %v108_v25 }
  0x1b   :  { %1620 = vmatprep.subr.bf16.mxu0 %v2274_v52  ;;  %1702 = vmatprep.subr.bf16.mxu1 %v2276_v54  ;;  %v116_v33 = vld [vmem:[%s3478_s1 + $0x320] sm:$0xff]  ;;  %v2324_v39 = vcombine.high %v113_v34, %v117_v35  ;;  %v121_v42 = vld [vmem:[%s3478_s1 + $0x348] sm:$0xff]  ;;  %v2323_v45 = vcombine.low %v113_v34, %v117_v35 }
  0x1c   :  { %v2322_v38 = vcombine.high %v112_v32, %v116_v33  ;;  %v120_v40 = vld [vmem:[%s3478_s1 + $0x340] sm:$0xff]  ;;  %v125_v43 = vld [vmem:[%s3478_s1 + $0x368] sm:$0xff]  ;;  %v2321_v44 = vcombine.low %v112_v32, %v116_v33 }
  0x1d   :  { %v124_v41 = vld [vmem:[%s3478_s1 + $0x360] sm:$0xff]  ;;  %v2332_v47 = vcombine.high %v121_v42, %v125_v43  ;;  %v129_v50 = vld [vmem:[%s3478_s1 + $0x388] sm:$0xff]  ;;  %v2331_v54 = vcombine.low %v121_v42, %v125_v43 }
  0x1e   :  { %1621 = vmatpush1.bf16.msra.mxu0 %v2273_v60  ;;  %1703 = vmatpush1.bf16.msra.mxu1 %v2275_v61  ;;  %v2330_v46 = vcombine.high %v120_v40, %v124_v41  ;;  %v128_v48 = vld [vmem:[%s3478_s1 + $0x380] sm:$0xff]  ;;  %v133_v51 = vld [vmem:[%s3478_s1 + $0x3a8] sm:$0xff]  ;;  %v2329_v52 = vcombine.low %v120_v40, %v124_v41 }
  0x1f   :  { %1622 = vmatprep.subr.bf16.mxu0 %v2282_v62  ;;  %1704 = vmatprep.subr.bf16.mxu1 %v2284_v63  ;;  %v132_v49 = vld [vmem:[%s3478_s1 + $0x3a0] sm:$0xff]  ;;  %v2340_v56 = vcombine.high %v129_v50, %v133_v51  ;;  %v137_v60 = vld [vmem:[%s3478_s1 + $0x3c8] sm:$0xff]  ;;  %v2339_v63 = vcombine.low %v129_v50, %v133_v51 }
  0x20   :  { %v2338_v55 = vcombine.high %v128_v48, %v132_v49  ;;  %v136_v58 = vld [vmem:[%s3478_s1 + $0x3c0] sm:$0xff]  ;;  %v141_v61 = vld [vmem:[%s3478_s1 + $0x3e8] sm:$0xff]  ;;  %v2337_v62 = vcombine.low %v128_v48, %v132_v49 }
  0x21   :  { %v140_v59 = vld [vmem:[%s3478_s1 + $0x3e0] sm:$0xff]  ;;  %v2348_v1 = vcombine.high %v137_v60, %v141_v61 }
  0x22   :  { %1623 = vmatpush1.bf16.msra.mxu0 %v2281_v4  ;;  %1705 = vmatpush1.bf16.msra.mxu1 %v2283_v5  ;;  %v2346_v0 = vcombine.high %v136_v58, %v140_v59  ;;  %v144_v2 = vld [vmem:[%s3478_s1 + $0x400] sm:$0xff]  ;;  %v145_v4 = vld [vmem:[%s3478_s1 + $0x408] sm:$0xff] }
  0x23   :  { %1624 = vmatprep.subr.bf16.mxu0 %v2290_v6  ;;  %1706 = vmatprep.subr.bf16.mxu1 %v2292_v7  ;;  %v148_v3 = vld [vmem:[%s3478_s1 + $0x420] sm:$0xff]  ;;  %v149_v5 = vld [vmem:[%s3478_s1 + $0x428] sm:$0xff]  ;;  %v2345_v6 = vcombine.low %v136_v58, %v140_v59  ;;  %v2347_v7 = vcombine.low %v137_v60, %v141_v61 }
  0x24   :  { %v2354_v8 = vcombine.high %v144_v2, %v148_v3  ;;  %v2356_v9 = vcombine.high %v145_v4, %v149_v5  ;;  %v152_v10 = vld [vmem:[%s3478_s1 + $0x440] sm:$0xff]  ;;  %v2353_v16 = vcombine.low %v144_v2, %v148_v3  ;;  %v2355_v17 = vcombine.low %v145_v4, %v149_v5 }
  0x25   :  { %v156_v11 = vld [vmem:[%s3478_s1 + $0x460] sm:$0xff] }
  0x26   :  { %1625 = vmatpush1.bf16.msra.mxu0 %v2289_v12  ;;  %1707 = vmatpush1.bf16.msra.mxu1 %v2291_v13  ;;  %v2758_v12 = vcombine.low %v2622_v53, %v2622_v53  ;;  %v153_v13 = vld [vmem:[%s3478_s1 + $0x448] sm:$0xff]  ;;  %v2362_v53 = vcombine.high %v152_v10, %v156_v11  ;;  %v160_v19 = vld [vmem:[%s3478_s1 + $0x480] sm:$0xff]  ;;  %v2361_v24 = vcombine.low %v152_v10, %v156_v11 }
  0x27   :  { %1626 = vmatprep.subr.bf16.mxu0 %v2298_v14  ;;  %1708 = vmatprep.subr.bf16.mxu1 %v2300_v15  ;;  %v157_v14 = vld [vmem:[%s3478_s1 + $0x468] sm:$0xff] }
  0x28   :  { %v2769_v15 = vld [vmem:[%s3479_s0 + $0x8] sm:$0xff]  ;;  %v2364_v18 = vcombine.high %v153_v13, %v157_v14  ;;  %v2363_v25 = vcombine.low %v153_v13, %v157_v14 }
  0x2a   :  { %1627 = vmatpush1.bf16.msra.mxu0 %v2297_v20  ;;  %1709 = vmatpush1.bf16.msra.mxu1 %v2299_v21  ;;  %v164_v20 = vld [vmem:[%s3478_s1 + $0x4a0] sm:$0xff]  ;;  %v2779_v21 = vcombine.high %v2769_v15, %v2769_v15 }
  0x2b   :  { %1628 = vmatprep.subr.bf16.mxu0 %v2306_v22  ;;  %1710 = vmatprep.subr.bf16.mxu1 %v2308_v23  ;;  %v161_v22 = vld [vmem:[%s3478_s1 + $0x488] sm:$0xff]  ;;  %v2370_v26 = vcombine.high %v160_v19, %v164_v20  ;;  %v2369_v32 = vcombine.low %v160_v19, %v164_v20 }
  0x2c   :  { %v165_v23 = vld [vmem:[%s3478_s1 + $0x4a8] sm:$0xff] }
  0x2d   :  { %v2372_v27 = vcombine.high %v161_v22, %v165_v23  ;;  %v2371_v33 = vcombine.low %v161_v22, %v165_v23 }
  0x2e   :  { %1629 = vmatpush1.bf16.msra.mxu0 %v2305_v28  ;;  %1711 = vmatpush1.bf16.msra.mxu1 %v2307_v29  ;;  %v168_v28 = vld [vmem:[%s3478_s1 + $0x4c0] sm:$0xff] }
  0x2f   :  { %1630 = vmatprep.subr.bf16.mxu0 %v2314_v30  ;;  %1712 = vmatprep.subr.bf16.mxu1 %v2316_v31  ;;  %v172_v29 = vld [vmem:[%s3478_s1 + $0x4e0] sm:$0xff]  ;;  %v169_v30 = vld [vmem:[%s3478_s1 + $0x4c8] sm:$0xff] }
  0x30   :  { %v173_v31 = vld [vmem:[%s3478_s1 + $0x4e8] sm:$0xff]  ;;  %v2378_v34 = vcombine.high %v168_v28, %v172_v29  ;;  %v2377_v40 = vcombine.low %v168_v28, %v172_v29 }
  0x31   :  { %v2380_v35 = vcombine.high %v169_v30, %v173_v31  ;;  %v2379_v41 = vcombine.low %v169_v30, %v173_v31 }
  0x32   :  { %1631 = vmatpush1.bf16.msra.mxu0 %v2313_v36  ;;  %1713 = vmatpush1.bf16.msra.mxu1 %v2315_v37  ;;  %v176_v36 = vld [vmem:[%s3478_s1 + $0x500] sm:$0xff] }
  0x33   :  { %1632 = vmatprep.subr.bf16.mxu0 %v2322_v38  ;;  %1714 = vmatprep.subr.bf16.mxu1 %v2324_v39  ;;  %v180_v37 = vld [vmem:[%s3478_s1 + $0x520] sm:$0xff]  ;;  %v177_v38 = vld [vmem:[%s3478_s1 + $0x508] sm:$0xff] }
  0x34   :  { %v181_v39 = vld [vmem:[%s3478_s1 + $0x528] sm:$0xff]  ;;  %v2386_v42 = vcombine.high %v176_v36, %v180_v37  ;;  %v2385_v48 = vcombine.low %v176_v36, %v180_v37 }
  0x35   :  { %v2388_v43 = vcombine.high %v177_v38, %v181_v39  ;;  %v2387_v49 = vcombine.low %v177_v38, %v181_v39 }
  0x36   :  { %1633 = vmatpush1.bf16.msra.mxu0 %v2321_v44  ;;  %1715 = vmatpush1.bf16.msra.mxu1 %v2323_v45  ;;  %v184_v44 = vld [vmem:[%s3478_s1 + $0x540] sm:$0xff] }
  0x37   :  { %1634 = vmatprep.subr.bf16.mxu0 %v2330_v46  ;;  %1716 = vmatprep.subr.bf16.mxu1 %v2332_v47  ;;  %v188_v45 = vld [vmem:[%s3478_s1 + $0x560] sm:$0xff]  ;;  %v185_v46 = vld [vmem:[%s3478_s1 + $0x548] sm:$0xff] }
  0x38   :  { %v189_v47 = vld [vmem:[%s3478_s1 + $0x568] sm:$0xff]  ;;  %v2394_v50 = vcombine.high %v184_v44, %v188_v45  ;;  %v2393_v58 = vcombine.low %v184_v44, %v188_v45 }
  0x39   :  { %v2396_v51 = vcombine.high %v185_v46, %v189_v47  ;;  %v2395_v59 = vcombine.low %v185_v46, %v189_v47 }
  0x3a   :  { %1635 = vmatpush1.bf16.msra.mxu0 %v2329_v52  ;;  %1717 = vmatpush1.bf16.msra.mxu1 %v2331_v54  ;;  %v192_v52 = vld [vmem:[%s3478_s1 + $0x580] sm:$0xff] }
  0x3b   :  { %1636 = vmatprep.subr.bf16.mxu0 %v2338_v55  ;;  %1718 = vmatprep.subr.bf16.mxu1 %v2340_v56  ;;  %v196_v54 = vld [vmem:[%s3478_s1 + $0x5a0] sm:$0xff]  ;;  %v193_v55 = vld [vmem:[%s3478_s1 + $0x588] sm:$0xff] }
  0x3c   :  { %v197_v56 = vld [vmem:[%s3478_s1 + $0x5a8] sm:$0xff]  ;;  %v2402_v60 = vcombine.high %v192_v52, %v196_v54  ;;  %v2401_v2 = vcombine.low %v192_v52, %v196_v54 }
  0x3d   :  { %v2404_v61 = vcombine.high %v193_v55, %v197_v56  ;;  %v2403_v3 = vcombine.low %v193_v55, %v197_v56 }
  0x3e   :  { %1637 = vmatpush1.bf16.msra.mxu0 %v2337_v62  ;;  %1719 = vmatpush1.bf16.msra.mxu1 %v2339_v63  ;;  %v200_v62 = vld [vmem:[%s3478_s1 + $0x5c0] sm:$0xff] }
  0x3f   :  { %1638 = vmatprep.subr.bf16.mxu0 %v2346_v0  ;;  %1720 = vmatprep.subr.bf16.mxu1 %v2348_v1  ;;  %v204_v63 = vld [vmem:[%s3478_s1 + $0x5e0] sm:$0xff]  ;;  %v201_v0 = vld [vmem:[%s3478_s1 + $0x5c8] sm:$0xff] }
  0x40   :  { %v205_v1 = vld [vmem:[%s3478_s1 + $0x5e8] sm:$0xff]  ;;  %v2410_v4 = vcombine.high %v200_v62, %v204_v63  ;;  %v2409_v10 = vcombine.low %v200_v62, %v204_v63 }
  0x41   :  { %v2412_v5 = vcombine.high %v201_v0, %v205_v1  ;;  %v2411_v11 = vcombine.low %v201_v0, %v205_v1 }
  0x42   :  { %1639 = vmatpush1.bf16.msra.mxu0 %v2345_v6  ;;  %1721 = vmatpush1.bf16.msra.mxu1 %v2347_v7  ;;  %v208_v6 = vld [vmem:[%s3478_s1 + $0x600] sm:$0xff] }
  0x43   :  { %1649 = vmatprep.subr.bf16.mxu0 %v2354_v8  ;;  %1731 = vmatprep.subr.bf16.mxu1 %v2356_v9  ;;  %v212_v7 = vld [vmem:[%s3478_s1 + $0x620] sm:$0xff]  ;;  %v209_v8 = vld [vmem:[%s3478_s1 + $0x608] sm:$0xff] }
  0x44   :  { %v213_v9 = vld [vmem:[%s3478_s1 + $0x628] sm:$0xff]  ;;  %v2418_v13 = vcombine.high %v208_v6, %v212_v7  ;;  %v2417_v19 = vcombine.low %v208_v6, %v212_v7 }
  0x45   :  { %1641 = vmatmul.mubr.bf16.vlgmr.msra.gmra.mrb[0].mxu0 %v2758_v12  ;;  %1723 = vmatmul.mubr.bf16.vlgmr.msra.gmra.mrb[0].mxu1 %v2758_v12  ;;  %v2420_v14 = vcombine.high %v209_v8, %v213_v9  ;;  %v2419_v20 = vcombine.low %v209_v8, %v213_v9 }
  0x46   :  { %1650 = vmatpush1.bf16.msra.mxu0 %v2353_v16  ;;  %1732 = vmatpush1.bf16.msra.mxu1 %v2355_v17  ;;  %v216_v16 = vld [vmem:[%s3478_s1 + $0x640] sm:$0xff] }
  0x47   :  { %1651 = vmatprep.subr.bf16.mxu0 %v2362_v53  ;;  %1733 = vmatprep.subr.bf16.mxu1 %v2364_v18  ;;  %v220_v17 = vld [vmem:[%s3478_s1 + $0x660] sm:$0xff]  ;;  %v217_v53 = vld [vmem:[%s3478_s1 + $0x648] sm:$0xff] }
  0x48   :  { %1681 = vmatprep.mubr.bf16.mxu0 %v2779_v21  ;;  %1763 = vmatprep.mubr.bf16.mxu1 %v2779_v21  ;;  %v221_v18 = vld [vmem:[%s3478_s1 + $0x668] sm:$0xff]  ;;  %v2426_v22 = vcombine.high %v216_v16, %v220_v17  ;;  %v2425_v28 = vcombine.low %v216_v16, %v220_v17 }
  0x49   :  { %v2428_v23 = vcombine.high %v217_v53, %v221_v18  ;;  %v2427_v29 = vcombine.low %v217_v53, %v221_v18 }
  0x4a   :  { %1652 = vmatpush1.bf16.msra.mxu0 %v2361_v24  ;;  %1734 = vmatpush1.bf16.msra.mxu1 %v2363_v25  ;;  %v224_v24 = vld [vmem:[%s3478_s1 + $0x680] sm:$0xff] }
  0x4b   :  { %1653 = vmatprep.subr.bf16.mxu0 %v2370_v26  ;;  %1735 = vmatprep.subr.bf16.mxu1 %v2372_v27  ;;  %v228_v25 = vld [vmem:[%s3478_s1 + $0x6a0] sm:$0xff]  ;;  %v225_v26 = vld [vmem:[%s3478_s1 + $0x688] sm:$0xff] }
  0x4c   :  { %v229_v27 = vld [vmem:[%s3478_s1 + $0x6a8] sm:$0xff]  ;;  %v2434_v30 = vcombine.high %v224_v24, %v228_v25  ;;  %v2433_v36 = vcombine.low %v224_v24, %v228_v25  ;;  %v31_v24 = vld [vmem:[%s3478_s1 + $0x78] sm:$0xff] }
  0x4d   :  { %v2436_v31 = vcombine.high %v225_v26, %v229_v27  ;;  %v2435_v37 = vcombine.low %v225_v26, %v229_v27 }
  0x4e   :  { %1654 = vmatpush1.bf16.msra.mxu0 %v2369_v32  ;;  %1736 = vmatpush1.bf16.msra.mxu1 %v2371_v33  ;;  %v232_v32 = vld [vmem:[%s3478_s1 + $0x6c0] sm:$0xff] }
  0x4f   :  { %1655 = vmatprep.subr.bf16.mxu0 %v2378_v34  ;;  %1737 = vmatprep.subr.bf16.mxu1 %v2380_v35  ;;  %v236_v33 = vld [vmem:[%s3478_s1 + $0x6e0] sm:$0xff]  ;;  %v233_v34 = vld [vmem:[%s3478_s1 + $0x6c8] sm:$0xff] }
  0x50   :  { %v237_v35 = vld [vmem:[%s3478_s1 + $0x6e8] sm:$0xff]  ;;  %v2442_v38 = vcombine.high %v232_v32, %v236_v33  ;;  %v2441_v44 = vcombine.low %v232_v32, %v236_v33 }
  0x51   :  { %v2444_v39 = vcombine.high %v233_v34, %v237_v35  ;;  %v2443_v45 = vcombine.low %v233_v34, %v237_v35 }
  0x52   :  { %1656 = vmatpush1.bf16.msra.mxu0 %v2377_v40  ;;  %1738 = vmatpush1.bf16.msra.mxu1 %v2379_v41  ;;  %v240_v40 = vld [vmem:[%s3478_s1 + $0x700] sm:$0xff] }
  0x53   :  { %1657 = vmatprep.subr.bf16.mxu0 %v2386_v42  ;;  %1739 = vmatprep.subr.bf16.mxu1 %v2388_v43  ;;  %v244_v41 = vld [vmem:[%s3478_s1 + $0x720] sm:$0xff]  ;;  %v241_v42 = vld [vmem:[%s3478_s1 + $0x708] sm:$0xff] }
  0x54   :  { %v245_v43 = vld [vmem:[%s3478_s1 + $0x728] sm:$0xff]  ;;  %v2450_v46 = vcombine.high %v240_v40, %v244_v41  ;;  %v2449_v52 = vcombine.low %v240_v40, %v244_v41 }
  0x55   :  { %v2452_v47 = vcombine.high %v241_v42, %v245_v43  ;;  %v2451_v54 = vcombine.low %v241_v42, %v245_v43 }
  0x56   :  { %1658 = vmatpush1.bf16.msra.mxu0 %v2385_v48  ;;  %1740 = vmatpush1.bf16.msra.mxu1 %v2387_v49  ;;  %v248_v48 = vld [vmem:[%s3478_s1 + $0x740] sm:$0xff] }
  0x57   :  { %1659 = vmatprep.subr.bf16.mxu0 %v2394_v50  ;;  %1741 = vmatprep.subr.bf16.mxu1 %v2396_v51  ;;  %v252_v49 = vld [vmem:[%s3478_s1 + $0x760] sm:$0xff]  ;;  %v249_v50 = vld [vmem:[%s3478_s1 + $0x748] sm:$0xff] }
  0x58   :  { %v253_v51 = vld [vmem:[%s3478_s1 + $0x768] sm:$0xff]  ;;  %v2458_v55 = vcombine.high %v248_v48, %v252_v49  ;;  %v2457_v62 = vcombine.low %v248_v48, %v252_v49 }
  0x59   :  { %v2460_v56 = vcombine.high %v249_v50, %v253_v51  ;;  %v2459_v63 = vcombine.low %v249_v50, %v253_v51  ;;  %v58_v51 = vld [vmem:[%s3478_s1 + $0x150] sm:$0xff] }
  0x5a   :  { %1660 = vmatpush1.bf16.msra.mxu0 %v2393_v58  ;;  %1742 = vmatpush1.bf16.msra.mxu1 %v2395_v59  ;;  %v256_v58 = vld [vmem:[%s3478_s1 + $0x780] sm:$0xff] }
  0x5b   :  { %1661 = vmatprep.subr.bf16.mxu0 %v2402_v60  ;;  %1743 = vmatprep.subr.bf16.mxu1 %v2404_v61  ;;  %v260_v59 = vld [vmem:[%s3478_s1 + $0x7a0] sm:$0xff]  ;;  %v257_v60 = vld [vmem:[%s3478_s1 + $0x788] sm:$0xff] }
  0x5c   :  { %v261_v61 = vld [vmem:[%s3478_s1 + $0x7a8] sm:$0xff]  ;;  %v2466_v0 = vcombine.high %v256_v58, %v260_v59  ;;  %v2465_v6 = vcombine.low %v256_v58, %v260_v59 }
  0x5d   :  { %v2468_v1 = vcombine.high %v257_v60, %v261_v61  ;;  %v2467_v7 = vcombine.low %v257_v60, %v261_v61  ;;  %v66_v61 = vld [vmem:[%s3478_s1 + $0x190] sm:$0xff] }
  0x5e   :  { %1662 = vmatpush1.bf16.msra.mxu0 %v2401_v2  ;;  %1744 = vmatpush1.bf16.msra.mxu1 %v2403_v3  ;;  %v264_v2 = vld [vmem:[%s3478_s1 + $0x7c0] sm:$0xff] }
  0x5f   :  { %1663 = vmatprep.subr.bf16.mxu0 %v2410_v4  ;;  %1745 = vmatprep.subr.bf16.mxu1 %v2412_v5  ;;  %v268_v3 = vld [vmem:[%s3478_s1 + $0x7e0] sm:$0xff]  ;;  %v265_v4 = vld [vmem:[%s3478_s1 + $0x7c8] sm:$0xff] }
  0x60   :  { %v269_v5 = vld [vmem:[%s3478_s1 + $0x7e8] sm:$0xff]  ;;  %v2474_v8 = vcombine.high %v264_v2, %v268_v3  ;;  %v2473_v16 = vcombine.low %v264_v2, %v268_v3 }
  0x61   :  { %v2476_v9 = vcombine.high %v265_v4, %v269_v5  ;;  %v2475_v17 = vcombine.low %v265_v4, %v269_v5  ;;  %v74_v5 = vld [vmem:[%s3478_s1 + $0x1d0] sm:$0xff] }
  0x62   :  { %1664 = vmatpush1.bf16.msra.mxu0 %v2409_v10  ;;  %1746 = vmatpush1.bf16.msra.mxu1 %v2411_v11  ;;  %v18_v10 = vld [vmem:[%s3478_s1 + $0x10] sm:$0xff] }
  0x63   :  { %1665 = vmatprep.subr.bf16.mxu0 %v2418_v13  ;;  %1747 = vmatprep.subr.bf16.mxu1 %v2420_v14  ;;  %v22_v11 = vld [vmem:[%s3478_s1 + $0x30] sm:$0xff]  ;;  %v19_v13 = vld [vmem:[%s3478_s1 + $0x18] sm:$0xff] }
  0x64   :  { %v23_v14 = vld [vmem:[%s3478_s1 + $0x38] sm:$0xff]  ;;  %v2230_v53 = vcombine.high %v18_v10, %v22_v11  ;;  %v2229_v25 = vcombine.low %v18_v10, %v22_v11 }
  0x65   :  { %v2232_v18 = vcombine.high %v19_v13, %v23_v14  ;;  %v2231_v26 = vcombine.low %v19_v13, %v23_v14  ;;  %v82_v14 = vld [vmem:[%s3478_s1 + $0x210] sm:$0xff] }
  0x66   :  { %1666 = vmatpush1.bf16.msra.mxu0 %v2417_v19  ;;  %1748 = vmatpush1.bf16.msra.mxu1 %v2419_v20  ;;  %v26_v19 = vld [vmem:[%s3478_s1 + $0x50] sm:$0xff] }
  0x67   :  { %1667 = vmatprep.subr.bf16.mxu0 %v2426_v22  ;;  %1749 = vmatprep.subr.bf16.mxu1 %v2428_v23  ;;  %v30_v20 = vld [vmem:[%s3478_s1 + $0x70] sm:$0xff]  ;;  %v2967_v22 = vcombine.low %v2769_v15, %v2769_v15  ;;  %v27_v23 = vld [vmem:[%s3478_s1 + $0x58] sm:$0xff] }
  0x68   :  { %v2238_v27 = vcombine.high %v26_v19, %v30_v20  ;;  %v34_v15 = vld [vmem:[%s3478_s1 + $0x90] sm:$0xff]  ;;  %v2237_v32 = vcombine.low %v26_v19, %v30_v20  ;;  %v2239_v33 = vcombine.low %v27_v23, %v31_v24 }
  0x6a   :  { %1668 = vmatpush1.bf16.msra.mxu0 %v2425_v28  ;;  %1750 = vmatpush1.bf16.msra.mxu1 %v2427_v29  ;;  %v2240_v28 = vcombine.high %v27_v23, %v31_v24  ;;  %v38_v29 = vld [vmem:[%s3478_s1 + $0xb0] sm:$0xff] }
  0x6b   :  { %1669 = vmatprep.subr.bf16.mxu0 %v2434_v30  ;;  %1751 = vmatprep.subr.bf16.mxu1 %v2436_v31  ;;  %v35_v30 = vld [vmem:[%s3478_s1 + $0x98] sm:$0xff]  ;;  %v2246_v34 = vcombine.high %v34_v15, %v38_v29  ;;  %v2245_v40 = vcombine.low %v34_v15, %v38_v29  ;;  %v90_v24 = vld [vmem:[%s3478_s1 + $0x250] sm:$0xff] }
  0x6c   :  { %v39_v31 = vld [vmem:[%s3478_s1 + $0xb8] sm:$0xff] }
  0x6d   :  { %v2248_v35 = vcombine.high %v35_v30, %v39_v31  ;;  %v2247_v41 = vcombine.low %v35_v30, %v39_v31  ;;  %v98_v31 = vld [vmem:[%s3478_s1 + $0x290] sm:$0xff] }
  0x6e   :  { %1670 = vmatpush1.bf16.msra.mxu0 %v2433_v36  ;;  %1752 = vmatpush1.bf16.msra.mxu1 %v2435_v37  ;;  %v42_v36 = vld [vmem:[%s3478_s1 + $0xd0] sm:$0xff] }
  0x6f   :  { %1671 = vmatprep.subr.bf16.mxu0 %v2442_v38  ;;  %1753 = vmatprep.subr.bf16.mxu1 %v2444_v39  ;;  %v46_v37 = vld [vmem:[%s3478_s1 + $0xf0] sm:$0xff]  ;;  %v43_v38 = vld [vmem:[%s3478_s1 + $0xd8] sm:$0xff] }
  0x70   :  { %v47_v39 = vld [vmem:[%s3478_s1 + $0xf8] sm:$0xff]  ;;  %v2254_v42 = vcombine.high %v42_v36, %v46_v37 }
  0x71   :  { %v2256_v43 = vcombine.high %v43_v38, %v47_v39  ;;  %v2255_v48 = vcombine.low %v43_v38, %v47_v39  ;;  %v106_v39 = vld [vmem:[%s3478_s1 + $0x2d0] sm:$0xff] }
  0x72   :  { %1672 = vmatpush1.bf16.msra.mxu0 %v2441_v44  ;;  %1754 = vmatpush1.bf16.msra.mxu1 %v2443_v45  ;;  %v50_v44 = vld [vmem:[%s3478_s1 + $0x110] sm:$0xff] }
  0x73   :  { %1673 = vmatprep.subr.bf16.mxu0 %v2450_v46  ;;  %1755 = vmatprep.subr.bf16.mxu1 %v2452_v47  ;;  %v54_v45 = vld [vmem:[%s3478_s1 + $0x130] sm:$0xff]  ;;  %v55_v46 = vld [vmem:[%s3478_s1 + $0x138] sm:$0xff]  ;;  %v2253_v47 = vcombine.low %v42_v36, %v46_v37 }
  0x74   :  { %v2262_v49 = vcombine.high %v50_v44, %v54_v45 }
  0x76   :  { %1674 = vmatpush1.bf16.msra.mxu0 %v2449_v52  ;;  %1756 = vmatpush1.bf16.msra.mxu1 %v2451_v54  ;;  %v62_v52 = vld [vmem:[%s3478_s1 + $0x170] sm:$0xff]  ;;  %v59_v54 = vld [vmem:[%s3478_s1 + $0x158] sm:$0xff] }
  0x77   :  { %1675 = vmatprep.subr.bf16.mxu0 %v2458_v55  ;;  %1757 = vmatprep.subr.bf16.mxu1 %v2460_v56  ;;  %v63_v55 = vld [vmem:[%s3478_s1 + $0x178] sm:$0xff]  ;;  %v2261_v56 = vcombine.low %v50_v44, %v54_v45  ;;  %v2270_v59 = vcombine.high %v58_v51, %v62_v52 }
  0x78   :  { %v2272_v60 = vcombine.high %v59_v54, %v63_v55  ;;  %v2271_v2 = vcombine.low %v59_v54, %v63_v55  ;;  %v122_v55 = vld [vmem:[%s3478_s1 + $0x350] sm:$0xff] }
  0x7a   :  { %1676 = vmatpush1.bf16.msra.mxu0 %v2457_v62  ;;  %1758 = vmatpush1.bf16.msra.mxu1 %v2459_v63  ;;  %v70_v62 = vld [vmem:[%s3478_s1 + $0x1b0] sm:$0xff]  ;;  %v67_v63 = vld [vmem:[%s3478_s1 + $0x198] sm:$0xff] }
  0x7b   :  { %1677 = vmatprep.subr.bf16.mxu0 %v2466_v0  ;;  %1759 = vmatprep.subr.bf16.mxu1 %v2468_v1  ;;  %v71_v0 = vld [vmem:[%s3478_s1 + $0x1b8] sm:$0xff]  ;;  %v2269_v1 = vcombine.low %v58_v51, %v62_v52  ;;  %v2278_v3 = vcombine.high %v66_v61, %v70_v62 }
  0x7c   :  { %v2280_v4 = vcombine.high %v67_v63, %v71_v0  ;;  %v2279_v10 = vcombine.low %v67_v63, %v71_v0  ;;  %v130_v0 = vld [vmem:[%s3478_s1 + $0x390] sm:$0xff] }
  0x7e   :  { %1678 = vmatpush1.bf16.msra.mxu0 %v2465_v6  ;;  %1760 = vmatpush1.bf16.msra.mxu1 %v2467_v7  ;;  %v78_v6 = vld [vmem:[%s3478_s1 + $0x1f0] sm:$0xff]  ;;  %v75_v7 = vld [vmem:[%s3478_s1 + $0x1d8] sm:$0xff] }
  0x7f   :  { %1679 = vmatprep.subr.bf16.mxu0 %v2474_v8  ;;  %1761 = vmatprep.subr.bf16.mxu1 %v2476_v9  ;;  %v79_v8 = vld [vmem:[%s3478_s1 + $0x1f8] sm:$0xff]  ;;  %v2277_v9 = vcombine.low %v66_v61, %v70_v62  ;;  %v2286_v11 = vcombine.high %v74_v5, %v78_v6 }
  0x80   :  { %v2288_v13 = vcombine.high %v75_v7, %v79_v8  ;;  %v2287_v19 = vcombine.low %v75_v7, %v79_v8  ;;  %v138_v8 = vld [vmem:[%s3478_s1 + $0x3d0] sm:$0xff] }
  0x82   :  { %1680 = vmatpush1.bf16.msra.mxu0 %v2473_v16  ;;  %1762 = vmatpush1.bf16.msra.mxu1 %v2475_v17  ;;  %v86_v16 = vld [vmem:[%s3478_s1 + $0x230] sm:$0xff]  ;;  %v83_v17 = vld [vmem:[%s3478_s1 + $0x218] sm:$0xff] }
  0x83   :  { %1772 = vmatprep.subr.bf16.mxu0 %v2230_v53  ;;  %1854 = vmatprep.subr.bf16.mxu1 %v2232_v18  ;;  %v87_v53 = vld [vmem:[%s3478_s1 + $0x238] sm:$0xff]  ;;  %v2285_v18 = vcombine.low %v74_v5, %v78_v6  ;;  %v2294_v20 = vcombine.high %v82_v14, %v86_v16 }
  0x84   :  { %v2296_v23 = vcombine.high %v83_v17, %v87_v53  ;;  %v2295_v15 = vcombine.low %v83_v17, %v87_v53  ;;  %v146_v53 = vld [vmem:[%s3478_s1 + $0x410] sm:$0xff] }
  0x85   :  { %1682 = vmatmul.mubr.bf16.vlgmr.msra.gmra.mrb[0].mxu0 %v2967_v22  ;;  %1764 = vmatmul.mubr.bf16.vlgmr.msra.gmra.mrb[0].mxu1 %v2967_v22 }
  0x86   :  { %1773 = vmatpush1.bf16.msra.mxu0 %v2229_v25  ;;  %1855 = vmatpush1.bf16.msra.mxu1 %v2231_v26  ;;  %v94_v25 = vld [vmem:[%s3478_s1 + $0x270] sm:$0xff]  ;;  %v91_v26 = vld [vmem:[%s3478_s1 + $0x258] sm:$0xff] }
  0x87   :  { %1774 = vmatprep.subr.bf16.mxu0 %v2238_v27  ;;  %1856 = vmatprep.subr.bf16.mxu1 %v2240_v28  ;;  %v95_v27 = vld [vmem:[%s3478_s1 + $0x278] sm:$0xff]  ;;  %v2293_v28 = vcombine.low %v82_v14, %v86_v16  ;;  %v2302_v29 = vcombine.high %v90_v24, %v94_v25 }
  0x88   :  { %1804 = vmatprep.mubr.bf16.mxu0 %v2632_v57  ;;  %1886 = vmatprep.mubr.bf16.mxu1 %v2632_v57  ;;  %v51_v57 = vld [vmem:[%s3478_s1 + $0x118] sm:$0xff]  ;;  %v2304_v30 = vcombine.high %v91_v26, %v95_v27  ;;  %v2303_v36 = vcombine.low %v91_v26, %v95_v27  ;;  %v154_v27 = vld [vmem:[%s3478_s1 + $0x450] sm:$0xff] }
  0x89   :  { %v2264_v50 = vcombine.high %v51_v57, %v55_v46  ;;  %v2263_v58 = vcombine.low %v51_v57, %v55_v46  ;;  %v114_v46 = vld [vmem:[%s3478_s1 + $0x310] sm:$0xff] }
  0x8a   :  { %1775 = vmatpush1.bf16.msra.mxu0 %v2237_v32  ;;  %1857 = vmatpush1.bf16.msra.mxu1 %v2239_v33  ;;  %v102_v32 = vld [vmem:[%s3478_s1 + $0x2b0] sm:$0xff]  ;;  %v99_v33 = vld [vmem:[%s3478_s1 + $0x298] sm:$0xff] }
  0x8b   :  { %1776 = vmatprep.subr.bf16.mxu0 %v2246_v34  ;;  %1858 = vmatprep.subr.bf16.mxu1 %v2248_v35  ;;  %v103_v34 = vld [vmem:[%s3478_s1 + $0x2b8] sm:$0xff]  ;;  %v2301_v35 = vcombine.low %v90_v24, %v94_v25  ;;  %v2310_v37 = vcombine.high %v98_v31, %v102_v32 }
  0x8c   :  { %v2312_v38 = vcombine.high %v99_v33, %v103_v34  ;;  %v2311_v44 = vcombine.low %v99_v33, %v103_v34  ;;  %v162_v34 = vld [vmem:[%s3478_s1 + $0x490] sm:$0xff] }
  0x8e   :  { %1777 = vmatpush1.bf16.msra.mxu0 %v2245_v40  ;;  %1859 = vmatpush1.bf16.msra.mxu1 %v2247_v41  ;;  %v110_v40 = vld [vmem:[%s3478_s1 + $0x2f0] sm:$0xff]  ;;  %v107_v41 = vld [vmem:[%s3478_s1 + $0x2d8] sm:$0xff] }
  0x8f   :  { %1778 = vmatprep.subr.bf16.mxu0 %v2254_v42  ;;  %1860 = vmatprep.subr.bf16.mxu1 %v2256_v43  ;;  %v111_v42 = vld [vmem:[%s3478_s1 + $0x2f8] sm:$0xff]  ;;  %v2309_v43 = vcombine.low %v98_v31, %v102_v32  ;;  %v2318_v45 = vcombine.high %v106_v39, %v110_v40 }
  0x90   :  { %v2320_v57 = vcombine.high %v107_v41, %v111_v42  ;;  %v2319_v51 = vcombine.low %v107_v41, %v111_v42  ;;  %v170_v42 = vld [vmem:[%s3478_s1 + $0x4d0] sm:$0xff] }
  0x92   :  { %1779 = vmatpush1.bf16.msra.mxu0 %v2253_v47  ;;  %1861 = vmatpush1.bf16.msra.mxu1 %v2255_v48  ;;  %v118_v47 = vld [vmem:[%s3478_s1 + $0x330] sm:$0xff]  ;;  %v115_v48 = vld [vmem:[%s3478_s1 + $0x318] sm:$0xff] }
  0x93   :  { %1780 = vmatprep.subr.bf16.mxu0 %v2262_v49  ;;  %1862 = vmatprep.subr.bf16.mxu1 %v2264_v50  ;;  %v119_v49 = vld [vmem:[%s3478_s1 + $0x338] sm:$0xff]  ;;  %v2317_v50 = vcombine.low %v106_v39, %v110_v40  ;;  %v2326_v52 = vcombine.high %v114_v46, %v118_v47 }
  0x94   :  { %v2328_v54 = vcombine.high %v115_v48, %v119_v49  ;;  %v2327_v61 = vcombine.low %v115_v48, %v119_v49  ;;  %v178_v48 = vld [vmem:[%s3478_s1 + $0x510] sm:$0xff] }
  0x95   :  { %v182_v49 = vld [vmem:[%s3478_s1 + $0x530] sm:$0xff] }
  0x96   :  { %1781 = vmatpush1.bf16.msra.mxu0 %v2261_v56  ;;  %1863 = vmatpush1.bf16.msra.mxu1 %v2263_v58  ;;  %v126_v56 = vld [vmem:[%s3478_s1 + $0x370] sm:$0xff]  ;;  %v123_v58 = vld [vmem:[%s3478_s1 + $0x358] sm:$0xff] }
  0x97   :  { %1782 = vmatprep.subr.bf16.mxu0 %v2270_v59  ;;  %1864 = vmatprep.subr.bf16.mxu1 %v2272_v60  ;;  %v127_v59 = vld [vmem:[%s3478_s1 + $0x378] sm:$0xff]  ;;  %v2325_v60 = vcombine.low %v114_v46, %v118_v47  ;;  %v2334_v62 = vcombine.high %v122_v55, %v126_v56 }
  0x98   :  { %v2336_v63 = vcombine.high %v123_v58, %v127_v59  ;;  %v2335_v5 = vcombine.low %v123_v58, %v127_v59  ;;  %v190_v58 = vld [vmem:[%s3478_s1 + $0x570] sm:$0xff]  ;;  %v187_v59 = vld [vmem:[%s3478_s1 + $0x558] sm:$0xff] }
  0x9a   :  { %1783 = vmatpush1.bf16.msra.mxu0 %v2269_v1  ;;  %1865 = vmatpush1.bf16.msra.mxu1 %v2271_v2  ;;  %v134_v1 = vld [vmem:[%s3478_s1 + $0x3b0] sm:$0xff]  ;;  %v131_v2 = vld [vmem:[%s3478_s1 + $0x398] sm:$0xff] }
  0x9b   :  { %1784 = vmatprep.subr.bf16.mxu0 %v2278_v3  ;;  %1866 = vmatprep.subr.bf16.mxu1 %v2280_v4  ;;  %v135_v3 = vld [vmem:[%s3478_s1 + $0x3b8] sm:$0xff]  ;;  %v2333_v4 = vcombine.low %v122_v55, %v126_v56  ;;  %v2342_v6 = vcombine.high %v130_v0, %v134_v1  ;;  %v186_v56 = vld [vmem:[%s3478_s1 + $0x550] sm:$0xff] }
  0x9c   :  { %v2344_v7 = vcombine.high %v131_v2, %v135_v3  ;;  %v2343_v14 = vcombine.low %v131_v2, %v135_v3  ;;  %v198_v2 = vld [vmem:[%s3478_s1 + $0x5b0] sm:$0xff]  ;;  %v195_v3 = vld [vmem:[%s3478_s1 + $0x598] sm:$0xff] }
  0x9e   :  { %1785 = vmatpush1.bf16.msra.mxu0 %v2277_v9  ;;  %1867 = vmatpush1.bf16.msra.mxu1 %v2279_v10  ;;  %v142_v9 = vld [vmem:[%s3478_s1 + $0x3f0] sm:$0xff]  ;;  %v139_v10 = vld [vmem:[%s3478_s1 + $0x3d8] sm:$0xff] }
  0x9f   :  { %1786 = vmatprep.subr.bf16.mxu0 %v2286_v11  ;;  %1868 = vmatprep.subr.bf16.mxu1 %v2288_v13  ;;  %v143_v11 = vld [vmem:[%s3478_s1 + $0x3f8] sm:$0xff]  ;;  %v2341_v13 = vcombine.low %v130_v0, %v134_v1  ;;  %v2350_v16 = vcombine.high %v138_v8, %v142_v9  ;;  %v194_v1 = vld [vmem:[%s3478_s1 + $0x590] sm:$0xff] }
  0xa0   :  { %v2352_v17 = vcombine.high %v139_v10, %v143_v11  ;;  %v2351_v24 = vcombine.low %v139_v10, %v143_v11  ;;  %v206_v10 = vld [vmem:[%s3478_s1 + $0x5f0] sm:$0xff]  ;;  %v203_v11 = vld [vmem:[%s3478_s1 + $0x5d8] sm:$0xff] }
  0xa2   :  { %1787 = vmatpush1.bf16.msra.mxu0 %v2285_v18  ;;  %1869 = vmatpush1.bf16.msra.mxu1 %v2287_v19  ;;  %v150_v18 = vld [vmem:[%s3478_s1 + $0x430] sm:$0xff]  ;;  %v147_v19 = vld [vmem:[%s3478_s1 + $0x418] sm:$0xff] }
  0xa3   :  { %1788 = vmatprep.subr.bf16.mxu0 %v2294_v20  ;;  %1870 = vmatprep.subr.bf16.mxu1 %v2296_v23  ;;  %v151_v20 = vld [vmem:[%s3478_s1 + $0x438] sm:$0xff]  ;;  %v2349_v23 = vcombine.low %v138_v8, %v142_v9  ;;  %v2358_v25 = vcombine.high %v146_v53, %v150_v18  ;;  %v202_v9 = vld [vmem:[%s3478_s1 + $0x5d0] sm:$0xff] }
  0xa4   :  { %v2360_v26 = vcombine.high %v147_v19, %v151_v20  ;;  %v2359_v31 = vcombine.low %v147_v19, %v151_v20  ;;  %v214_v19 = vld [vmem:[%s3478_s1 + $0x630] sm:$0xff]  ;;  %v211_v20 = vld [vmem:[%s3478_s1 + $0x618] sm:$0xff] }
  0xa6   :  { %1789 = vmatpush1.bf16.msra.mxu0 %v2293_v28  ;;  %1871 = vmatpush1.bf16.msra.mxu1 %v2295_v15  ;;  %v158_v28 = vld [vmem:[%s3478_s1 + $0x470] sm:$0xff]  ;;  %v155_v15 = vld [vmem:[%s3478_s1 + $0x458] sm:$0xff] }
  0xa7   :  { %1790 = vmatprep.subr.bf16.mxu0 %v2302_v29  ;;  %1872 = vmatprep.subr.bf16.mxu1 %v2304_v30  ;;  %v159_v29 = vld [vmem:[%s3478_s1 + $0x478] sm:$0xff]  ;;  %v2357_v30 = vcombine.low %v146_v53, %v150_v18  ;;  %v2366_v32 = vcombine.high %v154_v27, %v158_v28  ;;  %v210_v18 = vld [vmem:[%s3478_s1 + $0x610] sm:$0xff] }
  0xa8   :  { %v2368_v33 = vcombine.high %v155_v15, %v159_v29  ;;  %v2367_v39 = vcombine.low %v155_v15, %v159_v29  ;;  %v222_v15 = vld [vmem:[%s3478_s1 + $0x670] sm:$0xff]  ;;  %v219_v29 = vld [vmem:[%s3478_s1 + $0x658] sm:$0xff] }
  0xaa   :  { %1791 = vmatpush1.bf16.msra.mxu0 %v2301_v35  ;;  %1873 = vmatpush1.bf16.msra.mxu1 %v2303_v36  ;;  %v166_v35 = vld [vmem:[%s3478_s1 + $0x4b0] sm:$0xff]  ;;  %v163_v36 = vld [vmem:[%s3478_s1 + $0x498] sm:$0xff] }
  0xab   :  { %1792 = vmatprep.subr.bf16.mxu0 %v2310_v37  ;;  %1874 = vmatprep.subr.bf16.mxu1 %v2312_v38  ;;  %v167_v37 = vld [vmem:[%s3478_s1 + $0x4b8] sm:$0xff]  ;;  %v2365_v38 = vcombine.low %v154_v27, %v158_v28  ;;  %v2374_v40 = vcombine.high %v162_v34, %v166_v35  ;;  %v218_v28 = vld [vmem:[%s3478_s1 + $0x650] sm:$0xff] }
  0xac   :  { %v2376_v41 = vcombine.high %v163_v36, %v167_v37 }
  0xae   :  { %1793 = vmatpush1.bf16.msra.mxu0 %v2309_v43  ;;  %1875 = vmatpush1.bf16.msra.mxu1 %v2311_v44  ;;  %v174_v43 = vld [vmem:[%s3478_s1 + $0x4f0] sm:$0xff]  ;;  %v175_v44 = vld [vmem:[%s3478_s1 + $0x4f8] sm:$0xff] }
  0xaf   :  { %1794 = vmatprep.subr.bf16.mxu0 %v2318_v45  ;;  %1876 = vmatprep.subr.bf16.mxu1 %v2320_v57  ;;  %v2373_v45 = vcombine.low %v162_v34, %v166_v35  ;;  %v2375_v57 = vcombine.low %v163_v36, %v167_v37  ;;  %v2382_v46 = vcombine.high %v170_v42, %v174_v43  ;;  %v226_v35 = vld [vmem:[%s3478_s1 + $0x690] sm:$0xff]  ;;  %v227_v37 = vld [vmem:[%s3478_s1 + $0x698] sm:$0xff] }
  0xb0   :  { %v230_v36 = vld [vmem:[%s3478_s1 + $0x6b0] sm:$0xff] }
  0xb2   :  { %1795 = vmatpush1.bf16.msra.mxu0 %v2317_v50  ;;  %1877 = vmatpush1.bf16.msra.mxu1 %v2319_v51  ;;  %v183_v50 = vld [vmem:[%s3478_s1 + $0x538] sm:$0xff]  ;;  %v2381_v51 = vcombine.low %v170_v42, %v174_v43  ;;  %v234_v43 = vld [vmem:[%s3478_s1 + $0x6d0] sm:$0xff] }
  0xb3   :  { %1796 = vmatprep.subr.bf16.mxu0 %v2326_v52  ;;  %1878 = vmatprep.subr.bf16.mxu1 %v2328_v54  ;;  %v2390_v54 = vcombine.high %v178_v48, %v182_v49 }
  0xb6   :  { %1797 = vmatpush1.bf16.msra.mxu0 %v2325_v60  ;;  %1879 = vmatpush1.bf16.msra.mxu1 %v2327_v61  ;;  %v191_v60 = vld [vmem:[%s3478_s1 + $0x578] sm:$0xff]  ;;  %v2389_v61 = vcombine.low %v178_v48, %v182_v49  ;;  %v242_v49 = vld [vmem:[%s3478_s1 + $0x710] sm:$0xff] }
  0xb7   :  { %1798 = vmatprep.subr.bf16.mxu0 %v2334_v62  ;;  %1880 = vmatprep.subr.bf16.mxu1 %v2336_v63  ;;  %v2398_v63 = vcombine.high %v186_v56, %v190_v58  ;;  %v2400_v0 = vcombine.high %v187_v59, %v191_v60 }
  0xba   :  { %1799 = vmatpush1.bf16.msra.mxu0 %v2333_v4  ;;  %1881 = vmatpush1.bf16.msra.mxu1 %v2335_v5  ;;  %v199_v4 = vld [vmem:[%s3478_s1 + $0x5b8] sm:$0xff]  ;;  %v2397_v5 = vcombine.low %v186_v56, %v190_v58  ;;  %v250_v58 = vld [vmem:[%s3478_s1 + $0x750] sm:$0xff] }
  0xbb   :  { %1800 = vmatprep.subr.bf16.mxu0 %v2342_v6  ;;  %1882 = vmatprep.subr.bf16.mxu1 %v2344_v7  ;;  %v2399_v6 = vcombine.low %v187_v59, %v191_v60  ;;  %v2406_v7 = vcombine.high %v194_v1, %v198_v2  ;;  %v2408_v8 = vcombine.high %v195_v3, %v199_v4  ;;  %v254_v59 = vld [vmem:[%s3478_s1 + $0x770] sm:$0xff]  ;;  %v251_v60 = vld [vmem:[%s3478_s1 + $0x758] sm:$0xff] }
  0xbe   :  { %1801 = vmatpush1.bf16.msra.mxu0 %v2341_v13  ;;  %1883 = vmatpush1.bf16.msra.mxu1 %v2343_v14  ;;  %v207_v13 = vld [vmem:[%s3478_s1 + $0x5f8] sm:$0xff]  ;;  %v2405_v14 = vcombine.low %v194_v1, %v198_v2  ;;  %v258_v2 = vld [vmem:[%s3478_s1 + $0x790] sm:$0xff] }
  0xbf   :  { %1802 = vmatprep.subr.bf16.mxu0 %v2350_v16  ;;  %1884 = vmatprep.subr.bf16.mxu1 %v2352_v17  ;;  %v2407_v16 = vcombine.low %v195_v3, %v199_v4  ;;  %v2414_v17 = vcombine.high %v202_v9, %v206_v10  ;;  %v2416_v53 = vcombine.high %v203_v11, %v207_v13  ;;  %v262_v3 = vld [vmem:[%s3478_s1 + $0x7b0] sm:$0xff]  ;;  %v259_v4 = vld [vmem:[%s3478_s1 + $0x798] sm:$0xff] }
  0xc2   :  { %1803 = vmatpush1.bf16.msra.mxu0 %v2349_v23  ;;  %1885 = vmatpush1.bf16.msra.mxu1 %v2351_v24  ;;  %v215_v23 = vld [vmem:[%s3478_s1 + $0x638] sm:$0xff]  ;;  %v2413_v24 = vcombine.low %v202_v9, %v206_v10  ;;  %v266_v10 = vld [vmem:[%s3478_s1 + $0x7d0] sm:$0xff] }
  0xc3   :  { %1813 = vmatprep.subr.bf16.mxu0 %v2358_v25  ;;  %1895 = vmatprep.subr.bf16.mxu1 %v2360_v26  ;;  %v2415_v25 = vcombine.low %v203_v11, %v207_v13  ;;  %v2422_v26 = vcombine.high %v210_v18, %v214_v19  ;;  %v2424_v27 = vcombine.high %v211_v20, %v215_v23  ;;  %v270_v11 = vld [vmem:[%s3478_s1 + $0x7f0] sm:$0xff]  ;;  %v267_v13 = vld [vmem:[%s3478_s1 + $0x7d8] sm:$0xff] }
  0xc5   :  { %1805 = vmatmul.mubr.bf16.vlgmr.msra.gmra.mrb[4].mxu0 %v2758_v12  ;;  %1887 = vmatmul.mubr.bf16.vlgmr.msra.gmra.mrb[4].mxu1 %v2758_v12  ;;  %v171_v12 = vld [vmem:[%s3478_s1 + $0x4d8] sm:$0xff] }
  0xc6   :  { %1814 = vmatpush1.bf16.msra.mxu0 %v2357_v30  ;;  %1896 = vmatpush1.bf16.msra.mxu1 %v2359_v31  ;;  %v2384_v47 = vcombine.high %v171_v12, %v175_v44  ;;  %v2383_v52 = vcombine.low %v171_v12, %v175_v44  ;;  %v223_v30 = vld [vmem:[%s3478_s1 + $0x678] sm:$0xff]  ;;  %v2421_v31 = vcombine.low %v210_v18, %v214_v19  ;;  %v238_v12 = vld [vmem:[%s3478_s1 + $0x6f0] sm:$0xff] }
  0xc7   :  { %1815 = vmatprep.subr.bf16.mxu0 %v2366_v32  ;;  %1897 = vmatprep.subr.bf16.mxu1 %v2368_v33  ;;  %v2423_v32 = vcombine.low %v211_v20, %v215_v23  ;;  %v2430_v33 = vcombine.high %v218_v28, %v222_v15  ;;  %v2432_v34 = vcombine.high %v219_v29, %v223_v30  ;;  %v235_v44 = vld [vmem:[%s3478_s1 + $0x6d8] sm:$0xff]  ;;  %v274_v23 = vlaneseq }
  0xc8   :  { %1845 = vmatprep.mubr.bf16.mxu0 %v2779_v21  ;;  %1927 = vmatprep.mubr.bf16.mxu1 %v2779_v21  ;;  %v179_v21 = vld [vmem:[%s3478_s1 + $0x518] sm:$0xff]  ;;  %v2477_v19 = vcombine.low %v266_v10, %v270_v11 }
  0xc9   :  { %v2392_v55 = vcombine.high %v179_v21, %v183_v50  ;;  %v2391_v62 = vcombine.low %v179_v21, %v183_v50  ;;  %v246_v21 = vld [vmem:[%s3478_s1 + $0x730] sm:$0xff]  ;;  %v243_v50 = vld [vmem:[%s3478_s1 + $0x718] sm:$0xff] }
  0xca   :  { %1816 = vmatpush1.bf16.msra.mxu0 %v2365_v38  ;;  %1898 = vmatpush1.bf16.msra.mxu1 %v2367_v39  ;;  %v231_v38 = vld [vmem:[%s3478_s1 + $0x6b8] sm:$0xff]  ;;  %v2429_v39 = vcombine.low %v218_v28, %v222_v15 }
  0xcb   :  { %1817 = vmatprep.subr.bf16.mxu0 %v2374_v40  ;;  %1899 = vmatprep.subr.bf16.mxu1 %v2376_v41  ;;  %v2431_v40 = vcombine.low %v219_v29, %v223_v30  ;;  %v2438_v41 = vcombine.high %v226_v35, %v230_v36  ;;  %v2440_v42 = vcombine.high %v227_v37, %v231_v38 }
  0xce   :  { %1818 = vmatpush1.bf16.msra.mxu0 %v2373_v45  ;;  %1900 = vmatpush1.bf16.msra.mxu1 %v2375_v57  ;;  %v239_v45 = vld [vmem:[%s3478_s1 + $0x6f8] sm:$0xff]  ;;  %v2437_v57 = vcombine.low %v226_v35, %v230_v36 }
  0xcf   :  { %1819 = vmatprep.subr.bf16.mxu0 %v2382_v46  ;;  %1901 = vmatprep.subr.bf16.mxu1 %v2384_v47  ;;  %v2439_v46 = vcombine.low %v227_v37, %v231_v38  ;;  %v2446_v47 = vcombine.high %v234_v43, %v238_v12  ;;  %v2448_v48 = vcombine.high %v235_v44, %v239_v45 }
  0xd2   :  { %1820 = vmatpush1.bf16.msra.mxu0 %v2381_v51  ;;  %1902 = vmatpush1.bf16.msra.mxu1 %v2383_v52  ;;  %v247_v51 = vld [vmem:[%s3478_s1 + $0x738] sm:$0xff]  ;;  %v2445_v52 = vcombine.low %v234_v43, %v238_v12 }
  0xd3   :  { %1821 = vmatprep.subr.bf16.mxu0 %v2390_v54  ;;  %1903 = vmatprep.subr.bf16.mxu1 %v2392_v55  ;;  %v2447_v54 = vcombine.low %v235_v44, %v239_v45  ;;  %v2454_v55 = vcombine.high %v242_v49, %v246_v21  ;;  %v2456_v56 = vcombine.high %v243_v50, %v247_v51 }
  0xd6   :  { %1822 = vmatpush1.bf16.msra.mxu0 %v2389_v61  ;;  %1904 = vmatpush1.bf16.msra.mxu1 %v2391_v62  ;;  %v255_v61 = vld [vmem:[%s3478_s1 + $0x778] sm:$0xff]  ;;  %v2453_v62 = vcombine.low %v242_v49, %v246_v21 }
  0xd7   :  { %1823 = vmatprep.subr.bf16.mxu0 %v2398_v63  ;;  %1905 = vmatprep.subr.bf16.mxu1 %v2400_v0  ;;  %v2455_v63 = vcombine.low %v243_v50, %v247_v51  ;;  %v2462_v0 = vcombine.high %v250_v58, %v254_v59  ;;  %v2464_v1 = vcombine.high %v251_v60, %v255_v61 }
  0xda   :  { %1824 = vmatpush1.bf16.msra.mxu0 %v2397_v5  ;;  %1906 = vmatpush1.bf16.msra.mxu1 %v2399_v6  ;;  %v263_v5 = vld [vmem:[%s3478_s1 + $0x7b8] sm:$0xff]  ;;  %v2461_v6 = vcombine.low %v250_v58, %v254_v59  ;;  %v2514_v58 = vmov 1966171168  }
  0xdb   :  { %1825 = vmatprep.subr.bf16.mxu0 %v2406_v7  ;;  %1907 = vmatprep.subr.bf16.mxu1 %v2408_v8  ;;  %v2463_v7 = vcombine.low %v251_v60, %v255_v61  ;;  %v2470_v8 = vcombine.high %v258_v2, %v262_v3  ;;  %v2472_v9 = vcombine.high %v259_v4, %v263_v5  ;;  %v2025_v59 = vunpack.c.l.s4 %v2514_v58 }
  0xde   :  { %1826 = vmatpush1.bf16.msra.mxu0 %v2405_v14  ;;  %1908 = vmatpush1.bf16.msra.mxu1 %v2407_v16  ;;  %v271_v14 = vld [vmem:[%s3478_s1 + $0x7f8] sm:$0xff]  ;;  %v2469_v16 = vcombine.low %v258_v2, %v262_v3 }
  0xdf   :  { %1827 = vmatprep.subr.bf16.mxu0 %v2414_v17  ;;  %1909 = vmatprep.subr.bf16.mxu1 %v2416_v53  ;;  %v2471_v17 = vcombine.low %v259_v4, %v263_v5  ;;  %v2478_v53 = vcombine.high %v266_v10, %v270_v11  ;;  %v2480_v18 = vcombine.high %v267_v13, %v271_v14  ;;  %v2026_v4 = vunpack.c.0.s8 %v2025_v59 }
  0xe0   :  { %v2479_v20 = vcombine.low %v267_v13, %v271_v14 }
  0xe2   :  { %1828 = vmatpush1.bf16.msra.mxu0 %v2413_v24  ;;  %1910 = vmatpush1.bf16.msra.mxu1 %v2415_v25  ;;  %v3345_v24 = vshrl.u32 %v274_v23, 7 }
  0xe3   :  { %1829 = vmatprep.subr.bf16.mxu0 %v2422_v26  ;;  %1911 = vmatprep.subr.bf16.mxu1 %v2424_v27  ;;  %v3351_v26 = vld [vmem:[%s3480_s2] sm:$0xff] }
  0xe4   :  { %v276_v25 = vsub.s32 0, %v3345_v24  ;;  %v284_v27 = vsub.s32 2, %v3345_v24  ;;  %v280_v28 = vsub.s32 1, %v3345_v24  ;;  %v288_v15 = vsub.s32 3, %v3345_v24 }
  0xe5   :  { %vm1949_vm0 = vcmp.lt.s32.totalorder %v3345_v24, 6  ;;  %v3378_v14 = vsub.s32 %v2026_v4, %v3345_v24  ;;  %v292_v23 = vsub.s32 4, %v3345_v24 }
  0xe6   :  { %1830 = vmatpush1.bf16.msra.mxu0 %v2421_v31  ;;  %1912 = vmatpush1.bf16.msra.mxu1 %v2423_v32  ;;  %v285_v29 = vrot.slane %v3351_v26, %v284_v27  ;;  %v281_v30 = vrot.slane %v3351_v26, %v280_v28  ;;  %v289_v31 = vrot.slane %v3351_v26, %v288_v15 }
  0xe7   :  { %1831 = vmatprep.subr.bf16.mxu0 %v2430_v33  ;;  %1913 = vmatprep.subr.bf16.mxu1 %v2432_v34 }
  0xea   :  { %1832 = vmatpush1.bf16.msra.mxu0 %v2429_v39  ;;  %1914 = vmatpush1.bf16.msra.mxu1 %v2431_v40 }
  0xeb   :  { %1833 = vmatprep.subr.bf16.mxu0 %v2438_v41  ;;  %1915 = vmatprep.subr.bf16.mxu1 %v2440_v42 }
  0xee   :  { %1834 = vmatpush1.bf16.msra.mxu0 %v2437_v57  ;;  %1916 = vmatpush1.bf16.msra.mxu1 %v2439_v46 }
  0xef   :  { %1835 = vmatprep.subr.bf16.mxu0 %v2446_v47  ;;  %1917 = vmatprep.subr.bf16.mxu1 %v2448_v48 }
  0xf2   :  { %1836 = vmatpush1.bf16.msra.mxu0 %v2445_v52  ;;  %1918 = vmatpush1.bf16.msra.mxu1 %v2447_v54 }
  0xf3   :  { %1837 = vmatprep.subr.bf16.mxu0 %v2454_v55  ;;  %1919 = vmatprep.subr.bf16.mxu1 %v2456_v56 }
  0xf6   :  { %1838 = vmatpush1.bf16.msra.mxu0 %v2453_v62  ;;  %1920 = vmatpush1.bf16.msra.mxu1 %v2455_v63 }
  0xf7   :  { %1839 = vmatprep.subr.bf16.mxu0 %v2462_v0  ;;  %1921 = vmatprep.subr.bf16.mxu1 %v2464_v1 }
  0xfa   :  { %1840 = vmatpush1.bf16.msra.mxu0 %v2461_v6  ;;  %1922 = vmatpush1.bf16.msra.mxu1 %v2463_v7 }
  0xfb   :  { %1841 = vmatprep.subr.bf16.mxu0 %v2470_v8  ;;  %1923 = vmatprep.subr.bf16.mxu1 %v2472_v9 }
  0xfe   :  { %1842 = vmatpush1.bf16.msra.mxu0 %v2469_v16  ;;  %1924 = vmatpush1.bf16.msra.mxu1 %v2471_v17 }
  0xff   :  { %1843 = vmatprep.subr.bf16.mxu0 %v2478_v53  ;;  %1925 = vmatprep.subr.bf16.mxu1 %v2480_v18 }
 0x102   :  { %1844 = vmatpush1.bf16.msra.mxu0 %v2477_v19  ;;  %1926 = vmatpush1.bf16.msra.mxu1 %v2479_v20 }
 0x105   :  { %1846 = vmatmul.mubr.bf16.vlgmr.msra.gmra.mrb[4].mxu0 %v2967_v22  ;;  %1928 = vmatmul.mubr.bf16.vlgmr.msra.gmra.mrb[4].mxu1 %v2967_v22  ;;  %v277_v22 = vrot.slane %v3351_v26, %v276_v25 }
 0x158   :  { %v1683_v32 = vpop.f32.mrb[0].mxu0  ;;  %v1765_v34 = vpop.f32.mrb[0].mxu1 }
 0x159   :  { %v2485_v33 = vadd.f32 %v1683_v32, %v277_v22  ;;  %v1685_v35 = vpop.f32.mrb[1].mxu0  ;;  %v2487_v36 = vadd.f32 %v1765_v34, %v285_v29  ;;  %v1767_v38 = vpop.f32.mrb[1].mxu1  ;;  %v300_v22 = vsub.s32 6, %v3345_v24  ;;  %v296_v29 = vsub.s32 5, %v3345_v24 }
 0x15a   :  { %v2486_v37 = vadd.f32 %v1685_v35, %v281_v30  ;;  %v1687_v39 = vpop.f32.mrb[2].mxu0  ;;  %v2488_v41 = vadd.f32 %v1767_v38, %v289_v31  ;;  %v1769_v42 = vpop.f32.mrb[2].mxu1  ;;  %v304_v30 = vsub.s32 7, %v3345_v24  ;;  %v293_v31 = vrot.slane %v3351_v26, %v292_v23 }
 0x15b   :  { %v1936_v40 = vmax.f32 %v2485_v33, 0.0  ;;  %v1688_v43 = vpop.f32.mrb[3].mxu0  ;;  %v1938_v12 = vmax.f32 %v2487_v36, 0.0  ;;  %v1770_v45 = vpop.f32.mrb[3].mxu1  ;;  %v301_v32 = vrot.slane %v3351_v26, %v300_v22  ;;  %v297_v33 = vrot.slane %v3351_v26, %v296_v29 }
 0x15c   :  { %v1937_v44 = vmax.f32 %v2486_v37, 0.0  ;;  %v1939_v46 = vmax.f32 %v2488_v41, 0.0  ;;  %v305_v34 = vrot.slane %v3351_v26, %v304_v30 }
 0x15d   :  { %v1950_v57 = vsel %vm1949_vm0, %v1936_v40, -inf  ;;  %v1952_v48 = vsel %vm1949_vm0, %v1938_v12, -inf }
 0x15e   :  { %v1964_v47 = vrot.slane %v1950_v57, 4  ;;  %v1951_v49 = vsel %vm1949_vm0, %v1937_v44, -inf  ;;  %v1976_v21 = vrot.slane %v1952_v48, 4  ;;  %v1953_v51 = vsel %vm1949_vm0, %v1939_v46, -inf }
 0x15f   :  { %v1970_v50 = vrot.slane %v1951_v49, 4  ;;  %v1982_v54 = vrot.slane %v1953_v51, 4 }
 0x160   :  { %v1965_v52 = vmax.f32 %v1950_v57, %v1964_v47  ;;  %v1977_v55 = vmax.f32 %v1952_v48, %v1976_v21 }
 0x161   :  { %v1971_v56 = vmax.f32 %v1951_v49, %v1970_v50  ;;  %v1983_v61 = vmax.f32 %v1953_v51, %v1982_v54 }
 0x162   :  { %v1966_v60 = vrot.slane %v1965_v52, 2  ;;  %v1978_v62 = vrot.slane %v1977_v55, 2 }
 0x163   :  { %v1972_v63 = vrot.slane %v1971_v56, 2  ;;  %v1984_v1 = vrot.slane %v1983_v61, 2 }
 0x164   :  { %v1967_v0 = vmax.f32 %v1965_v52, %v1966_v60  ;;  %v1979_v2 = vmax.f32 %v1977_v55, %v1978_v62 }
 0x165   :  { %v1973_v3 = vmax.f32 %v1971_v56, %v1972_v63  ;;  %v1985_v6 = vmax.f32 %v1983_v61, %v1984_v1 }
 0x166   :  { %v1968_v5 = vrot.slane %v1967_v0, 1  ;;  %v1980_v7 = vrot.slane %v1979_v2, 1 }
 0x167   :  { %v1974_v8 = vrot.slane %v1973_v3, 1  ;;  %v1986_v10 = vrot.slane %v1985_v6, 1 }
 0x168   :  { %v1969_v9 = vmax.f32 %v1967_v0, %v1968_v5  ;;  %v1981_v11 = vmax.f32 %v1979_v2, %v1980_v7 }
 0x169   :  { %v1975_v13 = vmax.f32 %v1973_v3, %v1974_v8  ;;  %v1987_v16 = vmax.f32 %v1985_v6, %v1986_v10 }
 0x16b   :  { %v2020_v17 = vcombine.low %v1969_v9, %v1975_v13  ;;  %v2021_v53 = vcombine.low %v1981_v11, %v1987_v16 }
 0x16d   :  { %v3381_v18 = vrot.slane %v2020_v17, %v3378_v14  ;;  %v3384_v19 = vrot.slane %v2021_v53, %v3378_v14 }
 0x16f   :  { %v2052_v20 = vcombine.low %v3381_v18, %v3384_v19 }
 0x1d8   :  { %v1847_v35 = vpop.f32.mrb[4].mxu0  ;;  %v1929_v37 = vpop.f32.mrb[4].mxu1 }
 0x1d9   :  { %v2489_v36 = vadd.f32 %v1847_v35, %v293_v31  ;;  %v1849_v38 = vpop.f32.mrb[5].mxu0  ;;  %v2491_v39 = vadd.f32 %v1929_v37, %v301_v32  ;;  %v1931_v41 = vpop.f32.mrb[5].mxu1 }
 0x1da   :  { %v2490_v40 = vadd.f32 %v1849_v38, %v297_v33  ;;  %v1851_v42 = vpop.f32.mrb[6].mxu0  ;;  %v2492_v12 = vadd.f32 %v1931_v41, %v305_v34  ;;  %v1933_v44 = vpop.f32.mrb[6].mxu1 }
 0x1db   :  { %v1940_v43 = vmax.f32 %v2489_v36, 0.0  ;;  %v1852_v45 = vpop.f32.mrb[7].mxu0  ;;  %v1942_v57 = vmax.f32 %v2491_v39, 0.0  ;;  %v1934_v47 = vpop.f32.mrb[7].mxu1  ;;  %v2060_v36 = vrot.slane %v2052_v20, %v3378_v14 }
 0x1dc   :  { %v1941_v46 = vmax.f32 %v2490_v40, 0.0  ;;  %v1943_v49 = vmax.f32 %v2492_v12, 0.0  ;;  %v2214_v47 = vld [vmem:[%s3481_s3] sm:$0xff] }
 0x1dd   :  { %v1954_v48 = vsel %vm1949_vm0, %v1940_v43, -inf  ;;  %v1956_v21 = vsel %vm1949_vm0, %v1942_v57, -inf }
 0x1de   :  { %v1988_v26 = vrot.slane %v1954_v48, 4  ;;  %v1955_v50 = vsel %vm1949_vm0, %v1941_v46, -inf  ;;  %v2000_v51 = vrot.slane %v1956_v21, 4  ;;  %v1957_v54 = vsel %vm1949_vm0, %v1943_v49, -inf }
 0x1df   :  { %v1994_v52 = vrot.slane %v1955_v50, 4  ;;  %v2006_v56 = vrot.slane %v1957_v54, 4  ;;  %vm2199_vm0 = vsmask.f32 4352 }
 0x1e0   :  { %v1989_v55 = vmax.f32 %v1954_v48, %v1988_v26  ;;  %v2001_v58 = vmax.f32 %v1956_v21, %v2000_v51  ;;  %vm2200_vm2 = vmand %vm2198_vm15, %vm2199_vm0 }
 0x1e1   :  { %v1995_v59 = vmax.f32 %v1955_v50, %v1994_v52  ;;  %v2007_v61 = vmax.f32 %v1957_v54, %v2006_v56  ;;  %vm3437_vm5 = vmor %vm2200_vm2, %vm2197_vm1 }
 0x1e2   :  { %v1990_v60 = vrot.slane %v1989_v55, 2  ;;  %v2002_v62 = vrot.slane %v2001_v58, 2  ;;  %vm2205_vm9 = vmor %vm3441_vm6, %vm3437_vm5 }
 0x1e3   :  { %v1996_v63 = vrot.slane %v1995_v59, 2  ;;  %v2008_v1 = vrot.slane %v2007_v61, 2  ;;  %vm2209_vm13 = vmor %vm2208_vm10, %vm2205_vm9 }
 0x1e4   :  { %v1991_v0 = vmax.f32 %v1989_v55, %v1990_v60  ;;  %v2003_v3 = vmax.f32 %v2001_v58, %v2002_v62  ;;  %vm2213_vm15 = vmor %vm2212_vm14, %vm2209_vm13 }
 0x1e5   :  { %v1997_v4 = vmax.f32 %v1995_v59, %v1996_v63  ;;  %v2009_v7 = vmax.f32 %v2007_v61, %v2008_v1 }
 0x1e6   :  { %v1992_v6 = vrot.slane %v1991_v0, 1  ;;  %v2004_v8 = vrot.slane %v2003_v3, 1 }
 0x1e7   :  { %v1998_v9 = vrot.slane %v1997_v4, 1  ;;  %v2010_v11 = vrot.slane %v2009_v7, 1 }
 0x1e8   :  { %v1993_v10 = vmax.f32 %v1991_v0, %v1992_v6  ;;  %v2005_v13 = vmax.f32 %v2003_v3, %v2004_v8 }
 0x1e9   :  { %v1999_v16 = vmax.f32 %v1997_v4, %v1998_v9  ;;  %v2011_v17 = vmax.f32 %v2009_v7, %v2010_v11 }
 0x1eb   :  { %v2022_v53 = vcombine.low %v1993_v10, %v1999_v16  ;;  %v2023_v31 = vcombine.low %v2005_v13, %v2011_v17 }
 0x1ed   :  { %v2044_v33 = vrot.slane %v2022_v53, %v3378_v14  ;;  %v2051_v34 = vrot.slane %v2023_v31, %v3378_v14 }
 0x1ef   :  { %v2053_v35 = vcombine.low %v2044_v33, %v2051_v34 }
 0x1f1   :  { %v2067_v37 = vrot.slane %v2053_v35, %v3378_v14 }
 0x1f3   :  { %v2068_v38 = vcombine.low %v2060_v36, %v2067_v37 }
 0x1f5   :  { %v2080_v41 = vrot.slane %v2068_v38, %v276_v25  ;;  %v2084_v18 = vrot.slane %v2068_v38, %v280_v28  ;;  %v2088_v19 = vrot.slane %v2068_v38, %v284_v27  ;;  %v2092_v20 = vrot.slane %v2068_v38, %v288_v15 }
 0x1f6   :  { %v2096_v42 = vrot.slane %v2068_v38, %v292_v23  ;;  %v2100_v43 = vrot.slane %v2068_v38, %v296_v29  ;;  %v2104_v12 = vrot.slane %v2068_v38, %v300_v22  ;;  %v2108_v25 = vrot.slane %v2068_v38, %v304_v30 }
 0x1f7   :  { %v2481_v44 = vpack.c.bf16 %v2084_v18, %v2080_v41  ;;  %v2482_v28 = vpack.c.bf16 %v2092_v20, %v2088_v19 }
 0x1f8   :  { %v2483_v27 = vpack.c.bf16 %v2100_v43, %v2096_v42  ;;  %v2484_v15 = vpack.c.bf16 %v2108_v25, %v2104_v12 }
 0x1f9   :  { %v2143_v23 = vrot.slane %v2481_v44, %v3378_v14  ;;  %v2150_v29 = vrot.slane %v2482_v28, %v3378_v14 }
 0x1fa   :  { %v2157_v24 = vrot.slane %v2483_v27, %v3378_v14  ;;  %v2164_v22 = vrot.slane %v2484_v15, %v3378_v14 }
 0x1fb   :  { %v2165_v30 = vcombine.low %v2143_v23, %v2150_v29 }
 0x1fc   :  { %v2166_v45 = vcombine.low %v2157_v24, %v2164_v22 }
 0x1fd   :  { %v2173_v57 = vrot.slane %v2165_v30, %v3378_v14 }
 0x1fe   :  { %v2180_v46 = vrot.slane %v2166_v45, %v3378_v14 }
 0x200   :  { %v2181_v48 = vcombine.low %v2173_v57, %v2180_v46 }
 0x202   :  { %v2215_v49 = vsel %vm2213_vm15, %v2181_v48, %v2214_v47 }
 0x203   :  { %2216 = vst [vmem:[%s3481_s3] sm:$0xff] %v2215_v49 }

// kernel: pointnet_forward.22
= control target key start
LH: loop header
LB: loop body
LE: loop exit
PB: predicated region body
PF: predicated region fallthrough
CT: control target
= control target key end

     0   :  { %s1409_s1 = inlined_call_operand.vmem [shape: bf16[512,256], index: 1, kind: input, shape index: {}]   ;;  %s1410_s0 = inlined_call_operand.vmem [shape: bf16[16,512], index: 0, kind: input, shape index: {}]   ;;  %s1411_s3 = inlined_call_operand.vmem [shape: bf16[256,256], index: 3, kind: input, shape index: {}]   ;;  %s1412_s2 = inlined_call_operand.vmem [shape: f32[1,256], index: 2, kind: input, shape index: {}]   ;;  %s1413_s4 = inlined_call_operand.vmem [shape: f32[1,256], index: 4, kind: input, shape index: {}]   ;;  %s1414_s5 = inlined_call_operand.vmem [shape: bf16[16,256], index: 5, kind: output, shape index: {}]  }
   0x1   :  { %v917_v0 = vld [vmem:[%s1409_s1 + $0x4] ss:$8 sps:$4 sm:$0xff]   ;;  %v919_v1 = vld [vmem:[%s1409_s1] ss:$8 sps:$4 sm:$0xff]   ;;  %v920_v2 = vld [vmem:[%s1409_s1 + $0x14] ss:$8 sps:$4 sm:$0xff]  }
   0x2   :  { %440 = vmatprep.subr.bf16.mxu0 %v917_v0  ;;  %v922_v3 = vld [vmem:[%s1409_s1 + $0x10] ss:$8 sps:$4 sm:$0xff]   ;;  %v923_v4 = vld [vmem:[%s1409_s1 + $0x24] ss:$8 sps:$4 sm:$0xff]   ;;  %v925_v5 = vld [vmem:[%s1409_s1 + $0x20] ss:$8 sps:$4 sm:$0xff]  }
   0x3   :  { %441 = vmatpush1.bf16.msra.mxu0 %v919_v1  ;;  %v926_v6 = vld [vmem:[%s1409_s1 + $0x34] ss:$8 sps:$4 sm:$0xff]   ;;  %v928_v7 = vld [vmem:[%s1409_s1 + $0x30] ss:$8 sps:$4 sm:$0xff]   ;;  %v929_v8 = vld [vmem:[%s1409_s1 + $0x44] ss:$8 sps:$4 sm:$0xff]  }
   0x4   :  { %442 = vmatprep.subr.bf16.mxu0 %v920_v2  ;;  %v931_v9 = vld [vmem:[%s1409_s1 + $0x40] ss:$8 sps:$4 sm:$0xff]   ;;  %v932_v10 = vld [vmem:[%s1409_s1 + $0x54] ss:$8 sps:$4 sm:$0xff]   ;;  %v934_v11 = vld [vmem:[%s1409_s1 + $0x50] ss:$8 sps:$4 sm:$0xff]  }
   0x5   :  { %v935_v12 = vld [vmem:[%s1409_s1 + $0x64] ss:$8 sps:$4 sm:$0xff]   ;;  %v937_v14 = vld [vmem:[%s1409_s1 + $0x60] ss:$8 sps:$4 sm:$0xff]   ;;  %v938_v15 = vld [vmem:[%s1409_s1 + $0x74] ss:$8 sps:$4 sm:$0xff]  }
   0x6   :  { %v967_v13 = vld [vmem:[%s1410_s0 + $0x4] ss:$16 sps:$4 sm:$0xff]   ;;  %v940_v16 = vld [vmem:[%s1409_s1 + $0x70] ss:$8 sps:$4 sm:$0xff]   ;;  %v943_v18 = vld [vmem:[%s1409_s1 + $0x80] ss:$8 sps:$4 sm:$0xff]  }
   0x7   :  { %443 = vmatpush1.bf16.msra.mxu0 %v922_v3  ;;  %472 = vmatprep.mubr.bf16.mxu0 %v967_v13  ;;  %v941_v17 = vld [vmem:[%s1409_s1 + $0x84] ss:$8 sps:$4 sm:$0xff]   ;;  %v944_v19 = vld [vmem:[%s1409_s1 + $0x94] ss:$8 sps:$4 sm:$0xff]   ;;  %v946_v20 = vld [vmem:[%s1409_s1 + $0x90] ss:$8 sps:$4 sm:$0xff]  }
   0x8   :  { %444 = vmatprep.subr.bf16.mxu0 %v923_v4  ;;  %v947_v21 = vld [vmem:[%s1409_s1 + $0xa4] ss:$8 sps:$4 sm:$0xff]   ;;  %v949_v22 = vld [vmem:[%s1409_s1 + $0xa0] ss:$8 sps:$4 sm:$0xff]   ;;  %v950_v23 = vld [vmem:[%s1409_s1 + $0xb4] ss:$8 sps:$4 sm:$0xff]  }
   0x9   :  { %v952_v24 = vld [vmem:[%s1409_s1 + $0xb0] ss:$8 sps:$4 sm:$0xff]   ;;  %v953_v25 = vld [vmem:[%s1409_s1 + $0xc4] ss:$8 sps:$4 sm:$0xff]   ;;  %v1021_v27 = vld [vmem:[%s1411_s3] ss:$8 sps:$4 sm:$0xff]  }
   0xa   :  { %v1019_v26 = vld [vmem:[%s1411_s3 + $0x4] ss:$8 sps:$4 sm:$0xff]   ;;  %v955_v28 = vld [vmem:[%s1409_s1 + $0xc0] ss:$8 sps:$4 sm:$0xff]   ;;  %v1022_v29 = vld [vmem:[%s1411_s3 + $0x14] ss:$8 sps:$4 sm:$0xff]  }
   0xb   :  { %445 = vmatpush1.bf16.msra.mxu0 %v925_v5  ;;  %v956_v30 = vld [vmem:[%s1409_s1 + $0xd4] ss:$8 sps:$4 sm:$0xff]   ;;  %740 = vmatprep.subr.bf16.mxu1 %v1019_v26  ;;  %v1024_v31 = vld [vmem:[%s1411_s3 + $0x10] ss:$8 sps:$4 sm:$0xff]   ;;  %v1025_v32 = vld [vmem:[%s1411_s3 + $0x24] ss:$8 sps:$4 sm:$0xff]  }
   0xc   :  { %446 = vmatprep.subr.bf16.mxu0 %v926_v6  ;;  %741 = vmatpush1.bf16.msra.mxu1 %v1021_v27  ;;  %v958_v33 = vld [vmem:[%s1409_s1 + $0xd0] ss:$8 sps:$4 sm:$0xff]   ;;  %v959_v34 = vld [vmem:[%s1409_s1 + $0xe4] ss:$8 sps:$4 sm:$0xff]   ;;  %v1027_v35 = vld [vmem:[%s1411_s3 + $0x20] ss:$8 sps:$4 sm:$0xff]  }
   0xd   :  { %742 = vmatprep.subr.bf16.mxu1 %v1022_v29  ;;  %v1028_v36 = vld [vmem:[%s1411_s3 + $0x34] ss:$8 sps:$4 sm:$0xff]   ;;  %v961_v37 = vld [vmem:[%s1409_s1 + $0xe0] ss:$8 sps:$4 sm:$0xff]   ;;  %v1030_v39 = vld [vmem:[%s1411_s3 + $0x30] ss:$8 sps:$4 sm:$0xff]  }
   0xe   :  { %v962_v38 = vld [vmem:[%s1409_s1 + $0xf4] ss:$8 sps:$4 sm:$0xff]   ;;  %v1031_v40 = vld [vmem:[%s1411_s3 + $0x44] ss:$8 sps:$4 sm:$0xff]   ;;  %v964_v41 = vld [vmem:[%s1409_s1 + $0xf0] ss:$8 sps:$4 sm:$0xff]  }
   0xf   :  { %447 = vmatpush1.bf16.msra.mxu0 %v928_v7  ;;  %v965_v42 = vld [vmem:[%s1410_s0] ss:$16 sps:$4 sm:$0xff]   ;;  %v970_v43 = vld [vmem:[%s1409_s1 + $0x104] ss:$8 sps:$4 sm:$0xff]   ;;  %v1034_v46 = vld [vmem:[%s1411_s3 + $0x54] ss:$8 sps:$4 sm:$0xff]  }
  0x10   :  { %448 = vmatprep.subr.bf16.mxu0 %v929_v8  ;;  %743 = vmatpush1.bf16.msra.mxu1 %v1024_v31  ;;  %v1033_v44 = vld [vmem:[%s1411_s3 + $0x40] ss:$8 sps:$4 sm:$0xff]   ;;  %v973_v47 = vld [vmem:[%s1409_s1 + $0x114] ss:$8 sps:$4 sm:$0xff]   ;;  %v1036_v49 = vld [vmem:[%s1411_s3 + $0x50] ss:$8 sps:$4 sm:$0xff]  }
  0x11   :  { %744 = vmatprep.subr.bf16.mxu1 %v1025_v32  ;;  %v968_v45 = vld [vmem:[%s1409_s1 + $0x100] ss:$8 sps:$4 sm:$0xff]   ;;  %v1018_v48 = vld [vmem:[%s1410_s0 + $0xc] ss:$16 sps:$4 sm:$0xff]   ;;  %v971_v51 = vld [vmem:[%s1409_s1 + $0x110] ss:$8 sps:$4 sm:$0xff]  }
  0x12   :  { %v1037_v50 = vld [vmem:[%s1411_s3 + $0x64] ss:$8 sps:$4 sm:$0xff]   ;;  %v1039_v53 = vld [vmem:[%s1411_s3 + $0x60] ss:$8 sps:$4 sm:$0xff]   ;;  %v1040_v54 = vld [vmem:[%s1411_s3 + $0x74] ss:$8 sps:$4 sm:$0xff]  }
  0x13   :  { %449 = vmatpush1.bf16.msra.mxu0 %v931_v9  ;;  %v976_v52 = vld [vmem:[%s1409_s1 + $0x124] ss:$8 sps:$4 sm:$0xff]   ;;  %v974_v55 = vld [vmem:[%s1409_s1 + $0x120] ss:$8 sps:$4 sm:$0xff]   ;;  %v979_v56 = vld [vmem:[%s1409_s1 + $0x134] ss:$8 sps:$4 sm:$0xff]  }
  0x14   :  { %450 = vmatprep.subr.bf16.mxu0 %v932_v10  ;;  %745 = vmatpush1.bf16.msra.mxu1 %v1027_v35  ;;  %v1042_v57 = vld [vmem:[%s1411_s3 + $0x70] ss:$8 sps:$4 sm:$0xff]   ;;  %v1043_v58 = vld [vmem:[%s1411_s3 + $0x84] ss:$8 sps:$4 sm:$0xff]   ;;  %v1045_v61 = vld [vmem:[%s1411_s3 + $0x80] ss:$8 sps:$4 sm:$0xff]  }
  0x15   :  { %746 = vmatprep.subr.bf16.mxu1 %v1028_v36  ;;  %v977_v59 = vld [vmem:[%s1409_s1 + $0x130] ss:$8 sps:$4 sm:$0xff]   ;;  %v982_v60 = vld [vmem:[%s1409_s1 + $0x144] ss:$8 sps:$4 sm:$0xff]   ;;  %v1046_v62 = vld [vmem:[%s1411_s3 + $0x94] ss:$8 sps:$4 sm:$0xff]   ;;  %v90_v36 = vlaneseq }
  0x16   :  { %v980_v63 = vld [vmem:[%s1409_s1 + $0x140] ss:$8 sps:$4 sm:$0xff]   ;;  %v985_v0 = vld [vmem:[%s1409_s1 + $0x154] ss:$8 sps:$4 sm:$0xff]   ;;  %v1048_v1 = vld [vmem:[%s1411_s3 + $0x90] ss:$8 sps:$4 sm:$0xff]  }
  0x17   :  { %451 = vmatpush1.bf16.msra.mxu0 %v934_v11  ;;  %v1049_v2 = vld [vmem:[%s1411_s3 + $0xa4] ss:$8 sps:$4 sm:$0xff]   ;;  %v983_v3 = vld [vmem:[%s1409_s1 + $0x150] ss:$8 sps:$4 sm:$0xff]   ;;  %v1051_v5 = vld [vmem:[%s1411_s3 + $0xa0] ss:$8 sps:$4 sm:$0xff]  }
  0x18   :  { %452 = vmatprep.subr.bf16.mxu0 %v935_v12  ;;  %747 = vmatpush1.bf16.msra.mxu1 %v1030_v39  ;;  %v988_v4 = vld [vmem:[%s1409_s1 + $0x164] ss:$8 sps:$4 sm:$0xff]   ;;  %v1052_v6 = vld [vmem:[%s1411_s3 + $0xb4] ss:$8 sps:$4 sm:$0xff]   ;;  %v986_v7 = vld [vmem:[%s1409_s1 + $0x160] ss:$8 sps:$4 sm:$0xff]  }
  0x19   :  { %748 = vmatprep.subr.bf16.mxu1 %v1031_v40  ;;  %v991_v8 = vld [vmem:[%s1409_s1 + $0x174] ss:$8 sps:$4 sm:$0xff]   ;;  %v1054_v9 = vld [vmem:[%s1411_s3 + $0xb0] ss:$8 sps:$4 sm:$0xff]   ;;  %v1055_v10 = vld [vmem:[%s1411_s3 + $0xc4] ss:$8 sps:$4 sm:$0xff]  }
  0x1a   :  { %v989_v11 = vld [vmem:[%s1409_s1 + $0x170] ss:$8 sps:$4 sm:$0xff]   ;;  %v994_v12 = vld [vmem:[%s1409_s1 + $0x184] ss:$8 sps:$4 sm:$0xff]   ;;  %v1057_v13 = vld [vmem:[%s1411_s3 + $0xc0] ss:$8 sps:$4 sm:$0xff]  }
  0x1b   :  { %453 = vmatpush1.bf16.msra.mxu0 %v937_v14  ;;  %v1058_v14 = vld [vmem:[%s1411_s3 + $0xd4] ss:$8 sps:$4 sm:$0xff]   ;;  %v1012_v26 = vld [vmem:[%s1409_s1 + $0x1e4] ss:$8 sps:$4 sm:$0xff]   ;;  %v1010_v27 = vld [vmem:[%s1409_s1 + $0x1e0] ss:$8 sps:$4 sm:$0xff]  }
  0x1c   :  { %454 = vmatprep.subr.bf16.mxu0 %v938_v15  ;;  %749 = vmatpush1.bf16.msra.mxu1 %v1033_v44  ;;  %v992_v15 = vld [vmem:[%s1409_s1 + $0x180] ss:$8 sps:$4 sm:$0xff]   ;;  %v1013_v29 = vld [vmem:[%s1409_s1 + $0x1f0] ss:$8 sps:$4 sm:$0xff]   ;;  %v1061_v32 = vld [vmem:[%s1411_s3 + $0xe4] ss:$8 sps:$4 sm:$0xff]  }
  0x1d   :  { %750 = vmatprep.subr.bf16.mxu1 %v1034_v46  ;;  %v1060_v31 = vld [vmem:[%s1411_s3 + $0xd0] ss:$8 sps:$4 sm:$0xff]   ;;  %v88_v39 = vld [vmem:[%s1412_s2] sm:$0x3] }
  0x1e   :  { %v1066_v35 = vld [vmem:[%s1411_s3 + $0xf0] ss:$8 sps:$4 sm:$0xff]  }
  0x1f   :  { %455 = vmatpush1.bf16.msra.mxu0 %v940_v16  ;;  %v997_v16 = vld [vmem:[%s1409_s1 + $0x194] ss:$8 sps:$4 sm:$0xff]  }
  0x20   :  { %456 = vmatprep.subr.bf16.mxu0 %v941_v17  ;;  %751 = vmatpush1.bf16.msra.mxu1 %v1036_v49  ;;  %v995_v17 = vld [vmem:[%s1409_s1 + $0x190] ss:$8 sps:$4 sm:$0xff]  }
  0x21   :  { %752 = vmatprep.subr.bf16.mxu1 %v1037_v50 }
  0x23   :  { %457 = vmatpush1.bf16.msra.mxu0 %v943_v18  ;;  %v1000_v18 = vld [vmem:[%s1409_s1 + $0x1a4] ss:$8 sps:$4 sm:$0xff]  }
  0x24   :  { %458 = vmatprep.subr.bf16.mxu0 %v944_v19  ;;  %753 = vmatpush1.bf16.msra.mxu1 %v1039_v53  ;;  %v998_v19 = vld [vmem:[%s1409_s1 + $0x1a0] ss:$8 sps:$4 sm:$0xff]  }
  0x25   :  { %754 = vmatprep.subr.bf16.mxu1 %v1040_v54 }
  0x27   :  { %459 = vmatpush1.bf16.msra.mxu0 %v946_v20  ;;  %v1003_v20 = vld [vmem:[%s1409_s1 + $0x1b4] ss:$8 sps:$4 sm:$0xff]  }
  0x28   :  { %460 = vmatprep.subr.bf16.mxu0 %v947_v21  ;;  %755 = vmatpush1.bf16.msra.mxu1 %v1042_v57  ;;  %v1001_v21 = vld [vmem:[%s1409_s1 + $0x1b0] ss:$8 sps:$4 sm:$0xff]   ;;  %v568_v57 = vld [vmem:[%s1413_s4] sm:$0x3] }
  0x29   :  { %756 = vmatprep.subr.bf16.mxu1 %v1043_v58 }
  0x2b   :  { %461 = vmatpush1.bf16.msra.mxu0 %v949_v22  ;;  %v1006_v22 = vld [vmem:[%s1409_s1 + $0x1c4] ss:$8 sps:$4 sm:$0xff]  }
  0x2c   :  { %462 = vmatprep.subr.bf16.mxu0 %v950_v23  ;;  %757 = vmatpush1.bf16.msra.mxu1 %v1045_v61  ;;  %v1004_v23 = vld [vmem:[%s1409_s1 + $0x1c0] ss:$8 sps:$4 sm:$0xff]  }
  0x2d   :  { %758 = vmatprep.subr.bf16.mxu1 %v1046_v62 }
  0x2f   :  { %463 = vmatpush1.bf16.msra.mxu0 %v952_v24  ;;  %v1009_v24 = vld [vmem:[%s1409_s1 + $0x1d4] ss:$8 sps:$4 sm:$0xff]  }
  0x30   :  { %464 = vmatprep.subr.bf16.mxu0 %v953_v25  ;;  %759 = vmatpush1.bf16.msra.mxu1 %v1048_v1  ;;  %v1007_v25 = vld [vmem:[%s1409_s1 + $0x1d0] ss:$8 sps:$4 sm:$0xff]  }
  0x31   :  { %760 = vmatprep.subr.bf16.mxu1 %v1049_v2 }
  0x33   :  { %465 = vmatpush1.bf16.msra.mxu0 %v955_v28  ;;  %v1015_v28 = vld [vmem:[%s1409_s1 + $0x1f4] ss:$8 sps:$4 sm:$0xff]  }
  0x34   :  { %466 = vmatprep.subr.bf16.mxu0 %v956_v30  ;;  %761 = vmatpush1.bf16.msra.mxu1 %v1051_v5  ;;  %v1016_v30 = vld [vmem:[%s1410_s0 + $0x8] ss:$16 sps:$4 sm:$0xff]  }
  0x35   :  { %762 = vmatprep.subr.bf16.mxu1 %v1052_v6 }
  0x37   :  { %467 = vmatpush1.bf16.msra.mxu0 %v958_v33  ;;  %v1063_v33 = vld [vmem:[%s1411_s3 + $0xe0] ss:$8 sps:$4 sm:$0xff]  }
  0x38   :  { %468 = vmatprep.subr.bf16.mxu0 %v959_v34  ;;  %763 = vmatpush1.bf16.msra.mxu1 %v1054_v9  ;;  %v1064_v34 = vld [vmem:[%s1411_s3 + $0xf4] ss:$8 sps:$4 sm:$0xff]  }
  0x39   :  { %764 = vmatprep.subr.bf16.mxu1 %v1055_v10 }
  0x3b   :  { %469 = vmatpush1.bf16.msra.mxu0 %v961_v37  ;;  %v91_v37 = vshrl.u32 %v90_v36, 7 }
  0x3c   :  { %470 = vmatprep.subr.bf16.mxu0 %v962_v38  ;;  %765 = vmatpush1.bf16.msra.mxu1 %v1057_v13 }
  0x3d   :  { %766 = vmatprep.subr.bf16.mxu1 %v1058_v14  ;;  %v92_v38 = vsub.s32 0, %v91_v37  ;;  %v96_v40 = vsub.s32 1, %v91_v37 }
  0x3f   :  { %471 = vmatpush1.bf16.msra.mxu0 %v964_v41  ;;  %v93_v41 = vrot.slane %v88_v39, %v92_v38  ;;  %v573_v58 = vrot.slane %v568_v57, %v92_v38 }
  0x40   :  { %483 = vmatprep.subr.bf16.mxu0 %v970_v43  ;;  %767 = vmatpush1.bf16.msra.mxu1 %v1060_v31 }
  0x41   :  { %768 = vmatprep.subr.bf16.mxu1 %v1061_v32 }
  0x42   :  { %473 = vmatmul.mubr.bf16.vlgmr.msra.gmra.mrb[0].mxu0 %v965_v42  ;;  %v97_v42 = vrot.slane %v88_v39, %v96_v40 }
  0x43   :  { %484 = vmatpush1.bf16.msra.mxu0 %v968_v45  ;;  %515 = vmatprep.mubr.bf16.mxu0 %v1018_v48 }
  0x44   :  { %485 = vmatprep.subr.bf16.mxu0 %v973_v47  ;;  %769 = vmatpush1.bf16.msra.mxu1 %v1063_v33 }
  0x45   :  { %770 = vmatprep.subr.bf16.mxu1 %v1064_v34 }
  0x47   :  { %486 = vmatpush1.bf16.msra.mxu0 %v971_v51 }
  0x48   :  { %487 = vmatprep.subr.bf16.mxu0 %v976_v52  ;;  %771 = vmatpush1.bf16.msra.mxu1 %v1066_v35 }
  0x4b   :  { %488 = vmatpush1.bf16.msra.mxu0 %v974_v55 }
  0x4c   :  { %489 = vmatprep.subr.bf16.mxu0 %v979_v56 }
  0x4f   :  { %490 = vmatpush1.bf16.msra.mxu0 %v977_v59  ;;  %v577_v59 = vrot.slane %v568_v57, %v96_v40 }
  0x50   :  { %491 = vmatprep.subr.bf16.mxu0 %v982_v60 }
  0x53   :  { %492 = vmatpush1.bf16.msra.mxu0 %v980_v63 }
  0x54   :  { %493 = vmatprep.subr.bf16.mxu0 %v985_v0 }
  0x57   :  { %494 = vmatpush1.bf16.msra.mxu0 %v983_v3 }
  0x58   :  { %495 = vmatprep.subr.bf16.mxu0 %v988_v4 }
  0x5b   :  { %496 = vmatpush1.bf16.msra.mxu0 %v986_v7 }
  0x5c   :  { %497 = vmatprep.subr.bf16.mxu0 %v991_v8 }
  0x5f   :  { %498 = vmatpush1.bf16.msra.mxu0 %v989_v11 }
  0x60   :  { %499 = vmatprep.subr.bf16.mxu0 %v994_v12 }
  0x63   :  { %500 = vmatpush1.bf16.msra.mxu0 %v992_v15 }
  0x64   :  { %501 = vmatprep.subr.bf16.mxu0 %v997_v16 }
  0x67   :  { %502 = vmatpush1.bf16.msra.mxu0 %v995_v17 }
  0x68   :  { %503 = vmatprep.subr.bf16.mxu0 %v1000_v18 }
  0x6b   :  { %504 = vmatpush1.bf16.msra.mxu0 %v998_v19 }
  0x6c   :  { %505 = vmatprep.subr.bf16.mxu0 %v1003_v20 }
  0x6f   :  { %506 = vmatpush1.bf16.msra.mxu0 %v1001_v21 }
  0x70   :  { %507 = vmatprep.subr.bf16.mxu0 %v1006_v22 }
  0x73   :  { %508 = vmatpush1.bf16.msra.mxu0 %v1004_v23 }
  0x74   :  { %509 = vmatprep.subr.bf16.mxu0 %v1009_v24 }
  0x77   :  { %510 = vmatpush1.bf16.msra.mxu0 %v1007_v25 }
  0x78   :  { %511 = vmatprep.subr.bf16.mxu0 %v1012_v26 }
  0x7b   :  { %512 = vmatpush1.bf16.msra.mxu0 %v1010_v27 }
  0x7c   :  { %513 = vmatprep.subr.bf16.mxu0 %v1015_v28 }
  0x7f   :  { %514 = vmatpush1.bf16.msra.mxu0 %v1013_v29 }
  0x82   :  { %516 = vmatmul.mubr.bf16.vlgmr.msra.gmra.mrb[0].mxu0 %v1016_v30 }
 0x155   :  { %v517_v43 = vpop.f32.mrb[0].mxu0 }
 0x156   :  { %v909_v44 = vadd.f32 %v517_v43, %v93_v41  ;;  %v519_v45 = vpop.f32.mrb[1].mxu0 }
 0x157   :  { %v910_v46 = vadd.f32 %v519_v45, %v97_v42  ;;  %v521_v47 = vpop.f32.mrb[2].mxu0 }
 0x158   :  { %v911_v48 = vadd.f32 %v521_v47, %v93_v41  ;;  %v523_v49 = vpop.f32.mrb[3].mxu0  ;;  %v526_v51 = vmax.f32 %v909_v44, 0.0 }
 0x159   :  { %v912_v50 = vadd.f32 %v523_v49, %v97_v42  ;;  %v527_v53 = vmax.f32 %v910_v46, 0.0 }
 0x15a   :  { %v528_v52 = vmax.f32 %v911_v48, 0.0 }
 0x15b   :  { %v529_v54 = vmax.f32 %v912_v50, 0.0 }
 0x15c   :  { %v530_v55 = vpack.c.bf16 %v528_v52, %v526_v51 }
 0x15d   :  { %v531_v56 = vpack.c.bf16 %v529_v54, %v527_v53 }
 0x15f   :  { %772 = vmatprep.mubr.bf16.mxu1 %v531_v56 }
 0x160   :  { %773 = vmatmul.mubr.bf16.vlgmr.msra.gmra.mrb[0].mxu1 %v530_v55 }
 0x233   :  { %v774_v60 = vpop.f32.mrb[0].mxu1 }
 0x234   :  { %v775_v61 = vadd.f32 %v774_v60, %v573_v58  ;;  %v776_v62 = vpop.f32.mrb[1].mxu1 }
 0x235   :  { %v777_v63 = vadd.f32 %v776_v62, %v577_v59  ;;  %v778_v0 = vpop.f32.mrb[2].mxu1 }
 0x236   :  { %v783_v1 = vmax.f32 %v775_v61, 0.0  ;;  %v779_v2 = vadd.f32 %v778_v0, %v573_v58  ;;  %v780_v3 = vpop.f32.mrb[3].mxu1 }
 0x237   :  { %v784_v4 = vmax.f32 %v777_v63, 0.0  ;;  %v781_v5 = vadd.f32 %v780_v3, %v577_v59 }
 0x238   :  { %v785_v6 = vmax.f32 %v779_v2, 0.0 }
 0x239   :  { %v907_v7 = vpack.c.bf16 %v784_v4, %v783_v1  ;;  %v786_v8 = vmax.f32 %v781_v5, 0.0 }
 0x23b   :  { %799 = vst [vmem:[%s1414_s5] sm:$0xff] %v907_v7  ;;  %v908_v9 = vpack.c.bf16 %v786_v8, %v785_v6 }
 0x23d   :  { %800 = vst [vmem:[%s1414_s5 + $0x8] sm:$0xff] %v908_v9 }

// kernel: neg.21
= control target key start
LH: loop header
LB: loop body
LE: loop exit
PB: predicated region body
PF: predicated region fallthrough
CT: control target
= control target key end

     0   :  { %s72_s0 = inlined_call_operand.vmem [shape: f32[64,32], index: 0, kind: input, shape index: {}]   ;;  %s73_s1 = inlined_call_operand.vmem [shape: f32[64,32], index: 1, kind: output, shape index: {}]  }
   0x1   :  { %v2_v0 = vld [vmem:[%s72_s0] sm:$0xff]  ;;  %v32_v1 = vld [vmem:[%s72_s0 + $0x8] sm:$0xff]  ;;  %v34_v2 = vld [vmem:[%s72_s0 + $0x10] sm:$0xff] }
   0x2   :  { %v5_v3 = vxor.u32 2147483648, %v2_v0  ;;  %v12_v4 = vxor.u32 2147483648, %v32_v1  ;;  %v20_v5 = vxor.u32 2147483648, %v34_v2  ;;  %v36_v6 = vld [vmem:[%s72_s0 + $0x18] sm:$0xff] }
   0x3   :  { %v28_v7 = vxor.u32 2147483648, %v36_v6 }
   0x4   :  { %7 = vst [vmem:[%s73_s1] sm:$0xff] %v5_v3  ;;  %33 = vst [vmem:[%s73_s1 + $0x8] sm:$0xff] %v12_v4 }
   0x5   :  { %35 = vst [vmem:[%s73_s1 + $0x10] sm:$0xff] %v20_v5  ;;  %37 = vst [vmem:[%s73_s1 + $0x18] sm:$0xff] %v28_v7 }

// kernel: pointnet_forward.23
= control target key start
LH: loop header
LB: loop body
LE: loop exit
PB: predicated region body
PF: predicated region fallthrough
CT: control target
= control target key end

     0   :  { %v930_v1 = vmov 0   ;;  %s1185_s1 = inlined_call_operand.vmem [shape: bf16[384,256], index: 1, kind: input, shape index: {}]   ;;  %s1186_s0 = inlined_call_operand.vmem [shape: bf16[32,384], index: 0, kind: input, shape index: {}]   ;;  %s1187_s3 = inlined_call_operand.vmem [shape: bf16[256,128], index: 3, kind: input, shape index: {}]   ;;  %s1188_s2 = inlined_call_operand.vmem [shape: f32[1,256], index: 2, kind: input, shape index: {}]   ;;  %s1189_s4 = inlined_call_operand.vmem [shape: f32[1,128], index: 4, kind: input, shape index: {}]   ;;  %s1190_s5 = inlined_call_operand.vmem [shape: bf16[32,128], index: 5, kind: output, shape index: {}]  }
   0x1   :  { %v834_v0 = vld [vmem:[%s1185_s1 + $0x4] ss:$8 sps:$4 sm:$0xff]   ;;  %446 = vmatprep.mubr.bf16.mxu1 %v930_v1  ;;  %v836_v2 = vld [vmem:[%s1185_s1] ss:$8 sps:$4 sm:$0xff]   ;;  %v837_v3 = vld [vmem:[%s1185_s1 + $0x14] ss:$8 sps:$4 sm:$0xff]  }
   0x2   :  { %361 = vmatprep.subr.bf16.mxu0 %v834_v0  ;;  %v839_v4 = vld [vmem:[%s1185_s1 + $0x10] ss:$8 sps:$4 sm:$0xff]   ;;  %v840_v5 = vld [vmem:[%s1185_s1 + $0x24] ss:$8 sps:$4 sm:$0xff]   ;;  %v842_v6 = vld [vmem:[%s1185_s1 + $0x20] ss:$8 sps:$4 sm:$0xff]  }
   0x3   :  { %362 = vmatpush1.bf16.msra.mxu0 %v836_v2  ;;  %v843_v7 = vld [vmem:[%s1185_s1 + $0x34] ss:$8 sps:$4 sm:$0xff]   ;;  %v845_v8 = vld [vmem:[%s1185_s1 + $0x30] ss:$8 sps:$4 sm:$0xff]   ;;  %v858_v9 = vld [vmem:[%s1185_s1 + $0x104] ss:$8 sps:$4 sm:$0xff]  }
   0x4   :  { %363 = vmatprep.subr.bf16.mxu0 %v837_v3  ;;  %v846_v10 = vld [vmem:[%s1185_s1 + $0x44] ss:$8 sps:$4 sm:$0xff]   ;;  %v862_v11 = vld [vmem:[%s1185_s1 + $0x100] ss:$8 sps:$4 sm:$0xff]   ;;  %414 = vmatprep.subr.bf16.mxu1 %v858_v9  ;;  %v864_v12 = vld [vmem:[%s1185_s1 + $0x114] ss:$8 sps:$4 sm:$0xff]  }
   0x5   :  { %415 = vmatpush1.bf16.msra.mxu1 %v862_v11  ;;  %v848_v13 = vld [vmem:[%s1185_s1 + $0x40] ss:$8 sps:$4 sm:$0xff]   ;;  %v849_v14 = vld [vmem:[%s1185_s1 + $0x54] ss:$8 sps:$4 sm:$0xff]   ;;  %v868_v15 = vld [vmem:[%s1185_s1 + $0x110] ss:$8 sps:$4 sm:$0xff]   ;;  %v79_v11 = vlaneseq }
   0x6   :  { %416 = vmatprep.subr.bf16.mxu1 %v864_v12  ;;  %v870_v16 = vld [vmem:[%s1185_s1 + $0x124] ss:$8 sps:$4 sm:$0xff]   ;;  %v851_v17 = vld [vmem:[%s1185_s1 + $0x50] ss:$8 sps:$4 sm:$0xff]   ;;  %v874_v18 = vld [vmem:[%s1185_s1 + $0x120] ss:$8 sps:$4 sm:$0xff]  }
   0x7   :  { %364 = vmatpush1.bf16.msra.mxu0 %v839_v4  ;;  %v876_v19 = vld [vmem:[%s1185_s1 + $0x134] ss:$8 sps:$4 sm:$0xff]   ;;  %v852_v20 = vld [vmem:[%s1185_s1 + $0x64] ss:$8 sps:$4 sm:$0xff]   ;;  %v880_v21 = vld [vmem:[%s1185_s1 + $0x130] ss:$8 sps:$4 sm:$0xff]  }
   0x8   :  { %365 = vmatprep.subr.bf16.mxu0 %v840_v5  ;;  %v854_v22 = vld [vmem:[%s1185_s1 + $0x60] ss:$8 sps:$4 sm:$0xff]   ;;  %v882_v23 = vld [vmem:[%s1185_s1 + $0x144] ss:$8 sps:$4 sm:$0xff]   ;;  %v855_v24 = vld [vmem:[%s1185_s1 + $0x74] ss:$8 sps:$4 sm:$0xff]  }
   0x9   :  { %417 = vmatpush1.bf16.msra.mxu1 %v868_v15  ;;  %v857_v25 = vld [vmem:[%s1185_s1 + $0x70] ss:$8 sps:$4 sm:$0xff]   ;;  %v886_v26 = vld [vmem:[%s1185_s1 + $0x140] ss:$8 sps:$4 sm:$0xff]   ;;  %v888_v27 = vld [vmem:[%s1185_s1 + $0x154] ss:$8 sps:$4 sm:$0xff]  }
   0xa   :  { %418 = vmatprep.subr.bf16.mxu1 %v870_v16  ;;  %v860_v28 = vld [vmem:[%s1185_s1 + $0x84] ss:$8 sps:$4 sm:$0xff]   ;;  %v892_v29 = vld [vmem:[%s1185_s1 + $0x150] ss:$8 sps:$4 sm:$0xff]   ;;  %v863_v30 = vld [vmem:[%s1185_s1 + $0x80] ss:$8 sps:$4 sm:$0xff]  }
   0xb   :  { %366 = vmatpush1.bf16.msra.mxu0 %v842_v6  ;;  %v894_v31 = vld [vmem:[%s1185_s1 + $0x164] ss:$8 sps:$4 sm:$0xff]   ;;  %v866_v32 = vld [vmem:[%s1185_s1 + $0x94] ss:$8 sps:$4 sm:$0xff]   ;;  %v869_v33 = vld [vmem:[%s1185_s1 + $0x90] ss:$8 sps:$4 sm:$0xff]  }
   0xc   :  { %367 = vmatprep.subr.bf16.mxu0 %v843_v7  ;;  %v908_v34 = vld [vmem:[%s1186_s0 + $0x4] ss:$12 sps:$4 sm:$0xff]   ;;  %v898_v35 = vld [vmem:[%s1185_s1 + $0x160] ss:$8 sps:$4 sm:$0xff]   ;;  %v900_v36 = vld [vmem:[%s1185_s1 + $0x174] ss:$8 sps:$4 sm:$0xff]  }
   0xd   :  { %419 = vmatpush1.bf16.msra.mxu1 %v874_v18  ;;  %v872_v37 = vld [vmem:[%s1185_s1 + $0xa4] ss:$8 sps:$4 sm:$0xff]   ;;  %393 = vmatprep.mubr.bf16.mxu0 %v908_v34  ;;  %v875_v38 = vld [vmem:[%s1185_s1 + $0xa0] ss:$8 sps:$4 sm:$0xff]   ;;  %v904_v39 = vld [vmem:[%s1185_s1 + $0x170] ss:$8 sps:$4 sm:$0xff]  }
   0xe   :  { %420 = vmatprep.subr.bf16.mxu1 %v876_v19  ;;  %v914_v40 = vld [vmem:[%s1187_s3 + $0x40] sm:$0xff]   ;;  %v878_v41 = vld [vmem:[%s1185_s1 + $0xb4] ss:$8 sps:$4 sm:$0xff]   ;;  %v881_v42 = vld [vmem:[%s1185_s1 + $0xb0] ss:$8 sps:$4 sm:$0xff]  }
   0xf   :  { %368 = vmatpush1.bf16.msra.mxu0 %v845_v8  ;;  %v909_v43 = vld [vmem:[%s1186_s0 + $0x8] ss:$12 sps:$4 sm:$0xff]   ;;  %v915_v44 = vld [vmem:[%s1187_s3] sm:$0xff]   ;;  %v893_v53 = vld [vmem:[%s1185_s1 + $0xd0] ss:$8 sps:$4 sm:$0xff]  }
  0x10   :  { %369 = vmatprep.subr.bf16.mxu0 %v846_v10  ;;  %v916_v45 = vld [vmem:[%s1187_s3 + $0x48] sm:$0xff]   ;;  %v890_v49 = vld [vmem:[%s1185_s1 + $0xd4] ss:$8 sps:$4 sm:$0xff]   ;;  %v922_v58 = vld [vmem:[%s1187_s3 + $0x60] sm:$0xff]  }
  0x11   :  { %421 = vmatpush1.bf16.msra.mxu1 %v880_v21  ;;  %v884_v46 = vld [vmem:[%s1185_s1 + $0xc4] ss:$8 sps:$4 sm:$0xff]   ;;  %v887_v47 = vld [vmem:[%s1185_s1 + $0xc0] ss:$8 sps:$4 sm:$0xff]   ;;  %v918_v50 = vld [vmem:[%s1187_s3 + $0x50] sm:$0xff]  }
  0x12   :  { %422 = vmatprep.subr.bf16.mxu1 %v882_v23  ;;  %v917_v48 = vld [vmem:[%s1187_s3 + $0x8] sm:$0xff]   ;;  %v919_v52 = vld [vmem:[%s1187_s3 + $0x10] sm:$0xff]   ;;  %v920_v54 = vld [vmem:[%s1187_s3 + $0x58] sm:$0xff]  }
  0x13   :  { %370 = vmatpush1.bf16.msra.mxu0 %v848_v13  ;;  %v912_v51 = vld [vmem:[%s1186_s0 + $0x20] ss:$12 sps:$4 sm:$0xff]   ;;  %v921_v56 = vld [vmem:[%s1187_s3 + $0x18] sm:$0xff]   ;;  %v926_v3 = vld [vmem:[%s1187_s3 + $0x70] sm:$0xff]  }
  0x14   :  { %371 = vmatprep.subr.bf16.mxu0 %v849_v14  ;;  %v896_v55 = vld [vmem:[%s1185_s1 + $0xe4] ss:$8 sps:$4 sm:$0xff]   ;;  %v899_v57 = vld [vmem:[%s1185_s1 + $0xe0] ss:$8 sps:$4 sm:$0xff]   ;;  %v902_v59 = vld [vmem:[%s1185_s1 + $0xf4] ss:$8 sps:$4 sm:$0xff]  }
  0x15   :  { %423 = vmatpush1.bf16.msra.mxu1 %v886_v26  ;;  %v923_v60 = vld [vmem:[%s1187_s3 + $0x20] sm:$0xff]   ;;  %v905_v61 = vld [vmem:[%s1185_s1 + $0xf0] ss:$8 sps:$4 sm:$0xff]   ;;  %v910_v63 = vld [vmem:[%s1186_s0 + $0x1c] ss:$12 sps:$4 sm:$0xff]   ;;  %v80_v14 = vshrl.u32 %v79_v11, 7 }
  0x16   :  { %424 = vmatprep.subr.bf16.mxu1 %v888_v27  ;;  %v906_v62 = vld [vmem:[%s1186_s0] ss:$12 sps:$4 sm:$0xff]   ;;  %v913_v0 = vld [vmem:[%s1186_s0 + $0x18] ss:$12 sps:$4 sm:$0xff]   ;;  %v927_v4 = vld [vmem:[%s1187_s3 + $0x30] sm:$0xff]  }
  0x17   :  { %372 = vmatpush1.bf16.msra.mxu0 %v851_v17  ;;  %v925_v2 = vld [vmem:[%s1187_s3 + $0x28] sm:$0xff]   ;;  %v928_v5 = vld [vmem:[%s1187_s3 + $0x78] sm:$0xff]   ;;  %v81_v17 = vsub.s32 0, %v80_v14  ;;  %v77_v18 = vld [vmem:[%s1188_s2] sm:$0x3]  ;;  %v85_v19 = vsub.s32 1, %v80_v14 }
  0x18   :  { %373 = vmatprep.subr.bf16.mxu0 %v852_v20  ;;  %v929_v6 = vld [vmem:[%s1187_s3 + $0x38] sm:$0xff]  }
  0x19   :  { %425 = vmatpush1.bf16.msra.mxu1 %v892_v29  ;;  %v82_v20 = vrot.slane %v77_v18, %v81_v17  ;;  %v86_v21 = vrot.slane %v77_v18, %v85_v19 }
  0x1a   :  { %426 = vmatprep.subr.bf16.mxu1 %v894_v31 }
  0x1b   :  { %374 = vmatpush1.bf16.msra.mxu0 %v854_v22 }
  0x1c   :  { %375 = vmatprep.subr.bf16.mxu0 %v855_v24 }
  0x1d   :  { %427 = vmatpush1.bf16.msra.mxu1 %v898_v35 }
  0x1e   :  { %428 = vmatprep.subr.bf16.mxu1 %v900_v36 }
  0x1f   :  { %376 = vmatpush1.bf16.msra.mxu0 %v857_v25 }
  0x20   :  { %377 = vmatprep.subr.bf16.mxu0 %v860_v28 }
  0x21   :  { %429 = vmatpush1.bf16.msra.mxu1 %v904_v39 }
  0x22   :  { %789 = vmatprep.subr.bf16.mxu1 %v914_v40 }
  0x23   :  { %378 = vmatpush1.bf16.msra.mxu0 %v863_v30 }
  0x24   :  { %379 = vmatprep.subr.bf16.mxu0 %v866_v32  ;;  %447 = vmatmul.mubr.bf16.vlgmr.msra.gmra.mrb[0].mxu1 %v909_v43 }
  0x25   :  { %456 = vmatprep.mubr.bf16.mxu1 %v930_v1  ;;  %790 = vmatpush3.bf16.msra.mxu1 %v915_v44  ;;  %v924_v1 = vld [vmem:[%s1187_s3 + $0x68] sm:$0xff]  }
  0x26   :  { %791 = vmatprep.subr.bf16.mxu1 %v916_v45 }
  0x27   :  { %380 = vmatpush1.bf16.msra.mxu0 %v869_v33 }
  0x28   :  { %381 = vmatprep.subr.bf16.mxu0 %v872_v37 }
  0x29   :  { %792 = vmatpush3.bf16.msra.mxu1 %v917_v48 }
  0x2a   :  { %793 = vmatprep.subr.bf16.mxu1 %v918_v50 }
  0x2b   :  { %382 = vmatpush1.bf16.msra.mxu0 %v875_v38 }
  0x2c   :  { %383 = vmatprep.subr.bf16.mxu0 %v878_v41  ;;  %457 = vmatmul.mubr.bf16.gmra.mrb[4].mxu1 %v912_v51 }
  0x2d   :  { %794 = vmatpush3.bf16.msra.mxu1 %v919_v52 }
  0x2e   :  { %795 = vmatprep.subr.bf16.mxu1 %v920_v54 }
  0x2f   :  { %384 = vmatpush1.bf16.msra.mxu0 %v881_v42 }
  0x30   :  { %385 = vmatprep.subr.bf16.mxu0 %v884_v46 }
  0x31   :  { %796 = vmatpush3.bf16.msra.mxu1 %v921_v56 }
  0x32   :  { %797 = vmatprep.subr.bf16.mxu1 %v922_v58 }
  0x33   :  { %386 = vmatpush1.bf16.msra.mxu0 %v887_v47 }
  0x34   :  { %387 = vmatprep.subr.bf16.mxu0 %v890_v49 }
  0x35   :  { %798 = vmatpush3.bf16.msra.mxu1 %v923_v60 }
  0x36   :  { %799 = vmatprep.subr.bf16.mxu1 %v924_v1 }
  0x37   :  { %388 = vmatpush1.bf16.msra.mxu0 %v893_v53 }
  0x38   :  { %389 = vmatprep.subr.bf16.mxu0 %v896_v55 }
  0x39   :  { %800 = vmatpush3.bf16.msra.mxu1 %v925_v2 }
  0x3a   :  { %801 = vmatprep.subr.bf16.mxu1 %v926_v3 }
  0x3b   :  { %390 = vmatpush1.bf16.msra.mxu0 %v899_v57 }
  0x3c   :  { %391 = vmatprep.subr.bf16.mxu0 %v902_v59  ;;  %v753_v59 = vld [vmem:[%s1189_s4] ss:$0 sm:$0xff] }
  0x3d   :  { %802 = vmatpush3.bf16.msra.mxu1 %v927_v4 }
  0x3e   :  { %803 = vmatprep.subr.bf16.mxu1 %v928_v5 }
  0x3f   :  { %392 = vmatpush1.bf16.msra.mxu0 %v905_v61 }
  0x41   :  { %804 = vmatpush3.bf16.msra.mxu1 %v929_v6 }
  0x42   :  { %394 = vmatmul.mubr.bf16.vlgmr.msra.gmra.mrb[0].mxu0 %v906_v62 }
  0x43   :  { %403 = vmatprep.mubr.bf16.mxu0 %v910_v63 }
  0x4a   :  { %404 = vmatmul.mubr.bf16.gmra.mrb[4].mxu0 %v913_v0 }
  0xf7   :  { %v448_v7 = vpop.f32.mrb[0].mxu1 }
  0xf8   :  { %v450_v8 = vpop.f32.mrb[1].mxu1 }
  0xf9   :  { %v452_v9 = vpop.f32.mrb[2].mxu1 }
  0xfa   :  { %v454_v10 = vpop.f32.mrb[3].mxu1 }
  0xff   :  { %v458_v12 = vpop.f32.mrb[4].mxu1 }
 0x100   :  { %v460_v13 = vpop.f32.mrb[5].mxu1 }
 0x101   :  { %v462_v15 = vpop.f32.mrb[6].mxu1 }
 0x102   :  { %v464_v16 = vpop.f32.mrb[7].mxu1 }
 0x115   :  { %v395_v22 = vpop.f32.mrb[0].mxu0 }
 0x116   :  { %v396_v23 = vadd.f32 %v395_v22, %v82_v20  ;;  %v397_v24 = vpop.f32.mrb[1].mxu0 }
 0x117   :  { %v398_v25 = vadd.f32 %v397_v24, %v86_v21  ;;  %v399_v26 = vpop.f32.mrb[2].mxu0 }
 0x118   :  { %v449_v27 = vadd.f32 %v448_v7, %v396_v23  ;;  %v400_v28 = vadd.f32 %v399_v26, %v82_v20  ;;  %v401_v29 = vpop.f32.mrb[3].mxu0 }
 0x119   :  { %v451_v30 = vadd.f32 %v450_v8, %v398_v25  ;;  %v402_v31 = vadd.f32 %v401_v29, %v86_v21 }
 0x11a   :  { %v453_v32 = vadd.f32 %v452_v9, %v400_v28  ;;  %v467_v34 = vmax.f32 %v449_v27, 0.0 }
 0x11b   :  { %v455_v33 = vadd.f32 %v454_v10, %v402_v31  ;;  %v468_v36 = vmax.f32 %v451_v30, 0.0 }
 0x11c   :  { %v469_v35 = vmax.f32 %v453_v32, 0.0 }
 0x11d   :  { %v470_v37 = vmax.f32 %v455_v33, 0.0  ;;  %v405_v38 = vpop.f32.mrb[4].mxu0 }
 0x11e   :  { %v475_v39 = vpack.c.bf16 %v469_v35, %v467_v34  ;;  %v406_v40 = vadd.f32 %v405_v38, %v82_v20  ;;  %v407_v41 = vpop.f32.mrb[5].mxu0 }
 0x11f   :  { %v408_v42 = vadd.f32 %v407_v41, %v86_v21  ;;  %v409_v43 = vpop.f32.mrb[6].mxu0  ;;  %v476_v44 = vpack.c.bf16 %v470_v37, %v468_v36 }
 0x120   :  { %v459_v45 = vadd.f32 %v458_v12, %v406_v40  ;;  %v410_v46 = vadd.f32 %v409_v43, %v82_v20  ;;  %v411_v47 = vpop.f32.mrb[7].mxu0 }
 0x121   :  { %v461_v48 = vadd.f32 %v460_v13, %v408_v42  ;;  %v412_v49 = vadd.f32 %v411_v47, %v86_v21  ;;  %654 = vmatprep.mubr.bf16.mxu1 %v476_v44 }
 0x122   :  { %v463_v50 = vadd.f32 %v462_v15, %v410_v46  ;;  %655 = vmatmul.mubr.bf16.vlgmr.msra.gmra.mrb[8].mxu1 %v475_v39  ;;  %v471_v52 = vmax.f32 %v459_v45, 0.0 }
 0x123   :  { %v465_v51 = vadd.f32 %v464_v16, %v412_v49  ;;  %v472_v54 = vmax.f32 %v461_v48, 0.0 }
 0x124   :  { %v473_v53 = vmax.f32 %v463_v50, 0.0 }
 0x125   :  { %v474_v55 = vmax.f32 %v465_v51, 0.0 }
 0x126   :  { %v477_v56 = vpack.c.bf16 %v473_v53, %v471_v52 }
 0x127   :  { %v478_v57 = vpack.c.bf16 %v474_v55, %v472_v54 }
 0x129   :  { %662 = vmatprep.mubr.bf16.mxu1 %v478_v57 }
 0x12a   :  { %663 = vmatmul.mubr.bf16.gmra.mrb[12].mxu1 %v477_v56 }
 0x1f5   :  { %v805_v58 = vpop.f32.mrb[8].mxu1 }
 0x1f6   :  { %v806_v60 = vpop.f32.mrb[9].mxu1 }
 0x1f7   :  { %v807_v61 = vadd.f32 %v806_v60, %v805_v58  ;;  %v808_v62 = vpop.f32.mrb[10].mxu1 }
 0x1f8   :  { %v809_v63 = vpop.f32.mrb[11].mxu1 }
 0x1f9   :  { %v657_v0 = vadd.f32 %v807_v61, %v753_v59  ;;  %v810_v1 = vadd.f32 %v809_v63, %v808_v62 }
 0x1fb   :  { %v660_v2 = vadd.f32 %v810_v1, %v753_v59  ;;  %v671_v3 = vmax.f32 %v657_v0, 0.0 }
 0x1fd   :  { %v672_v4 = vmax.f32 %v660_v2, 0.0  ;;  %v811_v5 = vpop.f32.mrb[12].mxu1 }
 0x1fe   :  { %v812_v6 = vpop.f32.mrb[13].mxu1 }
 0x1ff   :  { %v781_v7 = vpack.c.bf16 %v672_v4, %v671_v3  ;;  %v813_v8 = vadd.f32 %v812_v6, %v811_v5  ;;  %v814_v9 = vpop.f32.mrb[14].mxu1 }
 0x200   :  { %v815_v10 = vpop.f32.mrb[15].mxu1 }
 0x201   :  { %782 = vst [vmem:[%s1190_s5] sm:$0xff] %v781_v7   ;;  %v665_v11 = vadd.f32 %v813_v8, %v753_v59  ;;  %v816_v12 = vadd.f32 %v815_v10, %v814_v9 }
 0x203   :  { %v668_v13 = vadd.f32 %v816_v12, %v753_v59  ;;  %v673_v14 = vmax.f32 %v665_v11, 0.0 }
 0x205   :  { %v674_v15 = vmax.f32 %v668_v13, 0.0 }
 0x207   :  { %v786_v16 = vpack.c.bf16 %v674_v15, %v673_v14 }
 0x209   :  { %788 = vst [vmem:[%s1190_s5 + $0x8] sm:$0xff] %v786_v16  }

// kernel: pointnet_forward.24
= control target key start
LH: loop header
LB: loop body
LE: loop exit
PB: predicated region body
PF: predicated region fallthrough
CT: control target
= control target key end

     0   :  { %v566_v0 = vmov 0   ;;  %vm140_vm0 = vcmask 31744   ;;  %vm153_vm1 = vcmask 1041408   ;;  %s694_s1 = inlined_call_operand.vmem [shape: bf16[132,128], index: 1, kind: input, shape index: {}]   ;;  %s695_s0 = inlined_call_operand.vmem [shape: bf16[64,132], index: 0, kind: input, shape index: {}]   ;;  %s696_s3 = inlined_call_operand.vmem [shape: bf16[128,128], index: 3, kind: input, shape index: {}]   ;;  %s697_s2 = inlined_call_operand.vmem [shape: f32[1,128], index: 2, kind: input, shape index: {}]   ;;  %s698_s4 = inlined_call_operand.vmem [shape: f32[1,128], index: 4, kind: input, shape index: {}]   ;;  %s699_s5 = inlined_call_operand.vmem [shape: bf16[64,128], index: 5, kind: output, shape index: {}]  }
   0x1   :  { %157 = vmatprep.subr.bf16.mxu0 %v566_v0  ;;  %v537_v1 = vld [vmem:[%s694_s1] sm:$0xff]   ;;  %v538_v2 = vld [vmem:[%s694_s1 + $0x8] sm:$0xff]   ;;  %v539_v3 = vld [vmem:[%s694_s1 + $0x10] sm:$0xff]  }
   0x2   :  { %158 = vmatpush1.bf16.msra.mxu0 %v537_v1  ;;  %v548_v4 = vld [vmem:[%s695_s0 + $0x4] ss:$8 sps:$4 sm:$0xff]   ;;  %v540_v5 = vld [vmem:[%s694_s1 + $0x18] sm:$0xff]   ;;  %v560_v10 = vld [vmem:[%s696_s3 + $0x10] sm:$0xff]  }
   0x3   :  { %159 = vmatprep.subr.bf16.mxu0 %v566_v0  ;;  %448 = vmatprep.mubr.msk.bf16.mxu0 %vm140_vm0, %v548_v4  ;;  %v541_v6 = vld [vmem:[%s694_s1 + $0x20] sm:$0xff]   ;;  %v559_v8 = vld [vmem:[%s696_s3 + $0x8] sm:$0xff]   ;;  %v543_v11 = vld [vmem:[%s694_s1 + $0x30] sm:$0xff]  }
   0x4   :  { %v558_v7 = vld [vmem:[%s696_s3] sm:$0xff]   ;;  %v542_v9 = vld [vmem:[%s694_s1 + $0x28] sm:$0xff]   ;;  %v561_v12 = vld [vmem:[%s696_s3 + $0x18] sm:$0xff]  }
   0x5   :  { %512 = vmatprep.subr.bf16.mxu1 %v558_v7  ;;  %v544_v13 = vld [vmem:[%s694_s1 + $0x38] sm:$0xff]   ;;  %v545_v14 = vld [vmem:[%s694_s1 + $0x40] ss:$0 sps:$4 sm:$0x33]   ;;  %v552_v19 = vld [vmem:[%s695_s0 + $0x24] ss:$8 sps:$4 sm:$0xff]  }
   0x6   :  { %160 = vmatpush1.bf16.msra.mxu0 %v538_v2  ;;  %513 = vmatpush3.bf16.msra.mxu1 %v558_v7  ;;  %v155_v15 = vsel %vm153_vm1, %v545_v14, 0  ;;  %v546_v16 = vld [vmem:[%s695_s0] ss:$8 sps:$4 sm:$0xff]   ;;  %v549_v17 = vld [vmem:[%s695_s0 + $0x14] ss:$8 sps:$4 sm:$0xff]  }
   0x7   :  { %161 = vmatprep.subr.bf16.mxu0 %v566_v0  ;;  %514 = vmatprep.subr.bf16.mxu1 %v559_v8  ;;  %v551_v18 = vld [vmem:[%s695_s0 + $0x10] ss:$8 sps:$4 sm:$0xff]   ;;  %v554_v20 = vld [vmem:[%s695_s0 + $0x20] ss:$8 sps:$4 sm:$0xff]   ;;  %v555_v21 = vld [vmem:[%s695_s0 + $0x34] ss:$8 sps:$4 sm:$0xff]  }
   0x8   :  { %v557_v22 = vld [vmem:[%s695_s0 + $0x30] ss:$8 sps:$4 sm:$0xff]   ;;  %v562_v23 = vld [vmem:[%s696_s3 + $0x20] sm:$0xff]   ;;  %v563_v24 = vld [vmem:[%s696_s3 + $0x28] sm:$0xff]  }
   0x9   :  { %v564_v25 = vld [vmem:[%s696_s3 + $0x30] sm:$0xff]   ;;  %v565_v26 = vld [vmem:[%s696_s3 + $0x38] sm:$0xff]   ;;  %v430_v27 = vld [vmem:[%s697_s2] ss:$0 sm:$0xff] }
   0xa   :  { %162 = vmatpush1.bf16.msra.mxu0 %v539_v3  ;;  %515 = vmatpush3.bf16.msra.mxu1 %v559_v8 }
   0xb   :  { %163 = vmatprep.subr.bf16.mxu0 %v566_v0  ;;  %516 = vmatprep.subr.bf16.mxu1 %v560_v10 }
   0xe   :  { %164 = vmatpush1.bf16.msra.mxu0 %v540_v5  ;;  %517 = vmatpush3.bf16.msra.mxu1 %v560_v10 }
   0xf   :  { %165 = vmatprep.subr.bf16.mxu0 %v566_v0  ;;  %518 = vmatprep.subr.bf16.mxu1 %v561_v12 }
  0x12   :  { %166 = vmatpush1.bf16.msra.mxu0 %v541_v6  ;;  %519 = vmatpush3.bf16.msra.mxu1 %v561_v12 }
  0x13   :  { %167 = vmatprep.subr.bf16.mxu0 %v566_v0  ;;  %520 = vmatprep.subr.bf16.mxu1 %v562_v23 }
  0x16   :  { %168 = vmatpush1.bf16.msra.mxu0 %v542_v9  ;;  %521 = vmatpush3.bf16.msra.mxu1 %v562_v23 }
  0x17   :  { %169 = vmatprep.subr.bf16.mxu0 %v566_v0  ;;  %522 = vmatprep.subr.bf16.mxu1 %v563_v24 }
  0x1a   :  { %170 = vmatpush1.bf16.msra.mxu0 %v543_v11  ;;  %523 = vmatpush3.bf16.msra.mxu1 %v563_v24 }
  0x1b   :  { %171 = vmatprep.subr.bf16.mxu0 %v566_v0  ;;  %524 = vmatprep.subr.bf16.mxu1 %v564_v25 }
  0x1e   :  { %172 = vmatpush1.bf16.msra.mxu0 %v544_v13  ;;  %525 = vmatpush3.bf16.msra.mxu1 %v564_v25 }
  0x1f   :  { %173 = vmatprep.subr.bf16.mxu0 %v566_v0  ;;  %526 = vmatprep.subr.bf16.mxu1 %v565_v26  ;;  %v452_v0 = vld [vmem:[%s698_s4] ss:$0 sm:$0xff] }
  0x22   :  { %174 = vmatpush1.bf16.msra.mxu0 %v155_v15  ;;  %527 = vmatpush3.bf16.msra.mxu1 %v565_v26 }
  0x25   :  { %190 = vmatmul.mubr.bf16.vlgmr.msra.gmra.mrb[0].mxu0 %v546_v16 }
  0x26   :  { %449 = vmatprep.mubr.msk.bf16.mxu0 %vm140_vm0, %v549_v17 }
  0x2d   :  { %198 = vmatmul.mubr.bf16.gmra.mrb[4].mxu0 %v551_v18 }
  0x2e   :  { %450 = vmatprep.mubr.msk.bf16.mxu0 %vm140_vm0, %v552_v19 }
  0x35   :  { %206 = vmatmul.mubr.bf16.gmra.mrb[8].mxu0 %v554_v20 }
  0x36   :  { %451 = vmatprep.mubr.msk.bf16.mxu0 %vm140_vm0, %v555_v21 }
  0x3d   :  { %214 = vmatmul.mubr.bf16.gmra.mrb[12].mxu0 %v557_v22 }
  0xf8   :  { %v191_v28 = vpop.f32.mrb[0].mxu0 }
  0xf9   :  { %v192_v29 = vadd.f32 %v430_v27, %v191_v28  ;;  %v193_v30 = vpop.f32.mrb[1].mxu0 }
  0xfa   :  { %v194_v31 = vpop.f32.mrb[2].mxu0 }
  0xfb   :  { %v195_v32 = vadd.f32 %v430_v27, %v194_v31  ;;  %v196_v33 = vpop.f32.mrb[3].mxu0  ;;  %v222_v34 = vmax.f32 %v192_v29, 0.0 }
  0xfd   :  { %v223_v35 = vmax.f32 %v195_v32, 0.0 }
  0xff   :  { %v230_v36 = vpack.c.bf16 %v223_v35, %v222_v34 }
 0x100   :  { %v199_v37 = vpop.f32.mrb[4].mxu0 }
 0x101   :  { %v200_v38 = vadd.f32 %v430_v27, %v199_v37  ;;  %v201_v39 = vpop.f32.mrb[5].mxu0  ;;  %528 = vmatprep.mubr.bf16.mxu1 %v230_v36 }
 0x102   :  { %v202_v40 = vpop.f32.mrb[6].mxu0 }
 0x103   :  { %v203_v41 = vadd.f32 %v430_v27, %v202_v40  ;;  %v204_v42 = vpop.f32.mrb[7].mxu0  ;;  %v224_v43 = vmax.f32 %v200_v38, 0.0 }
 0x105   :  { %v225_v44 = vmax.f32 %v203_v41, 0.0 }
 0x107   :  { %v231_v45 = vpack.c.bf16 %v225_v44, %v224_v43 }
 0x108   :  { %v207_v46 = vpop.f32.mrb[8].mxu0 }
 0x109   :  { %v208_v47 = vadd.f32 %v430_v27, %v207_v46  ;;  %v209_v48 = vpop.f32.mrb[9].mxu0  ;;  %529 = vmatmul.mubr.bf16.vlgmr.msra.gmra.mrb[0].mxu1 %v231_v45 }
 0x10a   :  { %v210_v49 = vpop.f32.mrb[10].mxu0 }
 0x10b   :  { %v211_v50 = vadd.f32 %v430_v27, %v210_v49  ;;  %v212_v51 = vpop.f32.mrb[11].mxu0  ;;  %v226_v52 = vmax.f32 %v208_v47, 0.0 }
 0x10d   :  { %v227_v53 = vmax.f32 %v211_v50, 0.0 }
 0x10f   :  { %v232_v54 = vpack.c.bf16 %v227_v53, %v226_v52 }
 0x110   :  { %v215_v55 = vpop.f32.mrb[12].mxu0 }
 0x111   :  { %v216_v56 = vadd.f32 %v430_v27, %v215_v55  ;;  %v217_v57 = vpop.f32.mrb[13].mxu0  ;;  %532 = vmatprep.mubr.bf16.mxu1 %v232_v54 }
 0x112   :  { %v218_v58 = vpop.f32.mrb[14].mxu0 }
 0x113   :  { %v219_v59 = vadd.f32 %v430_v27, %v218_v58  ;;  %v220_v60 = vpop.f32.mrb[15].mxu0  ;;  %v228_v61 = vmax.f32 %v216_v56, 0.0 }
 0x115   :  { %v229_v62 = vmax.f32 %v219_v59, 0.0 }
 0x117   :  { %v233_v63 = vpack.c.bf16 %v229_v62, %v228_v61 }
 0x119   :  { %533 = vmatmul.mubr.bf16.gmra.mrb[4].mxu1 %v233_v63 }
 0x1dc   :  { %v530_v1 = vpop.f32.mrb[0].mxu1 }
 0x1dd   :  { %v356_v2 = vadd.f32 %v530_v1, %v452_v0  ;;  %v347_v3 = vpop.f32.mrb[1].mxu1 }
 0x1de   :  { %v348_v4 = vadd.f32 %v452_v0, %v347_v3  ;;  %v531_v5 = vpop.f32.mrb[2].mxu1 }
 0x1df   :  { %v359_v6 = vadd.f32 %v531_v5, %v452_v0  ;;  %v350_v7 = vpop.f32.mrb[3].mxu1  ;;  %v380_v9 = vmax.f32 %v356_v2, 0.0 }
 0x1e0   :  { %v351_v8 = vadd.f32 %v452_v0, %v350_v7  ;;  %v378_v11 = vmax.f32 %v348_v4, 0.0 }
 0x1e1   :  { %v381_v10 = vmax.f32 %v359_v6, 0.0 }
 0x1e2   :  { %v379_v12 = vmax.f32 %v351_v8, 0.0 }
 0x1e3   :  { %v485_v13 = vpack.c.bf16 %v381_v10, %v380_v9 }
 0x1e4   :  { %v480_v14 = vpack.c.bf16 %v379_v12, %v378_v11 }
 0x1e5   :  { %497 = vst [vmem:[%s699_s5 + $0x8] sm:$0xff] %v485_v13  }
 0x1e6   :  { %481 = vst [vmem:[%s699_s5] sm:$0xff] %v480_v14  }
 0x1ec   :  { %v534_v15 = vpop.f32.mrb[4].mxu1 }
 0x1ed   :  { %v372_v16 = vadd.f32 %v534_v15, %v452_v0  ;;  %v363_v17 = vpop.f32.mrb[5].mxu1 }
 0x1ee   :  { %v364_v18 = vadd.f32 %v452_v0, %v363_v17  ;;  %v535_v19 = vpop.f32.mrb[6].mxu1 }
 0x1ef   :  { %v375_v20 = vadd.f32 %v535_v19, %v452_v0  ;;  %v366_v21 = vpop.f32.mrb[7].mxu1  ;;  %v384_v23 = vmax.f32 %v372_v16, 0.0 }
 0x1f0   :  { %v367_v22 = vadd.f32 %v452_v0, %v366_v21  ;;  %v382_v25 = vmax.f32 %v364_v18, 0.0 }
 0x1f1   :  { %v385_v24 = vmax.f32 %v375_v20, 0.0 }
 0x1f2   :  { %v383_v26 = vmax.f32 %v367_v22, 0.0 }
 0x1f3   :  { %v495_v27 = vpack.c.bf16 %v385_v24, %v384_v23 }
 0x1f4   :  { %v490_v28 = vpack.c.bf16 %v383_v26, %v382_v25 }
 0x1f5   :  { %499 = vst [vmem:[%s699_s5 + $0x18] sm:$0xff] %v495_v27  }
 0x1f6   :  { %498 = vst [vmem:[%s699_s5 + $0x10] sm:$0xff] %v490_v28  }

// kernel: pointnet_forward.25
= control target key start
LH: loop header
LB: loop body
LE: loop exit
PB: predicated region body
PF: predicated region fallthrough
CT: control target
= control target key end

     0   :  { %s650_s1 = inlined_call_operand.vmem [shape: bf16[128,128], index: 1, kind: input, shape index: {}]   ;;  %s651_s0 = inlined_call_operand.vmem [shape: bf16[64,128], index: 0, kind: input, shape index: {}]   ;;  %s652_s3 = inlined_call_operand.vmem [shape: bf16[128,128], index: 3, kind: input, shape index: {}]   ;;  %s653_s2 = inlined_call_operand.vmem [shape: f32[1,128], index: 2, kind: input, shape index: {}]   ;;  %s654_s4 = inlined_call_operand.vmem [shape: f32[1,128], index: 4, kind: input, shape index: {}]   ;;  %s655_s5 = inlined_call_operand.vmem [shape: bf16[64,128], index: 5, kind: output, shape index: {}]  }
   0x1   :  { %v522_v0 = vld [vmem:[%s650_s1] sm:$0xff]   ;;  %v523_v1 = vld [vmem:[%s650_s1 + $0x8] sm:$0xff]   ;;  %v524_v2 = vld [vmem:[%s650_s1 + $0x10] sm:$0xff]  }
   0x2   :  { %474 = vmatprep.subr.bf16.mxu0 %v522_v0  ;;  %v525_v3 = vld [vmem:[%s650_s1 + $0x18] sm:$0xff]   ;;  %v530_v4 = vld [vmem:[%s651_s0] sm:$0xff]   ;;  %v535_v7 = vld [vmem:[%s652_s3 + $0x8] sm:$0xff]  }
   0x3   :  { %475 = vmatpush3.bf16.msra.mxu0 %v522_v0  ;;  %490 = vmatprep.mubr.bf16.mxu0 %v530_v4  ;;  %v526_v5 = vld [vmem:[%s650_s1 + $0x20] sm:$0xff]   ;;  %v527_v8 = vld [vmem:[%s650_s1 + $0x28] sm:$0xff]   ;;  %v536_v9 = vld [vmem:[%s652_s3 + $0x10] sm:$0xff]  }
   0x4   :  { %476 = vmatprep.subr.bf16.mxu0 %v523_v1  ;;  %v534_v6 = vld [vmem:[%s652_s3] sm:$0xff]   ;;  %v528_v10 = vld [vmem:[%s650_s1 + $0x30] sm:$0xff]   ;;  %v537_v11 = vld [vmem:[%s652_s3 + $0x18] sm:$0xff]  }
   0x5   :  { %498 = vmatprep.subr.bf16.mxu1 %v534_v6  ;;  %v529_v12 = vld [vmem:[%s650_s1 + $0x38] sm:$0xff]   ;;  %v538_v13 = vld [vmem:[%s652_s3 + $0x20] sm:$0xff]   ;;  %v539_v14 = vld [vmem:[%s652_s3 + $0x28] sm:$0xff]  }
   0x6   :  { %499 = vmatpush3.bf16.msra.mxu1 %v534_v6  ;;  %v531_v15 = vld [vmem:[%s651_s0 + $0x8] sm:$0xff]   ;;  %v532_v16 = vld [vmem:[%s651_s0 + $0x10] sm:$0xff]   ;;  %v533_v17 = vld [vmem:[%s651_s0 + $0x18] sm:$0xff]  }
   0x7   :  { %477 = vmatpush3.bf16.msra.mxu0 %v523_v1  ;;  %500 = vmatprep.subr.bf16.mxu1 %v535_v7  ;;  %v540_v18 = vld [vmem:[%s652_s3 + $0x30] sm:$0xff]   ;;  %v541_v19 = vld [vmem:[%s652_s3 + $0x38] sm:$0xff]   ;;  %v389_v20 = vld [vmem:[%s653_s2] ss:$0 sm:$0xff] }
   0x8   :  { %478 = vmatprep.subr.bf16.mxu0 %v524_v2  ;;  %v402_v50 = vld [vmem:[%s654_s4] ss:$0 sm:$0xff] }
   0xa   :  { %501 = vmatpush3.bf16.msra.mxu1 %v535_v7 }
   0xb   :  { %479 = vmatpush3.bf16.msra.mxu0 %v524_v2  ;;  %502 = vmatprep.subr.bf16.mxu1 %v536_v9 }
   0xc   :  { %480 = vmatprep.subr.bf16.mxu0 %v525_v3 }
   0xe   :  { %503 = vmatpush3.bf16.msra.mxu1 %v536_v9 }
   0xf   :  { %481 = vmatpush3.bf16.msra.mxu0 %v525_v3  ;;  %504 = vmatprep.subr.bf16.mxu1 %v537_v11 }
  0x10   :  { %482 = vmatprep.subr.bf16.mxu0 %v526_v5 }
  0x12   :  { %505 = vmatpush3.bf16.msra.mxu1 %v537_v11 }
  0x13   :  { %483 = vmatpush3.bf16.msra.mxu0 %v526_v5  ;;  %506 = vmatprep.subr.bf16.mxu1 %v538_v13 }
  0x14   :  { %484 = vmatprep.subr.bf16.mxu0 %v527_v8 }
  0x16   :  { %507 = vmatpush3.bf16.msra.mxu1 %v538_v13 }
  0x17   :  { %485 = vmatpush3.bf16.msra.mxu0 %v527_v8  ;;  %508 = vmatprep.subr.bf16.mxu1 %v539_v14 }
  0x18   :  { %486 = vmatprep.subr.bf16.mxu0 %v528_v10 }
  0x1a   :  { %509 = vmatpush3.bf16.msra.mxu1 %v539_v14 }
  0x1b   :  { %487 = vmatpush3.bf16.msra.mxu0 %v528_v10  ;;  %510 = vmatprep.subr.bf16.mxu1 %v540_v18 }
  0x1c   :  { %488 = vmatprep.subr.bf16.mxu0 %v529_v12 }
  0x1e   :  { %511 = vmatpush3.bf16.msra.mxu1 %v540_v18 }
  0x1f   :  { %489 = vmatpush3.bf16.msra.mxu0 %v529_v12  ;;  %512 = vmatprep.subr.bf16.mxu1 %v541_v19 }
  0x22   :  { %491 = vmatmul.mubr.bf16.vlgmr.msra.gmra.mrb[0].mxu0 %v531_v15  ;;  %513 = vmatpush3.bf16.msra.mxu1 %v541_v19 }
  0x23   :  { %494 = vmatprep.mubr.bf16.mxu0 %v532_v16 }
  0x2a   :  { %495 = vmatmul.mubr.bf16.gmra.mrb[4].mxu0 %v533_v17 }
  0xf5   :  { %v492_v21 = vpop.f32.mrb[0].mxu0 }
  0xf6   :  { %v167_v22 = vadd.f32 %v492_v21, %v389_v20  ;;  %v158_v23 = vpop.f32.mrb[1].mxu0 }
  0xf7   :  { %v159_v24 = vadd.f32 %v389_v20, %v158_v23  ;;  %v493_v25 = vpop.f32.mrb[2].mxu0 }
  0xf8   :  { %v170_v26 = vadd.f32 %v493_v25, %v389_v20  ;;  %v161_v27 = vpop.f32.mrb[3].mxu0  ;;  %v191_v29 = vmax.f32 %v167_v22, 0.0 }
  0xf9   :  { %v162_v28 = vadd.f32 %v389_v20, %v161_v27  ;;  %v189_v31 = vmax.f32 %v159_v24, 0.0 }
  0xfa   :  { %v192_v30 = vmax.f32 %v170_v26, 0.0 }
  0xfb   :  { %v190_v32 = vmax.f32 %v162_v28, 0.0 }
  0xfc   :  { %v198_v33 = vpack.c.bf16 %v192_v30, %v191_v29 }
  0xfd   :  { %v496_v34 = vpop.f32.mrb[4].mxu0  ;;  %v197_v35 = vpack.c.bf16 %v190_v32, %v189_v31 }
  0xfe   :  { %v183_v36 = vadd.f32 %v496_v34, %v389_v20  ;;  %v174_v37 = vpop.f32.mrb[5].mxu0 }
  0xff   :  { %v175_v38 = vadd.f32 %v389_v20, %v174_v37  ;;  %v497_v39 = vpop.f32.mrb[6].mxu0  ;;  %514 = vmatprep.mubr.bf16.mxu1 %v197_v35 }
 0x100   :  { %v186_v40 = vadd.f32 %v497_v39, %v389_v20  ;;  %v177_v41 = vpop.f32.mrb[7].mxu0  ;;  %515 = vmatmul.mubr.bf16.vlgmr.msra.gmra.mrb[0].mxu1 %v198_v33  ;;  %v195_v43 = vmax.f32 %v183_v36, 0.0 }
 0x101   :  { %v178_v42 = vadd.f32 %v389_v20, %v177_v41  ;;  %v193_v45 = vmax.f32 %v175_v38, 0.0 }
 0x102   :  { %v196_v44 = vmax.f32 %v186_v40, 0.0 }
 0x103   :  { %v194_v46 = vmax.f32 %v178_v42, 0.0 }
 0x104   :  { %v200_v47 = vpack.c.bf16 %v196_v44, %v195_v43 }
 0x105   :  { %v199_v48 = vpack.c.bf16 %v194_v46, %v193_v45 }
 0x107   :  { %518 = vmatprep.mubr.bf16.mxu1 %v199_v48 }
 0x108   :  { %519 = vmatmul.mubr.bf16.gmra.mrb[4].mxu1 %v200_v47 }
 0x1d3   :  { %v516_v49 = vpop.f32.mrb[0].mxu1 }
 0x1d4   :  { %v314_v51 = vpop.f32.mrb[1].mxu1  ;;  %v323_v53 = vadd.f32 %v516_v49, %v402_v50 }
 0x1d5   :  { %v517_v52 = vpop.f32.mrb[2].mxu1  ;;  %v315_v56 = vadd.f32 %v402_v50, %v314_v51 }
 0x1d6   :  { %v326_v54 = vadd.f32 %v517_v52, %v402_v50  ;;  %v317_v55 = vpop.f32.mrb[3].mxu1 }
 0x1d7   :  { %v318_v57 = vadd.f32 %v402_v50, %v317_v55 }
 0x1d8   :  { %v435_v58 = vpack.c.bf16 %v326_v54, %v323_v53 }
 0x1d9   :  { %v430_v59 = vpack.c.bf16 %v318_v57, %v315_v56 }
 0x1da   :  { %447 = vst [vmem:[%s655_s5 + $0x8] sm:$0xff] %v435_v58  }
 0x1db   :  { %431 = vst [vmem:[%s655_s5] sm:$0xff] %v430_v59   ;;  %v520_v60 = vpop.f32.mrb[4].mxu1 }
 0x1dc   :  { %v330_v61 = vpop.f32.mrb[5].mxu1  ;;  %v339_v63 = vadd.f32 %v520_v60, %v402_v50 }
 0x1dd   :  { %v521_v62 = vpop.f32.mrb[6].mxu1  ;;  %v331_v2 = vadd.f32 %v402_v50, %v330_v61 }
 0x1de   :  { %v342_v0 = vadd.f32 %v521_v62, %v402_v50  ;;  %v333_v1 = vpop.f32.mrb[7].mxu1 }
 0x1df   :  { %v334_v3 = vadd.f32 %v402_v50, %v333_v1 }
 0x1e0   :  { %v445_v4 = vpack.c.bf16 %v342_v0, %v339_v63 }
 0x1e1   :  { %v440_v5 = vpack.c.bf16 %v334_v3, %v331_v2 }
 0x1e2   :  { %449 = vst [vmem:[%s655_s5 + $0x18] sm:$0xff] %v445_v4  }
 0x1e3   :  { %448 = vst [vmem:[%s655_s5 + $0x10] sm:$0xff] %v440_v5  }

</bundles_post_ra>
